<compile_context>
chip_gen: v7x
topology: tpu7x:2x2x1
jax: 0.10.0
libtpu: 0.0.40
codegen_flags: <defaults>
</compile_context>

<pallas_src>
import functools

import jax
import jax.numpy as jnp
from jax.experimental import pallas as pl
from jax.experimental.pallas import tpu as pltpu

VMEM_LIMIT_BYTES = 32 * 1024 * 1024   # >= default scoped VMEM on v5e/v6e/v7x


# ----------------------------------------------------------------------------
# Pallas kernels
# ----------------------------------------------------------------------------
def _conv_pool_kernel(p_ref, w_ref, b_ref, o_ref):
    """Fused conv (im2col matmul) + 2x2 max-pool + bias + ReLU.

    p_ref : (4, TM, K) bf16  -- patches for the 4 positions of each pool window
    w_ref : (K, Cout)  bf16
    b_ref : (1, Cout)  f32
    o_ref : (TM, Cout) bf16  -- pooled activations
    """
    w = w_ref[...]
    # Running max over the 4 window matmuls: one live f32 accumulator.
    acc = jnp.dot(p_ref[0], w, preferred_element_type=jnp.float32)
    for j in range(1, 4):
        acc = jnp.maximum(acc, jnp.dot(p_ref[j], w,
                                       preferred_element_type=jnp.float32))
    # Bias + ReLU once, after the max (bias is per-channel, ReLU is monotone).
    o_ref[...] = jnp.maximum(acc + b_ref[...], 0.0).astype(o_ref.dtype)


def _conv2_fc_kernel(p_ref, w2_ref, b2_ref, wf1_ref, bf1_ref, wf2_ref, bf2_ref,
                     wf3_ref, bf3_ref, o_ref, *, batch, n_pos, cout):
    """Fused conv2(+pool+bias+ReLU) -> flatten -> fc1+ReLU -> fc2+ReLU -> fc3.

    p_ref rows are ordered (p, q, b): rows [pq*batch:(pq+1)*batch] hold the
    pooled conv2 result of spatial position pq for every batch element, so the
    flatten is expressed as 25 aligned per-position matmuls (no reshape).
    """
    w2 = w2_ref[...]
    acc = jnp.dot(p_ref[0], w2, preferred_element_type=jnp.float32)
    for j in range(1, 4):
        acc = jnp.maximum(acc, jnp.dot(p_ref[j], w2,
                                       preferred_element_type=jnp.float32))
    pooled = jnp.maximum(acc + b2_ref[...], 0.0)      # (n_pos*batch, cout) f32

    # fc1: torch's NCHW flatten order is absorbed into wf1's row order (pq, c).
    h = jnp.zeros((batch, wf1_ref.shape[1]), jnp.float32)
    for pq in range(n_pos):
        lhs = pooled[pq * batch:(pq + 1) * batch, :].astype(jnp.bfloat16)
        rhs = wf1_ref[pq * cout:(pq + 1) * cout, :]
        h = h + jnp.dot(lhs, rhs, preferred_element_type=jnp.float32)
    h = jnp.maximum(h + bf1_ref[...], 0.0).astype(jnp.bfloat16)

    h = jnp.dot(h, wf2_ref[...], preferred_element_type=jnp.float32)
    h = jnp.maximum(h + bf2_ref[...], 0.0).astype(jnp.bfloat16)

    h = jnp.dot(h, wf3_ref[...], preferred_element_type=jnp.float32)
    o_ref[...] = (h + bf3_ref[...]).astype(o_ref.dtype)


# ----------------------------------------------------------------------------
# XLA-side im2col glue (fused by XLA with the NHWC/bf16 cast)
# ----------------------------------------------------------------------------
def _pool_window_patches(x_nhwc, k, hp, wp, row_order):
    """Patches for the 4 positions of each 2x2 pool window: (4, M, k*k*Cin).

    row_order "batch"    -> rows ordered (b, p, q)
    row_order "position" -> rows ordered (p, q, b)  (for the fused conv2+fc)
    """
    B, _, _, cin = x_nhwc.shape
    K = k * k * cin

    def one(dh, dw):
        cols = []
        for kh in range(k):
            for kw in range(k):
                s = x_nhwc[:, dh + kh::2, dw + kw::2, :][:, :hp, :wp, :]
                cols.append(s)                         # (B, hp, wp, Cin)
        p = jnp.stack(cols, axis=3)                    # (B, hp, wp, k*k, Cin)
        if row_order == "position":
            p = jnp.transpose(p, (1, 2, 0, 3, 4))      # (hp, wp, B, k*k, Cin)
        return p.reshape(B * hp * wp, K)

    return jnp.stack([one(0, 0), one(0, 1), one(1, 0), one(1, 1)], axis=0)


# ----------------------------------------------------------------------------
# Pallas wrappers
# ----------------------------------------------------------------------------
def conv1_stage(x_nhwc, w_mat, b_row, *, k=5):
    """conv1 + ReLU + 2x2/2 max-pool.  x_nhwc: (B,H,W,Cin) bf16."""
    B, H, W, Cin = x_nhwc.shape
    Hp, Wp = (H - k + 1) // 2, (W - k + 1) // 2
    Kpad, Cout = w_mat.shape
    K = k * k * Cin
    Mp = B * Hp * Wp

    patches = _pool_window_patches(x_nhwc, k, Hp, Wp, "batch")
    if Kpad != K:                                      # lane-align K (75 -> 128)
        patches = jnp.pad(patches, ((0, 0), (0, 0), (0, Kpad - K)))
    patches = patches.astype(jnp.bfloat16)

    # 2 equal M-blocks: no ragged tail (v5e/v6e) and 2 parallel points (v7x).
    tm = Mp // 2 if (Mp % 16 == 0) else Mp
    grid = (Mp // tm,)
    cost = pl.CostEstimate(
        flops=2 * 4 * Mp * Kpad * Cout, transcendentals=0,
        bytes_accessed=patches.size * 2 + w_mat.size * 2 + b_row.size * 4
        + Mp * Cout * 2)

    out = pl.pallas_call(
        _conv_pool_kernel,
        out_shape=jax.ShapeDtypeStruct((Mp, Cout), jnp.bfloat16),
        grid=grid,
        in_specs=[
            pl.BlockSpec((4, tm, Kpad), lambda i: (0, i, 0)),
            pl.BlockSpec((Kpad, Cout), lambda i: (0, 0)),
            pl.BlockSpec((1, Cout), lambda i: (0, 0)),
        ],
        out_specs=pl.BlockSpec((tm, Cout), lambda i: (i, 0)),
        compiler_params=pltpu.CompilerParams(
            dimension_semantics=("parallel",),
            vmem_limit_bytes=VMEM_LIMIT_BYTES),
        cost_estimate=cost,
    )(patches, w_mat, b_row)
    return out.reshape(B, Hp, Wp, Cout)


def conv2_fc_stage(x_nhwc, prep, *, k=5):
    """Fused conv2 + ReLU + pool + flatten + fc1/fc2/fc3 in one pallas_call."""
    B, H, W, Cin = x_nhwc.shape
    Hp, Wp = (H - k + 1) // 2, (W - k + 1) // 2
    Kpad, Cout = prep["conv2_w"].shape
    K = k * k * Cin
    n_pos = Hp * Wp
    Mp = n_pos * B

    patches = _pool_window_patches(x_nhwc, k, Hp, Wp, "position")
    if Kpad != K:                                      # lane-align K (400 -> 512)
        patches = jnp.pad(patches, ((0, 0), (0, 0), (0, Kpad - K)))
    patches = patches.astype(jnp.bfloat16)

    wf1, bf1 = prep["fc1_w"], prep["fc1_b"]
    wf2, bf2 = prep["fc2_w"], prep["fc2_b"]
    wf3, bf3 = prep["fc3_w"], prep["fc3_b"]
    H1, H2, Nout = wf1.shape[1], wf2.shape[1], wf3.shape[1]

    cost = pl.CostEstimate(
        flops=2 * 4 * Mp * Kpad * Cout
        + 2 * B * (wf1.shape[0] * H1 + H1 * H2 + H2 * Nout),
        transcendentals=0,
        bytes_accessed=patches.size * 2
        + (prep["conv2_w"].size + wf1.size + wf2.size + wf3.size) * 2
        + B * Nout * 4)

    kernel = functools.partial(_conv2_fc_kernel, batch=B, n_pos=n_pos, cout=Cout)
    return pl.pallas_call(
        kernel,
        out_shape=jax.ShapeDtypeStruct((B, Nout), jnp.float32),
        grid=(1,),
        in_specs=[
            pl.BlockSpec((4, Mp, Kpad), lambda i: (0, 0, 0)),
            pl.BlockSpec((Kpad, Cout), lambda i: (0, 0)),
            pl.BlockSpec((1, Cout), lambda i: (0, 0)),
            pl.BlockSpec((n_pos * Cout, H1), lambda i: (0, 0)),
            pl.BlockSpec((1, H1), lambda i: (0, 0)),
            pl.BlockSpec((H1, H2), lambda i: (0, 0)),
            pl.BlockSpec((1, H2), lambda i: (0, 0)),
            pl.BlockSpec((H2, Nout), lambda i: (0, 0)),
            pl.BlockSpec((1, Nout), lambda i: (0, 0)),
        ],
        out_specs=pl.BlockSpec((B, Nout), lambda i: (0, 0)),
        compiler_params=pltpu.CompilerParams(
            dimension_semantics=("arbitrary",),
            vmem_limit_bytes=VMEM_LIMIT_BYTES),
        cost_estimate=cost,
    )(patches, prep["conv2_w"], prep["conv2_b"], wf1, bf1, wf2, bf2, wf3, bf3)


# ----------------------------------------------------------------------------
# Parameter initialization (PyTorch-style uniform fan-in init, torch layouts)
# ----------------------------------------------------------------------------
def _uniform(key, shape, fan_in):
    bound = 1.0 / jnp.sqrt(jnp.float32(fan_in))
    return jax.random.uniform(key, shape, jnp.float32, -bound, bound)


def init_params(key):
    ks = jax.random.split(key, 10)
    p = {}
    p["conv1_w"] = _uniform(ks[0], (16, 3, 5, 5), 3 * 5 * 5)
    p["conv1_b"] = _uniform(ks[1], (16,), 3 * 5 * 5)
    p["conv2_w"] = _uniform(ks[2], (32, 16, 5, 5), 16 * 5 * 5)
    p["conv2_b"] = _uniform(ks[3], (32,), 16 * 5 * 5)
    p["fc1_w"] = _uniform(ks[4], (120, 32 * 5 * 5), 32 * 5 * 5)  # torch (out,in)
    p["fc1_b"] = _uniform(ks[5], (120,), 32 * 5 * 5)
    p["fc2_w"] = _uniform(ks[6], (84, 120), 120)
    p["fc2_b"] = _uniform(ks[7], (84,), 120)
    p["fc3_w"] = _uniform(ks[8], (10, 84), 84)
    p["fc3_b"] = _uniform(ks[9], (10,), 84)
    return p


def prepare_params(p):
    """One-time layout work (outside jit): transpose/permute/pad/cast weights."""
    prep = {}
    # conv1: (16,3,5,5) -> rows (kh,kw,ci) -> (75,16) -> K pad to 128
    w = jnp.transpose(p["conv1_w"], (2, 3, 1, 0)).reshape(75, 16)
    prep["conv1_w"] = jnp.pad(w, ((0, 128 - 75), (0, 0))).astype(jnp.bfloat16)
    prep["conv1_b"] = p["conv1_b"].reshape(1, 16).astype(jnp.float32)
    # conv2: (32,16,5,5) -> (400,32) -> K pad to 512
    w = jnp.transpose(p["conv2_w"], (2, 3, 1, 0)).reshape(400, 32)
    prep["conv2_w"] = jnp.pad(w, ((0, 512 - 400), (0, 0))).astype(jnp.bfloat16)
    prep["conv2_b"] = p["conv2_b"].reshape(1, 32).astype(jnp.float32)
    # fc1: absorb torch NCHW flatten (c,ph,pw) -> rows (ph,pw,c); pad out 120->128
    w1 = p["fc1_w"].reshape(120, 32, 5, 5)
    w1 = jnp.transpose(w1, (2, 3, 1, 0)).reshape(800, 120)
    prep["fc1_w"] = jnp.pad(w1, ((0, 0), (0, 8))).astype(jnp.bfloat16)
    prep["fc1_b"] = jnp.pad(p["fc1_b"], (0, 8)).reshape(1, 128).astype(jnp.float32)
    # fc2: (84,120) -> (120,84) -> pad to (128,128)   (zero rows/cols: no effect)
    w2 = jnp.pad(p["fc2_w"].T, ((0, 8), (0, 44)))
    prep["fc2_w"] = w2.astype(jnp.bfloat16)
    prep["fc2_b"] = jnp.pad(p["fc2_b"], (0, 44)).reshape(1, 128).astype(jnp.float32)
    # fc3: (10,84) -> (84,10) -> pad rows to 128
    w3 = jnp.pad(p["fc3_w"].T, ((0, 44), (0, 0)))
    prep["fc3_w"] = w3.astype(jnp.bfloat16)
    prep["fc3_b"] = p["fc3_b"].reshape(1, 10).astype(jnp.float32)
    return prep


# ----------------------------------------------------------------------------
# Forward pass (mirrors SimpleCNN.forward)
# ----------------------------------------------------------------------------
@jax.jit
def simple_cnn_forward(prep, x_nchw):
    x = jnp.transpose(x_nchw, (0, 2, 3, 1)).astype(jnp.bfloat16)   # NHWC bf16
    # conv1(3->16,k=5)+ReLU+pool (fused)                 -> (B, 14, 14, 16)
    x = conv1_stage(x, prep["conv1_w"], prep["conv1_b"])
    # conv2(16->32,k=5)+ReLU+pool + flatten + fc1/fc2/fc3 (single fused kernel)
    return conv2_fc_stage(x, prep)                                 # (B, 10) f32


# ----------------------------------------------------------------------------
if __name__ == "__main__":
    key = jax.random.PRNGKey(0)
    pkey, xkey = jax.random.split(key)
    params = init_params(pkey)
    prepared = prepare_params(params)

    # SimpleCNN's shapes imply 32x32 RGB input (CIFAR-like): (B, 3, 32, 32)
    x = jax.random.normal(xkey, (8, 3, 32, 32), dtype=jnp.float32)

    out = simple_cnn_forward(prepared, x)
    jax.block_until_ready(out)
    assert out.shape == (8, 10), out.shape
    assert bool(jnp.all(jnp.isfinite(out)))
    print("KERNEL_OK")
</pallas_src>

<mosaic_0001>
module attributes {stable_mosaic.version = 11 : i64} {
  func.func @_conv_pool_kernel(%arg0: i32, %arg1: memref<4x784x128xbf16, #tpu.memory_space<vmem>>, %arg2: memref<128x16xbf16, #tpu.memory_space<vmem>>, %arg3: memref<1x16xf32, #tpu.memory_space<vmem>>, %arg4: memref<784x16xbf16, #tpu.memory_space<vmem>>) attributes {dimension_semantics = [#tpu.dimension_semantics<parallel>], iteration_bounds = array<i64: 2>, scalar_prefetch = 0 : i64, scratch_operands = 0 : i64, tpu.core_type = #tpu.core_type<tc>, window_params = [{transform_indices = @transform_0, window_bounds = array<i64: 4, 784, 128>}, {pipeline_mode = #tpu.pipeline_mode<synchronous>, transform_indices = @transform_1, window_bounds = array<i64: 128, 16>}, {pipeline_mode = #tpu.pipeline_mode<synchronous>, transform_indices = @transform_2, window_bounds = array<i64: 1, 16>}, {transform_indices = @transform_3, window_bounds = array<i64: 784, 16>}]} {
    %c0 = arith.constant 0 : index
    %c0_0 = arith.constant 0 : index
    %0 = vector.load %arg2[%c0, %c0_0] : memref<128x16xbf16, #tpu.memory_space<vmem>>, vector<128x16xbf16>
    %c0_1 = arith.constant 0 : index
    %c0_2 = arith.constant 0 : index
    %c0_3 = arith.constant 0 : index
    %1 = vector.load %arg1[%c0_1, %c0_2, %c0_3] : memref<4x784x128xbf16, #tpu.memory_space<vmem>>, vector<1x784x128xbf16>
    %2 = vector.shape_cast %1 : vector<1x784x128xbf16> to vector<784x128xbf16>
    %cst = arith.constant dense<0.000000e+00> : vector<784x16xf32>
    %3 = tpu.matmul %2, %0, %cst {dimension_numbers = #tpu.dot_dimension_numbers<[1], [0], [0], [1], [0, 0, 1, 1], [], []>} : vector<784x128xbf16>, vector<128x16xbf16>, vector<784x16xf32> -> vector<784x16xf32>
    %c1 = arith.constant 1 : index
    %c0_4 = arith.constant 0 : index
    %c0_5 = arith.constant 0 : index
    %4 = vector.load %arg1[%c1, %c0_4, %c0_5] : memref<4x784x128xbf16, #tpu.memory_space<vmem>>, vector<1x784x128xbf16>
    %5 = vector.shape_cast %4 : vector<1x784x128xbf16> to vector<784x128xbf16>
    %cst_6 = arith.constant dense<0.000000e+00> : vector<784x16xf32>
    %6 = tpu.matmul %5, %0, %cst_6 {dimension_numbers = #tpu.dot_dimension_numbers<[1], [0], [0], [1], [0, 0, 1, 1], [], []>} : vector<784x128xbf16>, vector<128x16xbf16>, vector<784x16xf32> -> vector<784x16xf32>
    %7 = arith.maximumf %3, %6 : vector<784x16xf32>
    %c2 = arith.constant 2 : index
    %c0_7 = arith.constant 0 : index
    %c0_8 = arith.constant 0 : index
    %8 = vector.load %arg1[%c2, %c0_7, %c0_8] : memref<4x784x128xbf16, #tpu.memory_space<vmem>>, vector<1x784x128xbf16>
    %9 = vector.shape_cast %8 : vector<1x784x128xbf16> to vector<784x128xbf16>
    %cst_9 = arith.constant dense<0.000000e+00> : vector<784x16xf32>
    %10 = tpu.matmul %9, %0, %cst_9 {dimension_numbers = #tpu.dot_dimension_numbers<[1], [0], [0], [1], [0, 0, 1, 1], [], []>} : vector<784x128xbf16>, vector<128x16xbf16>, vector<784x16xf32> -> vector<784x16xf32>
    %11 = arith.maximumf %7, %10 : vector<784x16xf32>
    %c3 = arith.constant 3 : index
    %c0_10 = arith.constant 0 : index
    %c0_11 = arith.constant 0 : index
    %12 = vector.load %arg1[%c3, %c0_10, %c0_11] : memref<4x784x128xbf16, #tpu.memory_space<vmem>>, vector<1x784x128xbf16>
    %13 = vector.shape_cast %12 : vector<1x784x128xbf16> to vector<784x128xbf16>
    %cst_12 = arith.constant dense<0.000000e+00> : vector<784x16xf32>
    %14 = tpu.matmul %13, %0, %cst_12 {dimension_numbers = #tpu.dot_dimension_numbers<[1], [0], [0], [1], [0, 0, 1, 1], [], []>} : vector<784x128xbf16>, vector<128x16xbf16>, vector<784x16xf32> -> vector<784x16xf32>
    %15 = arith.maximumf %11, %14 : vector<784x16xf32>
    %c0_13 = arith.constant 0 : index
    %c0_14 = arith.constant 0 : index
    %16 = vector.load %arg3[%c0_13, %c0_14] : memref<1x16xf32, #tpu.memory_space<vmem>>, vector<1x16xf32>
    %17 = vector.broadcast %16 : vector<1x16xf32> to vector<784x16xf32>
    %18 = arith.addf %15, %17 : vector<784x16xf32>
    %cst_15 = arith.constant 0.000000e+00 : f32
    %19 = vector.broadcast %cst_15 : f32 to vector<784x16xf32>
    %20 = arith.maximumf %18, %19 : vector<784x16xf32>
    %21 = arith.truncf %20 : vector<784x16xf32> to vector<784x16xbf16>
    %c0_16 = arith.constant 0 : index
    %c0_17 = arith.constant 0 : index
    %22 = vector.load %arg4[%c0_16, %c0_17] : memref<784x16xbf16, #tpu.memory_space<vmem>>, vector<784x16xbf16>
    tpu.vector_store %arg4[%c0_16, %c0_17], %21 {strides = array<i32>} : memref<784x16xbf16, #tpu.memory_space<vmem>>, vector<784x16xbf16>,
    return
  }
  func.func @transform_0(%arg0: i32) -> (i32, i32, i32) {
    %c0_i32 = arith.constant 0 : i32
    %c0_i32_0 = arith.constant 0 : i32
    %c0_i32_1 = arith.constant 0 : i32
    return %c0_i32, %arg0, %c0_i32_0 : i32, i32, i32
  }
  func.func @transform_1(%arg0: i32) -> (i32, i32) {
    %c0_i32 = arith.constant 0 : i32
    %c0_i32_0 = arith.constant 0 : i32
    %c0_i32_1 = arith.constant 0 : i32
    return %c0_i32, %c0_i32_0 : i32, i32
  }
  func.func @transform_2(%arg0: i32) -> (i32, i32) {
    %c0_i32 = arith.constant 0 : i32
    %c0_i32_0 = arith.constant 0 : i32
    %c0_i32_1 = arith.constant 0 : i32
    return %c0_i32, %c0_i32_0 : i32, i32
  }
  func.func @transform_3(%arg0: i32) -> (i32, i32) {
    %c0_i32 = arith.constant 0 : i32
    %c0_i32_0 = arith.constant 0 : i32
    return %arg0, %c0_i32 : i32, i32
  }
}

module attributes {stable_mosaic.version = 11 : i64} {
  func.func @_conv2_fc_kernel(%arg0: i32, %arg1: memref<4x200x512xbf16, #tpu.memory_space<vmem>>, %arg2: memref<512x32xbf16, #tpu.memory_space<vmem>>, %arg3: memref<1x32xf32, #tpu.memory_space<vmem>>, %arg4: memref<800x128xbf16, #tpu.memory_space<vmem>>, %arg5: memref<1x128xf32, #tpu.memory_space<vmem>>, %arg6: memref<128x128xbf16, #tpu.memory_space<vmem>>, %arg7: memref<1x128xf32, #tpu.memory_space<vmem>>, %arg8: memref<128x10xbf16, #tpu.memory_space<vmem>>, %arg9: memref<1x10xf32, #tpu.memory_space<vmem>>, %arg10: memref<8x10xf32, #tpu.memory_space<vmem>>) attributes {dimension_semantics = [#tpu.dimension_semantics<arbitrary>], iteration_bounds = array<i64: 1>, scalar_prefetch = 0 : i64, scratch_operands = 0 : i64, tpu.core_type = #tpu.core_type<tc>, window_params = [{pipeline_mode = #tpu.pipeline_mode<synchronous>, transform_indices = @transform_0, window_bounds = array<i64: 4, 200, 512>}, {pipeline_mode = #tpu.pipeline_mode<synchronous>, transform_indices = @transform_1, window_bounds = array<i64: 512, 32>}, {pipeline_mode = #tpu.pipeline_mode<synchronous>, transform_indices = @transform_2, window_bounds = array<i64: 1, 32>}, {pipeline_mode = #tpu.pipeline_mode<synchronous>, transform_indices = @transform_3, window_bounds = array<i64: 800, 128>}, {pipeline_mode = #tpu.pipeline_mode<synchronous>, transform_indices = @transform_4, window_bounds = array<i64: 1, 128>}, {pipeline_mode = #tpu.pipeline_mode<synchronous>, transform_indices = @transform_5, window_bounds = array<i64: 128, 128>}, {pipeline_mode = #tpu.pipeline_mode<synchronous>, transform_indices = @transform_6, window_bounds = array<i64: 1, 128>}, {pipeline_mode = #tpu.pipeline_mode<synchronous>, transform_indices = @transform_7, window_bounds = array<i64: 128, 10>}, {pipeline_mode = #tpu.pipeline_mode<synchronous>, transform_indices = @transform_8, window_bounds = array<i64: 1, 10>}, {pipeline_mode = #tpu.pipeline_mode<synchronous>, transform_indices = @transform_9, window_bounds = array<i64: 8, 10>}]} {
    %c0 = arith.constant 0 : index
    %c0_0 = arith.constant 0 : index
    %0 = vector.load %arg2[%c0, %c0_0] : memref<512x32xbf16, #tpu.memory_space<vmem>>, vector<512x32xbf16>
    %c0_1 = arith.constant 0 : index
    %c0_2 = arith.constant 0 : index
    %c0_3 = arith.constant 0 : index
    %1 = vector.load %arg1[%c0_1, %c0_2, %c0_3] : memref<4x200x512xbf16, #tpu.memory_space<vmem>>, vector<1x200x512xbf16>
    %2 = vector.shape_cast %1 : vector<1x200x512xbf16> to vector<200x512xbf16>
    %cst = arith.constant dense<0.000000e+00> : vector<200x32xf32>
    %3 = tpu.matmul %2, %0, %cst {dimension_numbers = #tpu.dot_dimension_numbers<[1], [0], [0], [1], [0, 0, 1, 1], [], []>} : vector<200x512xbf16>, vector<512x32xbf16>, vector<200x32xf32> -> vector<200x32xf32>
    %c1 = arith.constant 1 : index
    %c0_4 = arith.constant 0 : index
    %c0_5 = arith.constant 0 : index
    %4 = vector.load %arg1[%c1, %c0_4, %c0_5] : memref<4x200x512xbf16, #tpu.memory_space<vmem>>, vector<1x200x512xbf16>
    %5 = vector.shape_cast %4 : vector<1x200x512xbf16> to vector<200x512xbf16>
    %cst_6 = arith.constant dense<0.000000e+00> : vector<200x32xf32>
    %6 = tpu.matmul %5, %0, %cst_6 {dimension_numbers = #tpu.dot_dimension_numbers<[1], [0], [0], [1], [0, 0, 1, 1], [], []>} : vector<200x512xbf16>, vector<512x32xbf16>, vector<200x32xf32> -> vector<200x32xf32>
    %7 = arith.maximumf %3, %6 : vector<200x32xf32>
    %c2 = arith.constant 2 : index
    %c0_7 = arith.constant 0 : index
    %c0_8 = arith.constant 0 : index
    %8 = vector.load %arg1[%c2, %c0_7, %c0_8] : memref<4x200x512xbf16, #tpu.memory_space<vmem>>, vector<1x200x512xbf16>
    %9 = vector.shape_cast %8 : vector<1x200x512xbf16> to vector<200x512xbf16>
    %cst_9 = arith.constant dense<0.000000e+00> : vector<200x32xf32>
    %10 = tpu.matmul %9, %0, %cst_9 {dimension_numbers = #tpu.dot_dimension_numbers<[1], [0], [0], [1], [0, 0, 1, 1], [], []>} : vector<200x512xbf16>, vector<512x32xbf16>, vector<200x32xf32> -> vector<200x32xf32>
    %11 = arith.maximumf %7, %10 : vector<200x32xf32>
    %c3 = arith.constant 3 : index
    %c0_10 = arith.constant 0 : index
    %c0_11 = arith.constant 0 : index
    %12 = vector.load %arg1[%c3, %c0_10, %c0_11] : memref<4x200x512xbf16, #tpu.memory_space<vmem>>, vector<1x200x512xbf16>
    %13 = vector.shape_cast %12 : vector<1x200x512xbf16> to vector<200x512xbf16>
    %cst_12 = arith.constant dense<0.000000e+00> : vector<200x32xf32>
    %14 = tpu.matmul %13, %0, %cst_12 {dimension_numbers = #tpu.dot_dimension_numbers<[1], [0], [0], [1], [0, 0, 1, 1], [], []>} : vector<200x512xbf16>, vector<512x32xbf16>, vector<200x32xf32> -> vector<200x32xf32>
    %15 = arith.maximumf %11, %14 : vector<200x32xf32>
    %c0_13 = arith.constant 0 : index
    %c0_14 = arith.constant 0 : index
    %16 = vector.load %arg3[%c0_13, %c0_14] : memref<1x32xf32, #tpu.memory_space<vmem>>, vector<1x32xf32>
    %17 = vector.broadcast %16 : vector<1x32xf32> to vector<200x32xf32>
    %18 = arith.addf %15, %17 : vector<200x32xf32>
    %cst_15 = arith.constant 0.000000e+00 : f32
    %19 = vector.broadcast %cst_15 : f32 to vector<200x32xf32>
    %20 = arith.maximumf %18, %19 : vector<200x32xf32>
    %cst_16 = arith.constant 0.000000e+00 : f32
    %21 = vector.broadcast %cst_16 : f32 to vector<8x128xf32>
    %22 = vector.extract_strided_slice %20 {offsets = [0, 0], sizes = [8, 32], strides = [1, 1]} : vector<200x32xf32> to vector<8x32xf32>
    %23 = arith.truncf %22 : vector<8x32xf32> to vector<8x32xbf16>
    %c0_17 = arith.constant 0 : index
    %c0_18 = arith.constant 0 : index
    %24 = vector.load %arg4[%c0_17, %c0_18] : memref<800x128xbf16, #tpu.memory_space<vmem>>, vector<32x128xbf16>
    %cst_19 = arith.constant dense<0.000000e+00> : vector<8x128xf32>
    %25 = tpu.matmul %23, %24, %cst_19 {dimension_numbers = #tpu.dot_dimension_numbers<[1], [0], [0], [1], [0, 0, 1, 1], [], []>} : vector<8x32xbf16>, vector<32x128xbf16>, vector<8x128xf32> -> vector<8x128xf32>
    %26 = arith.addf %21, %25 : vector<8x128xf32>
    %27 = vector.extract_strided_slice %20 {offsets = [8, 0], sizes = [8, 32], strides = [1, 1]} : vector<200x32xf32> to vector<8x32xf32>
    %28 = arith.truncf %27 : vector<8x32xf32> to vector<8x32xbf16>
    %c32 = arith.constant 32 : index
    %c0_20 = arith.constant 0 : index
    %29 = vector.load %arg4[%c32, %c0_20] : memref<800x128xbf16, #tpu.memory_space<vmem>>, vector<32x128xbf16>
    %cst_21 = arith.constant dense<0.000000e+00> : vector<8x128xf32>
    %30 = tpu.matmul %28, %29, %cst_21 {dimension_numbers = #tpu.dot_dimension_numbers<[1], [0], [0], [1], [0, 0, 1, 1], [], []>} : vector<8x32xbf16>, vector<32x128xbf16>, vector<8x128xf32> -> vector<8x128xf32>
    %31 = arith.addf %26, %30 : vector<8x128xf32>
    %32 = vector.extract_strided_slice %20 {offsets = [16, 0], sizes = [8, 32], strides = [1, 1]} : vector<200x32xf32> to vector<8x32xf32>
    %33 = arith.truncf %32 : vector<8x32xf32> to vector<8x32xbf16>
    %c64 = arith.constant 64 : index
    %c0_22 = arith.constant 0 : index
    %34 = vector.load %arg4[%c64, %c0_22] : memref<800x128xbf16, #tpu.memory_space<vmem>>, vector<32x128xbf16>
    %cst_23 = arith.constant dense<0.000000e+00> : vector<8x128xf32>
    %35 = tpu.matmul %33, %34, %cst_23 {dimension_numbers = #tpu.dot_dimension_numbers<[1], [0], [0], [1], [0, 0, 1, 1], [], []>} : vector<8x32xbf16>, vector<32x128xbf16>, vector<8x128xf32> -> vector<8x128xf32>
    %36 = arith.addf %31, %35 : vector<8x128xf32>
    %37 = vector.extract_strided_slice %20 {offsets = [24, 0], sizes = [8, 32], strides = [1, 1]} : vector<200x32xf32> to vector<8x32xf32>
    %38 = arith.truncf %37 : vector<8x32xf32> to vector<8x32xbf16>
    %c96 = arith.constant 96 : index
    %c0_24 = arith.constant 0 : index
    %39 = vector.load %arg4[%c96, %c0_24] : memref<800x128xbf16, #tpu.memory_space<vmem>>, vector<32x128xbf16>
    %cst_25 = arith.constant dense<0.000000e+00> : vector<8x128xf32>
    %40 = tpu.matmul %38, %39, %cst_25 {dimension_numbers = #tpu.dot_dimension_numbers<[1], [0], [0], [1], [0, 0, 1, 1], [], []>} : vector<8x32xbf16>, vector<32x128xbf16>, vector<8x128xf32> -> vector<8x128xf32>
    %41 = arith.addf %36, %40 : vector<8x128xf32>
    %42 = vector.extract_strided_slice %20 {offsets = [32, 0], sizes = [8, 32], strides = [1, 1]} : vector<200x32xf32> to vector<8x32xf32>
    %43 = arith.truncf %42 : vector<8x32xf32> to vector<8x32xbf16>
    %c128 = arith.constant 128 : index
    %c0_26 = arith.constant 0 : index
    %44 = vector.load %arg4[%c128, %c0_26] : memref<800x128xbf16, #tpu.memory_space<vmem>>, vector<32x128xbf16>
    %cst_27 = arith.constant dense<0.000000e+00> : vector<8x128xf32>
    %45 = tpu.matmul %43, %44, %cst_27 {dimension_numbers = #tpu.dot_dimension_numbers<[1], [0], [0], [1], [0, 0, 1, 1], [], []>} : vector<8x32xbf16>, vector<32x128xbf16>, vector<8x128xf32> -> vector<8x128xf32>
    %46 = arith.addf %41, %45 : vector<8x128xf32>
    %47 = vector.extract_strided_slice %20 {offsets = [40, 0], sizes = [8, 32], strides = [1, 1]} : vector<200x32xf32> to vector<8x32xf32>
    %48 = arith.truncf %47 : vector<8x32xf32> to vector<8x32xbf16>
    %c160 = arith.constant 160 : index
    %c0_28 = arith.constant 0 : index
    %49 = vector.load %arg4[%c160, %c0_28] : memref<800x128xbf16, #tpu.memory_space<vmem>>, vector<32x128xbf16>
    %cst_29 = arith.constant dense<0.000000e+00> : vector<8x128xf32>
    %50 = tpu.matmul %48, %49, %cst_29 {dimension_numbers = #tpu.dot_dimension_numbers<[1], [0], [0], [1], [0, 0, 1, 1], [], []>} : vector<8x32xbf16>, vector<32x128xbf16>, vector<8x128xf32> -> vector<8x128xf32>
    %51 = arith.addf %46, %50 : vector<8x128xf32>
    %52 = vector.extract_strided_slice %20 {offsets = [48, 0], sizes = [8, 32], strides = [1, 1]} : vector<200x32xf32> to vector<8x32xf32>
    %53 = arith.truncf %52 : vector<8x32xf32> to vector<8x32xbf16>
    %c192 = arith.constant 192 : index
    %c0_30 = arith.constant 0 : index
    %54 = vector.load %arg4[%c192, %c0_30] : memref<800x128xbf16, #tpu.memory_space<vmem>>, vector<32x128xbf16>
    %cst_31 = arith.constant dense<0.000000e+00> : vector<8x128xf32>
    %55 = tpu.matmul %53, %54, %cst_31 {dimension_numbers = #tpu.dot_dimension_numbers<[1], [0], [0], [1], [0, 0, 1, 1], [], []>} : vector<8x32xbf16>, vector<32x128xbf16>, vector<8x128xf32> -> vector<8x128xf32>
    %56 = arith.addf %51, %55 : vector<8x128xf32>
    %57 = vector.extract_strided_slice %20 {offsets = [56, 0], sizes = [8, 32], strides = [1, 1]} : vector<200x32xf32> to vector<8x32xf32>
    %58 = arith.truncf %57 : vector<8x32xf32> to vector<8x32xbf16>
    %c224 = arith.constant 224 : index
    %c0_32 = arith.constant 0 : index
    %59 = vector.load %arg4[%c224, %c0_32] : memref<800x128xbf16, #tpu.memory_space<vmem>>, vector<32x128xbf16>
    %cst_33 = arith.constant dense<0.000000e+00> : vector<8x128xf32>
    %60 = tpu.matmul %58, %59, %cst_33 {dimension_numbers = #tpu.dot_dimension_numbers<[1], [0], [0], [1], [0, 0, 1, 1], [], []>} : vector<8x32xbf16>, vector<32x128xbf16>, vector<8x128xf32> -> vector<8x128xf32>
    %61 = arith.addf %56, %60 : vector<8x128xf32>
    %62 = vector.extract_strided_slice %20 {offsets = [64, 0], sizes = [8, 32], strides = [1, 1]} : vector<200x32xf32> to vector<8x32xf32>
    %63 = arith.truncf %62 : vector<8x32xf32> to vector<8x32xbf16>
    %c256 = arith.constant 256 : index
    %c0_34 = arith.constant 0 : index
    %64 = vector.load %arg4[%c256, %c0_34] : memref<800x128xbf16, #tpu.memory_space<vmem>>, vector<32x128xbf16>
    %cst_35 = arith.constant dense<0.000000e+00> : vector<8x128xf32>
    %65 = tpu.matmul %63, %64, %cst_35 {dimension_numbers = #tpu.dot_dimension_numbers<[1], [0], [0], [1], [0, 0, 1, 1], [], []>} : vector<8x32xbf16>, vector<32x128xbf16>, vector<8x128xf32> -> vector<8x128xf32>
    %66 = arith.addf %61, %65 : vector<8x128xf32>
    %67 = vector.extract_strided_slice %20 {offsets = [72, 0], sizes = [8, 32], strides = [1, 1]} : vector<200x32xf32> to vector<8x32xf32>
    %68 = arith.truncf %67 : vector<8x32xf32> to vector<8x32xbf16>
    %c288 = arith.constant 288 : index
    %c0_36 = arith.constant 0 : index
    %69 = vector.load %arg4[%c288, %c0_36] : memref<800x128xbf16, #tpu.memory_space<vmem>>, vector<32x128xbf16>
    %cst_37 = arith.constant dense<0.000000e+00> : vector<8x128xf32>
    %70 = tpu.matmul %68, %69, %cst_37 {dimension_numbers = #tpu.dot_dimension_numbers<[1], [0], [0], [1], [0, 0, 1, 1], [], []>} : vector<8x32xbf16>, vector<32x128xbf16>, vector<8x128xf32> -> vector<8x128xf32>
    %71 = arith.addf %66, %70 : vector<8x128xf32>
    %72 = vector.extract_strided_slice %20 {offsets = [80, 0], sizes = [8, 32], strides = [1, 1]} : vector<200x32xf32> to vector<8x32xf32>
    %73 = arith.truncf %72 : vector<8x32xf32> to vector<8x32xbf16>
    %c320 = arith.constant 320 : index
    %c0_38 = arith.constant 0 : index
    %74 = vector.load %arg4[%c320, %c0_38] : memref<800x128xbf16, #tpu.memory_space<vmem>>, vector<32x128xbf16>
    %cst_39 = arith.constant dense<0.000000e+00> : vector<8x128xf32>
    %75 = tpu.matmul %73, %74, %cst_39 {dimension_numbers = #tpu.dot_dimension_numbers<[1], [0], [0], [1], [0, 0, 1, 1], [], []>} : vector<8x32xbf16>, vector<32x128xbf16>, vector<8x128xf32> -> vector<8x128xf32>
    %76 = arith.addf %71, %75 : vector<8x128xf32>
    %77 = vector.extract_strided_slice %20 {offsets = [88, 0], sizes = [8, 32], strides = [1, 1]} : vector<200x32xf32> to vector<8x32xf32>
    %78 = arith.truncf %77 : vector<8x32xf32> to vector<8x32xbf16>
    %c352 = arith.constant 352 : index
    %c0_40 = arith.constant 0 : index
    %79 = vector.load %arg4[%c352, %c0_40] : memref<800x128xbf16, #tpu.memory_space<vmem>>, vector<32x128xbf16>
    %cst_41 = arith.constant dense<0.000000e+00> : vector<8x128xf32>
    %80 = tpu.matmul %78, %79, %cst_41 {dimension_numbers = #tpu.dot_dimension_numbers<[1], [0], [0], [1], [0, 0, 1, 1], [], []>} : vector<8x32xbf16>, vector<32x128xbf16>, vector<8x128xf32> -> vector<8x128xf32>
    %81 = arith.addf %76, %80 : vector<8x128xf32>
    %82 = vector.extract_strided_slice %20 {offsets = [96, 0], sizes = [8, 32], strides = [1, 1]} : vector<200x32xf32> to vector<8x32xf32>
    %83 = arith.truncf %82 : vector<8x32xf32> to vector<8x32xbf16>
    %c384 = arith.constant 384 : index
    %c0_42 = arith.constant 0 : index
    %84 = vector.load %arg4[%c384, %c0_42] : memref<800x128xbf16, #tpu.memory_space<vmem>>, vector<32x128xbf16>
    %cst_43 = arith.constant dense<0.000000e+00> : vector<8x128xf32>
    %85 = tpu.matmul %83, %84, %cst_43 {dimension_numbers = #tpu.dot_dimension_numbers<[1], [0], [0], [1], [0, 0, 1, 1], [], []>} : vector<8x32xbf16>, vector<32x128xbf16>, vector<8x128xf32> -> vector<8x128xf32>
    %86 = arith.addf %81, %85 : vector<8x128xf32>
    %87 = vector.extract_strided_slice %20 {offsets = [104, 0], sizes = [8, 32], strides = [1, 1]} : vector<200x32xf32> to vector<8x32xf32>
    %88 = arith.truncf %87 : vector<8x32xf32> to vector<8x32xbf16>
    %c416 = arith.constant 416 : index
    %c0_44 = arith.constant 0 : index
    %89 = vector.load %arg4[%c416, %c0_44] : memref<800x128xbf16, #tpu.memory_space<vmem>>, vector<32x128xbf16>
    %cst_45 = arith.constant dense<0.000000e+00> : vector<8x128xf32>
    %90 = tpu.matmul %88, %89, %cst_45 {dimension_numbers = #tpu.dot_dimension_numbers<[1], [0], [0], [1], [0, 0, 1, 1], [], []>} : vector<8x32xbf16>, vector<32x128xbf16>, vector<8x128xf32> -> vector<8x128xf32>
    %91 = arith.addf %86, %90 : vector<8x128xf32>
    %92 = vector.extract_strided_slice %20 {offsets = [112, 0], sizes = [8, 32], strides = [1, 1]} : vector<200x32xf32> to vector<8x32xf32>
    %93 = arith.truncf %92 : vector<8x32xf32> to vector<8x32xbf16>
    %c448 = arith.constant 448 : index
    %c0_46 = arith.constant 0 : index
    %94 = vector.load %arg4[%c448, %c0_46] : memref<800x128xbf16, #tpu.memory_space<vmem>>, vector<32x128xbf16>
    %cst_47 = arith.constant dense<0.000000e+00> : vector<8x128xf32>
    %95 = tpu.matmul %93, %94, %cst_47 {dimension_numbers = #tpu.dot_dimension_numbers<[1], [0], [0], [1], [0, 0, 1, 1], [], []>} : vector<8x32xbf16>, vector<32x128xbf16>, vector<8x128xf32> -> vector<8x128xf32>
    %96 = arith.addf %91, %95 : vector<8x128xf32>
    %97 = vector.extract_strided_slice %20 {offsets = [120, 0], sizes = [8, 32], strides = [1, 1]} : vector<200x32xf32> to vector<8x32xf32>
    %98 = arith.truncf %97 : vector<8x32xf32> to vector<8x32xbf16>
    %c480 = arith.constant 480 : index
    %c0_48 = arith.constant 0 : index
    %99 = vector.load %arg4[%c480, %c0_48] : memref<800x128xbf16, #tpu.memory_space<vmem>>, vector<32x128xbf16>
    %cst_49 = arith.constant dense<0.000000e+00> : vector<8x128xf32>
    %100 = tpu.matmul %98, %99, %cst_49 {dimension_numbers = #tpu.dot_dimension_numbers<[1], [0], [0], [1], [0, 0, 1, 1], [], []>} : vector<8x32xbf16>, vector<32x128xbf16>, vector<8x128xf32> -> vector<8x128xf32>
    %101 = arith.addf %96, %100 : vector<8x128xf32>
    %102 = vector.extract_strided_slice %20 {offsets = [128, 0], sizes = [8, 32], strides = [1, 1]} : vector<200x32xf32> to vector<8x32xf32>
    %103 = arith.truncf %102 : vector<8x32xf32> to vector<8x32xbf16>
    %c512 = arith.constant 512 : index
    %c0_50 = arith.constant 0 : index
    %104 = vector.load %arg4[%c512, %c0_50] : memref<800x128xbf16, #tpu.memory_space<vmem>>, vector<32x128xbf16>
    %cst_51 = arith.constant dense<0.000000e+00> : vector<8x128xf32>
    %105 = tpu.matmul %103, %104, %cst_51 {dimension_numbers = #tpu.dot_dimension_numbers<[1], [0], [0], [1], [0, 0, 1, 1], [], []>} : vector<8x32xbf16>, vector<32x128xbf16>, vector<8x128xf32> -> vector<8x128xf32>
    %106 = arith.addf %101, %105 : vector<8x128xf32>
    %107 = vector.extract_strided_slice %20 {offsets = [136, 0], sizes = [8, 32], strides = [1, 1]} : vector<200x32xf32> to vector<8x32xf32>
    %108 = arith.truncf %107 : vector<8x32xf32> to vector<8x32xbf16>
    %c544 = arith.constant 544 : index
    %c0_52 = arith.constant 0 : index
    %109 = vector.load %arg4[%c544, %c0_52] : memref<800x128xbf16, #tpu.memory_space<vmem>>, vector<32x128xbf16>
    %cst_53 = arith.constant dense<0.000000e+00> : vector<8x128xf32>
    %110 = tpu.matmul %108, %109, %cst_53 {dimension_numbers = #tpu.dot_dimension_numbers<[1], [0], [0], [1], [0, 0, 1, 1], [], []>} : vector<8x32xbf16>, vector<32x128xbf16>, vector<8x128xf32> -> vector<8x128xf32>
    %111 = arith.addf %106, %110 : vector<8x128xf32>
    %112 = vector.extract_strided_slice %20 {offsets = [144, 0], sizes = [8, 32], strides = [1, 1]} : vector<200x32xf32> to vector<8x32xf32>
    %113 = arith.truncf %112 : vector<8x32xf32> to vector<8x32xbf16>
    %c576 = arith.constant 576 : index
    %c0_54 = arith.constant 0 : index
    %114 = vector.load %arg4[%c576, %c0_54] : memref<800x128xbf16, #tpu.memory_space<vmem>>, vector<32x128xbf16>
    %cst_55 = arith.constant dense<0.000000e+00> : vector<8x128xf32>
    %115 = tpu.matmul %113, %114, %cst_55 {dimension_numbers = #tpu.dot_dimension_numbers<[1], [0], [0], [1], [0, 0, 1, 1], [], []>} : vector<8x32xbf16>, vector<32x128xbf16>, vector<8x128xf32> -> vector<8x128xf32>
    %116 = arith.addf %111, %115 : vector<8x128xf32>
    %117 = vector.extract_strided_slice %20 {offsets = [152, 0], sizes = [8, 32], strides = [1, 1]} : vector<200x32xf32> to vector<8x32xf32>
    %118 = arith.truncf %117 : vector<8x32xf32> to vector<8x32xbf16>
    %c608 = arith.constant 608 : index
    %c0_56 = arith.constant 0 : index
    %119 = vector.load %arg4[%c608, %c0_56] : memref<800x128xbf16, #tpu.memory_space<vmem>>, vector<32x128xbf16>
    %cst_57 = arith.constant dense<0.000000e+00> : vector<8x128xf32>
    %120 = tpu.matmul %118, %119, %cst_57 {dimension_numbers = #tpu.dot_dimension_numbers<[1], [0], [0], [1], [0, 0, 1, 1], [], []>} : vector<8x32xbf16>, vector<32x128xbf16>, vector<8x128xf32> -> vector<8x128xf32>
    %121 = arith.addf %116, %120 : vector<8x128xf32>
    %122 = vector.extract_strided_slice %20 {offsets = [160, 0], sizes = [8, 32], strides = [1, 1]} : vector<200x32xf32> to vector<8x32xf32>
    %123 = arith.truncf %122 : vector<8x32xf32> to vector<8x32xbf16>
    %c640 = arith.constant 640 : index
    %c0_58 = arith.constant 0 : index
    %124 = vector.load %arg4[%c640, %c0_58] : memref<800x128xbf16, #tpu.memory_space<vmem>>, vector<32x128xbf16>
    %cst_59 = arith.constant dense<0.000000e+00> : vector<8x128xf32>
    %125 = tpu.matmul %123, %124, %cst_59 {dimension_numbers = #tpu.dot_dimension_numbers<[1], [0], [0], [1], [0, 0, 1, 1], [], []>} : vector<8x32xbf16>, vector<32x128xbf16>, vector<8x128xf32> -> vector<8x128xf32>
    %126 = arith.addf %121, %125 : vector<8x128xf32>
    %127 = vector.extract_strided_slice %20 {offsets = [168, 0], sizes = [8, 32], strides = [1, 1]} : vector<200x32xf32> to vector<8x32xf32>
    %128 = arith.truncf %127 : vector<8x32xf32> to vector<8x32xbf16>
    %c672 = arith.constant 672 : index
    %c0_60 = arith.constant 0 : index
    %129 = vector.load %arg4[%c672, %c0_60] : memref<800x128xbf16, #tpu.memory_space<vmem>>, vector<32x128xbf16>
    %cst_61 = arith.constant dense<0.000000e+00> : vector<8x128xf32>
    %130 = tpu.matmul %128, %129, %cst_61 {dimension_numbers = #tpu.dot_dimension_numbers<[1], [0], [0], [1], [0, 0, 1, 1], [], []>} : vector<8x32xbf16>, vector<32x128xbf16>, vector<8x128xf32> -> vector<8x128xf32>
    %131 = arith.addf %126, %130 : vector<8x128xf32>
    %132 = vector.extract_strided_slice %20 {offsets = [176, 0], sizes = [8, 32], strides = [1, 1]} : vector<200x32xf32> to vector<8x32xf32>
    %133 = arith.truncf %132 : vector<8x32xf32> to vector<8x32xbf16>
    %c704 = arith.constant 704 : index
    %c0_62 = arith.constant 0 : index
    %134 = vector.load %arg4[%c704, %c0_62] : memref<800x128xbf16, #tpu.memory_space<vmem>>, vector<32x128xbf16>
    %cst_63 = arith.constant dense<0.000000e+00> : vector<8x128xf32>
    %135 = tpu.matmul %133, %134, %cst_63 {dimension_numbers = #tpu.dot_dimension_numbers<[1], [0], [0], [1], [0, 0, 1, 1], [], []>} : vector<8x32xbf16>, vector<32x128xbf16>, vector<8x128xf32> -> vector<8x128xf32>
    %136 = arith.addf %131, %135 : vector<8x128xf32>
    %137 = vector.extract_strided_slice %20 {offsets = [184, 0], sizes = [8, 32], strides = [1, 1]} : vector<200x32xf32> to vector<8x32xf32>
    %138 = arith.truncf %137 : vector<8x32xf32> to vector<8x32xbf16>
    %c736 = arith.constant 736 : index
    %c0_64 = arith.constant 0 : index
    %139 = vector.load %arg4[%c736, %c0_64] : memref<800x128xbf16, #tpu.memory_space<vmem>>, vector<32x128xbf16>
    %cst_65 = arith.constant dense<0.000000e+00> : vector<8x128xf32>
    %140 = tpu.matmul %138, %139, %cst_65 {dimension_numbers = #tpu.dot_dimension_numbers<[1], [0], [0], [1], [0, 0, 1, 1], [], []>} : vector<8x32xbf16>, vector<32x128xbf16>, vector<8x128xf32> -> vector<8x128xf32>
    %141 = arith.addf %136, %140 : vector<8x128xf32>
    %142 = vector.extract_strided_slice %20 {offsets = [192, 0], sizes = [8, 32], strides = [1, 1]} : vector<200x32xf32> to vector<8x32xf32>
    %143 = arith.truncf %142 : vector<8x32xf32> to vector<8x32xbf16>
    %c768 = arith.constant 768 : index
    %c0_66 = arith.constant 0 : index
    %144 = vector.load %arg4[%c768, %c0_66] : memref<800x128xbf16, #tpu.memory_space<vmem>>, vector<32x128xbf16>
    %cst_67 = arith.constant dense<0.000000e+00> : vector<8x128xf32>
    %145 = tpu.matmul %143, %144, %cst_67 {dimension_numbers = #tpu.dot_dimension_numbers<[1], [0], [0], [1], [0, 0, 1, 1], [], []>} : vector<8x32xbf16>, vector<32x128xbf16>, vector<8x128xf32> -> vector<8x128xf32>
    %146 = arith.addf %141, %145 : vector<8x128xf32>
    %c0_68 = arith.constant 0 : index
    %c0_69 = arith.constant 0 : index
    %147 = vector.load %arg5[%c0_68, %c0_69] : memref<1x128xf32, #tpu.memory_space<vmem>>, vector<1x128xf32>
    %148 = vector.broadcast %147 : vector<1x128xf32> to vector<8x128xf32>
    %149 = arith.addf %146, %148 : vector<8x128xf32>
    %cst_70 = arith.constant 0.000000e+00 : f32
    %150 = vector.broadcast %cst_70 : f32 to vector<8x128xf32>
    %151 = arith.maximumf %149, %150 : vector<8x128xf32>
    %152 = arith.truncf %151 : vector<8x128xf32> to vector<8x128xbf16>
    %c0_71 = arith.constant 0 : index
    %c0_72 = arith.constant 0 : index
    %153 = vector.load %arg6[%c0_71, %c0_72] : memref<128x128xbf16, #tpu.memory_space<vmem>>, vector<128x128xbf16>
    %cst_73 = arith.constant dense<0.000000e+00> : vector<8x128xf32>
    %154 = tpu.matmul %152, %153, %cst_73 {dimension_numbers = #tpu.dot_dimension_numbers<[1], [0], [0], [1], [0, 0, 1, 1], [], []>} : vector<8x128xbf16>, vector<128x128xbf16>, vector<8x128xf32> -> vector<8x128xf32>
    %c0_74 = arith.constant 0 : index
    %c0_75 = arith.constant 0 : index
    %155 = vector.load %arg7[%c0_74, %c0_75] : memref<1x128xf32, #tpu.memory_space<vmem>>, vector<1x128xf32>
    %156 = vector.broadcast %155 : vector<1x128xf32> to vector<8x128xf32>
    %157 = arith.addf %154, %156 : vector<8x128xf32>
    %cst_76 = arith.constant 0.000000e+00 : f32
    %158 = vector.broadcast %cst_76 : f32 to vector<8x128xf32>
    %159 = arith.maximumf %157, %158 : vector<8x128xf32>
    %160 = arith.truncf %159 : vector<8x128xf32> to vector<8x128xbf16>
    %c0_77 = arith.constant 0 : index
    %c0_78 = arith.constant 0 : index
    %161 = vector.load %arg8[%c0_77, %c0_78] : memref<128x10xbf16, #tpu.memory_space<vmem>>, vector<128x10xbf16>
    %cst_79 = arith.constant dense<0.000000e+00> : vector<8x10xf32>
    %162 = tpu.matmul %160, %161, %cst_79 {dimension_numbers = #tpu.dot_dimension_numbers<[1], [0], [0], [1], [0, 0, 1, 1], [], []>} : vector<8x128xbf16>, vector<128x10xbf16>, vector<8x10xf32> -> vector<8x10xf32>
    %c0_80 = arith.constant 0 : index
    %c0_81 = arith.constant 0 : index
    %163 = vector.load %arg9[%c0_80, %c0_81] : memref<1x10xf32, #tpu.memory_space<vmem>>, vector<1x10xf32>
    %164 = vector.broadcast %163 : vector<1x10xf32> to vector<8x10xf32>
    %165 = arith.addf %162, %164 : vector<8x10xf32>
    %c0_82 = arith.constant 0 : index
    %c0_83 = arith.constant 0 : index
    %166 = vector.load %arg10[%c0_82, %c0_83] : memref<8x10xf32, #tpu.memory_space<vmem>>, vector<8x10xf32>
    tpu.vector_store %arg10[%c0_82, %c0_83], %165 {strides = array<i32>} : memref<8x10xf32, #tpu.memory_space<vmem>>, vector<8x10xf32>,
    return
  }
  func.func @transform_0(%arg0: i32) -> (i32, i32, i32) {
    %c0_i32 = arith.constant 0 : i32
    %c0_i32_0 = arith.constant 0 : i32
    %c0_i32_1 = arith.constant 0 : i32
    %c0_i32_2 = arith.constant 0 : i32
    return %c0_i32, %c0_i32_0, %c0_i32_1 : i32, i32, i32
  }
  func.func @transform_1(%arg0: i32) -> (i32, i32) {
    %c0_i32 = arith.constant 0 : i32
    %c0_i32_0 = arith.constant 0 : i32
    %c0_i32_1 = arith.constant 0 : i32
    return %c0_i32, %c0_i32_0 : i32, i32
  }
  func.func @transform_2(%arg0: i32) -> (i32, i32) {
    %c0_i32 = arith.constant 0 : i32
    %c0_i32_0 = arith.constant 0 : i32
    %c0_i32_1 = arith.constant 0 : i32
    return %c0_i32, %c0_i32_0 : i32, i32
  }
  func.func @transform_3(%arg0: i32) -> (i32, i32) {
    %c0_i32 = arith.constant 0 : i32
    %c0_i32_0 = arith.constant 0 : i32
    %c0_i32_1 = arith.constant 0 : i32
    return %c0_i32, %c0_i32_0 : i32, i32
  }
  func.func @transform_4(%arg0: i32) -> (i32, i32) {
    %c0_i32 = arith.constant 0 : i32
    %c0_i32_0 = arith.constant 0 : i32
    %c0_i32_1 = arith.constant 0 : i32
    return %c0_i32, %c0_i32_0 : i32, i32
  }
  func.func @transform_5(%arg0: i32) -> (i32, i32) {
    %c0_i32 = arith.constant 0 : i32
    %c0_i32_0 = arith.constant 0 : i32
    %c0_i32_1 = arith.constant 0 : i32
    return %c0_i32, %c0_i32_0 : i32, i32
  }
  func.func @transform_6(%arg0: i32) -> (i32, i32) {
    %c0_i32 = arith.constant 0 : i32
    %c0_i32_0 = arith.constant 0 : i32
    %c0_i32_1 = arith.constant 0 : i32
    return %c0_i32, %c0_i32_0 : i32, i32
  }
  func.func @transform_7(%arg0: i32) -> (i32, i32) {
    %c0_i32 = arith.constant 0 : i32
    %c0_i32_0 = arith.constant 0 : i32
    %c0_i32_1 = arith.constant 0 : i32
    return %c0_i32, %c0_i32_0 : i32, i32
  }
  func.func @transform_8(%arg0: i32) -> (i32, i32) {
    %c0_i32 = arith.constant 0 : i32
    %c0_i32_0 = arith.constant 0 : i32
    %c0_i32_1 = arith.constant 0 : i32
    return %c0_i32, %c0_i32_0 : i32, i32
  }
  func.func @transform_9(%arg0: i32) -> (i32, i32) {
    %c0_i32 = arith.constant 0 : i32
    %c0_i32_0 = arith.constant 0 : i32
    %c0_i32_1 = arith.constant 0 : i32
    return %c0_i32, %c0_i32_0 : i32, i32
  }
}

</mosaic_0001>

<bundles_post_ra>
// kernel: simple_cnn_forward.2
= control target key start
LH: loop header
LB: loop body
LE: loop exit
PB: predicated region body
PF: predicated region fallthrough
CT: control target
= control target key end

     0   :  { %s8226_s12 = smov 0   ;;  %s8228_s13 = smov 0   ;;  %s10505_s0 = inlined_call_operand.vmem [shape: bf16[4,1568,128], index: 0, kind: input, shape index: {}]   ;;  %s10506_s1 = inlined_call_operand.vmem [shape: bf16[128,16], index: 1, kind: input, shape index: {}]   ;;  %s10507_s2 = inlined_call_operand.vmem [shape: f32[1,16], index: 2, kind: input, shape index: {}]   ;;  %s10508_s3 = inlined_call_operand.vmem [shape: bf16[1568,16], index: 3, kind: output, shape index: {}]  }
   0x1   :  { %s8230_s14 = smov 0  }
   0x2 LB: > { %s6165_s15 = sadd.s32 4294967295, %s8202_s14   ;;  %s8243_s16 = sadd.s32 1, %s8202_s14   ;;  %s8202_s14 = sphi %s8230_s14, %s11056_s14   ;;  %s8198_s13 = sphi %s8228_s13, %s11055_s13   ;;  %s8194_s12 = sphi %s8226_s12, %s11054_s12  }
   0x3   : > { %s17_s17 = ssub.s32 %s8202_s14, %s8243_s16  ;;  %s20_s18 = sadd.s32 1, %s8198_s13 }
   0x4   : > { %p18_p0 = scmp.eq.s32.totalorder %s17_s17, 0  ;;  %p27_p1 = scmp.ne.s32.totalorder %s8198_s13, %s8194_s12 }
   0x5   : > { %p28_p2 = scmp.eq.s32.totalorder %s8202_s14, 0  ;;  %p6168_p4 = scmp.ge.s32.totalorder %s8202_s14, 2 }
   0x6   : > { %s8252_s19 = scalar_select %p18_p0, %s8198_s13, %s20_s18  }
   0x7   : > { %p29_p3 = por %p28_p2, %p27_p1  ;;  %127 = sbr.rel (%p6168_p4) target bundleno = 117 (0x75), region = 24 }
   0xe   : > { %130 = sbr.rel (!%p29_p3) target bundleno = 117 (0x75), region = 28  ;;  %s132_s20 = sand.u32 (%p29_p3), 1, %s8198_s13  }
   0xf   : > { %s6771_s21 = smul.u32 (%p29_p3), 392, %s8202_s14 }
  0x10   : > { %s7946_s22 = smul.u32 (%p29_p3), 1568, %s132_s20 }
  0x11   : > { %s8260_s25 = scalar_lea.vmem (%p29_p3), %s10505_s0, %s6771_s21 }
  0x12   : > { %v153_v0 = vld [vmem:[%s8260_s25] sm:$0xff] (%p29_p3)   ;;  %v157_v1 = vld [vmem:[%s8260_s25 + $0x8] sm:$0xff] (%p29_p3)   ;;  %v161_v2 = vld [vmem:[%s8260_s25 + $0x10] sm:$0xff] (%p29_p3)   ;;  %s8265_s26 = scalar_lea.vmem (%p29_p3), [#allocation2], %s7946_s22 }
  0x13   : > { %154 = vst [vmem:[%s8265_s26] sm:$0xff] (%p29_p3), %v153_v0   ;;  %158 = vst [vmem:[%s8265_s26 + $0x8] sm:$0xff] (%p29_p3), %v157_v1   ;;  %v165_v3 = vld [vmem:[%s8260_s25 + $0x18] sm:$0xff] (%p29_p3)   ;;  %v169_v4 = vld [vmem:[%s8260_s25 + $0x20] sm:$0xff] (%p29_p3)  }
  0x14   : > { %162 = vst [vmem:[%s8265_s26 + $0x10] sm:$0xff] (%p29_p3), %v161_v2   ;;  %v173_v5 = vld [vmem:[%s8260_s25 + $0x28] sm:$0xff] (%p29_p3)   ;;  %166 = vst [vmem:[%s8265_s26 + $0x18] sm:$0xff] (%p29_p3), %v165_v3   ;;  %v177_v6 = vld [vmem:[%s8260_s25 + $0x30] sm:$0xff] (%p29_p3)  }
  0x15   : > { %170 = vst [vmem:[%s8265_s26 + $0x20] sm:$0xff] %v169_v4   ;;  %174 = vst [vmem:[%s8265_s26 + $0x28] sm:$0xff] %v173_v5   ;;  %v181_v7 = vld [vmem:[%s8260_s25 + $0x38] sm:$0xff]   ;;  %v185_v8 = vld [vmem:[%s8260_s25 + $0x40] sm:$0xff]  }
  0x16   : > { %178 = vst [vmem:[%s8265_s26 + $0x30] sm:$0xff] %v177_v6   ;;  %182 = vst [vmem:[%s8265_s26 + $0x38] sm:$0xff] %v181_v7   ;;  %v189_v9 = vld [vmem:[%s8260_s25 + $0x48] sm:$0xff]   ;;  %v193_v10 = vld [vmem:[%s8260_s25 + $0x50] sm:$0xff]  }
  0x17   : > { %186 = vst [vmem:[%s8265_s26 + $0x40] sm:$0xff] %v185_v8   ;;  %v197_v11 = vld [vmem:[%s8260_s25 + $0x58] sm:$0xff]   ;;  %190 = vst [vmem:[%s8265_s26 + $0x48] sm:$0xff] %v189_v9   ;;  %v201_v12 = vld [vmem:[%s8260_s25 + $0x60] sm:$0xff]  }
  0x18   : > { %194 = vst [vmem:[%s8265_s26 + $0x50] sm:$0xff] %v193_v10   ;;  %198 = vst [vmem:[%s8265_s26 + $0x58] sm:$0xff] %v197_v11   ;;  %v205_v13 = vld [vmem:[%s8260_s25 + $0x68] sm:$0xff]   ;;  %v209_v14 = vld [vmem:[%s8260_s25 + $0x70] sm:$0xff]  }
  0x19   : > { %202 = vst [vmem:[%s8265_s26 + $0x60] sm:$0xff] %v201_v12   ;;  %206 = vst [vmem:[%s8265_s26 + $0x68] sm:$0xff] %v205_v13   ;;  %v213_v15 = vld [vmem:[%s8260_s25 + $0x78] sm:$0xff]   ;;  %v217_v16 = vld [vmem:[%s8260_s25 + $0x80] sm:$0xff]  }
  0x1a   : > { %210 = vst [vmem:[%s8265_s26 + $0x70] sm:$0xff] %v209_v14   ;;  %v221_v17 = vld [vmem:[%s8260_s25 + $0x88] sm:$0xff]   ;;  %214 = vst [vmem:[%s8265_s26 + $0x78] sm:$0xff] %v213_v15   ;;  %v225_v18 = vld [vmem:[%s8260_s25 + $0x90] sm:$0xff]  }
  0x1b   : > { %218 = vst [vmem:[%s8265_s26 + $0x80] sm:$0xff] %v217_v16   ;;  %222 = vst [vmem:[%s8265_s26 + $0x88] sm:$0xff] %v221_v17   ;;  %v229_v19 = vld [vmem:[%s8260_s25 + $0x98] sm:$0xff]   ;;  %v233_v20 = vld [vmem:[%s8260_s25 + $0xa0] sm:$0xff]  }
  0x1c   : > { %226 = vst [vmem:[%s8265_s26 + $0x90] sm:$0xff] %v225_v18   ;;  %230 = vst [vmem:[%s8265_s26 + $0x98] sm:$0xff] %v229_v19   ;;  %v237_v21 = vld [vmem:[%s8260_s25 + $0xa8] sm:$0xff]   ;;  %v241_v22 = vld [vmem:[%s8260_s25 + $0xb0] sm:$0xff]  }
  0x1d   : > { %234 = vst [vmem:[%s8265_s26 + $0xa0] sm:$0xff] %v233_v20   ;;  %v245_v23 = vld [vmem:[%s8260_s25 + $0xb8] sm:$0xff]   ;;  %238 = vst [vmem:[%s8265_s26 + $0xa8] sm:$0xff] %v237_v21   ;;  %v249_v24 = vld [vmem:[%s8260_s25 + $0xc0] sm:$0xff]  }
  0x1e   : > { %242 = vst [vmem:[%s8265_s26 + $0xb0] sm:$0xff] %v241_v22   ;;  %246 = vst [vmem:[%s8265_s26 + $0xb8] sm:$0xff] %v245_v23   ;;  %v253_v25 = vld [vmem:[%s8260_s25 + $0xc8] sm:$0xff]   ;;  %v257_v26 = vld [vmem:[%s8260_s25 + $0xd0] sm:$0xff]  }
  0x1f   : > { %250 = vst [vmem:[%s8265_s26 + $0xc0] sm:$0xff] %v249_v24   ;;  %254 = vst [vmem:[%s8265_s26 + $0xc8] sm:$0xff] %v253_v25   ;;  %v261_v27 = vld [vmem:[%s8260_s25 + $0xd8] sm:$0xff]   ;;  %v265_v28 = vld [vmem:[%s8260_s25 + $0xe0] sm:$0xff]  }
  0x20   : > { %258 = vst [vmem:[%s8265_s26 + $0xd0] sm:$0xff] %v257_v26   ;;  %v269_v29 = vld [vmem:[%s8260_s25 + $0xe8] sm:$0xff]   ;;  %262 = vst [vmem:[%s8265_s26 + $0xd8] sm:$0xff] %v261_v27   ;;  %v273_v30 = vld [vmem:[%s8260_s25 + $0xf0] sm:$0xff]  }
  0x21   : > { %266 = vst [vmem:[%s8265_s26 + $0xe0] sm:$0xff] %v265_v28   ;;  %270 = vst [vmem:[%s8265_s26 + $0xe8] sm:$0xff] %v269_v29   ;;  %v277_v31 = vld [vmem:[%s8260_s25 + $0xf8] sm:$0xff]   ;;  %v281_v32 = vld [vmem:[%s8260_s25 + $0x100] sm:$0xff]  }
  0x22   : > { %274 = vst [vmem:[%s8265_s26 + $0xf0] sm:$0xff] %v273_v30   ;;  %278 = vst [vmem:[%s8265_s26 + $0xf8] sm:$0xff] %v277_v31   ;;  %v285_v33 = vld [vmem:[%s8260_s25 + $0x108] sm:$0xff]   ;;  %v289_v34 = vld [vmem:[%s8260_s25 + $0x110] sm:$0xff]  }
  0x23   : > { %282 = vst [vmem:[%s8265_s26 + $0x100] sm:$0xff] %v281_v32   ;;  %v293_v35 = vld [vmem:[%s8260_s25 + $0x118] sm:$0xff]   ;;  %286 = vst [vmem:[%s8265_s26 + $0x108] sm:$0xff] %v285_v33   ;;  %v297_v36 = vld [vmem:[%s8260_s25 + $0x120] sm:$0xff]  }
  0x24   : > { %290 = vst [vmem:[%s8265_s26 + $0x110] sm:$0xff] %v289_v34   ;;  %294 = vst [vmem:[%s8265_s26 + $0x118] sm:$0xff] %v293_v35   ;;  %v301_v37 = vld [vmem:[%s8260_s25 + $0x128] sm:$0xff]   ;;  %v305_v38 = vld [vmem:[%s8260_s25 + $0x130] sm:$0xff]  }
  0x25   : > { %298 = vst [vmem:[%s8265_s26 + $0x120] sm:$0xff] %v297_v36   ;;  %302 = vst [vmem:[%s8265_s26 + $0x128] sm:$0xff] %v301_v37   ;;  %v309_v39 = vld [vmem:[%s8260_s25 + $0x138] sm:$0xff]   ;;  %v313_v40 = vld [vmem:[%s8260_s25 + $0x140] sm:$0xff]  }
  0x26   : > { %306 = vst [vmem:[%s8265_s26 + $0x130] sm:$0xff] %v305_v38   ;;  %v317_v41 = vld [vmem:[%s8260_s25 + $0x148] sm:$0xff]   ;;  %310 = vst [vmem:[%s8265_s26 + $0x138] sm:$0xff] %v309_v39   ;;  %v321_v42 = vld [vmem:[%s8260_s25 + $0x150] sm:$0xff]  }
  0x27   : > { %314 = vst [vmem:[%s8265_s26 + $0x140] sm:$0xff] %v313_v40   ;;  %318 = vst [vmem:[%s8265_s26 + $0x148] sm:$0xff] %v317_v41   ;;  %v325_v43 = vld [vmem:[%s8260_s25 + $0x158] sm:$0xff]   ;;  %v329_v44 = vld [vmem:[%s8260_s25 + $0x160] sm:$0xff]  }
  0x28   : > { %322 = vst [vmem:[%s8265_s26 + $0x150] sm:$0xff] %v321_v42   ;;  %326 = vst [vmem:[%s8265_s26 + $0x158] sm:$0xff] %v325_v43   ;;  %v333_v45 = vld [vmem:[%s8260_s25 + $0x168] sm:$0xff]   ;;  %v337_v46 = vld [vmem:[%s8260_s25 + $0x170] sm:$0xff]  }
  0x29   : > { %330 = vst [vmem:[%s8265_s26 + $0x160] sm:$0xff] %v329_v44   ;;  %v341_v47 = vld [vmem:[%s8260_s25 + $0x178] sm:$0xff]   ;;  %334 = vst [vmem:[%s8265_s26 + $0x168] sm:$0xff] %v333_v45   ;;  %v345_v48 = vld [vmem:[%s8260_s25 + $0x180] sm:$0xff]  }
  0x2a   : > { %338 = vst [vmem:[%s8265_s26 + $0x170] sm:$0xff] %v337_v46   ;;  %342 = vst [vmem:[%s8265_s26 + $0x178] sm:$0xff] %v341_v47   ;;  %v349_v49 = vld [vmem:[%s8260_s25 + $0x310] sm:$0xff]   ;;  %v353_v50 = vld [vmem:[%s8260_s25 + $0x318] sm:$0xff]  }
  0x2b   : > { %346 = vst [vmem:[%s8265_s26 + $0x180] sm:$0xff] %v345_v48   ;;  %350 = vst [vmem:[%s8265_s26 + $0x188] sm:$0xff] %v349_v49   ;;  %v357_v51 = vld [vmem:[%s8260_s25 + $0x320] sm:$0xff]   ;;  %v361_v52 = vld [vmem:[%s8260_s25 + $0x328] sm:$0xff]  }
  0x2c   : > { %354 = vst [vmem:[%s8265_s26 + $0x190] sm:$0xff] %v353_v50   ;;  %v365_v53 = vld [vmem:[%s8260_s25 + $0x330] sm:$0xff]   ;;  %358 = vst [vmem:[%s8265_s26 + $0x198] sm:$0xff] %v357_v51   ;;  %v369_v54 = vld [vmem:[%s8260_s25 + $0x338] sm:$0xff]  }
  0x2d   : > { %362 = vst [vmem:[%s8265_s26 + $0x1a0] sm:$0xff] %v361_v52   ;;  %366 = vst [vmem:[%s8265_s26 + $0x1a8] sm:$0xff] %v365_v53   ;;  %v373_v55 = vld [vmem:[%s8260_s25 + $0x340] sm:$0xff]   ;;  %v377_v56 = vld [vmem:[%s8260_s25 + $0x348] sm:$0xff]  }
  0x2e   : > { %370 = vst [vmem:[%s8265_s26 + $0x1b0] sm:$0xff] %v369_v54   ;;  %374 = vst [vmem:[%s8265_s26 + $0x1b8] sm:$0xff] %v373_v55   ;;  %v381_v57 = vld [vmem:[%s8260_s25 + $0x350] sm:$0xff]   ;;  %v385_v58 = vld [vmem:[%s8260_s25 + $0x358] sm:$0xff]  }
  0x2f   : > { %378 = vst [vmem:[%s8265_s26 + $0x1c0] sm:$0xff] %v377_v56   ;;  %v389_v59 = vld [vmem:[%s8260_s25 + $0x360] sm:$0xff]   ;;  %382 = vst [vmem:[%s8265_s26 + $0x1c8] sm:$0xff] %v381_v57   ;;  %v393_v60 = vld [vmem:[%s8260_s25 + $0x368] sm:$0xff]  }
  0x30   : > { %386 = vst [vmem:[%s8265_s26 + $0x1d0] sm:$0xff] %v385_v58   ;;  %390 = vst [vmem:[%s8265_s26 + $0x1d8] sm:$0xff] %v389_v59   ;;  %v397_v61 = vld [vmem:[%s8260_s25 + $0x370] sm:$0xff]   ;;  %v401_v62 = vld [vmem:[%s8260_s25 + $0x378] sm:$0xff]  }
  0x31   : > { %394 = vst [vmem:[%s8265_s26 + $0x1e0] sm:$0xff] %v393_v60   ;;  %398 = vst [vmem:[%s8265_s26 + $0x1e8] sm:$0xff] %v397_v61   ;;  %v405_v63 = vld [vmem:[%s8260_s25 + $0x380] sm:$0xff]   ;;  %v409_v0 = vld [vmem:[%s8260_s25 + $0x388] sm:$0xff]  }
  0x32   : > { %402 = vst [vmem:[%s8265_s26 + $0x1f0] sm:$0xff] %v401_v62   ;;  %v413_v1 = vld [vmem:[%s8260_s25 + $0x390] sm:$0xff]   ;;  %406 = vst [vmem:[%s8265_s26 + $0x1f8] sm:$0xff] %v405_v63   ;;  %v417_v2 = vld [vmem:[%s8260_s25 + $0x398] sm:$0xff]  }
  0x33   : > { %410 = vst [vmem:[%s8265_s26 + $0x200] sm:$0xff] %v409_v0   ;;  %414 = vst [vmem:[%s8265_s26 + $0x208] sm:$0xff] %v413_v1   ;;  %v421_v3 = vld [vmem:[%s8260_s25 + $0x3a0] sm:$0xff]   ;;  %v425_v4 = vld [vmem:[%s8260_s25 + $0x3a8] sm:$0xff]  }
  0x34   : > { %418 = vst [vmem:[%s8265_s26 + $0x210] sm:$0xff] %v417_v2   ;;  %422 = vst [vmem:[%s8265_s26 + $0x218] sm:$0xff] %v421_v3   ;;  %v429_v5 = vld [vmem:[%s8260_s25 + $0x3b0] sm:$0xff]   ;;  %v433_v6 = vld [vmem:[%s8260_s25 + $0x3b8] sm:$0xff]  }
  0x35   : > { %426 = vst [vmem:[%s8265_s26 + $0x220] sm:$0xff] %v425_v4   ;;  %v437_v7 = vld [vmem:[%s8260_s25 + $0x3c0] sm:$0xff]   ;;  %430 = vst [vmem:[%s8265_s26 + $0x228] sm:$0xff] %v429_v5   ;;  %v441_v8 = vld [vmem:[%s8260_s25 + $0x3c8] sm:$0xff]  }
  0x36   : > { %434 = vst [vmem:[%s8265_s26 + $0x230] sm:$0xff] %v433_v6   ;;  %438 = vst [vmem:[%s8265_s26 + $0x238] sm:$0xff] %v437_v7   ;;  %v445_v9 = vld [vmem:[%s8260_s25 + $0x3d0] sm:$0xff]   ;;  %v449_v10 = vld [vmem:[%s8260_s25 + $0x3d8] sm:$0xff]  }
  0x37   : > { %442 = vst [vmem:[%s8265_s26 + $0x240] sm:$0xff] %v441_v8   ;;  %446 = vst [vmem:[%s8265_s26 + $0x248] sm:$0xff] %v445_v9   ;;  %v453_v11 = vld [vmem:[%s8260_s25 + $0x3e0] sm:$0xff]   ;;  %v457_v12 = vld [vmem:[%s8260_s25 + $0x3e8] sm:$0xff]  }
  0x38   : > { %450 = vst [vmem:[%s8265_s26 + $0x250] sm:$0xff] %v449_v10   ;;  %v461_v13 = vld [vmem:[%s8260_s25 + $0x3f0] sm:$0xff]   ;;  %454 = vst [vmem:[%s8265_s26 + $0x258] sm:$0xff] %v453_v11   ;;  %v465_v14 = vld [vmem:[%s8260_s25 + $0x3f8] sm:$0xff]  }
  0x39   : > { %458 = vst [vmem:[%s8265_s26 + $0x260] sm:$0xff] %v457_v12   ;;  %462 = vst [vmem:[%s8265_s26 + $0x268] sm:$0xff] %v461_v13   ;;  %v469_v15 = vld [vmem:[%s8260_s25 + $0x400] sm:$0xff]   ;;  %v473_v16 = vld [vmem:[%s8260_s25 + $0x408] sm:$0xff]  }
  0x3a   : > { %466 = vst [vmem:[%s8265_s26 + $0x270] sm:$0xff] %v465_v14   ;;  %470 = vst [vmem:[%s8265_s26 + $0x278] sm:$0xff] %v469_v15   ;;  %v477_v17 = vld [vmem:[%s8260_s25 + $0x410] sm:$0xff]   ;;  %v481_v18 = vld [vmem:[%s8260_s25 + $0x418] sm:$0xff]  }
  0x3b   : > { %474 = vst [vmem:[%s8265_s26 + $0x280] sm:$0xff] %v473_v16   ;;  %v485_v19 = vld [vmem:[%s8260_s25 + $0x420] sm:$0xff]   ;;  %478 = vst [vmem:[%s8265_s26 + $0x288] sm:$0xff] %v477_v17   ;;  %v489_v20 = vld [vmem:[%s8260_s25 + $0x428] sm:$0xff]  }
  0x3c   : > { %482 = vst [vmem:[%s8265_s26 + $0x290] sm:$0xff] %v481_v18   ;;  %486 = vst [vmem:[%s8265_s26 + $0x298] sm:$0xff] %v485_v19   ;;  %v493_v21 = vld [vmem:[%s8260_s25 + $0x430] sm:$0xff]   ;;  %v497_v22 = vld [vmem:[%s8260_s25 + $0x438] sm:$0xff]  }
  0x3d   : > { %490 = vst [vmem:[%s8265_s26 + $0x2a0] sm:$0xff] %v489_v20   ;;  %494 = vst [vmem:[%s8265_s26 + $0x2a8] sm:$0xff] %v493_v21   ;;  %v501_v23 = vld [vmem:[%s8260_s25 + $0x440] sm:$0xff]   ;;  %v505_v24 = vld [vmem:[%s8260_s25 + $0x448] sm:$0xff]  }
  0x3e   : > { %498 = vst [vmem:[%s8265_s26 + $0x2b0] sm:$0xff] %v497_v22   ;;  %v509_v25 = vld [vmem:[%s8260_s25 + $0x450] sm:$0xff]   ;;  %502 = vst [vmem:[%s8265_s26 + $0x2b8] sm:$0xff] %v501_v23   ;;  %v513_v26 = vld [vmem:[%s8260_s25 + $0x458] sm:$0xff]  }
  0x3f   : > { %506 = vst [vmem:[%s8265_s26 + $0x2c0] sm:$0xff] %v505_v24   ;;  %510 = vst [vmem:[%s8265_s26 + $0x2c8] sm:$0xff] %v509_v25   ;;  %v517_v27 = vld [vmem:[%s8260_s25 + $0x460] sm:$0xff]   ;;  %v521_v28 = vld [vmem:[%s8260_s25 + $0x468] sm:$0xff]  }
  0x40   : > { %514 = vst [vmem:[%s8265_s26 + $0x2d0] sm:$0xff] %v513_v26   ;;  %518 = vst [vmem:[%s8265_s26 + $0x2d8] sm:$0xff] %v517_v27   ;;  %v525_v29 = vld [vmem:[%s8260_s25 + $0x470] sm:$0xff]   ;;  %v529_v30 = vld [vmem:[%s8260_s25 + $0x478] sm:$0xff]  }
  0x41   : > { %522 = vst [vmem:[%s8265_s26 + $0x2e0] sm:$0xff] %v521_v28   ;;  %v533_v31 = vld [vmem:[%s8260_s25 + $0x480] sm:$0xff]   ;;  %526 = vst [vmem:[%s8265_s26 + $0x2e8] sm:$0xff] %v525_v29   ;;  %v537_v32 = vld [vmem:[%s8260_s25 + $0x488] sm:$0xff]  }
  0x42   : > { %530 = vst [vmem:[%s8265_s26 + $0x2f0] sm:$0xff] %v529_v30   ;;  %534 = vst [vmem:[%s8265_s26 + $0x2f8] sm:$0xff] %v533_v31   ;;  %v541_v33 = vld [vmem:[%s8260_s25 + $0x490] sm:$0xff]   ;;  %v545_v34 = vld [vmem:[%s8260_s25 + $0x620] sm:$0xff]  }
  0x43   : > { %538 = vst [vmem:[%s8265_s26 + $0x300] sm:$0xff] %v537_v32   ;;  %542 = vst [vmem:[%s8265_s26 + $0x308] sm:$0xff] %v541_v33   ;;  %v549_v35 = vld [vmem:[%s8260_s25 + $0x628] sm:$0xff]   ;;  %v553_v36 = vld [vmem:[%s8260_s25 + $0x630] sm:$0xff]  }
  0x44   : > { %546 = vst [vmem:[%s8265_s26 + $0x310] sm:$0xff] %v545_v34   ;;  %v557_v37 = vld [vmem:[%s8260_s25 + $0x638] sm:$0xff]   ;;  %550 = vst [vmem:[%s8265_s26 + $0x318] sm:$0xff] %v549_v35   ;;  %v561_v38 = vld [vmem:[%s8260_s25 + $0x640] sm:$0xff]  }
  0x45   : > { %554 = vst [vmem:[%s8265_s26 + $0x320] sm:$0xff] %v553_v36   ;;  %558 = vst [vmem:[%s8265_s26 + $0x328] sm:$0xff] %v557_v37   ;;  %v565_v39 = vld [vmem:[%s8260_s25 + $0x648] sm:$0xff]   ;;  %v569_v40 = vld [vmem:[%s8260_s25 + $0x650] sm:$0xff]  }
  0x46   : > { %562 = vst [vmem:[%s8265_s26 + $0x330] sm:$0xff] %v561_v38   ;;  %566 = vst [vmem:[%s8265_s26 + $0x338] sm:$0xff] %v565_v39   ;;  %v573_v41 = vld [vmem:[%s8260_s25 + $0x658] sm:$0xff]   ;;  %v577_v42 = vld [vmem:[%s8260_s25 + $0x660] sm:$0xff]  }
  0x47   : > { %570 = vst [vmem:[%s8265_s26 + $0x340] sm:$0xff] %v569_v40   ;;  %v581_v43 = vld [vmem:[%s8260_s25 + $0x668] sm:$0xff]   ;;  %574 = vst [vmem:[%s8265_s26 + $0x348] sm:$0xff] %v573_v41   ;;  %v585_v44 = vld [vmem:[%s8260_s25 + $0x670] sm:$0xff]  }
  0x48   : > { %578 = vst [vmem:[%s8265_s26 + $0x350] sm:$0xff] %v577_v42   ;;  %582 = vst [vmem:[%s8265_s26 + $0x358] sm:$0xff] %v581_v43   ;;  %v589_v45 = vld [vmem:[%s8260_s25 + $0x678] sm:$0xff]   ;;  %v593_v46 = vld [vmem:[%s8260_s25 + $0x680] sm:$0xff]  }
  0x49   : > { %586 = vst [vmem:[%s8265_s26 + $0x360] sm:$0xff] %v585_v44   ;;  %590 = vst [vmem:[%s8265_s26 + $0x368] sm:$0xff] %v589_v45   ;;  %v597_v47 = vld [vmem:[%s8260_s25 + $0x688] sm:$0xff]   ;;  %v601_v48 = vld [vmem:[%s8260_s25 + $0x690] sm:$0xff]  }
  0x4a   : > { %594 = vst [vmem:[%s8265_s26 + $0x370] sm:$0xff] %v593_v46   ;;  %v605_v49 = vld [vmem:[%s8260_s25 + $0x698] sm:$0xff]   ;;  %598 = vst [vmem:[%s8265_s26 + $0x378] sm:$0xff] %v597_v47   ;;  %v609_v50 = vld [vmem:[%s8260_s25 + $0x6a0] sm:$0xff]  }
  0x4b   : > { %602 = vst [vmem:[%s8265_s26 + $0x380] sm:$0xff] %v601_v48   ;;  %606 = vst [vmem:[%s8265_s26 + $0x388] sm:$0xff] %v605_v49   ;;  %v613_v51 = vld [vmem:[%s8260_s25 + $0x6a8] sm:$0xff]   ;;  %v617_v52 = vld [vmem:[%s8260_s25 + $0x6b0] sm:$0xff]  }
  0x4c   : > { %610 = vst [vmem:[%s8265_s26 + $0x390] sm:$0xff] %v609_v50   ;;  %614 = vst [vmem:[%s8265_s26 + $0x398] sm:$0xff] %v613_v51   ;;  %v621_v53 = vld [vmem:[%s8260_s25 + $0x6b8] sm:$0xff]   ;;  %v625_v54 = vld [vmem:[%s8260_s25 + $0x6c0] sm:$0xff]  }
  0x4d   : > { %618 = vst [vmem:[%s8265_s26 + $0x3a0] sm:$0xff] %v617_v52   ;;  %v629_v55 = vld [vmem:[%s8260_s25 + $0x6c8] sm:$0xff]   ;;  %622 = vst [vmem:[%s8265_s26 + $0x3a8] sm:$0xff] %v621_v53   ;;  %v633_v56 = vld [vmem:[%s8260_s25 + $0x6d0] sm:$0xff]  }
  0x4e   : > { %626 = vst [vmem:[%s8265_s26 + $0x3b0] sm:$0xff] %v625_v54   ;;  %630 = vst [vmem:[%s8265_s26 + $0x3b8] sm:$0xff] %v629_v55   ;;  %v637_v57 = vld [vmem:[%s8260_s25 + $0x6d8] sm:$0xff]   ;;  %v641_v58 = vld [vmem:[%s8260_s25 + $0x6e0] sm:$0xff]  }
  0x4f   : > { %634 = vst [vmem:[%s8265_s26 + $0x3c0] sm:$0xff] %v633_v56   ;;  %638 = vst [vmem:[%s8265_s26 + $0x3c8] sm:$0xff] %v637_v57   ;;  %v645_v59 = vld [vmem:[%s8260_s25 + $0x6e8] sm:$0xff]   ;;  %v649_v60 = vld [vmem:[%s8260_s25 + $0x6f0] sm:$0xff]  }
  0x50   : > { %642 = vst [vmem:[%s8265_s26 + $0x3d0] sm:$0xff] %v641_v58   ;;  %v653_v61 = vld [vmem:[%s8260_s25 + $0x6f8] sm:$0xff]   ;;  %646 = vst [vmem:[%s8265_s26 + $0x3d8] sm:$0xff] %v645_v59   ;;  %v657_v62 = vld [vmem:[%s8260_s25 + $0x700] sm:$0xff]  }
  0x51   : > { %650 = vst [vmem:[%s8265_s26 + $0x3e0] sm:$0xff] %v649_v60   ;;  %654 = vst [vmem:[%s8265_s26 + $0x3e8] sm:$0xff] %v653_v61   ;;  %v661_v63 = vld [vmem:[%s8260_s25 + $0x708] sm:$0xff]   ;;  %v665_v0 = vld [vmem:[%s8260_s25 + $0x710] sm:$0xff]  }
  0x52   : > { %658 = vst [vmem:[%s8265_s26 + $0x3f0] sm:$0xff] %v657_v62   ;;  %662 = vst [vmem:[%s8265_s26 + $0x3f8] sm:$0xff] %v661_v63   ;;  %v669_v1 = vld [vmem:[%s8260_s25 + $0x718] sm:$0xff]   ;;  %v673_v2 = vld [vmem:[%s8260_s25 + $0x720] sm:$0xff]  }
  0x53   : > { %666 = vst [vmem:[%s8265_s26 + $0x400] sm:$0xff] %v665_v0   ;;  %v677_v3 = vld [vmem:[%s8260_s25 + $0x728] sm:$0xff]   ;;  %670 = vst [vmem:[%s8265_s26 + $0x408] sm:$0xff] %v669_v1   ;;  %v681_v4 = vld [vmem:[%s8260_s25 + $0x730] sm:$0xff]  }
  0x54   : > { %674 = vst [vmem:[%s8265_s26 + $0x410] sm:$0xff] %v673_v2   ;;  %678 = vst [vmem:[%s8265_s26 + $0x418] sm:$0xff] %v677_v3   ;;  %v685_v5 = vld [vmem:[%s8260_s25 + $0x738] sm:$0xff]   ;;  %v689_v6 = vld [vmem:[%s8260_s25 + $0x740] sm:$0xff]  }
  0x55   : > { %682 = vst [vmem:[%s8265_s26 + $0x420] sm:$0xff] %v681_v4   ;;  %686 = vst [vmem:[%s8265_s26 + $0x428] sm:$0xff] %v685_v5   ;;  %v693_v7 = vld [vmem:[%s8260_s25 + $0x748] sm:$0xff]   ;;  %v697_v8 = vld [vmem:[%s8260_s25 + $0x750] sm:$0xff]  }
  0x56   : > { %690 = vst [vmem:[%s8265_s26 + $0x430] sm:$0xff] %v689_v6   ;;  %v701_v9 = vld [vmem:[%s8260_s25 + $0x758] sm:$0xff]   ;;  %694 = vst [vmem:[%s8265_s26 + $0x438] sm:$0xff] %v693_v7   ;;  %v705_v10 = vld [vmem:[%s8260_s25 + $0x760] sm:$0xff]  }
  0x57   : > { %698 = vst [vmem:[%s8265_s26 + $0x440] sm:$0xff] %v697_v8   ;;  %702 = vst [vmem:[%s8265_s26 + $0x448] sm:$0xff] %v701_v9   ;;  %v709_v11 = vld [vmem:[%s8260_s25 + $0x768] sm:$0xff]   ;;  %v713_v12 = vld [vmem:[%s8260_s25 + $0x770] sm:$0xff]  }
  0x58   : > { %706 = vst [vmem:[%s8265_s26 + $0x450] sm:$0xff] %v705_v10   ;;  %710 = vst [vmem:[%s8265_s26 + $0x458] sm:$0xff] %v709_v11   ;;  %v717_v13 = vld [vmem:[%s8260_s25 + $0x778] sm:$0xff]   ;;  %v721_v14 = vld [vmem:[%s8260_s25 + $0x780] sm:$0xff]  }
  0x59   : > { %714 = vst [vmem:[%s8265_s26 + $0x460] sm:$0xff] %v713_v12   ;;  %v725_v15 = vld [vmem:[%s8260_s25 + $0x788] sm:$0xff]   ;;  %718 = vst [vmem:[%s8265_s26 + $0x468] sm:$0xff] %v717_v13   ;;  %v729_v16 = vld [vmem:[%s8260_s25 + $0x790] sm:$0xff]  }
  0x5a   : > { %722 = vst [vmem:[%s8265_s26 + $0x470] sm:$0xff] %v721_v14   ;;  %726 = vst [vmem:[%s8265_s26 + $0x478] sm:$0xff] %v725_v15   ;;  %v733_v17 = vld [vmem:[%s8260_s25 + $0x798] sm:$0xff]   ;;  %v737_v18 = vld [vmem:[%s8260_s25 + $0x7a0] sm:$0xff]  }
  0x5b   : > { %730 = vst [vmem:[%s8265_s26 + $0x480] sm:$0xff] %v729_v16   ;;  %734 = vst [vmem:[%s8265_s26 + $0x488] sm:$0xff] %v733_v17   ;;  %v741_v19 = vld [vmem:[%s8260_s25 + $0x930] sm:$0xff]   ;;  %v745_v20 = vld [vmem:[%s8260_s25 + $0x938] sm:$0xff]  }
  0x5c   : > { %738 = vst [vmem:[%s8265_s26 + $0x490] sm:$0xff] %v737_v18   ;;  %v749_v21 = vld [vmem:[%s8260_s25 + $0x940] sm:$0xff]   ;;  %742 = vst [vmem:[%s8265_s26 + $0x498] sm:$0xff] %v741_v19   ;;  %v753_v22 = vld [vmem:[%s8260_s25 + $0x948] sm:$0xff]  }
  0x5d   : > { %746 = vst [vmem:[%s8265_s26 + $0x4a0] sm:$0xff] %v745_v20   ;;  %750 = vst [vmem:[%s8265_s26 + $0x4a8] sm:$0xff] %v749_v21   ;;  %v757_v23 = vld [vmem:[%s8260_s25 + $0x950] sm:$0xff]   ;;  %v761_v24 = vld [vmem:[%s8260_s25 + $0x958] sm:$0xff]  }
  0x5e   : > { %754 = vst [vmem:[%s8265_s26 + $0x4b0] sm:$0xff] %v753_v22   ;;  %758 = vst [vmem:[%s8265_s26 + $0x4b8] sm:$0xff] %v757_v23   ;;  %v765_v25 = vld [vmem:[%s8260_s25 + $0x960] sm:$0xff]   ;;  %v769_v26 = vld [vmem:[%s8260_s25 + $0x968] sm:$0xff]  }
  0x5f   : > { %762 = vst [vmem:[%s8265_s26 + $0x4c0] sm:$0xff] %v761_v24   ;;  %v773_v27 = vld [vmem:[%s8260_s25 + $0x970] sm:$0xff]   ;;  %766 = vst [vmem:[%s8265_s26 + $0x4c8] sm:$0xff] %v765_v25   ;;  %v777_v28 = vld [vmem:[%s8260_s25 + $0x978] sm:$0xff]  }
  0x60   : > { %770 = vst [vmem:[%s8265_s26 + $0x4d0] sm:$0xff] %v769_v26   ;;  %774 = vst [vmem:[%s8265_s26 + $0x4d8] sm:$0xff] %v773_v27   ;;  %v781_v29 = vld [vmem:[%s8260_s25 + $0x980] sm:$0xff]   ;;  %v785_v30 = vld [vmem:[%s8260_s25 + $0x988] sm:$0xff]  }
  0x61   : > { %778 = vst [vmem:[%s8265_s26 + $0x4e0] sm:$0xff] %v777_v28   ;;  %782 = vst [vmem:[%s8265_s26 + $0x4e8] sm:$0xff] %v781_v29   ;;  %v789_v31 = vld [vmem:[%s8260_s25 + $0x990] sm:$0xff]   ;;  %v793_v32 = vld [vmem:[%s8260_s25 + $0x998] sm:$0xff]  }
  0x62   : > { %786 = vst [vmem:[%s8265_s26 + $0x4f0] sm:$0xff] %v785_v30   ;;  %v797_v33 = vld [vmem:[%s8260_s25 + $0x9a0] sm:$0xff]   ;;  %790 = vst [vmem:[%s8265_s26 + $0x4f8] sm:$0xff] %v789_v31   ;;  %v801_v34 = vld [vmem:[%s8260_s25 + $0x9a8] sm:$0xff]  }
  0x63   : > { %794 = vst [vmem:[%s8265_s26 + $0x500] sm:$0xff] %v793_v32   ;;  %798 = vst [vmem:[%s8265_s26 + $0x508] sm:$0xff] %v797_v33   ;;  %v805_v35 = vld [vmem:[%s8260_s25 + $0x9b0] sm:$0xff]   ;;  %v809_v36 = vld [vmem:[%s8260_s25 + $0x9b8] sm:$0xff]  }
  0x64   : > { %802 = vst [vmem:[%s8265_s26 + $0x510] sm:$0xff] %v801_v34   ;;  %806 = vst [vmem:[%s8265_s26 + $0x518] sm:$0xff] %v805_v35   ;;  %v813_v37 = vld [vmem:[%s8260_s25 + $0x9c0] sm:$0xff]   ;;  %v817_v38 = vld [vmem:[%s8260_s25 + $0x9c8] sm:$0xff]  }
  0x65   : > { %810 = vst [vmem:[%s8265_s26 + $0x520] sm:$0xff] %v809_v36   ;;  %v821_v39 = vld [vmem:[%s8260_s25 + $0x9d0] sm:$0xff]   ;;  %814 = vst [vmem:[%s8265_s26 + $0x528] sm:$0xff] %v813_v37   ;;  %v825_v40 = vld [vmem:[%s8260_s25 + $0x9d8] sm:$0xff]  }
  0x66   : > { %818 = vst [vmem:[%s8265_s26 + $0x530] sm:$0xff] %v817_v38   ;;  %822 = vst [vmem:[%s8265_s26 + $0x538] sm:$0xff] %v821_v39   ;;  %v829_v41 = vld [vmem:[%s8260_s25 + $0x9e0] sm:$0xff]   ;;  %v833_v42 = vld [vmem:[%s8260_s25 + $0x9e8] sm:$0xff]  }
  0x67   : > { %826 = vst [vmem:[%s8265_s26 + $0x540] sm:$0xff] %v825_v40   ;;  %830 = vst [vmem:[%s8265_s26 + $0x548] sm:$0xff] %v829_v41   ;;  %v837_v43 = vld [vmem:[%s8260_s25 + $0x9f0] sm:$0xff]   ;;  %v841_v44 = vld [vmem:[%s8260_s25 + $0x9f8] sm:$0xff]  }
  0x68   : > { %834 = vst [vmem:[%s8265_s26 + $0x550] sm:$0xff] %v833_v42   ;;  %v845_v45 = vld [vmem:[%s8260_s25 + $0xa00] sm:$0xff]   ;;  %838 = vst [vmem:[%s8265_s26 + $0x558] sm:$0xff] %v837_v43   ;;  %v849_v46 = vld [vmem:[%s8260_s25 + $0xa08] sm:$0xff]  }
  0x69   : > { %842 = vst [vmem:[%s8265_s26 + $0x560] sm:$0xff] %v841_v44   ;;  %846 = vst [vmem:[%s8265_s26 + $0x568] sm:$0xff] %v845_v45   ;;  %v853_v47 = vld [vmem:[%s8260_s25 + $0xa10] sm:$0xff]   ;;  %v857_v48 = vld [vmem:[%s8260_s25 + $0xa18] sm:$0xff]  }
  0x6a   : > { %850 = vst [vmem:[%s8265_s26 + $0x570] sm:$0xff] %v849_v46   ;;  %854 = vst [vmem:[%s8265_s26 + $0x578] sm:$0xff] %v853_v47   ;;  %v861_v49 = vld [vmem:[%s8260_s25 + $0xa20] sm:$0xff]   ;;  %v865_v50 = vld [vmem:[%s8260_s25 + $0xa28] sm:$0xff]  }
  0x6b   : > { %858 = vst [vmem:[%s8265_s26 + $0x580] sm:$0xff] %v857_v48   ;;  %v869_v51 = vld [vmem:[%s8260_s25 + $0xa30] sm:$0xff]   ;;  %862 = vst [vmem:[%s8265_s26 + $0x588] sm:$0xff] %v861_v49   ;;  %v873_v52 = vld [vmem:[%s8260_s25 + $0xa38] sm:$0xff]  }
  0x6c   : > { %866 = vst [vmem:[%s8265_s26 + $0x590] sm:$0xff] %v865_v50   ;;  %870 = vst [vmem:[%s8265_s26 + $0x598] sm:$0xff] %v869_v51   ;;  %v877_v53 = vld [vmem:[%s8260_s25 + $0xa40] sm:$0xff]   ;;  %v881_v54 = vld [vmem:[%s8260_s25 + $0xa48] sm:$0xff]  }
  0x6d   : > { %874 = vst [vmem:[%s8265_s26 + $0x5a0] sm:$0xff] %v873_v52   ;;  %878 = vst [vmem:[%s8265_s26 + $0x5a8] sm:$0xff] %v877_v53   ;;  %v885_v55 = vld [vmem:[%s8260_s25 + $0xa50] sm:$0xff]   ;;  %v889_v56 = vld [vmem:[%s8260_s25 + $0xa58] sm:$0xff]  }
  0x6e   : > { %882 = vst [vmem:[%s8265_s26 + $0x5b0] sm:$0xff] %v881_v54   ;;  %v893_v57 = vld [vmem:[%s8260_s25 + $0xa60] sm:$0xff]   ;;  %886 = vst [vmem:[%s8265_s26 + $0x5b8] sm:$0xff] %v885_v55   ;;  %v897_v58 = vld [vmem:[%s8260_s25 + $0xa68] sm:$0xff]  }
  0x6f   : > { %890 = vst [vmem:[%s8265_s26 + $0x5c0] sm:$0xff] %v889_v56   ;;  %894 = vst [vmem:[%s8265_s26 + $0x5c8] sm:$0xff] %v893_v57   ;;  %v901_v59 = vld [vmem:[%s8260_s25 + $0xa70] sm:$0xff]   ;;  %v905_v60 = vld [vmem:[%s8260_s25 + $0xa78] sm:$0xff]  }
  0x70   : > { %898 = vst [vmem:[%s8265_s26 + $0x5d0] sm:$0xff] %v897_v58   ;;  %902 = vst [vmem:[%s8265_s26 + $0x5d8] sm:$0xff] %v901_v59   ;;  %v909_v61 = vld [vmem:[%s8260_s25 + $0xa80] sm:$0xff]   ;;  %v913_v62 = vld [vmem:[%s8260_s25 + $0xa88] sm:$0xff]  }
  0x71   : > { %906 = vst [vmem:[%s8265_s26 + $0x5e0] sm:$0xff] %v905_v60   ;;  %v917_v63 = vld [vmem:[%s8260_s25 + $0xa90] sm:$0xff]   ;;  %910 = vst [vmem:[%s8265_s26 + $0x5e8] sm:$0xff] %v909_v61   ;;  %v921_v0 = vld [vmem:[%s8260_s25 + $0xa98] sm:$0xff]  }
  0x72   : > { %914 = vst [vmem:[%s8265_s26 + $0x5f0] sm:$0xff] %v913_v62   ;;  %918 = vst [vmem:[%s8265_s26 + $0x5f8] sm:$0xff] %v917_v63   ;;  %v925_v1 = vld [vmem:[%s8260_s25 + $0xaa0] sm:$0xff]   ;;  %v929_v2 = vld [vmem:[%s8260_s25 + $0xaa8] sm:$0xff]  }
  0x73   : > { %922 = vst [vmem:[%s8265_s26 + $0x600] sm:$0xff] %v921_v0   ;;  %926 = vst [vmem:[%s8265_s26 + $0x608] sm:$0xff] %v925_v1   ;;  %v933_v3 = vld [vmem:[%s8260_s25 + $0xab0] sm:$0xff]  }
  0x74   : > { %930 = vst [vmem:[%s8265_s26 + $0x610] sm:$0xff] %v929_v2   ;;  %934 = vst [vmem:[%s8265_s26 + $0x618] sm:$0xff] %v933_v3  }
  0x75 PF: > { %p6170_p5 = scmp.ge.s32.totalorder %s8202_s14, 1  ;;  %p1742_p6 = scmp.lt.s32.totalorder %s8202_s14, 3 }
  0x77   : > { %p1743_p7 = pnand %p6170_p5, %p1742_p6 }
  0x79   : > { %1746 = sbr.rel (%p1743_p7) target bundleno = 1162 (0x48a), region = 69 }
  0x80   : > { %v7974_v4 = vld [vmem:[%s10506_s1] sm:$0xff]   ;;  %v10509_v5 = vmov 0.0   ;;  %v7975_v6 = vld [vmem:[%s10506_s1 + $0x8] sm:$0xff]   ;;  %s1749_s4 = sand.u32 1, %s8194_s12   ;;  %vm8205_vm0 = vmmov 0   ;;  %v7976_v7 = vld [vmem:[%s10506_s1 + $0x10] sm:$0xff]  }
  0x81   : > { %7098 = vmatprep.subr.bf16.mxu0 %v10509_v5  ;;  %7310 = vmatprep.subr.bf16.mxu1 %v10509_v5  ;;  %s7947_s5 = smul.u32 1568, %s1749_s4  ;;  %v7977_v8 = vld [vmem:[%s10506_s1 + $0x18] sm:$0xff]   ;;  %v7978_v9 = vld [vmem:[%s10506_s1 + $0x20] sm:$0xff]   ;;  %v7979_v10 = vld [vmem:[%s10506_s1 + $0x28] sm:$0xff]   ;;  %vm6004_vm1 = vcmask 125952  }
  0x82   : > { %7099 = vmatpush3.bf16.msra.mxu0 %v7974_v4  ;;  %7311 = vmatpush3.bf16.msra.mxu1 %v7974_v4  ;;  %v7980_v11 = vld [vmem:[%s10506_s1 + $0x30] sm:$0xff]   ;;  %v7981_v12 = vld [vmem:[%s10506_s1 + $0x38] sm:$0xff]   ;;  %s1773_s24 = smul.u32 98, %s6165_s15 }
  0x83   : > { %7100 = vmatprep.subr.bf16.mxu0 %v10509_v5  ;;  %7312 = vmatprep.subr.bf16.mxu1 %v10509_v5  ;;  %s8678_s8 = scalar_lea.vmem [#allocation2], %s7947_s5 }
  0x84   : > { %7114 = vmatprep.mubr.msk.bf16.mxu0 %vm8205_vm0, %v10509_v5  ;;  %7326 = vmatprep.mubr.msk.bf16.mxu1 %vm8205_vm0, %v10509_v5  ;;  %v7982_v13 = vld [vmem:[%s8678_s8] sm:$0xff]   ;;  %v7983_v14 = vld [vmem:[%s8678_s8 + $0x188] sm:$0xff]   ;;  %v7985_v16 = vld [vmem:[%s8678_s8 + $0x190] sm:$0xff]   ;;  %p1774_p8 = scmp.lt.s32.totalorder %s1773_s24, 195 }
  0x85   : > { %v7984_v15 = vld [vmem:[%s8678_s8 + $0x8] sm:$0xff]   ;;  %v7986_v17 = vld [vmem:[%s8678_s8 + $0x10] sm:$0xff]   ;;  %v7987_v18 = vld [vmem:[%s8678_s8 + $0x198] sm:$0xff]  }
  0x86   : > { %7101 = vmatpush3.bf16.msra.mxu0 %v7975_v6  ;;  %7313 = vmatpush3.bf16.msra.mxu1 %v7975_v6  ;;  %v7988_v19 = vld [vmem:[%s8678_s8 + $0x18] sm:$0xff]   ;;  %v7989_v20 = vld [vmem:[%s8678_s8 + $0x1a0] sm:$0xff]   ;;  %v7991_v22 = vld [vmem:[%s8678_s8 + $0x1a8] sm:$0xff]   ;;  %s11058_s24 = smov (!%p1774_p8, %s1773_s24), 195 }
  0x87   : > { %7102 = vmatprep.subr.bf16.mxu0 %v10509_v5  ;;  %7314 = vmatprep.subr.bf16.mxu1 %v10509_v5  ;;  %v7990_v21 = vld [vmem:[%s8678_s8 + $0x20] sm:$0xff]   ;;  %v7992_v23 = vld [vmem:[%s8678_s8 + $0x28] sm:$0xff]   ;;  %v7993_v24 = vld [vmem:[%s8678_s8 + $0x1b0] sm:$0xff]   ;;  %s6171_s25 = sshll.u32 %s11058_s24, 2 }
  0x88   : > { %v7994_v25 = vld [vmem:[%s8678_s8 + $0x30] sm:$0xff]   ;;  %v7995_v26 = vld [vmem:[%s8678_s8 + $0x1b8] sm:$0xff]   ;;  %v7997_v28 = vld [vmem:[%s8678_s8 + $0x1c0] sm:$0xff]   ;;  %s9789_s28 = scalar_lea.vmem %s10508_s3, %s6171_s25 }
  0x89   : > { %v7996_v27 = vld [vmem:[%s8678_s8 + $0x38] sm:$0xff]   ;;  %v7998_v29 = vld [vmem:[%s8678_s8 + $0x40] sm:$0xff]   ;;  %v7999_v30 = vld [vmem:[%s8678_s8 + $0x1c8] sm:$0xff]  }
  0x8a   : > { %7103 = vmatpush3.bf16.msra.mxu0 %v7976_v7  ;;  %7315 = vmatpush3.bf16.msra.mxu1 %v7976_v7  ;;  %v8000_v31 = vld [vmem:[%s8678_s8 + $0x48] sm:$0xff]   ;;  %v8001_v32 = vld [vmem:[%s8678_s8 + $0x1d0] sm:$0xff]   ;;  %v8003_v34 = vld [vmem:[%s8678_s8 + $0x1d8] sm:$0xff]  }
  0x8b   : > { %7104 = vmatprep.subr.bf16.mxu0 %v10509_v5  ;;  %7316 = vmatprep.subr.bf16.mxu1 %v10509_v5  ;;  %v8002_v33 = vld [vmem:[%s8678_s8 + $0x50] sm:$0xff]   ;;  %v8004_v35 = vld [vmem:[%s8678_s8 + $0x58] sm:$0xff]   ;;  %v8005_v36 = vld [vmem:[%s8678_s8 + $0x1e0] sm:$0xff]  }
  0x8c   : > { %v8006_v37 = vld [vmem:[%s8678_s8 + $0x60] sm:$0xff]   ;;  %v8007_v38 = vld [vmem:[%s8678_s8 + $0x1e8] sm:$0xff]   ;;  %v8009_v40 = vld [vmem:[%s8678_s8 + $0x1f0] sm:$0xff]  }
  0x8d   : > { %v8008_v39 = vld [vmem:[%s8678_s8 + $0x68] sm:$0xff]   ;;  %v8010_v41 = vld [vmem:[%s8678_s8 + $0x70] sm:$0xff]   ;;  %v8011_v42 = vld [vmem:[%s8678_s8 + $0x1f8] sm:$0xff]  }
  0x8e   : > { %7105 = vmatpush3.bf16.msra.mxu0 %v7977_v8  ;;  %7317 = vmatpush3.bf16.msra.mxu1 %v7977_v8  ;;  %v8012_v43 = vld [vmem:[%s8678_s8 + $0x78] sm:$0xff]   ;;  %v8013_v44 = vld [vmem:[%s8678_s8 + $0x200] sm:$0xff]   ;;  %v8015_v46 = vld [vmem:[%s8678_s8 + $0x208] sm:$0xff]  }
  0x8f   : > { %7106 = vmatprep.subr.bf16.mxu0 %v10509_v5  ;;  %7318 = vmatprep.subr.bf16.mxu1 %v10509_v5  ;;  %v8014_v45 = vld [vmem:[%s8678_s8 + $0x80] sm:$0xff]   ;;  %v8016_v47 = vld [vmem:[%s8678_s8 + $0x88] sm:$0xff]   ;;  %v8017_v48 = vld [vmem:[%s8678_s8 + $0x210] sm:$0xff]  }
  0x90   : > { %v8018_v49 = vld [vmem:[%s8678_s8 + $0x90] sm:$0xff]   ;;  %v8019_v50 = vld [vmem:[%s8678_s8 + $0x218] sm:$0xff]   ;;  %v8021_v52 = vld [vmem:[%s8678_s8 + $0x220] sm:$0xff]  }
  0x91   : > { %v8020_v51 = vld [vmem:[%s8678_s8 + $0x98] sm:$0xff]   ;;  %v8022_v53 = vld [vmem:[%s8678_s8 + $0xa0] sm:$0xff]   ;;  %v8023_v54 = vld [vmem:[%s8678_s8 + $0x228] sm:$0xff]  }
  0x92   : > { %7107 = vmatpush3.bf16.msra.mxu0 %v7978_v9  ;;  %7319 = vmatpush3.bf16.msra.mxu1 %v7978_v9  ;;  %v8024_v55 = vld [vmem:[%s8678_s8 + $0xa8] sm:$0xff]   ;;  %v8025_v56 = vld [vmem:[%s8678_s8 + $0x230] sm:$0xff]   ;;  %v8027_v58 = vld [vmem:[%s8678_s8 + $0x238] sm:$0xff]  }
  0x93   : > { %7108 = vmatprep.subr.bf16.mxu0 %v10509_v5  ;;  %7320 = vmatprep.subr.bf16.mxu1 %v10509_v5  ;;  %v8026_v57 = vld [vmem:[%s8678_s8 + $0xb0] sm:$0xff]   ;;  %v8028_v59 = vld [vmem:[%s8678_s8 + $0xb8] sm:$0xff]   ;;  %v8029_v60 = vld [vmem:[%s8678_s8 + $0x240] sm:$0xff]  }
  0x94   : > { %v8030_v61 = vld [vmem:[%s8678_s8 + $0xc0] sm:$0xff]   ;;  %v8031_v62 = vld [vmem:[%s8678_s8 + $0x248] sm:$0xff]   ;;  %v8033_v0 = vld [vmem:[%s8678_s8 + $0x250] sm:$0xff]  }
  0x95   : > { %v8032_v63 = vld [vmem:[%s8678_s8 + $0xc8] sm:$0xff]   ;;  %v8034_v1 = vld [vmem:[%s8678_s8 + $0xd0] sm:$0xff]   ;;  %v8035_v2 = vld [vmem:[%s8678_s8 + $0x258] sm:$0xff]  }
  0x96   : > { %7109 = vmatpush3.bf16.msra.mxu0 %v7979_v10  ;;  %7321 = vmatpush3.bf16.msra.mxu1 %v7979_v10 }
  0x97   : > { %7110 = vmatprep.subr.bf16.mxu0 %v10509_v5  ;;  %7322 = vmatprep.subr.bf16.mxu1 %v10509_v5 }
  0x9a   : > { %7111 = vmatpush3.bf16.msra.mxu0 %v7980_v11  ;;  %7323 = vmatpush3.bf16.msra.mxu1 %v7980_v11 }
  0x9b   : > { %7112 = vmatprep.subr.bf16.mxu0 %v10509_v5  ;;  %7324 = vmatprep.subr.bf16.mxu1 %v10509_v5 }
  0x9e   : > { %7113 = vmatpush3.bf16.msra.mxu0 %v7981_v12  ;;  %7325 = vmatpush3.bf16.msra.mxu1 %v7981_v12 }
  0x9f   : > { %7522 = vmatprep.subr.bf16.mxu0 %v10509_v5  ;;  %7734 = vmatprep.subr.bf16.mxu1 %v10509_v5 }
  0xa1   : > { %7115 = vmatmul.mubr.bf16.vlgmr.msra.gmra.mrb[0].mxu0 %v7982_v13  ;;  %7327 = vmatmul.mubr.bf16.vlgmr.msra.gmra.mrb[0].mxu1 %v7983_v14 }
  0xa2   : > { %7523 = vmatpush3.bf16.msra.mxu0 %v7974_v4  ;;  %7735 = vmatpush3.bf16.msra.mxu1 %v7974_v4 }
  0xa3   : > { %7118 = vmatprep.mubr.msk.bf16.mxu0 %vm8205_vm0, %v10509_v5  ;;  %7330 = vmatprep.mubr.msk.bf16.mxu1 %vm8205_vm0, %v10509_v5 }
  0xa4   : > { %7524 = vmatprep.subr.bf16.mxu0 %v10509_v5  ;;  %7736 = vmatprep.subr.bf16.mxu1 %v10509_v5 }
  0xa6   : > { %7525 = vmatpush3.bf16.msra.mxu0 %v7975_v6  ;;  %7737 = vmatpush3.bf16.msra.mxu1 %v7975_v6 }
  0xa7   : > { %7526 = vmatprep.subr.bf16.mxu0 %v10509_v5  ;;  %7738 = vmatprep.subr.bf16.mxu1 %v10509_v5 }
  0xa9   : > { %7119 = vmatmul.mubr.bf16.gmra.mrb[4].mxu0 %v7984_v15  ;;  %7331 = vmatmul.mubr.bf16.gmra.mrb[4].mxu1 %v7985_v16  ;;  %v8062_v15 = vld [vmem:[%s8678_s8 + $0x140] sm:$0xff]  }
  0xaa   : > { %7122 = vmatprep.mubr.msk.bf16.mxu0 %vm8205_vm0, %v10509_v5  ;;  %7334 = vmatprep.mubr.msk.bf16.mxu1 %vm8205_vm0, %v10509_v5 }
  0xab   : > { %7527 = vmatpush3.bf16.msra.mxu0 %v7976_v7  ;;  %7739 = vmatpush3.bf16.msra.mxu1 %v7976_v7 }
  0xac   : > { %7528 = vmatprep.subr.bf16.mxu0 %v10509_v5  ;;  %7740 = vmatprep.subr.bf16.mxu1 %v10509_v5 }
  0xaf   : > { %7529 = vmatpush3.bf16.msra.mxu0 %v7977_v8  ;;  %7741 = vmatpush3.bf16.msra.mxu1 %v7977_v8  ;;  %v8036_v8 = vld [vmem:[%s8678_s8 + $0xd8] sm:$0xff]  }
  0xb0   : > { %7530 = vmatprep.subr.bf16.mxu0 %v10509_v5  ;;  %7742 = vmatprep.subr.bf16.mxu1 %v10509_v5 }
  0xb1   : > { %7123 = vmatmul.mubr.bf16.gmra.mrb[8].mxu0 %v7986_v17  ;;  %7335 = vmatmul.mubr.bf16.gmra.mrb[8].mxu1 %v7987_v18 }
  0xb2   : > { %7126 = vmatprep.mubr.msk.bf16.mxu0 %vm8205_vm0, %v10509_v5  ;;  %7338 = vmatprep.mubr.msk.bf16.mxu1 %vm8205_vm0, %v10509_v5 }
  0xb3   : > { %7531 = vmatpush3.bf16.msra.mxu0 %v7978_v9  ;;  %7743 = vmatpush3.bf16.msra.mxu1 %v7978_v9  ;;  %v8037_v9 = vld [vmem:[%s8678_s8 + $0x260] sm:$0xff]  }
  0xb4   : > { %7532 = vmatprep.subr.bf16.mxu0 %v10509_v5  ;;  %7744 = vmatprep.subr.bf16.mxu1 %v10509_v5 }
  0xb7   : > { %7533 = vmatpush3.bf16.msra.mxu0 %v7979_v10  ;;  %7745 = vmatpush3.bf16.msra.mxu1 %v7979_v10 }
  0xb8   : > { %7534 = vmatprep.subr.bf16.mxu0 %v10509_v5  ;;  %7746 = vmatprep.subr.bf16.mxu1 %v10509_v5 }
  0xb9   : > { %7127 = vmatmul.mubr.bf16.gmra.mrb[12].mxu0 %v7988_v19  ;;  %7339 = vmatmul.mubr.bf16.gmra.mrb[12].mxu1 %v7989_v20  ;;  %v8038_v20 = vld [vmem:[%s8678_s8 + $0xe0] sm:$0xff]  }
  0xba   : > { %7130 = vmatprep.mubr.msk.bf16.mxu0 %vm8205_vm0, %v10509_v5  ;;  %7342 = vmatprep.mubr.msk.bf16.mxu1 %vm8205_vm0, %v10509_v5 }
  0xbb   : > { %7535 = vmatpush3.bf16.msra.mxu0 %v7980_v11  ;;  %7747 = vmatpush3.bf16.msra.mxu1 %v7980_v11 }
  0xbc   : > { %7536 = vmatprep.subr.bf16.mxu0 %v10509_v5  ;;  %7748 = vmatprep.subr.bf16.mxu1 %v10509_v5 }
  0xbf   : > { %7537 = vmatpush3.bf16.msra.mxu0 %v7981_v12  ;;  %7749 = vmatpush3.bf16.msra.mxu1 %v7981_v12 }
  0xc1   : > { %7131 = vmatmul.mubr.bf16.gmra.mrb[16].mxu0 %v7990_v21  ;;  %7343 = vmatmul.mubr.bf16.gmra.mrb[16].mxu1 %v7991_v22  ;;  %v8039_v21 = vld [vmem:[%s8678_s8 + $0x268] sm:$0xff]  }
  0xc2   : > { %7134 = vmatprep.mubr.msk.bf16.mxu0 %vm8205_vm0, %v10509_v5  ;;  %7346 = vmatprep.mubr.msk.bf16.mxu1 %vm8205_vm0, %v10509_v5 }
  0xc9   : > { %7135 = vmatmul.mubr.bf16.gmra.mrb[20].mxu0 %v7992_v23  ;;  %7347 = vmatmul.mubr.bf16.gmra.mrb[20].mxu1 %v7993_v24 }
  0xca   : > { %7138 = vmatprep.mubr.msk.bf16.mxu0 %vm8205_vm0, %v10509_v5  ;;  %7350 = vmatprep.mubr.msk.bf16.mxu1 %vm8205_vm0, %v10509_v5 }
  0xd1   : > { %7139 = vmatmul.mubr.bf16.gmra.mrb[24].mxu0 %v7994_v25  ;;  %7351 = vmatmul.mubr.bf16.gmra.mrb[24].mxu1 %v7995_v26 }
  0xd2   : > { %7142 = vmatprep.mubr.msk.bf16.mxu0 %vm8205_vm0, %v10509_v5  ;;  %7354 = vmatprep.mubr.msk.bf16.mxu1 %vm8205_vm0, %v10509_v5 }
  0xd9   : > { %7143 = vmatmul.mubr.bf16.gmra.mrb[28].mxu0 %v7996_v27  ;;  %7355 = vmatmul.mubr.bf16.gmra.mrb[28].mxu1 %v7997_v28 }
  0xda   : > { %7146 = vmatprep.mubr.msk.bf16.mxu0 %vm8205_vm0, %v10509_v5  ;;  %7358 = vmatprep.mubr.msk.bf16.mxu1 %vm8205_vm0, %v10509_v5 }
  0xe1   : > { %7147 = vmatmul.mubr.bf16.gmra.mrb[32].mxu0 %v7998_v29  ;;  %7359 = vmatmul.mubr.bf16.gmra.mrb[32].mxu1 %v7999_v30 }
  0xe2   : > { %7150 = vmatprep.mubr.msk.bf16.mxu0 %vm8205_vm0, %v10509_v5  ;;  %7362 = vmatprep.mubr.msk.bf16.mxu1 %vm8205_vm0, %v10509_v5 }
  0xe9   : > { %7151 = vmatmul.mubr.bf16.gmra.mrb[36].mxu0 %v8000_v31  ;;  %7363 = vmatmul.mubr.bf16.gmra.mrb[36].mxu1 %v8001_v32  ;;  %v8040_v32 = vld [vmem:[%s8678_s8 + $0xe8] sm:$0xff]  }
  0xea   : > { %7154 = vmatprep.mubr.msk.bf16.mxu0 %vm8205_vm0, %v10509_v5  ;;  %7366 = vmatprep.mubr.msk.bf16.mxu1 %vm8205_vm0, %v10509_v5 }
  0xf1   : > { %7155 = vmatmul.mubr.bf16.gmra.mrb[40].mxu0 %v8002_v33  ;;  %7367 = vmatmul.mubr.bf16.gmra.mrb[40].mxu1 %v8003_v34  ;;  %v8041_v33 = vld [vmem:[%s8678_s8 + $0x270] sm:$0xff]  }
  0xf2   : > { %7158 = vmatprep.mubr.msk.bf16.mxu0 %vm8205_vm0, %v10509_v5  ;;  %7370 = vmatprep.mubr.msk.bf16.mxu1 %vm8205_vm0, %v10509_v5 }
  0xf9   : > { %7159 = vmatmul.mubr.bf16.gmra.mrb[44].mxu0 %v8004_v35  ;;  %7371 = vmatmul.mubr.bf16.gmra.mrb[44].mxu1 %v8005_v36 }
  0xfa   : > { %7162 = vmatprep.mubr.msk.bf16.mxu0 %vm8205_vm0, %v10509_v5  ;;  %7374 = vmatprep.mubr.msk.bf16.mxu1 %vm8205_vm0, %v10509_v5 }
 0x101   : > { %7163 = vmatmul.mubr.bf16.gmra.mrb[48].mxu0 %v8006_v37  ;;  %7375 = vmatmul.mubr.bf16.gmra.mrb[48].mxu1 %v8007_v38 }
 0x102   : > { %7166 = vmatprep.mubr.msk.bf16.mxu0 %vm8205_vm0, %v10509_v5  ;;  %7378 = vmatprep.mubr.msk.bf16.mxu1 %vm8205_vm0, %v10509_v5 }
 0x109   : > { %7167 = vmatmul.mubr.bf16.gmra.mrb[52].mxu0 %v8008_v39  ;;  %7379 = vmatmul.mubr.bf16.gmra.mrb[52].mxu1 %v8009_v40  ;;  %v8060_v39 = vld [vmem:[%s8678_s8 + $0x138] sm:$0xff]  }
 0x10a   : > { %7170 = vmatprep.mubr.msk.bf16.mxu0 %vm8205_vm0, %v10509_v5  ;;  %7382 = vmatprep.mubr.msk.bf16.mxu1 %vm8205_vm0, %v10509_v5 }
 0x111   : > { %7171 = vmatmul.mubr.bf16.gmra.mrb[56].mxu0 %v8010_v41  ;;  %7383 = vmatmul.mubr.bf16.gmra.mrb[56].mxu1 %v8011_v42 }
 0x112   : > { %7174 = vmatprep.mubr.msk.bf16.mxu0 %vm8205_vm0, %v10509_v5  ;;  %7386 = vmatprep.mubr.msk.bf16.mxu1 %vm8205_vm0, %v10509_v5 }
 0x119   : > { %7175 = vmatmul.mubr.bf16.gmra.mrb[60].mxu0 %v8012_v43  ;;  %7387 = vmatmul.mubr.bf16.gmra.mrb[60].mxu1 %v8013_v44  ;;  %v8042_v44 = vld [vmem:[%s8678_s8 + $0xf0] sm:$0xff]  }
 0x11a   : > { %7178 = vmatprep.mubr.msk.bf16.mxu0 %vm8205_vm0, %v10509_v5  ;;  %7390 = vmatprep.mubr.msk.bf16.mxu1 %vm8205_vm0, %v10509_v5 }
 0x121   : > { %7179 = vmatmul.mubr.bf16.gmra.mrb[64].mxu0 %v8014_v45  ;;  %7391 = vmatmul.mubr.bf16.gmra.mrb[64].mxu1 %v8015_v46  ;;  %v8043_v45 = vld [vmem:[%s8678_s8 + $0x278] sm:$0xff]  }
 0x122   : > { %7182 = vmatprep.mubr.msk.bf16.mxu0 %vm8205_vm0, %v10509_v5  ;;  %7394 = vmatprep.mubr.msk.bf16.mxu1 %vm8205_vm0, %v10509_v5 }
 0x129   : > { %7183 = vmatmul.mubr.bf16.gmra.mrb[68].mxu0 %v8016_v47  ;;  %7395 = vmatmul.mubr.bf16.gmra.mrb[68].mxu1 %v8017_v48 }
 0x12a   : > { %7186 = vmatprep.mubr.msk.bf16.mxu0 %vm8205_vm0, %v10509_v5  ;;  %7398 = vmatprep.mubr.msk.bf16.mxu1 %vm8205_vm0, %v10509_v5 }
 0x131   : > { %7187 = vmatmul.mubr.bf16.gmra.mrb[72].mxu0 %v8018_v49  ;;  %7399 = vmatmul.mubr.bf16.gmra.mrb[72].mxu1 %v8019_v50 }
 0x132   : > { %7190 = vmatprep.mubr.msk.bf16.mxu0 %vm8205_vm0, %v10509_v5  ;;  %7402 = vmatprep.mubr.msk.bf16.mxu1 %vm8205_vm0, %v10509_v5 }
 0x139   : > { %7191 = vmatmul.mubr.bf16.gmra.mrb[76].mxu0 %v8020_v51  ;;  %7403 = vmatmul.mubr.bf16.gmra.mrb[76].mxu1 %v8021_v52 }
 0x13a   : > { %7194 = vmatprep.mubr.msk.bf16.mxu0 %vm8205_vm0, %v10509_v5  ;;  %7406 = vmatprep.mubr.msk.bf16.mxu1 %vm8205_vm0, %v10509_v5 }
 0x141   : > { %7195 = vmatmul.mubr.bf16.gmra.mrb[80].mxu0 %v8022_v53  ;;  %7407 = vmatmul.mubr.bf16.gmra.mrb[80].mxu1 %v8023_v54 }
 0x142   : > { %7198 = vmatprep.mubr.msk.bf16.mxu0 %vm8205_vm0, %v10509_v5  ;;  %7410 = vmatprep.mubr.msk.bf16.mxu1 %vm8205_vm0, %v10509_v5 }
 0x149   : > { %7199 = vmatmul.mubr.bf16.gmra.mrb[84].mxu0 %v8024_v55  ;;  %7411 = vmatmul.mubr.bf16.gmra.mrb[84].mxu1 %v8025_v56  ;;  %v8044_v56 = vld [vmem:[%s8678_s8 + $0xf8] sm:$0xff]  }
 0x14a   : > { %7202 = vmatprep.mubr.msk.bf16.mxu0 %vm8205_vm0, %v10509_v5  ;;  %7414 = vmatprep.mubr.msk.bf16.mxu1 %vm8205_vm0, %v10509_v5 }
 0x151   : > { %7203 = vmatmul.mubr.bf16.gmra.mrb[88].mxu0 %v8026_v57  ;;  %7415 = vmatmul.mubr.bf16.gmra.mrb[88].mxu1 %v8027_v58  ;;  %v8045_v57 = vld [vmem:[%s8678_s8 + $0x280] sm:$0xff]  }
 0x152   : > { %7206 = vmatprep.mubr.msk.bf16.mxu0 %vm8205_vm0, %v10509_v5  ;;  %7418 = vmatprep.mubr.msk.bf16.mxu1 %vm8205_vm0, %v10509_v5 }
 0x159   : > { %7207 = vmatmul.mubr.bf16.gmra.mrb[92].mxu0 %v8028_v59  ;;  %7419 = vmatmul.mubr.bf16.gmra.mrb[92].mxu1 %v8029_v60 }
 0x15a   : > { %7210 = vmatprep.mubr.msk.bf16.mxu0 %vm8205_vm0, %v10509_v5  ;;  %7422 = vmatprep.mubr.msk.bf16.mxu1 %vm8205_vm0, %v10509_v5 }
 0x161   : > { %7211 = vmatmul.mubr.bf16.gmra.mrb[96].mxu0 %v8030_v61  ;;  %7423 = vmatmul.mubr.bf16.gmra.mrb[96].mxu1 %v8031_v62 }
 0x162   : > { %7214 = vmatprep.mubr.msk.bf16.mxu0 %vm8205_vm0, %v10509_v5  ;;  %7426 = vmatprep.mubr.msk.bf16.mxu1 %vm8205_vm0, %v10509_v5 }
 0x169   : > { %7215 = vmatmul.mubr.bf16.gmra.mrb[100].mxu0 %v8032_v63  ;;  %7427 = vmatmul.mubr.bf16.gmra.mrb[100].mxu1 %v8033_v0  ;;  %v8058_v63 = vld [vmem:[%s8678_s8 + $0x130] sm:$0xff]  }
 0x16a   : > { %7218 = vmatprep.mubr.msk.bf16.mxu0 %vm8205_vm0, %v10509_v5  ;;  %7430 = vmatprep.mubr.msk.bf16.mxu1 %vm8205_vm0, %v10509_v5 }
 0x171   : > { %7219 = vmatmul.mubr.bf16.gmra.mrb[104].mxu0 %v8034_v1  ;;  %7431 = vmatmul.mubr.bf16.gmra.mrb[104].mxu1 %v8035_v2 }
 0x172   : > { %7222 = vmatprep.mubr.msk.bf16.mxu0 %vm8205_vm0, %v10509_v5  ;;  %7434 = vmatprep.mubr.msk.bf16.mxu1 %vm8205_vm0, %v10509_v5 }
 0x174   : > { %v8883_v3 = vpop.f32.mrb[0].mxu0  ;;  %v8885_v4 = vpop.f32.mrb[0].mxu1 }
 0x175   : > { %v7116_v6 = vpop.f32.mrb[1].mxu0  ;;  %v7328_v7 = vpop.f32.mrb[1].mxu1 }
 0x176   : > { %v8891_v11 = vpop.f32.mrb[2].mxu0  ;;  %v8893_v12 = vpop.f32.mrb[2].mxu1  ;;  %v8046_v7 = vld [vmem:[%s8678_s8 + $0x100] sm:$0xff]  }
 0x177   : > { %v7117_v13 = vpop.f32.mrb[3].mxu0  ;;  %v7329_v14 = vpop.f32.mrb[3].mxu1 }
 0x179   : > { %7223 = vmatmul.mubr.bf16.gmra.mrb[108].mxu0 %v8036_v8  ;;  %7435 = vmatmul.mubr.bf16.gmra.mrb[108].mxu1 %v8037_v9  ;;  %v8047_v8 = vld [vmem:[%s8678_s8 + $0x288] sm:$0xff]  }
 0x17a   : > { %7226 = vmatprep.mubr.msk.bf16.mxu0 %vm8205_vm0, %v10509_v5  ;;  %7438 = vmatprep.mubr.msk.bf16.mxu1 %vm8205_vm0, %v10509_v5 }
 0x17c   : > { %v8901_v16 = vpop.f32.mrb[4].mxu0  ;;  %v8903_v17 = vpop.f32.mrb[4].mxu1 }
 0x17d   : > { %v7120_v18 = vpop.f32.mrb[5].mxu0  ;;  %v7332_v19 = vpop.f32.mrb[5].mxu1 }
 0x17e   : > { %v8909_v23 = vpop.f32.mrb[6].mxu0  ;;  %v8911_v24 = vpop.f32.mrb[6].mxu1 }
 0x17f   : > { %v7121_v25 = vpop.f32.mrb[7].mxu0  ;;  %v7333_v26 = vpop.f32.mrb[7].mxu1 }
 0x181   : > { %7227 = vmatmul.mubr.bf16.gmra.mrb[112].mxu0 %v8038_v20  ;;  %7439 = vmatmul.mubr.bf16.gmra.mrb[112].mxu1 %v8039_v21 }
 0x182   : > { %7230 = vmatprep.mubr.msk.bf16.mxu0 %vm8205_vm0, %v10509_v5  ;;  %7442 = vmatprep.mubr.msk.bf16.mxu1 %vm8205_vm0, %v10509_v5 }
 0x184   : > { %v8919_v28 = vpop.f32.mrb[8].mxu0  ;;  %v8921_v29 = vpop.f32.mrb[8].mxu1 }
 0x185   : > { %v7124_v30 = vpop.f32.mrb[9].mxu0  ;;  %v7336_v31 = vpop.f32.mrb[9].mxu1 }
 0x186   : > { %v8927_v35 = vpop.f32.mrb[10].mxu0  ;;  %v8929_v36 = vpop.f32.mrb[10].mxu1  ;;  %v8048_v31 = vld [vmem:[%s8678_s8 + $0x108] sm:$0xff]  }
 0x187   : > { %v7125_v37 = vpop.f32.mrb[11].mxu0  ;;  %v7337_v38 = vpop.f32.mrb[11].mxu1 }
 0x189   : > { %7231 = vmatmul.mubr.bf16.gmra.mrb[116].mxu0 %v8040_v32  ;;  %7443 = vmatmul.mubr.bf16.gmra.mrb[116].mxu1 %v8041_v33  ;;  %v8049_v32 = vld [vmem:[%s8678_s8 + $0x290] sm:$0xff]  }
 0x18a   : > { %7234 = vmatprep.mubr.msk.bf16.mxu0 %vm8205_vm0, %v10509_v5  ;;  %7446 = vmatprep.mubr.msk.bf16.mxu1 %vm8205_vm0, %v10509_v5 }
 0x18c   : > { %v8937_v40 = vpop.f32.mrb[12].mxu0  ;;  %v8939_v41 = vpop.f32.mrb[12].mxu1 }
 0x18d   : > { %v7128_v42 = vpop.f32.mrb[13].mxu0  ;;  %v7340_v43 = vpop.f32.mrb[13].mxu1 }
 0x18e   : > { %v8945_v47 = vpop.f32.mrb[14].mxu0  ;;  %v8947_v48 = vpop.f32.mrb[14].mxu1 }
 0x18f   : > { %v7129_v49 = vpop.f32.mrb[15].mxu0  ;;  %v7341_v50 = vpop.f32.mrb[15].mxu1 }
 0x191   : > { %7235 = vmatmul.mubr.bf16.gmra.mrb[120].mxu0 %v8042_v44  ;;  %7447 = vmatmul.mubr.bf16.gmra.mrb[120].mxu1 %v8043_v45  ;;  %v8056_v44 = vld [vmem:[%s8678_s8 + $0x128] sm:$0xff]  }
 0x192   : > { %7238 = vmatprep.mubr.msk.bf16.mxu0 %vm8205_vm0, %v10509_v5  ;;  %7450 = vmatprep.mubr.msk.bf16.mxu1 %vm8205_vm0, %v10509_v5 }
 0x194   : > { %v8955_v52 = vpop.f32.mrb[16].mxu0  ;;  %v8957_v53 = vpop.f32.mrb[16].mxu1 }
 0x195   : > { %v7132_v54 = vpop.f32.mrb[17].mxu0  ;;  %v7344_v55 = vpop.f32.mrb[17].mxu1 }
 0x196   : > { %v8963_v59 = vpop.f32.mrb[18].mxu0  ;;  %v8965_v60 = vpop.f32.mrb[18].mxu1  ;;  %v8050_v55 = vld [vmem:[%s8678_s8 + $0x110] sm:$0xff]  }
 0x197   : > { %v7133_v61 = vpop.f32.mrb[19].mxu0  ;;  %v7345_v62 = vpop.f32.mrb[19].mxu1 }
 0x199   : > { %7239 = vmatmul.mubr.bf16.gmra.mrb[124].mxu0 %v8044_v56  ;;  %7451 = vmatmul.mubr.bf16.gmra.mrb[124].mxu1 %v8045_v57  ;;  %v8051_v56 = vld [vmem:[%s8678_s8 + $0x298] sm:$0xff]  }
 0x19a   : > { %7242 = vmatprep.mubr.msk.bf16.mxu0 %vm8205_vm0, %v10509_v5  ;;  %7454 = vmatprep.mubr.msk.bf16.mxu1 %vm8205_vm0, %v10509_v5 }
 0x19c   : > { %v8973_v0 = vpop.f32.mrb[20].mxu0  ;;  %v8975_v1 = vpop.f32.mrb[20].mxu1 }
 0x19d   : > { %v7136_v2 = vpop.f32.mrb[21].mxu0  ;;  %v7348_v6 = vpop.f32.mrb[21].mxu1 }
 0x19e   : > { %v8981_v13 = vpop.f32.mrb[22].mxu0  ;;  %v8983_v14 = vpop.f32.mrb[22].mxu1 }
 0x19f   : > { %v7137_v18 = vpop.f32.mrb[23].mxu0  ;;  %v7349_v19 = vpop.f32.mrb[23].mxu1 }
 0x1a1   : > { %7243 = vmatmul.mubr.bf16.gmra.mrb[128].mxu0 %v8046_v7  ;;  %7455 = vmatmul.mubr.bf16.gmra.mrb[128].mxu1 %v8047_v8 }
 0x1a2   : > { %7246 = vmatprep.mubr.msk.bf16.mxu0 %vm8205_vm0, %v10509_v5  ;;  %7458 = vmatprep.mubr.msk.bf16.mxu1 %vm8205_vm0, %v10509_v5 }
 0x1a4   : > { %v8991_v21 = vpop.f32.mrb[24].mxu0  ;;  %v8993_v25 = vpop.f32.mrb[24].mxu1 }
 0x1a5   : > { %v7140_v26 = vpop.f32.mrb[25].mxu0  ;;  %v7352_v30 = vpop.f32.mrb[25].mxu1 }
 0x1a6   : > { %v8999_v37 = vpop.f32.mrb[26].mxu0  ;;  %v9001_v38 = vpop.f32.mrb[26].mxu1  ;;  %v8052_v30 = vld [vmem:[%s8678_s8 + $0x118] sm:$0xff]  }
 0x1a7   : > { %v7141_v42 = vpop.f32.mrb[27].mxu0  ;;  %v7353_v43 = vpop.f32.mrb[27].mxu1 }
 0x1a9   : > { %7247 = vmatmul.mubr.bf16.gmra.mrb[132].mxu0 %v8048_v31  ;;  %7459 = vmatmul.mubr.bf16.gmra.mrb[132].mxu1 %v8049_v32  ;;  %v8053_v31 = vld [vmem:[%s8678_s8 + $0x2a0] sm:$0xff]  }
 0x1aa   : > { %7250 = vmatprep.mubr.msk.bf16.mxu0 %vm8205_vm0, %v10509_v5  ;;  %7462 = vmatprep.mubr.msk.bf16.mxu1 %vm8205_vm0, %v10509_v5 }
 0x1ac   : > { %v9009_v45 = vpop.f32.mrb[28].mxu0  ;;  %v9011_v49 = vpop.f32.mrb[28].mxu1 }
 0x1ad   : > { %v7144_v50 = vpop.f32.mrb[29].mxu0  ;;  %v7356_v54 = vpop.f32.mrb[29].mxu1 }
 0x1ae   : > { %v9017_v61 = vpop.f32.mrb[30].mxu0  ;;  %v9019_v62 = vpop.f32.mrb[30].mxu1 }
 0x1af   : > { %v7145_v2 = vpop.f32.mrb[31].mxu0  ;;  %v7357_v6 = vpop.f32.mrb[31].mxu1 }
 0x1b1   : > { %7251 = vmatmul.mubr.bf16.gmra.mrb[136].mxu0 %v8050_v55  ;;  %7463 = vmatmul.mubr.bf16.gmra.mrb[136].mxu1 %v8051_v56 }
 0x1b2   : > { %7254 = vmatprep.mubr.msk.bf16.mxu0 %vm8205_vm0, %v10509_v5  ;;  %7466 = vmatprep.mubr.msk.bf16.mxu1 %vm8205_vm0, %v10509_v5 }
 0x1b4   : > { %v9027_v8 = vpop.f32.mrb[32].mxu0  ;;  %v9029_v18 = vpop.f32.mrb[32].mxu1 }
 0x1b5   : > { %v7148_v19 = vpop.f32.mrb[33].mxu0  ;;  %v7360_v26 = vpop.f32.mrb[33].mxu1 }
 0x1b6   : > { %v9035_v42 = vpop.f32.mrb[34].mxu0  ;;  %v9037_v43 = vpop.f32.mrb[34].mxu1  ;;  %v8054_v26 = vld [vmem:[%s8678_s8 + $0x120] sm:$0xff]  }
 0x1b7   : > { %v7149_v50 = vpop.f32.mrb[35].mxu0  ;;  %v7361_v54 = vpop.f32.mrb[35].mxu1 }
 0x1b8   : > { %v8055_v50 = vld [vmem:[%s8678_s8 + $0x2a8] sm:$0xff]  }
 0x1b9   : > { %7255 = vmatmul.mubr.bf16.gmra.mrb[140].mxu0 %v8052_v30  ;;  %7467 = vmatmul.mubr.bf16.gmra.mrb[140].mxu1 %v8053_v31 }
 0x1ba   : > { %7258 = vmatprep.mubr.msk.bf16.mxu0 %vm8205_vm0, %v10509_v5  ;;  %7470 = vmatprep.mubr.msk.bf16.mxu1 %vm8205_vm0, %v10509_v5 }
 0x1bc   : > { %v9045_v56 = vpop.f32.mrb[36].mxu0  ;;  %v9047_v2 = vpop.f32.mrb[36].mxu1 }
 0x1bd   : > { %v7152_v6 = vpop.f32.mrb[37].mxu0  ;;  %v7364_v19 = vpop.f32.mrb[37].mxu1 }
 0x1be   : > { %v9053_v31 = vpop.f32.mrb[38].mxu0  ;;  %v9055_v54 = vpop.f32.mrb[38].mxu1 }
 0x1bf   : > { %v7153_v55 = vpop.f32.mrb[39].mxu0  ;;  %v7365_v32 = vpop.f32.mrb[39].mxu1 }
 0x1c0   : > { %v8057_v32 = vld [vmem:[%s8678_s8 + $0x2b0] sm:$0xff]  }
 0x1c1   : > { %7259 = vmatmul.mubr.bf16.gmra.mrb[144].mxu0 %v8054_v26  ;;  %7471 = vmatmul.mubr.bf16.gmra.mrb[144].mxu1 %v8055_v50 }
 0x1c2   : > { %7262 = vmatprep.mubr.msk.bf16.mxu0 %vm8205_vm0, %v10509_v5  ;;  %7474 = vmatprep.mubr.msk.bf16.mxu1 %vm8205_vm0, %v10509_v5 }
 0x1c4   : > { %v9063_v6 = vpop.f32.mrb[40].mxu0  ;;  %v9065_v19 = vpop.f32.mrb[40].mxu1 }
 0x1c5   : > { %v7156_v30 = vpop.f32.mrb[41].mxu0  ;;  %v7368_v57 = vpop.f32.mrb[41].mxu1 }
 0x1c6   : > { %v9071_v26 = vpop.f32.mrb[42].mxu0  ;;  %v9073_v50 = vpop.f32.mrb[42].mxu1 }
 0x1c7   : > { %v7157_v7 = vpop.f32.mrb[43].mxu0  ;;  %v7369_v33 = vpop.f32.mrb[43].mxu1 }
 0x1c8   : > { %v8059_v33 = vld [vmem:[%s8678_s8 + $0x2b8] sm:$0xff]  }
 0x1c9   : > { %7263 = vmatmul.mubr.bf16.gmra.mrb[148].mxu0 %v8056_v44  ;;  %7475 = vmatmul.mubr.bf16.gmra.mrb[148].mxu1 %v8057_v32 }
 0x1ca   : > { %7266 = vmatprep.mubr.msk.bf16.mxu0 %vm8205_vm0, %v10509_v5  ;;  %7478 = vmatprep.mubr.msk.bf16.mxu1 %vm8205_vm0, %v10509_v5 }
 0x1cc   : > { %v9081_v57 = vpop.f32.mrb[44].mxu0  ;;  %v9083_v30 = vpop.f32.mrb[44].mxu1 }
 0x1cd   : > { %v7160_v55 = vpop.f32.mrb[45].mxu0  ;;  %v7372_v9 = vpop.f32.mrb[45].mxu1 }
 0x1ce   : > { %v9089_v7 = vpop.f32.mrb[46].mxu0  ;;  %v9091_v32 = vpop.f32.mrb[46].mxu1 }
 0x1cf   : > { %v7161_v20 = vpop.f32.mrb[47].mxu0  ;;  %v7373_v58 = vpop.f32.mrb[47].mxu1 }
 0x1d0   : > { %v8061_v58 = vld [vmem:[%s8678_s8 + $0x2c0] sm:$0xff]  }
 0x1d1   : > { %7267 = vmatmul.mubr.bf16.gmra.mrb[152].mxu0 %v8058_v63  ;;  %7479 = vmatmul.mubr.bf16.gmra.mrb[152].mxu1 %v8059_v33 }
 0x1d2   : > { %7270 = vmatprep.mubr.msk.bf16.mxu0 %vm8205_vm0, %v10509_v5  ;;  %7482 = vmatprep.mubr.msk.bf16.mxu1 %vm8205_vm0, %v10509_v5 }
 0x1d4   : > { %v9099_v9 = vpop.f32.mrb[48].mxu0  ;;  %v9101_v55 = vpop.f32.mrb[48].mxu1 }
 0x1d5   : > { %10659 = vst [vmem:[#allocation3_spill] sm:$0xff] %v9099_v9  ;;  %10660 = vst [vmem:[#allocation4_spill] sm:$0xff] %v9101_v55  ;;  %v7164_v44 = vpop.f32.mrb[49].mxu0  ;;  %v7376_v46 = vpop.f32.mrb[49].mxu1 }
 0x1d6   : > { %v9107_v20 = vpop.f32.mrb[50].mxu0  ;;  %v9109_v33 = vpop.f32.mrb[50].mxu1 }
 0x1d7   : > { %10661 = vst [vmem:[#allocation5_spill] sm:$0xff] %v9107_v20  ;;  %10662 = vst [vmem:[#allocation6_spill] sm:$0xff] %v9109_v33  ;;  %v7165_v51 = vpop.f32.mrb[51].mxu0  ;;  %v7377_v34 = vpop.f32.mrb[51].mxu1  ;;  %v8064_v33 = vld [vmem:[%s8678_s8 + $0x148] sm:$0xff]   ;;  %v10809_v20 = vmax.f32 %v8891_v11, %v8893_v12 }
 0x1d8   : > { %v8063_v34 = vld [vmem:[%s8678_s8 + $0x2c8] sm:$0xff]  }
 0x1d9   : > { %7271 = vmatmul.mubr.bf16.gmra.mrb[156].mxu0 %v8060_v39  ;;  %7483 = vmatmul.mubr.bf16.gmra.mrb[156].mxu1 %v8061_v58 }
 0x1da   : > { %7274 = vmatprep.mubr.msk.bf16.mxu0 %vm8205_vm0, %v10509_v5  ;;  %7486 = vmatprep.mubr.msk.bf16.mxu1 %vm8205_vm0, %v10509_v5 }
 0x1dc   : > { %v9117_v46 = vpop.f32.mrb[52].mxu0  ;;  %v9119_v44 = vpop.f32.mrb[52].mxu1 }
 0x1dd   : > { %10663 = vst [vmem:[#allocation7_spill] sm:$0xff] %v9117_v46  ;;  %10664 = vst [vmem:[#allocation8_spill] sm:$0xff] %v9119_v44  ;;  %v7168_v63 = vpop.f32.mrb[53].mxu0  ;;  %v7380_v22 = vpop.f32.mrb[53].mxu1 }
 0x1de   : > { %v9125_v51 = vpop.f32.mrb[54].mxu0  ;;  %v9127_v58 = vpop.f32.mrb[54].mxu1  ;;  %v10667_v63 = vmov 0.0  }
 0x1df   : > { %10665 = vst [vmem:[#allocation9_spill] sm:$0xff] %v9125_v51  ;;  %10666 = vst [vmem:[#allocation10_spill] sm:$0xff] %v9127_v58  ;;  %v7169_v27 = vpop.f32.mrb[55].mxu0  ;;  %v7381_v10 = vpop.f32.mrb[55].mxu1 }
 0x1e0   : > { %v8065_v10 = vld [vmem:[%s8678_s8 + $0x2d0] sm:$0xff]  }
 0x1e1   : > { %7275 = vmatmul.mubr.bf16.gmra.mrb[160].mxu0 %v8062_v15  ;;  %7487 = vmatmul.mubr.bf16.gmra.mrb[160].mxu1 %v8063_v34 }
 0x1e2   : > { %7278 = vmatprep.mubr.msk.bf16.mxu0 %vm8205_vm0, %v10667_v63  ;;  %7490 = vmatprep.mubr.msk.bf16.mxu1 %vm8205_vm0, %v10667_v63 }
 0x1e4   : > { %v9135_v22 = vpop.f32.mrb[56].mxu0  ;;  %v9137_v39 = vpop.f32.mrb[56].mxu1 }
 0x1e5   : > { %10668 = vst [vmem:[#allocation11_spill] sm:$0xff] %v9135_v22  ;;  %10669 = vst [vmem:[#allocation12_spill] sm:$0xff] %v9137_v39  ;;  %v7172_v44 = vpop.f32.mrb[57].mxu0  ;;  %v7384_v46 = vpop.f32.mrb[57].mxu1  ;;  %v8066_v22 = vld [vmem:[%s8678_s8 + $0x150] sm:$0xff]  }
 0x1e6   : > { %v9143_v27 = vpop.f32.mrb[58].mxu0  ;;  %v9145_v34 = vpop.f32.mrb[58].mxu1 }
 0x1e7   : > { %10670 = vst [vmem:[#allocation13_spill] sm:$0xff] %v9143_v27  ;;  %10671 = vst [vmem:[#allocation14_spill] sm:$0xff] %v9145_v34  ;;  %v7173_v5 = vpop.f32.mrb[59].mxu0  ;;  %v7385_v58 = vpop.f32.mrb[59].mxu1 }
 0x1e8   : > { %v8067_v5 = vld [vmem:[%s8678_s8 + $0x2d8] sm:$0xff]  }
 0x1e9   : > { %7279 = vmatmul.mubr.bf16.gmra.mrb[164].mxu0 %v8064_v33  ;;  %7491 = vmatmul.mubr.bf16.gmra.mrb[164].mxu1 %v8065_v10 }
 0x1ea   : > { %7282 = vmatprep.mubr.msk.bf16.mxu0 %vm8205_vm0, %v10667_v63  ;;  %7494 = vmatprep.mubr.msk.bf16.mxu1 %vm8205_vm0, %v10667_v63 }
 0x1ec   : > { %v9153_v46 = vpop.f32.mrb[60].mxu0  ;;  %v9155_v44 = vpop.f32.mrb[60].mxu1 }
 0x1ed   : > { %10672 = vst [vmem:[#allocation15_spill] sm:$0xff] %v9153_v46  ;;  %10673 = vst [vmem:[#allocation16_spill] sm:$0xff] %v9155_v44  ;;  %v7176_v15 = vpop.f32.mrb[61].mxu0  ;;  %v7388_v39 = vpop.f32.mrb[61].mxu1  ;;  %v8068_v46 = vld [vmem:[%s8678_s8 + $0x158] sm:$0xff]  }
 0x1ee   : > { %v9161_v58 = vpop.f32.mrb[62].mxu0  ;;  %v9163_v10 = vpop.f32.mrb[62].mxu1 }
 0x1ef   : > { %10674 = vst [vmem:[#allocation17_spill] sm:$0xff] %v9161_v58  ;;  %10675 = vst [vmem:[#allocation18_spill] sm:$0xff] %v9163_v10  ;;  %v7177_v51 = vpop.f32.mrb[63].mxu0  ;;  %v7389_v34 = vpop.f32.mrb[63].mxu1 }
 0x1f0   : > { %v8069_v51 = vld [vmem:[%s8678_s8 + $0x2e0] sm:$0xff]  }
 0x1f1   : > { %7283 = vmatmul.mubr.bf16.gmra.mrb[168].mxu0 %v8066_v22  ;;  %7495 = vmatmul.mubr.bf16.gmra.mrb[168].mxu1 %v8067_v5 }
 0x1f2   : > { %7286 = vmatprep.mubr.msk.bf16.mxu0 %vm8205_vm0, %v10667_v63  ;;  %7498 = vmatprep.mubr.msk.bf16.mxu1 %vm8205_vm0, %v10667_v63 }
 0x1f4   : > { %v9171_v39 = vpop.f32.mrb[64].mxu0  ;;  %v9173_v15 = vpop.f32.mrb[64].mxu1 }
 0x1f5   : > { %10676 = vst [vmem:[#allocation19_spill] sm:$0xff] %v9171_v39  ;;  %10677 = vst [vmem:[#allocation20_spill] sm:$0xff] %v9173_v15  ;;  %v7180_v33 = vpop.f32.mrb[65].mxu0  ;;  %v7392_v44 = vpop.f32.mrb[65].mxu1  ;;  %v8070_v39 = vld [vmem:[%s8678_s8 + $0x160] sm:$0xff]  }
 0x1f6   : > { %v9179_v34 = vpop.f32.mrb[66].mxu0  ;;  %v9181_v5 = vpop.f32.mrb[66].mxu1 }
 0x1f7   : > { %10678 = vst [vmem:[#allocation21_spill] sm:$0xff] %v9179_v34  ;;  %10679 = vst [vmem:[#allocation22_spill] sm:$0xff] %v9181_v5  ;;  %v7181_v27 = vpop.f32.mrb[67].mxu0  ;;  %v7393_v10 = vpop.f32.mrb[67].mxu1 }
 0x1f8   : > { %v8071_v27 = vld [vmem:[%s8678_s8 + $0x2e8] sm:$0xff]  }
 0x1f9   : > { %7287 = vmatmul.mubr.bf16.gmra.mrb[172].mxu0 %v8068_v46  ;;  %7499 = vmatmul.mubr.bf16.gmra.mrb[172].mxu1 %v8069_v51 }
 0x1fa   : > { %7290 = vmatprep.mubr.msk.bf16.mxu0 %vm8205_vm0, %v10667_v63  ;;  %7502 = vmatprep.mubr.msk.bf16.mxu1 %vm8205_vm0, %v10667_v63 }
 0x1fc   : > { %v9189_v44 = vpop.f32.mrb[68].mxu0  ;;  %v9191_v33 = vpop.f32.mrb[68].mxu1 }
 0x1fd   : > { %10680 = vst [vmem:[#allocation23_spill] sm:$0xff] %v9189_v44  ;;  %10681 = vst [vmem:[#allocation24_spill] sm:$0xff] %v9191_v33  ;;  %v7184_v22 = vpop.f32.mrb[69].mxu0  ;;  %v7396_v15 = vpop.f32.mrb[69].mxu1  ;;  %v8072_v44 = vld [vmem:[%s8678_s8 + $0x168] sm:$0xff]  }
 0x1fe   : > { %v9197_v10 = vpop.f32.mrb[70].mxu0  ;;  %v9199_v51 = vpop.f32.mrb[70].mxu1 }
 0x1ff   : > { %10682 = vst [vmem:[#allocation25_spill] sm:$0xff] %v9197_v10  ;;  %10683 = vst [vmem:[#allocation26_spill] sm:$0xff] %v9199_v51  ;;  %v7185_v58 = vpop.f32.mrb[71].mxu0  ;;  %v7397_v5 = vpop.f32.mrb[71].mxu1 }
 0x200   : > { %v8073_v58 = vld [vmem:[%s8678_s8 + $0x2f0] sm:$0xff]  }
 0x201   : > { %7291 = vmatmul.mubr.bf16.gmra.mrb[176].mxu0 %v8070_v39  ;;  %7503 = vmatmul.mubr.bf16.gmra.mrb[176].mxu1 %v8071_v27 }
 0x202   : > { %7294 = vmatprep.mubr.msk.bf16.mxu0 %vm8205_vm0, %v10667_v63  ;;  %7506 = vmatprep.mubr.msk.bf16.mxu1 %vm8205_vm0, %v10667_v63 }
 0x204   : > { %v9207_v15 = vpop.f32.mrb[72].mxu0  ;;  %v9209_v22 = vpop.f32.mrb[72].mxu1 }
 0x205   : > { %10684 = vst [vmem:[#allocation27_spill] sm:$0xff] %v9207_v15  ;;  %10685 = vst [vmem:[#allocation28_spill] sm:$0xff] %v9209_v22  ;;  %v7188_v46 = vpop.f32.mrb[73].mxu0  ;;  %v7400_v33 = vpop.f32.mrb[73].mxu1  ;;  %v8074_v15 = vld [vmem:[%s8678_s8 + $0x170] sm:$0xff]  }
 0x206   : > { %v9215_v5 = vpop.f32.mrb[74].mxu0  ;;  %v9217_v27 = vpop.f32.mrb[74].mxu1 }
 0x207   : > { %10686 = vst [vmem:[#allocation29_spill] sm:$0xff] %v9215_v5  ;;  %10687 = vst [vmem:[#allocation30_spill] sm:$0xff] %v9217_v27  ;;  %v7189_v34 = vpop.f32.mrb[75].mxu0  ;;  %v7401_v51 = vpop.f32.mrb[75].mxu1 }
 0x208   : > { %v8075_v34 = vld [vmem:[%s8678_s8 + $0x2f8] sm:$0xff]  }
 0x209   : > { %7295 = vmatmul.mubr.bf16.gmra.mrb[180].mxu0 %v8072_v44  ;;  %7507 = vmatmul.mubr.bf16.gmra.mrb[180].mxu1 %v8073_v58 }
 0x20a   : > { %7298 = vmatprep.mubr.msk.bf16.mxu0 %vm8205_vm0, %v10667_v63  ;;  %7510 = vmatprep.mubr.msk.bf16.mxu1 %vm8205_vm0, %v10667_v63 }
 0x20c   : > { %v9225_v33 = vpop.f32.mrb[76].mxu0  ;;  %v9227_v46 = vpop.f32.mrb[76].mxu1 }
 0x20d   : > { %10688 = vst [vmem:[#allocation31_spill] sm:$0xff] %v9225_v33  ;;  %10689 = vst [vmem:[#allocation32_spill] sm:$0xff] %v9227_v46  ;;  %v7192_v39 = vpop.f32.mrb[77].mxu0  ;;  %v7404_v22 = vpop.f32.mrb[77].mxu1  ;;  %v8076_v33 = vld [vmem:[%s8678_s8 + $0x178] sm:$0xff]  }
 0x20e   : > { %v9233_v51 = vpop.f32.mrb[78].mxu0  ;;  %v9235_v58 = vpop.f32.mrb[78].mxu1 }
 0x20f   : > { %10690 = vst [vmem:[#allocation33_spill] sm:$0xff] %v9233_v51  ;;  %10691 = vst [vmem:[#allocation34_spill] sm:$0xff] %v9235_v58  ;;  %v7193_v10 = vpop.f32.mrb[79].mxu0  ;;  %v7405_v27 = vpop.f32.mrb[79].mxu1 }
 0x210   : > { %v8077_v10 = vld [vmem:[%s8678_s8 + $0x300] sm:$0xff]  }
 0x211   : > { %7299 = vmatmul.mubr.bf16.gmra.mrb[184].mxu0 %v8074_v15  ;;  %7511 = vmatmul.mubr.bf16.gmra.mrb[184].mxu1 %v8075_v34 }
 0x212   : > { %7302 = vmatprep.mubr.msk.bf16.mxu0 %vm8205_vm0, %v10667_v63  ;;  %7514 = vmatprep.mubr.msk.bf16.mxu1 %vm8205_vm0, %v10667_v63 }
 0x214   : > { %v9243_v22 = vpop.f32.mrb[80].mxu0  ;;  %v9245_v39 = vpop.f32.mrb[80].mxu1 }
 0x215   : > { %10692 = vst [vmem:[#allocation35_spill] sm:$0xff] %v9243_v22  ;;  %10693 = vst [vmem:[#allocation36_spill] sm:$0xff] %v9245_v39  ;;  %v7196_v44 = vpop.f32.mrb[81].mxu0  ;;  %v7408_v46 = vpop.f32.mrb[81].mxu1  ;;  %v8078_v22 = vld [vmem:[%s8678_s8 + $0x180] sm:$0xff]  }
 0x216   : > { %v9251_v27 = vpop.f32.mrb[82].mxu0  ;;  %v9253_v34 = vpop.f32.mrb[82].mxu1 }
 0x217   : > { %10694 = vst [vmem:[#allocation37_spill] sm:$0xff] %v9251_v27  ;;  %10695 = vst [vmem:[#allocation38_spill] sm:$0xff] %v9253_v34  ;;  %v7197_v5 = vpop.f32.mrb[83].mxu0  ;;  %v7409_v58 = vpop.f32.mrb[83].mxu1 }
 0x218   : > { %v8079_v5 = vld [vmem:[%s8678_s8 + $0x308] sm:$0xff]  }
 0x219   : > { %7303 = vmatmul.mubr.bf16.gmra.mrb[188].mxu0 %v8076_v33  ;;  %7515 = vmatmul.mubr.bf16.gmra.mrb[188].mxu1 %v8077_v10 }
 0x21a   : > { %7306 = vmatprep.mubr.msk.bf16.mxu0 %vm8205_vm0, %v10667_v63  ;;  %7518 = vmatprep.mubr.msk.bf16.mxu1 %vm8205_vm0, %v10667_v63 }
 0x21c   : > { %v9261_v46 = vpop.f32.mrb[84].mxu0  ;;  %v9263_v44 = vpop.f32.mrb[84].mxu1 }
 0x21d   : > { %10696 = vst [vmem:[#allocation39_spill] sm:$0xff] %v9261_v46  ;;  %10697 = vst [vmem:[#allocation40_spill] sm:$0xff] %v9263_v44  ;;  %v7200_v15 = vpop.f32.mrb[85].mxu0  ;;  %v7412_v39 = vpop.f32.mrb[85].mxu1  ;;  %v8080_v46 = vld [vmem:[%s8678_s8 + $0x310] sm:$0xff]  }
 0x21e   : > { %v9269_v58 = vpop.f32.mrb[86].mxu0  ;;  %v9271_v10 = vpop.f32.mrb[86].mxu1 }
 0x21f   : > { %10698 = vst [vmem:[#allocation41_spill] sm:$0xff] %v9269_v58  ;;  %10699 = vst [vmem:[#allocation42_spill] sm:$0xff] %v9271_v10  ;;  %v7201_v51 = vpop.f32.mrb[87].mxu0  ;;  %v7413_v34 = vpop.f32.mrb[87].mxu1 }
 0x220   : > { %v8081_v51 = vld [vmem:[%s8678_s8 + $0x498] sm:$0xff]  }
 0x221   : > { %7307 = vmatmul.mubr.bf16.gmra.mrb[192].mxu0 %v8078_v22  ;;  %7519 = vmatmul.mubr.bf16.gmra.mrb[192].mxu1 %v8079_v5 }
 0x222   : > { %7538 = vmatprep.mubr.msk.bf16.mxu0 %vm8205_vm0, %v10667_v63  ;;  %7750 = vmatprep.mubr.msk.bf16.mxu1 %vm8205_vm0, %v10667_v63 }
 0x224   : > { %v9279_v39 = vpop.f32.mrb[88].mxu0  ;;  %v9281_v15 = vpop.f32.mrb[88].mxu1 }
 0x225   : > { %10700 = vst [vmem:[#allocation43_spill] sm:$0xff] %v9279_v39  ;;  %10701 = vst [vmem:[#allocation44_spill] sm:$0xff] %v9281_v15  ;;  %v7204_v33 = vpop.f32.mrb[89].mxu0  ;;  %v7416_v44 = vpop.f32.mrb[89].mxu1  ;;  %v8082_v39 = vld [vmem:[%s8678_s8 + $0x318] sm:$0xff]  }
 0x226   : > { %v9287_v34 = vpop.f32.mrb[90].mxu0  ;;  %v9289_v5 = vpop.f32.mrb[90].mxu1 }
 0x227   : > { %10702 = vst [vmem:[#allocation45_spill] sm:$0xff] %v9287_v34  ;;  %10703 = vst [vmem:[#allocation46_spill] sm:$0xff] %v9289_v5  ;;  %v7205_v27 = vpop.f32.mrb[91].mxu0  ;;  %v7417_v10 = vpop.f32.mrb[91].mxu1 }
 0x228   : > { %v8083_v27 = vld [vmem:[%s8678_s8 + $0x4a0] sm:$0xff]  }
 0x229   : > { %7539 = vmatmul.mubr.bf16.vlgmr.msra.gmra.mrb[196].mxu0 %v8080_v46  ;;  %7751 = vmatmul.mubr.bf16.vlgmr.msra.gmra.mrb[196].mxu1 %v8081_v51 }
 0x22a   : > { %7542 = vmatprep.mubr.msk.bf16.mxu0 %vm8205_vm0, %v10667_v63  ;;  %7754 = vmatprep.mubr.msk.bf16.mxu1 %vm8205_vm0, %v10667_v63 }
 0x22c   : > { %v9297_v44 = vpop.f32.mrb[92].mxu0  ;;  %v9299_v33 = vpop.f32.mrb[92].mxu1 }
 0x22d   : > { %10704 = vst [vmem:[#allocation47_spill] sm:$0xff] %v9297_v44  ;;  %10705 = vst [vmem:[#allocation48_spill] sm:$0xff] %v9299_v33  ;;  %v7208_v22 = vpop.f32.mrb[93].mxu0  ;;  %v7420_v15 = vpop.f32.mrb[93].mxu1  ;;  %v8084_v44 = vld [vmem:[%s8678_s8 + $0x320] sm:$0xff]  }
 0x22e   : > { %v9305_v10 = vpop.f32.mrb[94].mxu0  ;;  %v9307_v51 = vpop.f32.mrb[94].mxu1 }
 0x22f   : > { %10706 = vst [vmem:[#allocation49_spill] sm:$0xff] %v9305_v10  ;;  %10707 = vst [vmem:[#allocation50_spill] sm:$0xff] %v9307_v51  ;;  %v7209_v58 = vpop.f32.mrb[95].mxu0  ;;  %v7421_v5 = vpop.f32.mrb[95].mxu1 }
 0x230   : > { %v8085_v58 = vld [vmem:[%s8678_s8 + $0x4a8] sm:$0xff]  }
 0x231   : > { %7543 = vmatmul.mubr.bf16.gmra.mrb[200].mxu0 %v8082_v39  ;;  %7755 = vmatmul.mubr.bf16.gmra.mrb[200].mxu1 %v8083_v27 }
 0x232   : > { %7546 = vmatprep.mubr.msk.bf16.mxu0 %vm8205_vm0, %v10667_v63  ;;  %7758 = vmatprep.mubr.msk.bf16.mxu1 %vm8205_vm0, %v10667_v63 }
 0x234   : > { %v9315_v15 = vpop.f32.mrb[96].mxu0  ;;  %v9317_v22 = vpop.f32.mrb[96].mxu1 }
 0x235   : > { %10708 = vst [vmem:[#allocation51_spill] sm:$0xff] %v9315_v15  ;;  %10709 = vst [vmem:[#allocation52_spill] sm:$0xff] %v9317_v22  ;;  %v7212_v46 = vpop.f32.mrb[97].mxu0  ;;  %v7424_v33 = vpop.f32.mrb[97].mxu1  ;;  %v8086_v15 = vld [vmem:[%s8678_s8 + $0x328] sm:$0xff]  }
 0x236   : > { %v9323_v5 = vpop.f32.mrb[98].mxu0  ;;  %v9325_v27 = vpop.f32.mrb[98].mxu1 }
 0x237   : > { %10710 = vst [vmem:[#allocation53_spill] sm:$0xff] %v9323_v5  ;;  %10711 = vst [vmem:[#allocation54_spill] sm:$0xff] %v9325_v27  ;;  %v7213_v34 = vpop.f32.mrb[99].mxu0  ;;  %v7425_v51 = vpop.f32.mrb[99].mxu1 }
 0x238   : > { %v8087_v34 = vld [vmem:[%s8678_s8 + $0x4b0] sm:$0xff]  }
 0x239   : > { %7547 = vmatmul.mubr.bf16.gmra.mrb[204].mxu0 %v8084_v44  ;;  %7759 = vmatmul.mubr.bf16.gmra.mrb[204].mxu1 %v8085_v58 }
 0x23a   : > { %7550 = vmatprep.mubr.msk.bf16.mxu0 %vm8205_vm0, %v10667_v63  ;;  %7762 = vmatprep.mubr.msk.bf16.mxu1 %vm8205_vm0, %v10667_v63 }
 0x23c   : > { %v9333_v33 = vpop.f32.mrb[100].mxu0  ;;  %v9335_v46 = vpop.f32.mrb[100].mxu1 }
 0x23d   : > { %10712 = vst [vmem:[#allocation55_spill] sm:$0xff] %v9333_v33  ;;  %10713 = vst [vmem:[#allocation56_spill] sm:$0xff] %v9335_v46  ;;  %v7216_v39 = vpop.f32.mrb[101].mxu0  ;;  %v7428_v22 = vpop.f32.mrb[101].mxu1  ;;  %v8088_v33 = vld [vmem:[%s8678_s8 + $0x330] sm:$0xff]  }
 0x23e   : > { %v9341_v51 = vpop.f32.mrb[102].mxu0  ;;  %v9343_v58 = vpop.f32.mrb[102].mxu1 }
 0x23f   : > { %10714 = vst [vmem:[#allocation57_spill] sm:$0xff] %v9341_v51  ;;  %10715 = vst [vmem:[#allocation58_spill] sm:$0xff] %v9343_v58  ;;  %v7217_v10 = vpop.f32.mrb[103].mxu0  ;;  %v7429_v27 = vpop.f32.mrb[103].mxu1 }
 0x240   : > { %v8089_v10 = vld [vmem:[%s8678_s8 + $0x4b8] sm:$0xff]  }
 0x241   : > { %7551 = vmatmul.mubr.bf16.gmra.mrb[208].mxu0 %v8086_v15  ;;  %7763 = vmatmul.mubr.bf16.gmra.mrb[208].mxu1 %v8087_v34 }
 0x242   : > { %7554 = vmatprep.mubr.msk.bf16.mxu0 %vm8205_vm0, %v10667_v63  ;;  %7766 = vmatprep.mubr.msk.bf16.mxu1 %vm8205_vm0, %v10667_v63 }
 0x244   : > { %v9351_v22 = vpop.f32.mrb[104].mxu0  ;;  %v9353_v39 = vpop.f32.mrb[104].mxu1 }
 0x245   : > { %10716 = vst [vmem:[#allocation59_spill] sm:$0xff] %v9351_v22  ;;  %10717 = vst [vmem:[#allocation60_spill] sm:$0xff] %v9353_v39  ;;  %v7220_v44 = vpop.f32.mrb[105].mxu0  ;;  %v7432_v46 = vpop.f32.mrb[105].mxu1  ;;  %v8090_v22 = vld [vmem:[%s8678_s8 + $0x338] sm:$0xff]  }
 0x246   : > { %v9359_v27 = vpop.f32.mrb[106].mxu0  ;;  %v9361_v34 = vpop.f32.mrb[106].mxu1 }
 0x247   : > { %10718 = vst [vmem:[#allocation61_spill] sm:$0xff] %v9359_v27  ;;  %10719 = vst [vmem:[#allocation62_spill] sm:$0xff] %v9361_v34  ;;  %v7221_v5 = vpop.f32.mrb[107].mxu0  ;;  %v7433_v58 = vpop.f32.mrb[107].mxu1 }
 0x248   : > { %v8091_v5 = vld [vmem:[%s8678_s8 + $0x4c0] sm:$0xff]  }
 0x249   : > { %7555 = vmatmul.mubr.bf16.gmra.mrb[212].mxu0 %v8088_v33  ;;  %7767 = vmatmul.mubr.bf16.gmra.mrb[212].mxu1 %v8089_v10 }
 0x24a   : > { %7558 = vmatprep.mubr.msk.bf16.mxu0 %vm8205_vm0, %v10667_v63  ;;  %7770 = vmatprep.mubr.msk.bf16.mxu1 %vm8205_vm0, %v10667_v63 }
 0x24c   : > { %v9369_v46 = vpop.f32.mrb[108].mxu0  ;;  %v9371_v44 = vpop.f32.mrb[108].mxu1 }
 0x24d   : > { %10720 = vst [vmem:[#allocation63_spill] sm:$0xff] %v9369_v46  ;;  %10721 = vst [vmem:[#allocation64_spill] sm:$0xff] %v9371_v44  ;;  %v7224_v15 = vpop.f32.mrb[109].mxu0  ;;  %v7436_v39 = vpop.f32.mrb[109].mxu1  ;;  %v8092_v46 = vld [vmem:[%s8678_s8 + $0x340] sm:$0xff]  }
 0x24e   : > { %v9377_v58 = vpop.f32.mrb[110].mxu0  ;;  %v9379_v10 = vpop.f32.mrb[110].mxu1 }
 0x24f   : > { %10722 = vst [vmem:[#allocation65_spill] sm:$0xff] %v9377_v58  ;;  %10723 = vst [vmem:[#allocation66_spill] sm:$0xff] %v9379_v10  ;;  %v7225_v51 = vpop.f32.mrb[111].mxu0  ;;  %v7437_v34 = vpop.f32.mrb[111].mxu1 }
 0x250   : > { %v8093_v51 = vld [vmem:[%s8678_s8 + $0x4c8] sm:$0xff]  }
 0x251   : > { %7559 = vmatmul.mubr.bf16.gmra.mrb[216].mxu0 %v8090_v22  ;;  %7771 = vmatmul.mubr.bf16.gmra.mrb[216].mxu1 %v8091_v5 }
 0x252   : > { %7562 = vmatprep.mubr.msk.bf16.mxu0 %vm8205_vm0, %v10667_v63  ;;  %7774 = vmatprep.mubr.msk.bf16.mxu1 %vm8205_vm0, %v10667_v63 }
 0x254   : > { %v9387_v39 = vpop.f32.mrb[112].mxu0  ;;  %v9389_v15 = vpop.f32.mrb[112].mxu1 }
 0x255   : > { %10724 = vst [vmem:[#allocation67_spill] sm:$0xff] %v9387_v39  ;;  %10725 = vst [vmem:[#allocation68_spill] sm:$0xff] %v9389_v15  ;;  %v7228_v33 = vpop.f32.mrb[113].mxu0  ;;  %v7440_v44 = vpop.f32.mrb[113].mxu1  ;;  %v8094_v39 = vld [vmem:[%s8678_s8 + $0x348] sm:$0xff]  }
 0x256   : > { %v9395_v34 = vpop.f32.mrb[114].mxu0  ;;  %v9397_v5 = vpop.f32.mrb[114].mxu1 }
 0x257   : > { %10726 = vst [vmem:[#allocation69_spill] sm:$0xff] %v9395_v34  ;;  %10727 = vst [vmem:[#allocation70_spill] sm:$0xff] %v9397_v5  ;;  %v7229_v27 = vpop.f32.mrb[115].mxu0  ;;  %v7441_v10 = vpop.f32.mrb[115].mxu1 }
 0x258   : > { %v8095_v27 = vld [vmem:[%s8678_s8 + $0x4d0] sm:$0xff]  }
 0x259   : > { %7563 = vmatmul.mubr.bf16.gmra.mrb[220].mxu0 %v8092_v46  ;;  %7775 = vmatmul.mubr.bf16.gmra.mrb[220].mxu1 %v8093_v51 }
 0x25a   : > { %7566 = vmatprep.mubr.msk.bf16.mxu0 %vm8205_vm0, %v10667_v63  ;;  %7778 = vmatprep.mubr.msk.bf16.mxu1 %vm8205_vm0, %v10667_v63 }
 0x25c   : > { %v9405_v44 = vpop.f32.mrb[116].mxu0  ;;  %v9407_v33 = vpop.f32.mrb[116].mxu1 }
 0x25d   : > { %10728 = vst [vmem:[#allocation71_spill] sm:$0xff] %v9405_v44  ;;  %10729 = vst [vmem:[#allocation72_spill] sm:$0xff] %v9407_v33  ;;  %v7232_v22 = vpop.f32.mrb[117].mxu0  ;;  %v7444_v15 = vpop.f32.mrb[117].mxu1  ;;  %v8096_v44 = vld [vmem:[%s8678_s8 + $0x350] sm:$0xff]  }
 0x25e   : > { %v9413_v10 = vpop.f32.mrb[118].mxu0  ;;  %v9415_v51 = vpop.f32.mrb[118].mxu1 }
 0x25f   : > { %10730 = vst [vmem:[#allocation73_spill] sm:$0xff] %v9413_v10  ;;  %10731 = vst [vmem:[#allocation74_spill] sm:$0xff] %v9415_v51  ;;  %v7233_v58 = vpop.f32.mrb[119].mxu0  ;;  %v7445_v5 = vpop.f32.mrb[119].mxu1 }
 0x260   : > { %v8097_v58 = vld [vmem:[%s8678_s8 + $0x4d8] sm:$0xff]  }
 0x261   : > { %7567 = vmatmul.mubr.bf16.gmra.mrb[224].mxu0 %v8094_v39  ;;  %7779 = vmatmul.mubr.bf16.gmra.mrb[224].mxu1 %v8095_v27 }
 0x262   : > { %7570 = vmatprep.mubr.msk.bf16.mxu0 %vm8205_vm0, %v10667_v63  ;;  %7782 = vmatprep.mubr.msk.bf16.mxu1 %vm8205_vm0, %v10667_v63 }
 0x264   : > { %v9423_v15 = vpop.f32.mrb[120].mxu0  ;;  %v9425_v22 = vpop.f32.mrb[120].mxu1 }
 0x265   : > { %10732 = vst [vmem:[#allocation75_spill] sm:$0xff] %v9423_v15  ;;  %10733 = vst [vmem:[#allocation76_spill] sm:$0xff] %v9425_v22  ;;  %v7236_v46 = vpop.f32.mrb[121].mxu0  ;;  %v7448_v33 = vpop.f32.mrb[121].mxu1  ;;  %v8098_v15 = vld [vmem:[%s8678_s8 + $0x358] sm:$0xff]  }
 0x266   : > { %v9431_v5 = vpop.f32.mrb[122].mxu0  ;;  %v9433_v27 = vpop.f32.mrb[122].mxu1 }
 0x267   : > { %10734 = vst [vmem:[#allocation77_spill] sm:$0xff] %v9431_v5  ;;  %10735 = vst [vmem:[#allocation78_spill] sm:$0xff] %v9433_v27  ;;  %v7237_v34 = vpop.f32.mrb[123].mxu0  ;;  %v7449_v51 = vpop.f32.mrb[123].mxu1 }
 0x268   : > { %v8099_v34 = vld [vmem:[%s8678_s8 + $0x4e0] sm:$0xff]  }
 0x269   : > { %7571 = vmatmul.mubr.bf16.gmra.mrb[228].mxu0 %v8096_v44  ;;  %7783 = vmatmul.mubr.bf16.gmra.mrb[228].mxu1 %v8097_v58 }
 0x26a   : > { %7574 = vmatprep.mubr.msk.bf16.mxu0 %vm8205_vm0, %v10667_v63  ;;  %7786 = vmatprep.mubr.msk.bf16.mxu1 %vm8205_vm0, %v10667_v63 }
 0x26c   : > { %v9441_v33 = vpop.f32.mrb[124].mxu0  ;;  %v9443_v46 = vpop.f32.mrb[124].mxu1 }
 0x26d   : > { %10736 = vst [vmem:[#allocation79_spill] sm:$0xff] %v9441_v33  ;;  %10737 = vst [vmem:[#allocation80_spill] sm:$0xff] %v9443_v46  ;;  %v7240_v39 = vpop.f32.mrb[125].mxu0  ;;  %v7452_v22 = vpop.f32.mrb[125].mxu1  ;;  %v8100_v33 = vld [vmem:[%s8678_s8 + $0x360] sm:$0xff]  }
 0x26e   : > { %v9449_v51 = vpop.f32.mrb[126].mxu0  ;;  %v9451_v58 = vpop.f32.mrb[126].mxu1 }
 0x26f   : > { %10738 = vst [vmem:[#allocation81_spill] sm:$0xff] %v9449_v51  ;;  %10739 = vst [vmem:[#allocation82_spill] sm:$0xff] %v9451_v58  ;;  %v7241_v10 = vpop.f32.mrb[127].mxu0  ;;  %v7453_v27 = vpop.f32.mrb[127].mxu1 }
 0x270   : > { %v8101_v10 = vld [vmem:[%s8678_s8 + $0x4e8] sm:$0xff]  }
 0x271   : > { %7575 = vmatmul.mubr.bf16.gmra.mrb[232].mxu0 %v8098_v15  ;;  %7787 = vmatmul.mubr.bf16.gmra.mrb[232].mxu1 %v8099_v34 }
 0x272   : > { %7578 = vmatprep.mubr.msk.bf16.mxu0 %vm8205_vm0, %v10667_v63  ;;  %7790 = vmatprep.mubr.msk.bf16.mxu1 %vm8205_vm0, %v10667_v63 }
 0x274   : > { %v9459_v22 = vpop.f32.mrb[128].mxu0  ;;  %v9461_v39 = vpop.f32.mrb[128].mxu1 }
 0x275   : > { %10740 = vst [vmem:[#allocation83_spill] sm:$0xff] %v9459_v22  ;;  %10741 = vst [vmem:[#allocation84_spill] sm:$0xff] %v9461_v39  ;;  %v7244_v44 = vpop.f32.mrb[129].mxu0  ;;  %v7456_v46 = vpop.f32.mrb[129].mxu1  ;;  %v8102_v22 = vld [vmem:[%s8678_s8 + $0x368] sm:$0xff]  }
 0x276   : > { %v9467_v27 = vpop.f32.mrb[130].mxu0  ;;  %v9469_v34 = vpop.f32.mrb[130].mxu1 }
 0x277   : > { %10742 = vst [vmem:[#allocation85_spill] sm:$0xff] %v9467_v27  ;;  %10743 = vst [vmem:[#allocation86_spill] sm:$0xff] %v9469_v34  ;;  %v7245_v5 = vpop.f32.mrb[131].mxu0  ;;  %v7457_v58 = vpop.f32.mrb[131].mxu1  ;;  %v8105_v27 = vld [vmem:[%s8678_s8 + $0x4f8] sm:$0xff]  }
 0x278   : > { %v8103_v5 = vld [vmem:[%s8678_s8 + $0x4f0] sm:$0xff]   ;;  %v10808_v58 = vmax.f32 %v8883_v3, %v8885_v4 }
 0x279   : > { %7579 = vmatmul.mubr.bf16.gmra.mrb[236].mxu0 %v8100_v33  ;;  %7791 = vmatmul.mubr.bf16.gmra.mrb[236].mxu1 %v8101_v10 }
 0x27a   : > { %7582 = vmatprep.mubr.msk.bf16.mxu0 %vm8205_vm0, %v10667_v63  ;;  %7794 = vmatprep.mubr.msk.bf16.mxu1 %vm8205_vm0, %v10667_v63 }
 0x27c   : > { %v9477_v46 = vpop.f32.mrb[132].mxu0  ;;  %v9479_v44 = vpop.f32.mrb[132].mxu1 }
 0x27d   : > { %10744 = vst [vmem:[#allocation87_spill] sm:$0xff] %v9477_v46  ;;  %10745 = vst [vmem:[#allocation88_spill] sm:$0xff] %v9479_v44  ;;  %v7248_v15 = vpop.f32.mrb[133].mxu0  ;;  %v7460_v39 = vpop.f32.mrb[133].mxu1  ;;  %v8104_v44 = vld [vmem:[%s8678_s8 + $0x370] sm:$0xff]  }
 0x27e   : > { %v9485_v33 = vpop.f32.mrb[134].mxu0  ;;  %v9487_v10 = vpop.f32.mrb[134].mxu1 }
 0x27f   : > { %10746 = vst [vmem:[#allocation89_spill] sm:$0xff] %v9485_v33  ;;  %10747 = vst [vmem:[#allocation90_spill] sm:$0xff] %v9487_v10  ;;  %v7249_v51 = vpop.f32.mrb[135].mxu0  ;;  %v7461_v34 = vpop.f32.mrb[135].mxu1  ;;  %v8106_v10 = vld [vmem:[%s8678_s8 + $0x378] sm:$0xff]  }
 0x281   : > { %7583 = vmatmul.mubr.bf16.gmra.mrb[240].mxu0 %v8102_v22  ;;  %7795 = vmatmul.mubr.bf16.gmra.mrb[240].mxu1 %v8103_v5 }
 0x282   : > { %7586 = vmatprep.mubr.msk.bf16.mxu0 %vm8205_vm0, %v10667_v63  ;;  %7798 = vmatprep.mubr.msk.bf16.mxu1 %vm8205_vm0, %v10667_v63 }
 0x284   : > { %v9495_v39 = vpop.f32.mrb[136].mxu0  ;;  %v9497_v15 = vpop.f32.mrb[136].mxu1 }
 0x285   : > { %10748 = vst [vmem:[#allocation91_spill] sm:$0xff] %v9495_v39  ;;  %10749 = vst [vmem:[#allocation92_spill] sm:$0xff] %v9497_v15  ;;  %v7252_v51 = vpop.f32.mrb[137].mxu0  ;;  %v7464_v34 = vpop.f32.mrb[137].mxu1 }
 0x286   : > { %v9503_v22 = vpop.f32.mrb[138].mxu0  ;;  %v9505_v5 = vpop.f32.mrb[138].mxu1 }
 0x287   : > { %10750 = vst [vmem:[#allocation93_spill] sm:$0xff] %v9503_v22  ;;  %10751 = vst [vmem:[#allocation94_spill] sm:$0xff] %v9505_v5  ;;  %v7253_v33 = vpop.f32.mrb[139].mxu0  ;;  %v7465_v46 = vpop.f32.mrb[139].mxu1 }
 0x288   : > { %v8107_v46 = vld [vmem:[%s8678_s8 + $0x500] sm:$0xff]  }
 0x289   : > { %7587 = vmatmul.mubr.bf16.gmra.mrb[244].mxu0 %v8104_v44  ;;  %7799 = vmatmul.mubr.bf16.gmra.mrb[244].mxu1 %v8105_v27  ;;  %v8108_v33 = vld [vmem:[%s8678_s8 + $0x380] sm:$0xff]  }
 0x28a   : > { %7590 = vmatprep.mubr.msk.bf16.mxu0 %vm8205_vm0, %v10667_v63  ;;  %7802 = vmatprep.mubr.msk.bf16.mxu1 %vm8205_vm0, %v10667_v63 }
 0x28c   : > { %v9513_v51 = vpop.f32.mrb[140].mxu0  ;;  %v9515_v34 = vpop.f32.mrb[140].mxu1 }
 0x28d   : > { %10752 = vst [vmem:[#allocation95_spill] sm:$0xff] %v9513_v51  ;;  %10753 = vst [vmem:[#allocation96_spill] sm:$0xff] %v9515_v34  ;;  %v7256_v15 = vpop.f32.mrb[141].mxu0  ;;  %v7468_v39 = vpop.f32.mrb[141].mxu1 }
 0x28e   : > { %v9521_v27 = vpop.f32.mrb[142].mxu0  ;;  %v9523_v44 = vpop.f32.mrb[142].mxu1 }
 0x28f   : > { %10754 = vst [vmem:[#allocation97_spill] sm:$0xff] %v9521_v27  ;;  %10755 = vst [vmem:[#allocation98_spill] sm:$0xff] %v9523_v44  ;;  %v7257_v5 = vpop.f32.mrb[143].mxu0  ;;  %v7469_v22 = vpop.f32.mrb[143].mxu1 }
 0x290   : > { %v8109_v22 = vld [vmem:[%s8678_s8 + $0x508] sm:$0xff]  }
 0x291   : > { %7591 = vmatmul.mubr.bf16.gmra.mrb[248].mxu0 %v8106_v10  ;;  %7803 = vmatmul.mubr.bf16.gmra.mrb[248].mxu1 %v8107_v46  ;;  %v8110_v46 = vld [vmem:[%s8678_s8 + $0x388] sm:$0xff]  }
 0x292   : > { %7594 = vmatprep.mubr.msk.bf16.mxu0 %vm8205_vm0, %v10667_v63  ;;  %7806 = vmatprep.mubr.msk.bf16.mxu1 %vm8205_vm0, %v10667_v63 }
 0x294   : > { %v9531_v39 = vpop.f32.mrb[144].mxu0  ;;  %v9533_v15 = vpop.f32.mrb[144].mxu1 }
 0x295   : > { %10756 = vst [vmem:[#allocation99_spill] sm:$0xff] %v9531_v39  ;;  %10757 = vst [vmem:[#allocation100_spill] sm:$0xff] %v9533_v15  ;;  %v7260_v34 = vpop.f32.mrb[145].mxu0  ;;  %v7472_v51 = vpop.f32.mrb[145].mxu1 }
 0x296   : > { %v9539_v10 = vpop.f32.mrb[146].mxu0  ;;  %v9541_v5 = vpop.f32.mrb[146].mxu1 }
 0x297   : > { %10758 = vst [vmem:[#allocation101_spill] sm:$0xff] %v9539_v10  ;;  %10759 = vst [vmem:[#allocation102_spill] sm:$0xff] %v9541_v5  ;;  %v7261_v44 = vpop.f32.mrb[147].mxu0  ;;  %v7473_v27 = vpop.f32.mrb[147].mxu1 }
 0x298   : > { %v8111_v27 = vld [vmem:[%s8678_s8 + $0x510] sm:$0xff]  }
 0x299   : > { %7595 = vmatmul.mubr.bf16.gmra.mrb[252].mxu0 %v8108_v33  ;;  %7807 = vmatmul.mubr.bf16.gmra.mrb[252].mxu1 %v8109_v22  ;;  %v8112_v22 = vld [vmem:[%s8678_s8 + $0x390] sm:$0xff]  }
 0x29a   : > { %7598 = vmatprep.mubr.msk.bf16.mxu0 %vm8205_vm0, %v10667_v63  ;;  %7810 = vmatprep.mubr.msk.bf16.mxu1 %vm8205_vm0, %v10667_v63 }
 0x29c   : > { %v9549_v51 = vpop.f32.mrb[148].mxu0  ;;  %v9551_v34 = vpop.f32.mrb[148].mxu1 }
 0x29d   : > { %10760 = vst [vmem:[#allocation103_spill] sm:$0xff] %v9549_v51  ;;  %10761 = vst [vmem:[#allocation104_spill] sm:$0xff] %v9551_v34  ;;  %v7264_v15 = vpop.f32.mrb[149].mxu0  ;;  %v7476_v39 = vpop.f32.mrb[149].mxu1 }
 0x29e   : > { %v9557_v44 = vpop.f32.mrb[150].mxu0  ;;  %v9559_v33 = vpop.f32.mrb[150].mxu1 }
 0x29f   : > { %10762 = vst [vmem:[#allocation105_spill] sm:$0xff] %v9557_v44  ;;  %10763 = vst [vmem:[#allocation106_spill] sm:$0xff] %v9559_v33  ;;  %v7265_v5 = vpop.f32.mrb[151].mxu0  ;;  %v7477_v10 = vpop.f32.mrb[151].mxu1 }
 0x2a0   : > { %v8113_v10 = vld [vmem:[%s8678_s8 + $0x518] sm:$0xff]  }
 0x2a1   : > { %7599 = vmatmul.mubr.bf16.gmra.mrb[0].mxu0 %v8110_v46  ;;  %7811 = vmatmul.mubr.bf16.gmra.mrb[0].mxu1 %v8111_v27  ;;  %v8114_v27 = vld [vmem:[%s8678_s8 + $0x398] sm:$0xff]  }
 0x2a2   : > { %7602 = vmatprep.mubr.msk.bf16.mxu0 %vm8205_vm0, %v10667_v63  ;;  %7814 = vmatprep.mubr.msk.bf16.mxu1 %vm8205_vm0, %v10667_v63 }
 0x2a4   : > { %v9567_v39 = vpop.f32.mrb[152].mxu0  ;;  %v9569_v15 = vpop.f32.mrb[152].mxu1 }
 0x2a5   : > { %10764 = vst [vmem:[#allocation107_spill] sm:$0xff] %v9567_v39  ;;  %10765 = vst [vmem:[#allocation108_spill] sm:$0xff] %v9569_v15  ;;  %v7268_v34 = vpop.f32.mrb[153].mxu0  ;;  %v7480_v51 = vpop.f32.mrb[153].mxu1 }
 0x2a6   : > { %v9575_v5 = vpop.f32.mrb[154].mxu0  ;;  %v9577_v46 = vpop.f32.mrb[154].mxu1 }
 0x2a7   : > { %10766 = vst [vmem:[#allocation109_spill] sm:$0xff] %v9575_v5  ;;  %10767 = vst [vmem:[#allocation110_spill] sm:$0xff] %v9577_v46  ;;  %v7269_v33 = vpop.f32.mrb[155].mxu0  ;;  %v7481_v44 = vpop.f32.mrb[155].mxu1 }
 0x2a8   : > { %v8115_v44 = vld [vmem:[%s8678_s8 + $0x520] sm:$0xff]  }
 0x2a9   : > { %7603 = vmatmul.mubr.bf16.gmra.mrb[4].mxu0 %v8112_v22  ;;  %7815 = vmatmul.mubr.bf16.gmra.mrb[4].mxu1 %v8113_v10  ;;  %v8116_v10 = vld [vmem:[%s8678_s8 + $0x3a0] sm:$0xff]  }
 0x2aa   : > { %7606 = vmatprep.mubr.msk.bf16.mxu0 %vm8205_vm0, %v10667_v63  ;;  %7818 = vmatprep.mubr.msk.bf16.mxu1 %vm8205_vm0, %v10667_v63 }
 0x2ac   : > { %v9585_v51 = vpop.f32.mrb[156].mxu0  ;;  %v9587_v34 = vpop.f32.mrb[156].mxu1 }
 0x2ad   : > { %10768 = vst [vmem:[#allocation111_spill] sm:$0xff] %v9585_v51  ;;  %10769 = vst [vmem:[#allocation112_spill] sm:$0xff] %v9587_v34  ;;  %v7272_v15 = vpop.f32.mrb[157].mxu0  ;;  %v7484_v39 = vpop.f32.mrb[157].mxu1 }
 0x2ae   : > { %v9593_v33 = vpop.f32.mrb[158].mxu0  ;;  %v9595_v22 = vpop.f32.mrb[158].mxu1 }
 0x2af   : > { %10770 = vst [vmem:[#allocation113_spill] sm:$0xff] %v9593_v33  ;;  %10771 = vst [vmem:[#allocation114_spill] sm:$0xff] %v9595_v22  ;;  %v7273_v46 = vpop.f32.mrb[159].mxu0  ;;  %v7485_v5 = vpop.f32.mrb[159].mxu1 }
 0x2b0   : > { %v8117_v5 = vld [vmem:[%s8678_s8 + $0x528] sm:$0xff]  }
 0x2b1   : > { %7607 = vmatmul.mubr.bf16.gmra.mrb[8].mxu0 %v8114_v27  ;;  %7819 = vmatmul.mubr.bf16.gmra.mrb[8].mxu1 %v8115_v44  ;;  %v8118_v44 = vld [vmem:[%s8678_s8 + $0x3a8] sm:$0xff]  }
 0x2b2   : > { %7610 = vmatprep.mubr.msk.bf16.mxu0 %vm8205_vm0, %v10667_v63  ;;  %7822 = vmatprep.mubr.msk.bf16.mxu1 %vm8205_vm0, %v10667_v63 }
 0x2b4   : > { %v9603_v39 = vpop.f32.mrb[160].mxu0  ;;  %v9605_v15 = vpop.f32.mrb[160].mxu1 }
 0x2b5   : > { %10772 = vst [vmem:[#allocation115_spill] sm:$0xff] %v9603_v39  ;;  %10773 = vst [vmem:[#allocation116_spill] sm:$0xff] %v9605_v15  ;;  %v7276_v34 = vpop.f32.mrb[161].mxu0  ;;  %v7488_v51 = vpop.f32.mrb[161].mxu1 }
 0x2b6   : > { %v9611_v46 = vpop.f32.mrb[162].mxu0  ;;  %v9613_v27 = vpop.f32.mrb[162].mxu1 }
 0x2b7   : > { %10774 = vst [vmem:[#allocation117_spill] sm:$0xff] %v9611_v46  ;;  %10775 = vst [vmem:[#allocation118_spill] sm:$0xff] %v9613_v27  ;;  %v7277_v22 = vpop.f32.mrb[163].mxu0  ;;  %v7489_v33 = vpop.f32.mrb[163].mxu1 }
 0x2b8   : > { %v8119_v33 = vld [vmem:[%s8678_s8 + $0x530] sm:$0xff]  }
 0x2b9   : > { %7611 = vmatmul.mubr.bf16.gmra.mrb[12].mxu0 %v8116_v10  ;;  %7823 = vmatmul.mubr.bf16.gmra.mrb[12].mxu1 %v8117_v5  ;;  %v8120_v5 = vld [vmem:[%s8678_s8 + $0x3b0] sm:$0xff]  }
 0x2ba   : > { %7614 = vmatprep.mubr.msk.bf16.mxu0 %vm8205_vm0, %v10667_v63  ;;  %7826 = vmatprep.mubr.msk.bf16.mxu1 %vm8205_vm0, %v10667_v63 }
 0x2bc   : > { %v9621_v51 = vpop.f32.mrb[164].mxu0  ;;  %v9623_v34 = vpop.f32.mrb[164].mxu1 }
 0x2bd   : > { %10776 = vst [vmem:[#allocation119_spill] sm:$0xff] %v9621_v51  ;;  %10777 = vst [vmem:[#allocation120_spill] sm:$0xff] %v9623_v34  ;;  %v7280_v15 = vpop.f32.mrb[165].mxu0  ;;  %v7492_v39 = vpop.f32.mrb[165].mxu1 }
 0x2be   : > { %v9629_v22 = vpop.f32.mrb[166].mxu0  ;;  %v9631_v10 = vpop.f32.mrb[166].mxu1 }
 0x2bf   : > { %10778 = vst [vmem:[#allocation121_spill] sm:$0xff] %v9629_v22  ;;  %10779 = vst [vmem:[#allocation122_spill] sm:$0xff] %v9631_v10  ;;  %v7281_v27 = vpop.f32.mrb[167].mxu0  ;;  %v7493_v46 = vpop.f32.mrb[167].mxu1 }
 0x2c0   : > { %v8121_v46 = vld [vmem:[%s8678_s8 + $0x538] sm:$0xff]  }
 0x2c1   : > { %7615 = vmatmul.mubr.bf16.gmra.mrb[16].mxu0 %v8118_v44  ;;  %7827 = vmatmul.mubr.bf16.gmra.mrb[16].mxu1 %v8119_v33  ;;  %v8122_v33 = vld [vmem:[%s8678_s8 + $0x3b8] sm:$0xff]  }
 0x2c2   : > { %7618 = vmatprep.mubr.msk.bf16.mxu0 %vm8205_vm0, %v10667_v63  ;;  %7830 = vmatprep.mubr.msk.bf16.mxu1 %vm8205_vm0, %v10667_v63 }
 0x2c4   : > { %v9639_v39 = vpop.f32.mrb[168].mxu0  ;;  %v9641_v15 = vpop.f32.mrb[168].mxu1 }
 0x2c5   : > { %10780 = vst [vmem:[#allocation123_spill] sm:$0xff] %v9639_v39  ;;  %10781 = vst [vmem:[#allocation124_spill] sm:$0xff] %v9641_v15  ;;  %v7284_v34 = vpop.f32.mrb[169].mxu0  ;;  %v7496_v51 = vpop.f32.mrb[169].mxu1 }
 0x2c6   : > { %v9647_v27 = vpop.f32.mrb[170].mxu0  ;;  %v9649_v44 = vpop.f32.mrb[170].mxu1 }
 0x2c7   : > { %10782 = vst [vmem:[#allocation125_spill] sm:$0xff] %v9647_v27  ;;  %10783 = vst [vmem:[#allocation126_spill] sm:$0xff] %v9649_v44  ;;  %v7285_v10 = vpop.f32.mrb[171].mxu0  ;;  %v7497_v22 = vpop.f32.mrb[171].mxu1 }
 0x2c8   : > { %v8123_v22 = vld [vmem:[%s8678_s8 + $0x540] sm:$0xff]  }
 0x2c9   : > { %7619 = vmatmul.mubr.bf16.gmra.mrb[20].mxu0 %v8120_v5  ;;  %7831 = vmatmul.mubr.bf16.gmra.mrb[20].mxu1 %v8121_v46  ;;  %v8124_v46 = vld [vmem:[%s8678_s8 + $0x3c0] sm:$0xff]  }
 0x2ca   : > { %7622 = vmatprep.mubr.msk.bf16.mxu0 %vm8205_vm0, %v10667_v63  ;;  %7834 = vmatprep.mubr.msk.bf16.mxu1 %vm8205_vm0, %v10667_v63 }
 0x2cc   : > { %v9657_v51 = vpop.f32.mrb[172].mxu0  ;;  %v9659_v34 = vpop.f32.mrb[172].mxu1 }
 0x2cd   : > { %10784 = vst [vmem:[#allocation127_spill] sm:$0xff] %v9657_v51  ;;  %10785 = vst [vmem:[#allocation128_spill] sm:$0xff] %v9659_v34  ;;  %v7288_v15 = vpop.f32.mrb[173].mxu0  ;;  %v7500_v39 = vpop.f32.mrb[173].mxu1 }
 0x2ce   : > { %v9665_v10 = vpop.f32.mrb[174].mxu0  ;;  %v9667_v5 = vpop.f32.mrb[174].mxu1 }
 0x2cf   : > { %10786 = vst [vmem:[#allocation129_spill] sm:$0xff] %v9665_v10  ;;  %10787 = vst [vmem:[#allocation130_spill] sm:$0xff] %v9667_v5  ;;  %v7289_v44 = vpop.f32.mrb[175].mxu0  ;;  %v7501_v27 = vpop.f32.mrb[175].mxu1 }
 0x2d0   : > { %v8125_v27 = vld [vmem:[%s8678_s8 + $0x548] sm:$0xff]  }
 0x2d1   : > { %7623 = vmatmul.mubr.bf16.gmra.mrb[24].mxu0 %v8122_v33  ;;  %7835 = vmatmul.mubr.bf16.gmra.mrb[24].mxu1 %v8123_v22  ;;  %v8126_v22 = vld [vmem:[%s8678_s8 + $0x3c8] sm:$0xff]  }
 0x2d2   : > { %7626 = vmatprep.mubr.msk.bf16.mxu0 %vm8205_vm0, %v10667_v63  ;;  %7838 = vmatprep.mubr.msk.bf16.mxu1 %vm8205_vm0, %v10667_v63 }
 0x2d4   : > { %v9675_v39 = vpop.f32.mrb[176].mxu0  ;;  %v9677_v15 = vpop.f32.mrb[176].mxu1 }
 0x2d5   : > { %10788 = vst [vmem:[#allocation131_spill] sm:$0xff] %v9675_v39  ;;  %10789 = vst [vmem:[#allocation132_spill] sm:$0xff] %v9677_v15  ;;  %v7292_v34 = vpop.f32.mrb[177].mxu0  ;;  %v7504_v51 = vpop.f32.mrb[177].mxu1 }
 0x2d6   : > { %v9683_v44 = vpop.f32.mrb[178].mxu0  ;;  %v9685_v33 = vpop.f32.mrb[178].mxu1 }
 0x2d7   : > { %10790 = vst [vmem:[#allocation133_spill] sm:$0xff] %v9683_v44  ;;  %10791 = vst [vmem:[#allocation134_spill] sm:$0xff] %v9685_v33  ;;  %v7293_v5 = vpop.f32.mrb[179].mxu0  ;;  %v7505_v10 = vpop.f32.mrb[179].mxu1 }
 0x2d8   : > { %v8127_v10 = vld [vmem:[%s8678_s8 + $0x550] sm:$0xff]  }
 0x2d9   : > { %7627 = vmatmul.mubr.bf16.gmra.mrb[28].mxu0 %v8124_v46  ;;  %7839 = vmatmul.mubr.bf16.gmra.mrb[28].mxu1 %v8125_v27  ;;  %v8128_v27 = vld [vmem:[%s8678_s8 + $0x3d0] sm:$0xff]  }
 0x2da   : > { %7630 = vmatprep.mubr.msk.bf16.mxu0 %vm8205_vm0, %v10667_v63  ;;  %7842 = vmatprep.mubr.msk.bf16.mxu1 %vm8205_vm0, %v10667_v63 }
 0x2dc   : > { %v9693_v51 = vpop.f32.mrb[180].mxu0  ;;  %v9695_v34 = vpop.f32.mrb[180].mxu1 }
 0x2dd   : > { %10792 = vst [vmem:[#allocation135_spill] sm:$0xff] %v9693_v51  ;;  %10793 = vst [vmem:[#allocation136_spill] sm:$0xff] %v9695_v34  ;;  %v7296_v15 = vpop.f32.mrb[181].mxu0  ;;  %v7508_v39 = vpop.f32.mrb[181].mxu1 }
 0x2de   : > { %v9701_v5 = vpop.f32.mrb[182].mxu0  ;;  %v9703_v46 = vpop.f32.mrb[182].mxu1 }
 0x2df   : > { %10794 = vst [vmem:[#allocation137_spill] sm:$0xff] %v9701_v5  ;;  %10795 = vst [vmem:[#allocation138_spill] sm:$0xff] %v9703_v46  ;;  %v7297_v33 = vpop.f32.mrb[183].mxu0  ;;  %v7509_v44 = vpop.f32.mrb[183].mxu1 }
 0x2e0   : > { %v8129_v44 = vld [vmem:[%s8678_s8 + $0x558] sm:$0xff]  }
 0x2e1   : > { %7631 = vmatmul.mubr.bf16.gmra.mrb[32].mxu0 %v8126_v22  ;;  %7843 = vmatmul.mubr.bf16.gmra.mrb[32].mxu1 %v8127_v10  ;;  %v8130_v10 = vld [vmem:[%s8678_s8 + $0x3d8] sm:$0xff]  }
 0x2e2   : > { %7634 = vmatprep.mubr.msk.bf16.mxu0 %vm8205_vm0, %v10667_v63  ;;  %7846 = vmatprep.mubr.msk.bf16.mxu1 %vm8205_vm0, %v10667_v63 }
 0x2e4   : > { %v9711_v39 = vpop.f32.mrb[184].mxu0  ;;  %v9713_v15 = vpop.f32.mrb[184].mxu1 }
 0x2e5   : > { %10796 = vst [vmem:[#allocation139_spill] sm:$0xff] %v9711_v39  ;;  %10797 = vst [vmem:[#allocation140_spill] sm:$0xff] %v9713_v15  ;;  %v7300_v34 = vpop.f32.mrb[185].mxu0  ;;  %v7512_v51 = vpop.f32.mrb[185].mxu1 }
 0x2e6   : > { %v9719_v33 = vpop.f32.mrb[186].mxu0  ;;  %v9721_v22 = vpop.f32.mrb[186].mxu1 }
 0x2e7   : > { %10798 = vst [vmem:[#allocation141_spill] sm:$0xff] %v9719_v33  ;;  %10799 = vst [vmem:[#allocation142_spill] sm:$0xff] %v9721_v22  ;;  %v7301_v46 = vpop.f32.mrb[187].mxu0  ;;  %v7513_v5 = vpop.f32.mrb[187].mxu1 }
 0x2e8   : > { %v8131_v5 = vld [vmem:[%s8678_s8 + $0x560] sm:$0xff]  }
 0x2e9   : > { %7635 = vmatmul.mubr.bf16.gmra.mrb[36].mxu0 %v8128_v27  ;;  %7847 = vmatmul.mubr.bf16.gmra.mrb[36].mxu1 %v8129_v44  ;;  %v8132_v44 = vld [vmem:[%s8678_s8 + $0x3e0] sm:$0xff]  }
 0x2ea   : > { %7638 = vmatprep.mubr.msk.bf16.mxu0 %vm8205_vm0, %v10667_v63  ;;  %7850 = vmatprep.mubr.msk.bf16.mxu1 %vm8205_vm0, %v10667_v63 }
 0x2ec   : > { %v9729_v51 = vpop.f32.mrb[188].mxu0  ;;  %v9731_v34 = vpop.f32.mrb[188].mxu1 }
 0x2ed   : > { %10800 = vst [vmem:[#allocation143_spill] sm:$0xff] %v9729_v51  ;;  %10801 = vst [vmem:[#allocation144_spill] sm:$0xff] %v9731_v34  ;;  %v7304_v15 = vpop.f32.mrb[189].mxu0  ;;  %v7516_v39 = vpop.f32.mrb[189].mxu1 }
 0x2ee   : > { %v9737_v46 = vpop.f32.mrb[190].mxu0  ;;  %v9739_v27 = vpop.f32.mrb[190].mxu1 }
 0x2ef   : > { %10802 = vst [vmem:[#allocation145_spill] sm:$0xff] %v9737_v46  ;;  %10803 = vst [vmem:[#allocation146_spill] sm:$0xff] %v9739_v27  ;;  %v7305_v22 = vpop.f32.mrb[191].mxu0  ;;  %v7517_v33 = vpop.f32.mrb[191].mxu1 }
 0x2f0   : > { %v8133_v22 = vld [vmem:[%s8678_s8 + $0x568] sm:$0xff]  }
 0x2f1   : > { %7639 = vmatmul.mubr.bf16.gmra.mrb[40].mxu0 %v8130_v10  ;;  %7851 = vmatmul.mubr.bf16.gmra.mrb[40].mxu1 %v8131_v5 }
 0x2f2   : > { %7642 = vmatprep.mubr.msk.bf16.mxu0 %vm8205_vm0, %v10667_v63  ;;  %7854 = vmatprep.mubr.msk.bf16.mxu1 %vm8205_vm0, %v10667_v63 }
 0x2f4   : > { %v9747_v39 = vpop.f32.mrb[192].mxu0  ;;  %v9749_v15 = vpop.f32.mrb[192].mxu1 }
 0x2f5   : > { %10804 = vst [vmem:[#allocation147_spill] sm:$0xff] %v9747_v39  ;;  %10805 = vst [vmem:[#allocation148_spill] sm:$0xff] %v9749_v15  ;;  %v7308_v34 = vpop.f32.mrb[193].mxu0  ;;  %v7520_v51 = vpop.f32.mrb[193].mxu1 }
 0x2f6   : > { %v9757_v33 = vpop.f32.mrb[194].mxu0  ;;  %v9759_v10 = vpop.f32.mrb[194].mxu1 }
 0x2f7   : > { %10806 = vst [vmem:[#allocation149_spill] sm:$0xff] %v9757_v33  ;;  %10807 = vst [vmem:[#allocation150_spill] sm:$0xff] %v9759_v10  ;;  %v7309_v27 = vpop.f32.mrb[195].mxu0  ;;  %v7521_v46 = vpop.f32.mrb[195].mxu1 }
 0x2f8   : > { %v8134_v27 = vld [vmem:[%s8678_s8 + $0x3e8] sm:$0xff]   ;;  %v8135_v46 = vld [vmem:[%s8678_s8 + $0x570] sm:$0xff]  }
 0x2f9   : > { %7643 = vmatmul.mubr.bf16.gmra.mrb[44].mxu0 %v8132_v44  ;;  %7855 = vmatmul.mubr.bf16.gmra.mrb[44].mxu1 %v8133_v22  ;;  %v9775_v44 = vld [vmem:[%s10507_s2] ss:$0 sm:$0xff] }
 0x2fa   : > { %7646 = vmatprep.mubr.msk.bf16.mxu0 %vm8205_vm0, %v10667_v63  ;;  %7858 = vmatprep.mubr.msk.bf16.mxu1 %vm8205_vm0, %v10667_v63 }
 0x2fc   : > { %v4004_v51 = vpop.f32.mrb[196].mxu0  ;;  %v4920_v34 = vpop.f32.mrb[196].mxu1 }
 0x2fd   : > { %v4395_v15 = vmax.f32 %v10808_v58, %v4004_v51  ;;  %v7540_v39 = vpop.f32.mrb[197].mxu0  ;;  %v7752_v5 = vpop.f32.mrb[197].mxu1  ;;  %v8136_v51 = vld [vmem:[%s8678_s8 + $0x3f0] sm:$0xff]  }
 0x2fe   : > { %v4007_v22 = vpop.f32.mrb[198].mxu0  ;;  %v4923_v10 = vpop.f32.mrb[198].mxu1 }
 0x2ff   : > { %v5311_v33 = vmax.f32 %v4395_v15, %v4920_v34  ;;  %v4396_v55 = vmax.f32 %v10809_v20, %v4007_v22  ;;  %v7541_v9 = vpop.f32.mrb[199].mxu0  ;;  %v7753_v3 = vpop.f32.mrb[199].mxu1  ;;  %v10810_v15 = vmax.f32 %v8901_v16, %v8903_v17  ;;  %v8137_v34 = vld [vmem:[%s8678_s8 + $0x578] sm:$0xff]  }
 0x301   : > { %v5416_v4 = vadd.f32 %v9775_v44, %v5311_v33  ;;  %v5312_v58 = vmax.f32 %v4396_v55, %v4923_v10  ;;  %7647 = vmatmul.mubr.bf16.gmra.mrb[48].mxu0 %v8134_v27  ;;  %7859 = vmatmul.mubr.bf16.gmra.mrb[48].mxu1 %v8135_v46 }
 0x302   : > { %7650 = vmatprep.mubr.msk.bf16.mxu0 %vm8205_vm0, %v10667_v63  ;;  %7862 = vmatprep.mubr.msk.bf16.mxu1 %vm8205_vm0, %v10667_v63 }
 0x303   : > { %v5514_v39 = vmax.f32 %v5416_v4, 0.0  ;;  %v5417_v11 = vadd.f32 %v9775_v44, %v5312_v58  ;;  %v10811_v4 = vmax.f32 %v8909_v23, %v8911_v24 }
 0x304   : > { %v4012_v12 = vpop.f32.mrb[200].mxu0  ;;  %v4928_v9 = vpop.f32.mrb[200].mxu1 }
 0x305   : > { %v6772_v55 = vpack.c.bf16 %v5514_v39, %v5514_v39  ;;  %v5515_v20 = vmax.f32 %v5417_v11, 0.0  ;;  %v4397_v33 = vmax.f32 %v10810_v15, %v4012_v12  ;;  %v7544_v10 = vpop.f32.mrb[201].mxu0  ;;  %v7756_v5 = vpop.f32.mrb[201].mxu1  ;;  %v10812_v15 = vmax.f32 %v8919_v28, %v8921_v29 }
 0x306   : > { %v4015_v27 = vpop.f32.mrb[202].mxu0  ;;  %v4931_v46 = vpop.f32.mrb[202].mxu1 }
 0x307   : > { %6005 = vst.msk [vmem:[%s9789_s28] sm:$0xf] %vm6004_vm1, %v6772_v55  ;;  %v6773_v22 = vpack.c.bf16 %v5515_v20, %v5515_v20  ;;  %v5313_v3 = vmax.f32 %v4397_v33, %v4928_v9  ;;  %v4398_v58 = vmax.f32 %v10811_v4, %v4015_v27  ;;  %v7545_v39 = vpop.f32.mrb[203].mxu0  ;;  %v7757_v11 = vpop.f32.mrb[203].mxu1  ;;  %v10813_v4 = vmax.f32 %v8927_v35, %v8929_v36 }
 0x309   : > { %6006 = vst.msk [vmem:[%s9789_s28 + $0x4] sm:$0xf] %vm6004_vm1, %v6773_v22  ;;  %v5418_v16 = vadd.f32 %v9775_v44, %v5313_v3  ;;  %v5314_v17 = vmax.f32 %v4398_v58, %v4931_v46  ;;  %7651 = vmatmul.mubr.bf16.gmra.mrb[52].mxu0 %v8136_v51  ;;  %7863 = vmatmul.mubr.bf16.gmra.mrb[52].mxu1 %v8137_v34  ;;  %v8138_v51 = vld [vmem:[%s8678_s8 + $0x3f8] sm:$0xff]   ;;  %v8139_v34 = vld [vmem:[%s8678_s8 + $0x580] sm:$0xff]  }
 0x30a   : > { %7654 = vmatprep.mubr.msk.bf16.mxu0 %vm8205_vm0, %v10667_v63  ;;  %7866 = vmatprep.mubr.msk.bf16.mxu1 %vm8205_vm0, %v10667_v63 }
 0x30b   : > { %v5516_v23 = vmax.f32 %v5418_v16, 0.0  ;;  %v5419_v24 = vadd.f32 %v9775_v44, %v5314_v17 }
 0x30c   : > { %v4020_v12 = vpop.f32.mrb[204].mxu0  ;;  %v4936_v9 = vpop.f32.mrb[204].mxu1 }
 0x30d   : > { %v6774_v55 = vpack.c.bf16 %v5516_v23, %v5516_v23  ;;  %v5517_v20 = vmax.f32 %v5419_v24, 0.0  ;;  %v4399_v33 = vmax.f32 %v10812_v15, %v4020_v12  ;;  %v7548_v10 = vpop.f32.mrb[205].mxu0  ;;  %v7760_v5 = vpop.f32.mrb[205].mxu1  ;;  %v10814_v12 = vmax.f32 %v8937_v40, %v8939_v41  ;;  %v8140_v15 = vld [vmem:[%s8678_s8 + $0x400] sm:$0xff]  }
 0x30e   : > { %v4023_v27 = vpop.f32.mrb[206].mxu0  ;;  %v4939_v46 = vpop.f32.mrb[206].mxu1 }
 0x30f   : > { %6007 = vst.msk [vmem:[%s9789_s28 + $0x8] sm:$0xf] %vm6004_vm1, %v6774_v55  ;;  %v6775_v22 = vpack.c.bf16 %v5517_v20, %v5517_v20  ;;  %v5315_v3 = vmax.f32 %v4399_v33, %v4936_v9  ;;  %v4400_v58 = vmax.f32 %v10813_v4, %v4023_v27  ;;  %v7549_v39 = vpop.f32.mrb[207].mxu0  ;;  %v7761_v11 = vpop.f32.mrb[207].mxu1  ;;  %v8141_v33 = vld [vmem:[%s8678_s8 + $0x588] sm:$0xff]   ;;  %v10815_v27 = vmax.f32 %v8945_v47, %v8947_v48 }
 0x311   : > { %6008 = vst.msk [vmem:[%s9789_s28 + $0xc] sm:$0xf] %vm6004_vm1, %v6775_v22  ;;  %v5420_v28 = vadd.f32 %v9775_v44, %v5315_v3  ;;  %v5316_v29 = vmax.f32 %v4400_v58, %v4939_v46  ;;  %7655 = vmatmul.mubr.bf16.gmra.mrb[56].mxu0 %v8138_v51  ;;  %7867 = vmatmul.mubr.bf16.gmra.mrb[56].mxu1 %v8139_v34 }
 0x312   : > { %7658 = vmatprep.mubr.msk.bf16.mxu0 %vm8205_vm0, %v10667_v63  ;;  %7870 = vmatprep.mubr.msk.bf16.mxu1 %vm8205_vm0, %v10667_v63 }
 0x313   : > { %v5518_v35 = vmax.f32 %v5420_v28, 0.0  ;;  %v5421_v36 = vadd.f32 %v9775_v44, %v5316_v29  ;;  %v10816_v28 = vmax.f32 %v8955_v52, %v8957_v53 }
 0x314   : > { %v4028_v16 = vpop.f32.mrb[208].mxu0  ;;  %v4944_v17 = vpop.f32.mrb[208].mxu1 }
 0x315   : > { %v6776_v23 = vpack.c.bf16 %v5518_v35, %v5518_v35  ;;  %v5519_v24 = vmax.f32 %v5421_v36, 0.0  ;;  %v4401_v9 = vmax.f32 %v10814_v12, %v4028_v16  ;;  %v7552_v55 = vpop.f32.mrb[209].mxu0  ;;  %v7764_v20 = vpop.f32.mrb[209].mxu1  ;;  %v8142_v16 = vld [vmem:[%s8678_s8 + $0x408] sm:$0xff]  }
 0x316   : > { %v4031_v10 = vpop.f32.mrb[210].mxu0  ;;  %v4947_v5 = vpop.f32.mrb[210].mxu1  ;;  %v10817_v55 = vmax.f32 %v8963_v59, %v8965_v60 }
 0x317   : > { %6009 = vst.msk [vmem:[%s9789_s28 + $0x10] sm:$0xf] %vm6004_vm1, %v6776_v23  ;;  %v6777_v51 = vpack.c.bf16 %v5519_v24, %v5519_v24  ;;  %v5317_v34 = vmax.f32 %v4401_v9, %v4944_v17  ;;  %v4402_v46 = vmax.f32 %v10815_v27, %v4031_v10  ;;  %v7553_v22 = vpop.f32.mrb[211].mxu0  ;;  %v7765_v3 = vpop.f32.mrb[211].mxu1  ;;  %v8143_v17 = vld [vmem:[%s8678_s8 + $0x590] sm:$0xff]   ;;  %v10818_v27 = vmax.f32 %v8973_v0, %v8975_v1 }
 0x319   : > { %6010 = vst.msk [vmem:[%s9789_s28 + $0x14] sm:$0xf] %vm6004_vm1, %v6777_v51  ;;  %v5422_v40 = vadd.f32 %v9775_v44, %v5317_v34  ;;  %v5318_v41 = vmax.f32 %v4402_v46, %v4947_v5  ;;  %7659 = vmatmul.mubr.bf16.gmra.mrb[60].mxu0 %v8140_v15  ;;  %7871 = vmatmul.mubr.bf16.gmra.mrb[60].mxu1 %v8141_v33 }
 0x31a   : > { %7662 = vmatprep.mubr.msk.bf16.mxu0 %vm8205_vm0, %v10667_v63  ;;  %7874 = vmatprep.mubr.msk.bf16.mxu1 %vm8205_vm0, %v10667_v63 }
 0x31b   : > { %v5520_v47 = vmax.f32 %v5422_v40, 0.0  ;;  %v5423_v48 = vadd.f32 %v9775_v44, %v5318_v41  ;;  %v8144_v40 = vld [vmem:[%s8678_s8 + $0x410] sm:$0xff]   ;;  %v8145_v41 = vld [vmem:[%s8678_s8 + $0x598] sm:$0xff]  }
 0x31c   : > { %v4036_v4 = vpop.f32.mrb[212].mxu0  ;;  %v4952_v58 = vpop.f32.mrb[212].mxu1 }
 0x31d   : > { %v6778_v39 = vpack.c.bf16 %v5520_v47, %v5520_v47  ;;  %v5521_v11 = vmax.f32 %v5423_v48, 0.0  ;;  %v4403_v29 = vmax.f32 %v10816_v28, %v4036_v4  ;;  %v7556_v35 = vpop.f32.mrb[213].mxu0  ;;  %v7768_v36 = vpop.f32.mrb[213].mxu1 }
 0x31e   : > { %v4039_v23 = vpop.f32.mrb[214].mxu0  ;;  %v4955_v24 = vpop.f32.mrb[214].mxu1 }
 0x31f   : > { %6011 = vst.msk [vmem:[%s9789_s28 + $0x18] sm:$0xf] %vm6004_vm1, %v6778_v39  ;;  %v6779_v12 = vpack.c.bf16 %v5521_v11, %v5521_v11  ;;  %v5319_v9 = vmax.f32 %v4403_v29, %v4952_v58  ;;  %v4404_v20 = vmax.f32 %v10817_v55, %v4039_v23  ;;  %v7557_v15 = vpop.f32.mrb[215].mxu0  ;;  %v7769_v33 = vpop.f32.mrb[215].mxu1  ;;  %v10819_v39 = vmax.f32 %v8981_v13, %v8983_v14  ;;  %v8146_v55 = vld [vmem:[%s8678_s8 + $0x418] sm:$0xff]  }
 0x320   : > { %v10820_v23 = vmax.f32 %v8991_v21, %v8993_v25 }
 0x321   : > { %6012 = vst.msk [vmem:[%s9789_s28 + $0x1c] sm:$0xf] %vm6004_vm1, %v6779_v12  ;;  %v5424_v52 = vadd.f32 %v9775_v44, %v5319_v9  ;;  %v5320_v53 = vmax.f32 %v4404_v20, %v4955_v24  ;;  %7663 = vmatmul.mubr.bf16.gmra.mrb[64].mxu0 %v8142_v16  ;;  %7875 = vmatmul.mubr.bf16.gmra.mrb[64].mxu1 %v8143_v17  ;;  %v8147_v20 = vld [vmem:[%s8678_s8 + $0x5a0] sm:$0xff]  }
 0x322   : > { %7666 = vmatprep.mubr.msk.bf16.mxu0 %vm8205_vm0, %v10667_v63  ;;  %7878 = vmatprep.mubr.msk.bf16.mxu1 %vm8205_vm0, %v10667_v63 }
 0x323   : > { %v5522_v59 = vmax.f32 %v5424_v52, 0.0  ;;  %v5425_v60 = vadd.f32 %v9775_v44, %v5320_v53 }
 0x324   : > { %v4044_v10 = vpop.f32.mrb[216].mxu0  ;;  %v4960_v5 = vpop.f32.mrb[216].mxu1 }
 0x325   : > { %v6780_v51 = vpack.c.bf16 %v5522_v59, %v5522_v59  ;;  %v5523_v34 = vmax.f32 %v5425_v60, 0.0  ;;  %v4405_v46 = vmax.f32 %v10818_v27, %v4044_v10  ;;  %v7560_v22 = vpop.f32.mrb[217].mxu0  ;;  %v7772_v3 = vpop.f32.mrb[217].mxu1  ;;  %v10821_v59 = vmax.f32 %v8999_v37, %v9001_v38 }
 0x326   : > { %v4047_v47 = vpop.f32.mrb[218].mxu0  ;;  %v4963_v48 = vpop.f32.mrb[218].mxu1  ;;  %v10822_v22 = vmax.f32 %v9009_v45, %v9011_v49 }
 0x327   : > { %6013 = vst.msk [vmem:[%s9789_s28 + $0x20] sm:$0xf] %vm6004_vm1, %v6780_v51  ;;  %v6781_v4 = vpack.c.bf16 %v5523_v34, %v5523_v34  ;;  %v5321_v58 = vmax.f32 %v4405_v46, %v4960_v5  ;;  %v4406_v11 = vmax.f32 %v10819_v39, %v4047_v47  ;;  %v7561_v28 = vpop.f32.mrb[219].mxu0  ;;  %v7773_v29 = vpop.f32.mrb[219].mxu1  ;;  %v8148_v47 = vld [vmem:[%s8678_s8 + $0x420] sm:$0xff]  }
 0x328   : > { %v10823_v28 = vmax.f32 %v9017_v61, %v9019_v62 }
 0x329   : > { %6014 = vst.msk [vmem:[%s9789_s28 + $0x24] sm:$0xf] %vm6004_vm1, %v6781_v4  ;;  %v5426_v0 = vadd.f32 %v9775_v44, %v5321_v58  ;;  %v5322_v1 = vmax.f32 %v4406_v11, %v4963_v48  ;;  %7667 = vmatmul.mubr.bf16.gmra.mrb[68].mxu0 %v8144_v40  ;;  %7879 = vmatmul.mubr.bf16.gmra.mrb[68].mxu1 %v8145_v41  ;;  %v8149_v48 = vld [vmem:[%s8678_s8 + $0x5a8] sm:$0xff]  }
 0x32a   : > { %7670 = vmatprep.mubr.msk.bf16.mxu0 %vm8205_vm0, %v10667_v63  ;;  %7882 = vmatprep.mubr.msk.bf16.mxu1 %vm8205_vm0, %v10667_v63 }
 0x32b   : > { %v5524_v13 = vmax.f32 %v5426_v0, 0.0  ;;  %v5427_v14 = vadd.f32 %v9775_v44, %v5322_v1 }
 0x32c   : > { %v4052_v35 = vpop.f32.mrb[220].mxu0  ;;  %v4968_v36 = vpop.f32.mrb[220].mxu1 }
 0x32d   : > { %v6782_v16 = vpack.c.bf16 %v5524_v13, %v5524_v13  ;;  %v5525_v17 = vmax.f32 %v5427_v14, 0.0  ;;  %v4407_v24 = vmax.f32 %v10820_v23, %v4052_v35  ;;  %v7564_v12 = vpop.f32.mrb[221].mxu0  ;;  %v7776_v9 = vpop.f32.mrb[221].mxu1 }
 0x32e   : > { %v4055_v15 = vpop.f32.mrb[222].mxu0  ;;  %v4971_v33 = vpop.f32.mrb[222].mxu1  ;;  %v8150_v12 = vld [vmem:[%s8678_s8 + $0x428] sm:$0xff]   ;;  %v8151_v9 = vld [vmem:[%s8678_s8 + $0x5b0] sm:$0xff]  }
 0x32f   : > { %6015 = vst.msk [vmem:[%s9789_s28 + $0x28] sm:$0xf] %vm6004_vm1, %v6782_v16  ;;  %v6783_v52 = vpack.c.bf16 %v5525_v17, %v5525_v17  ;;  %v5323_v53 = vmax.f32 %v4407_v24, %v4968_v36  ;;  %v4408_v60 = vmax.f32 %v10821_v59, %v4055_v15  ;;  %v7565_v10 = vpop.f32.mrb[223].mxu0  ;;  %v7777_v5 = vpop.f32.mrb[223].mxu1  ;;  %v10824_v16 = vmax.f32 %v9027_v8, %v9029_v18 }
 0x331   : > { %6016 = vst.msk [vmem:[%s9789_s28 + $0x2c] sm:$0xf] %vm6004_vm1, %v6783_v52  ;;  %v5428_v21 = vadd.f32 %v9775_v44, %v5323_v53  ;;  %v5324_v25 = vmax.f32 %v4408_v60, %v4971_v33  ;;  %7671 = vmatmul.mubr.bf16.gmra.mrb[72].mxu0 %v8146_v55  ;;  %7883 = vmatmul.mubr.bf16.gmra.mrb[72].mxu1 %v8147_v20 }
 0x332   : > { %7674 = vmatprep.mubr.msk.bf16.mxu0 %vm8205_vm0, %v10667_v63  ;;  %7886 = vmatprep.mubr.msk.bf16.mxu1 %vm8205_vm0, %v10667_v63  ;;  %v10825_v52 = vmax.f32 %v9035_v42, %v9037_v43 }
 0x333   : > { %v5526_v37 = vmax.f32 %v5428_v21, 0.0  ;;  %v5429_v38 = vadd.f32 %v9775_v44, %v5324_v25 }
 0x334   : > { %v4060_v51 = vpop.f32.mrb[224].mxu0  ;;  %v4976_v34 = vpop.f32.mrb[224].mxu1 }
 0x335   : > { %v6784_v27 = vpack.c.bf16 %v5526_v37, %v5526_v37  ;;  %v5527_v46 = vmax.f32 %v5429_v38, 0.0  ;;  %v4409_v3 = vmax.f32 %v10822_v22, %v4060_v51  ;;  %v7568_v40 = vpop.f32.mrb[225].mxu0  ;;  %v7780_v41 = vpop.f32.mrb[225].mxu1  ;;  %v10826_v37 = vmax.f32 %v9045_v56, %v9047_v2 }
 0x336   : > { %v4063_v4 = vpop.f32.mrb[226].mxu0  ;;  %v4979_v58 = vpop.f32.mrb[226].mxu1 }
 0x337   : > { %6017 = vst.msk [vmem:[%s9789_s28 + $0x30] sm:$0xf] %vm6004_vm1, %v6784_v27  ;;  %v6785_v39 = vpack.c.bf16 %v5527_v46, %v5527_v46  ;;  %v5325_v11 = vmax.f32 %v4409_v3, %v4976_v34  ;;  %v4410_v29 = vmax.f32 %v10823_v28, %v4063_v4  ;;  %v7569_v0 = vpop.f32.mrb[227].mxu0  ;;  %v7781_v1 = vpop.f32.mrb[227].mxu1  ;;  %v8152_v27 = vld [vmem:[%s8678_s8 + $0x430] sm:$0xff]   ;;  %v8153_v46 = vld [vmem:[%s8678_s8 + $0x5b8] sm:$0xff]  }
 0x338   : > { %v10828_v0 = vmax.f32 %v9063_v6, %v9065_v19 }
 0x339   : > { %6018 = vst.msk [vmem:[%s9789_s28 + $0x34] sm:$0xf] %vm6004_vm1, %v6785_v39  ;;  %v5430_v45 = vadd.f32 %v9775_v44, %v5325_v11  ;;  %v5326_v49 = vmax.f32 %v4410_v29, %v4979_v58  ;;  %7675 = vmatmul.mubr.bf16.gmra.mrb[76].mxu0 %v8148_v47  ;;  %7887 = vmatmul.mubr.bf16.gmra.mrb[76].mxu1 %v8149_v48 }
 0x33a   : > { %7678 = vmatprep.mubr.msk.bf16.mxu0 %vm8205_vm0, %v10667_v63  ;;  %7890 = vmatprep.mubr.msk.bf16.mxu1 %vm8205_vm0, %v10667_v63  ;;  %v10827_v47 = vmax.f32 %v9053_v31, %v9055_v54 }
 0x33b   : > { %v5528_v61 = vmax.f32 %v5430_v45, 0.0  ;;  %v5431_v62 = vadd.f32 %v9775_v44, %v5326_v49 }
 0x33c   : > { %v4068_v13 = vpop.f32.mrb[228].mxu0  ;;  %v4984_v14 = vpop.f32.mrb[228].mxu1 }
 0x33d   : > { %v6786_v35 = vpack.c.bf16 %v5528_v61, %v5528_v61  ;;  %v5529_v36 = vmax.f32 %v5431_v62, 0.0  ;;  %v4411_v17 = vmax.f32 %v10824_v16, %v4068_v13  ;;  %v7572_v23 = vpop.f32.mrb[229].mxu0  ;;  %v7784_v24 = vpop.f32.mrb[229].mxu1  ;;  %v8154_v61 = vld [vmem:[%s8678_s8 + $0x438] sm:$0xff]   ;;  %v8155_v62 = vld [vmem:[%s8678_s8 + $0x5c0] sm:$0xff]   ;;  %v10829_v16 = vmax.f32 %v9071_v26, %v9073_v50 }
 0x33e   : > { %v4071_v55 = vpop.f32.mrb[230].mxu0  ;;  %v4987_v20 = vpop.f32.mrb[230].mxu1 }
 0x33f   : > { %6019 = vst.msk [vmem:[%s9789_s28 + $0x38] sm:$0xf] %vm6004_vm1, %v6786_v35  ;;  %v6787_v15 = vpack.c.bf16 %v5529_v36, %v5529_v36  ;;  %v5327_v33 = vmax.f32 %v4411_v17, %v4984_v14  ;;  %v4412_v53 = vmax.f32 %v10825_v52, %v4071_v55  ;;  %v7573_v59 = vpop.f32.mrb[231].mxu0  ;;  %v7785_v60 = vpop.f32.mrb[231].mxu1 }
 0x340   : > { %v8156_v59 = vld [vmem:[%s8678_s8 + $0x440] sm:$0xff]   ;;  %v8157_v60 = vld [vmem:[%s8678_s8 + $0x5c8] sm:$0xff]  }
 0x341   : > { %6020 = vst.msk [vmem:[%s9789_s28 + $0x3c] sm:$0xf] %vm6004_vm1, %v6787_v15  ;;  %v5432_v8 = vadd.f32 %v9775_v44, %v5327_v33  ;;  %v5328_v18 = vmax.f32 %v4412_v53, %v4987_v20  ;;  %7679 = vmatmul.mubr.bf16.gmra.mrb[80].mxu0 %v8150_v12  ;;  %7891 = vmatmul.mubr.bf16.gmra.mrb[80].mxu1 %v8151_v9 }
 0x342   : > { %7682 = vmatprep.mubr.msk.bf16.mxu0 %vm8205_vm0, %v10667_v63  ;;  %7894 = vmatprep.mubr.msk.bf16.mxu1 %vm8205_vm0, %v10667_v63  ;;  %v10830_v15 = vmax.f32 %v9081_v57, %v9083_v30 }
 0x343   : > { %v5530_v42 = vmax.f32 %v5432_v8, 0.0  ;;  %v5433_v43 = vadd.f32 %v9775_v44, %v5328_v18 }
 0x344   : > { %v4076_v10 = vpop.f32.mrb[232].mxu0  ;;  %v4992_v5 = vpop.f32.mrb[232].mxu1 }
 0x345   : > { %v6788_v21 = vpack.c.bf16 %v5530_v42, %v5530_v42  ;;  %v5531_v25 = vmax.f32 %v5433_v43, 0.0  ;;  %v4413_v38 = vmax.f32 %v10826_v37, %v4076_v10  ;;  %v7576_v51 = vpop.f32.mrb[233].mxu0  ;;  %v7788_v34 = vpop.f32.mrb[233].mxu1  ;;  %v10831_v10 = vmax.f32 %v9089_v7, %v9091_v32 }
 0x346   : > { %v4079_v22 = vpop.f32.mrb[234].mxu0  ;;  %v4995_v3 = vpop.f32.mrb[234].mxu1 }
 0x347   : > { %6021 = vst.msk [vmem:[%s9789_s28 + $0x40] sm:$0xf] %vm6004_vm1, %v6788_v21  ;;  %v6789_v40 = vpack.c.bf16 %v5531_v25, %v5531_v25  ;;  %v5329_v41 = vmax.f32 %v4413_v38, %v4992_v5  ;;  %v4414_v48 = vmax.f32 %v10827_v47, %v4079_v22  ;;  %v7577_v4 = vpop.f32.mrb[235].mxu0  ;;  %v7789_v58 = vpop.f32.mrb[235].mxu1  ;;  %v8158_v47 = vld [vmem:[%s8678_s8 + $0x448] sm:$0xff]  }
 0x349   : > { %6022 = vst.msk [vmem:[%s9789_s28 + $0x44] sm:$0xf] %vm6004_vm1, %v6789_v40  ;;  %v5434_v56 = vadd.f32 %v9775_v44, %v5329_v41  ;;  %v5330_v2 = vmax.f32 %v4414_v48, %v4995_v3  ;;  %7683 = vmatmul.mubr.bf16.gmra.mrb[84].mxu0 %v8152_v27  ;;  %7895 = vmatmul.mubr.bf16.gmra.mrb[84].mxu1 %v8153_v46  ;;  %v10832_v27 = vld [vmem:[#allocation3_spill] sm:$0xff]  ;;  %v10833_v46 = vld [vmem:[#allocation4_spill] sm:$0xff]  ;;  %v8159_v48 = vld [vmem:[%s8678_s8 + $0x5d0] sm:$0xff]  }
 0x34a   : > { %7686 = vmatprep.mubr.msk.bf16.mxu0 %vm8205_vm0, %v10667_v63  ;;  %7898 = vmatprep.mubr.msk.bf16.mxu1 %vm8205_vm0, %v10667_v63  ;;  %v10834_v22 = vmax.f32 %v10832_v27, %v10833_v46 }
 0x34b   : > { %v5532_v31 = vmax.f32 %v5434_v56, 0.0  ;;  %v5435_v54 = vadd.f32 %v9775_v44, %v5330_v2 }
 0x34c   : > { %v4084_v39 = vpop.f32.mrb[236].mxu0  ;;  %v5000_v11 = vpop.f32.mrb[236].mxu1 }
 0x34d   : > { %v6790_v28 = vpack.c.bf16 %v5532_v31, %v5532_v31  ;;  %v5533_v29 = vmax.f32 %v5435_v54, 0.0  ;;  %v4415_v1 = vmax.f32 %v10828_v0, %v4084_v39  ;;  %v7580_v45 = vpop.f32.mrb[237].mxu0  ;;  %v7792_v49 = vpop.f32.mrb[237].mxu1  ;;  %v10835_v31 = vld [vmem:[#allocation5_spill] sm:$0xff]  ;;  %v10836_v54 = vld [vmem:[#allocation6_spill] sm:$0xff] }
 0x34e   : > { %v4087_v13 = vpop.f32.mrb[238].mxu0  ;;  %v5003_v14 = vpop.f32.mrb[238].mxu1  ;;  %v10837_v39 = vmax.f32 %v10835_v31, %v10836_v54 }
 0x34f   : > { %6023 = vst.msk [vmem:[%s9789_s28 + $0x48] sm:$0xf] %vm6004_vm1, %v6790_v28  ;;  %v6791_v35 = vpack.c.bf16 %v5533_v29, %v5533_v29  ;;  %v5331_v36 = vmax.f32 %v4415_v1, %v5000_v11  ;;  %v4416_v17 = vmax.f32 %v10829_v16, %v4087_v13  ;;  %v7581_v23 = vpop.f32.mrb[239].mxu0  ;;  %v7793_v24 = vpop.f32.mrb[239].mxu1 }
 0x351   : > { %6024 = vst.msk [vmem:[%s9789_s28 + $0x4c] sm:$0xf] %vm6004_vm1, %v6791_v35  ;;  %v5436_v6 = vadd.f32 %v9775_v44, %v5331_v36  ;;  %v5332_v19 = vmax.f32 %v4416_v17, %v5003_v14  ;;  %7687 = vmatmul.mubr.bf16.gmra.mrb[88].mxu0 %v8154_v61  ;;  %7899 = vmatmul.mubr.bf16.gmra.mrb[88].mxu1 %v8155_v62  ;;  %v10838_v35 = vld [vmem:[#allocation7_spill] sm:$0xff]  ;;  %v10839_v36 = vld [vmem:[#allocation8_spill] sm:$0xff] }
 0x352   : > { %7690 = vmatprep.mubr.msk.bf16.mxu0 %vm8205_vm0, %v10667_v63  ;;  %7902 = vmatprep.mubr.msk.bf16.mxu1 %vm8205_vm0, %v10667_v63  ;;  %v10840_v16 = vmax.f32 %v10838_v35, %v10839_v36 }
 0x353   : > { %v5534_v26 = vmax.f32 %v5436_v6, 0.0  ;;  %v5437_v50 = vadd.f32 %v9775_v44, %v5332_v19  ;;  %v8160_v6 = vld [vmem:[%s8678_s8 + $0x450] sm:$0xff]   ;;  %v8161_v19 = vld [vmem:[%s8678_s8 + $0x5d8] sm:$0xff]  }
 0x354   : > { %v4092_v12 = vpop.f32.mrb[240].mxu0  ;;  %v5008_v9 = vpop.f32.mrb[240].mxu1 }
 0x355   : > { %v6792_v55 = vpack.c.bf16 %v5534_v26, %v5534_v26  ;;  %v5535_v20 = vmax.f32 %v5437_v50, 0.0  ;;  %v4417_v33 = vmax.f32 %v10830_v15, %v4092_v12  ;;  %v7584_v52 = vpop.f32.mrb[241].mxu0  ;;  %v7796_v53 = vpop.f32.mrb[241].mxu1 }
 0x356   : > { %v4095_v8 = vpop.f32.mrb[242].mxu0  ;;  %v5011_v18 = vpop.f32.mrb[242].mxu1 }
 0x357   : > { %6025 = vst.msk [vmem:[%s9789_s28 + $0x50] sm:$0xf] %vm6004_vm1, %v6792_v55  ;;  %v6793_v42 = vpack.c.bf16 %v5535_v20, %v5535_v20  ;;  %v5333_v43 = vmax.f32 %v4417_v33, %v5008_v9  ;;  %v4418_v5 = vmax.f32 %v10831_v10, %v4095_v8  ;;  %v7585_v21 = vpop.f32.mrb[243].mxu0  ;;  %v7797_v25 = vpop.f32.mrb[243].mxu1  ;;  %v10841_v55 = vld [vmem:[#allocation9_spill] sm:$0xff]  ;;  %v10842_v20 = vld [vmem:[#allocation10_spill] sm:$0xff] }
 0x358   : > { %v10843_v15 = vmax.f32 %v10841_v55, %v10842_v20  ;;  %v10844_v21 = vld [vmem:[#allocation11_spill] sm:$0xff]  ;;  %v10845_v25 = vld [vmem:[#allocation12_spill] sm:$0xff] }
 0x359   : > { %6026 = vst.msk [vmem:[%s9789_s28 + $0x54] sm:$0xf] %vm6004_vm1, %v6793_v42  ;;  %v5438_v57 = vadd.f32 %v9775_v44, %v5333_v43  ;;  %v5334_v30 = vmax.f32 %v4418_v5, %v5011_v18  ;;  %7691 = vmatmul.mubr.bf16.gmra.mrb[92].mxu0 %v8156_v59  ;;  %7903 = vmatmul.mubr.bf16.gmra.mrb[92].mxu1 %v8157_v60 }
 0x35a   : > { %7694 = vmatprep.mubr.msk.bf16.mxu0 %vm8205_vm0, %v10667_v63  ;;  %7906 = vmatprep.mubr.msk.bf16.mxu1 %vm8205_vm0, %v10667_v63 }
 0x35b   : > { %v5536_v7 = vmax.f32 %v5438_v57, 0.0  ;;  %v5439_v32 = vadd.f32 %v9775_v44, %v5334_v30  ;;  %v10846_v57 = vmax.f32 %v10844_v21, %v10845_v25 }
 0x35c   : > { %v4100_v37 = vpop.f32.mrb[244].mxu0  ;;  %v5016_v38 = vpop.f32.mrb[244].mxu1 }
 0x35d   : > { %v6794_v51 = vpack.c.bf16 %v5536_v7, %v5536_v7  ;;  %v5537_v34 = vmax.f32 %v5439_v32, 0.0  ;;  %v4419_v3 = vmax.f32 %v10834_v22, %v4100_v37  ;;  %v7588_v40 = vpop.f32.mrb[245].mxu0  ;;  %v7800_v41 = vpop.f32.mrb[245].mxu1  ;;  %v8162_v37 = vld [vmem:[%s8678_s8 + $0x458] sm:$0xff]   ;;  %v10847_v22 = vld [vmem:[#allocation13_spill] sm:$0xff] }
 0x35e   : > { %v4103_v4 = vpop.f32.mrb[246].mxu0  ;;  %v5019_v58 = vpop.f32.mrb[246].mxu1 }
 0x35f   : > { %6027 = vst.msk [vmem:[%s9789_s28 + $0x58] sm:$0xf] %vm6004_vm1, %v6794_v51  ;;  %v6795_v56 = vpack.c.bf16 %v5537_v34, %v5537_v34  ;;  %v5335_v2 = vmax.f32 %v4419_v3, %v5016_v38  ;;  %v4420_v11 = vmax.f32 %v10837_v39, %v4103_v4  ;;  %v7589_v28 = vpop.f32.mrb[247].mxu0  ;;  %v7801_v29 = vpop.f32.mrb[247].mxu1  ;;  %v8163_v38 = vld [vmem:[%s8678_s8 + $0x5e0] sm:$0xff]   ;;  %v10848_v3 = vld [vmem:[#allocation14_spill] sm:$0xff] }
 0x360   : > { %v10849_v40 = vmax.f32 %v10847_v22, %v10848_v3  ;;  %v10850_v28 = vld [vmem:[#allocation15_spill] sm:$0xff]  ;;  %v10851_v29 = vld [vmem:[#allocation16_spill] sm:$0xff] }
 0x361   : > { %6028 = vst.msk [vmem:[%s9789_s28 + $0x5c] sm:$0xf] %vm6004_vm1, %v6795_v56  ;;  %v5440_v0 = vadd.f32 %v9775_v44, %v5335_v2  ;;  %v5336_v1 = vmax.f32 %v4420_v11, %v5019_v58  ;;  %7695 = vmatmul.mubr.bf16.gmra.mrb[96].mxu0 %v8158_v47  ;;  %7907 = vmatmul.mubr.bf16.gmra.mrb[96].mxu1 %v8159_v48 }
 0x362   : > { %7698 = vmatprep.mubr.msk.bf16.mxu0 %vm8205_vm0, %v10667_v63  ;;  %7910 = vmatprep.mubr.msk.bf16.mxu1 %vm8205_vm0, %v10667_v63 }
 0x363   : > { %v5538_v45 = vmax.f32 %v5440_v0, 0.0  ;;  %v5441_v49 = vadd.f32 %v9775_v44, %v5336_v1  ;;  %v10852_v0 = vmax.f32 %v10850_v28, %v10851_v29 }
 0x364   : > { %v4108_v61 = vpop.f32.mrb[248].mxu0  ;;  %v5024_v62 = vpop.f32.mrb[248].mxu1 }
 0x365   : > { %v6796_v13 = vpack.c.bf16 %v5538_v45, %v5538_v45  ;;  %v5539_v14 = vmax.f32 %v5441_v49, 0.0  ;;  %v4421_v17 = vmax.f32 %v10840_v16, %v4108_v61  ;;  %v7592_v23 = vpop.f32.mrb[249].mxu0  ;;  %v7804_v24 = vpop.f32.mrb[249].mxu1  ;;  %v8164_v61 = vld [vmem:[%s8678_s8 + $0x460] sm:$0xff]   ;;  %v10853_v16 = vld [vmem:[#allocation17_spill] sm:$0xff] }
 0x366   : > { %v4111_v26 = vpop.f32.mrb[250].mxu0  ;;  %v5027_v50 = vpop.f32.mrb[250].mxu1 }
 0x367   : > { %6029 = vst.msk [vmem:[%s9789_s28 + $0x60] sm:$0xf] %vm6004_vm1, %v6796_v13  ;;  %v6797_v12 = vpack.c.bf16 %v5539_v14, %v5539_v14  ;;  %v5337_v9 = vmax.f32 %v4421_v17, %v5024_v62  ;;  %v4422_v33 = vmax.f32 %v10843_v15, %v4111_v26  ;;  %v7593_v52 = vpop.f32.mrb[251].mxu0  ;;  %v7805_v53 = vpop.f32.mrb[251].mxu1  ;;  %v8165_v62 = vld [vmem:[%s8678_s8 + $0x5e8] sm:$0xff]   ;;  %v10854_v17 = vld [vmem:[#allocation18_spill] sm:$0xff] }
 0x368   : > { %v10855_v23 = vmax.f32 %v10853_v16, %v10854_v17  ;;  %v10856_v52 = vld [vmem:[#allocation19_spill] sm:$0xff]  ;;  %v10857_v53 = vld [vmem:[#allocation20_spill] sm:$0xff] }
 0x369   : > { %6030 = vst.msk [vmem:[%s9789_s28 + $0x64] sm:$0xf] %vm6004_vm1, %v6797_v12  ;;  %v5442_v59 = vadd.f32 %v9775_v44, %v5337_v9  ;;  %v5338_v60 = vmax.f32 %v4422_v33, %v5027_v50  ;;  %7699 = vmatmul.mubr.bf16.gmra.mrb[100].mxu0 %v8160_v6  ;;  %7911 = vmatmul.mubr.bf16.gmra.mrb[100].mxu1 %v8161_v19 }
 0x36a   : > { %7702 = vmatprep.mubr.msk.bf16.mxu0 %vm8205_vm0, %v10667_v63  ;;  %7914 = vmatprep.mubr.msk.bf16.mxu1 %vm8205_vm0, %v10667_v63 }
 0x36b   : > { %v5540_v8 = vmax.f32 %v5442_v59, 0.0  ;;  %v5443_v18 = vadd.f32 %v9775_v44, %v5338_v60  ;;  %v10858_v59 = vmax.f32 %v10856_v52, %v10857_v53 }
 0x36c   : > { %v4116_v42 = vpop.f32.mrb[252].mxu0  ;;  %v5032_v43 = vpop.f32.mrb[252].mxu1 }
 0x36d   : > { %v6798_v10 = vpack.c.bf16 %v5540_v8, %v5540_v8  ;;  %v5541_v5 = vmax.f32 %v5443_v18, 0.0  ;;  %v4423_v30 = vmax.f32 %v10846_v57, %v4116_v42  ;;  %v7596_v7 = vpop.f32.mrb[253].mxu0  ;;  %v7808_v32 = vpop.f32.mrb[253].mxu1  ;;  %v8166_v42 = vld [vmem:[%s8678_s8 + $0x468] sm:$0xff]   ;;  %v10859_v57 = vld [vmem:[#allocation21_spill] sm:$0xff] }
 0x36e   : > { %v4119_v51 = vpop.f32.mrb[254].mxu0  ;;  %v5035_v34 = vpop.f32.mrb[254].mxu1 }
 0x36f   : > { %6031 = vst.msk [vmem:[%s9789_s28 + $0x68] sm:$0xf] %vm6004_vm1, %v6798_v10  ;;  %v6799_v27 = vpack.c.bf16 %v5541_v5, %v5541_v5  ;;  %v5339_v46 = vmax.f32 %v4423_v30, %v5032_v43  ;;  %v4424_v41 = vmax.f32 %v10849_v40, %v4119_v51  ;;  %v7597_v47 = vpop.f32.mrb[255].mxu0  ;;  %v7809_v48 = vpop.f32.mrb[255].mxu1  ;;  %v8167_v43 = vld [vmem:[%s8678_s8 + $0x5f0] sm:$0xff]   ;;  %v10860_v30 = vld [vmem:[#allocation22_spill] sm:$0xff] }
 0x370   : > { %v10861_v7 = vmax.f32 %v10859_v57, %v10860_v30  ;;  %v10862_v47 = vld [vmem:[#allocation23_spill] sm:$0xff]  ;;  %v10863_v48 = vld [vmem:[#allocation24_spill] sm:$0xff] }
 0x371   : > { %6032 = vst.msk [vmem:[%s9789_s28 + $0x6c] sm:$0xf] %vm6004_vm1, %v6799_v27  ;;  %v5444_v4 = vadd.f32 %v9775_v44, %v5339_v46  ;;  %v5340_v58 = vmax.f32 %v4424_v41, %v5035_v34  ;;  %7703 = vmatmul.mubr.bf16.gmra.mrb[104].mxu0 %v8162_v37  ;;  %7915 = vmatmul.mubr.bf16.gmra.mrb[104].mxu1 %v8163_v38 }
 0x372   : > { %7706 = vmatprep.mubr.msk.bf16.mxu0 %vm8205_vm0, %v10667_v63  ;;  %7918 = vmatprep.mubr.msk.bf16.mxu1 %vm8205_vm0, %v10667_v63 }
 0x373   : > { %v5542_v56 = vmax.f32 %v5444_v4, 0.0  ;;  %v5445_v2 = vadd.f32 %v9775_v44, %v5340_v58  ;;  %v10864_v4 = vmax.f32 %v10862_v47, %v10863_v48 }
 0x374   : > { %v4124_v31 = vpop.f32.mrb[0].mxu0  ;;  %v5040_v54 = vpop.f32.mrb[0].mxu1 }
 0x375   : > { %v6800_v39 = vpack.c.bf16 %v5542_v56, %v5542_v56  ;;  %v5543_v11 = vmax.f32 %v5445_v2, 0.0  ;;  %v4425_v1 = vmax.f32 %v10852_v0, %v4124_v31  ;;  %v7600_v45 = vpop.f32.mrb[1].mxu0  ;;  %v7812_v49 = vpop.f32.mrb[1].mxu1  ;;  %v8168_v31 = vld [vmem:[%s8678_s8 + $0x470] sm:$0xff]  }
 0x376   : > { %v4127_v13 = vpop.f32.mrb[2].mxu0  ;;  %v5043_v14 = vpop.f32.mrb[2].mxu1  ;;  %v10865_v0 = vld [vmem:[#allocation25_spill] sm:$0xff] }
 0x377   : > { %6033 = vst.msk [vmem:[%s9789_s28 + $0x70] sm:$0xf] %vm6004_vm1, %v6800_v39  ;;  %v6801_v35 = vpack.c.bf16 %v5543_v11, %v5543_v11  ;;  %v5341_v36 = vmax.f32 %v4425_v1, %v5040_v54  ;;  %v4426_v24 = vmax.f32 %v10855_v23, %v4127_v13  ;;  %v7601_v6 = vpop.f32.mrb[3].mxu0  ;;  %v7813_v19 = vpop.f32.mrb[3].mxu1  ;;  %v8169_v54 = vld [vmem:[%s8678_s8 + $0x5f8] sm:$0xff]  }
 0x378   : > { %v10866_v1 = vld [vmem:[#allocation26_spill] sm:$0xff]  ;;  %v10868_v6 = vld [vmem:[#allocation27_spill] sm:$0xff]  ;;  %v10869_v19 = vld [vmem:[#allocation28_spill] sm:$0xff] }
 0x379   : > { %6034 = vst.msk [vmem:[%s9789_s28 + $0x74] sm:$0xf] %vm6004_vm1, %v6801_v35  ;;  %v5446_v26 = vadd.f32 %v9775_v44, %v5341_v36  ;;  %v5342_v50 = vmax.f32 %v4426_v24, %v5043_v14  ;;  %7707 = vmatmul.mubr.bf16.gmra.mrb[108].mxu0 %v8164_v61  ;;  %7919 = vmatmul.mubr.bf16.gmra.mrb[108].mxu1 %v8165_v62 }
 0x37a   : > { %7710 = vmatprep.mubr.msk.bf16.mxu0 %vm8205_vm0, %v10667_v63  ;;  %7922 = vmatprep.mubr.msk.bf16.mxu1 %vm8205_vm0, %v10667_v63  ;;  %v10867_v45 = vmax.f32 %v10865_v0, %v10866_v1 }
 0x37b   : > { %v5544_v12 = vmax.f32 %v5446_v26, 0.0  ;;  %v5447_v9 = vadd.f32 %v9775_v44, %v5342_v50  ;;  %v10870_v26 = vmax.f32 %v10868_v6, %v10869_v19 }
 0x37c   : > { %v4132_v55 = vpop.f32.mrb[4].mxu0  ;;  %v5048_v20 = vpop.f32.mrb[4].mxu1 }
 0x37d   : > { %v6802_v15 = vpack.c.bf16 %v5544_v12, %v5544_v12  ;;  %v5545_v33 = vmax.f32 %v5447_v9, 0.0  ;;  %v4427_v60 = vmax.f32 %v10858_v59, %v4132_v55  ;;  %v7604_v8 = vpop.f32.mrb[5].mxu0  ;;  %v7816_v18 = vpop.f32.mrb[5].mxu1  ;;  %v8170_v55 = vld [vmem:[%s8678_s8 + $0x478] sm:$0xff]   ;;  %v10871_v59 = vld [vmem:[#allocation29_spill] sm:$0xff] }
 0x37e   : > { %v4135_v10 = vpop.f32.mrb[6].mxu0  ;;  %v5051_v5 = vpop.f32.mrb[6].mxu1 }
 0x37f   : > { %6035 = vst.msk [vmem:[%s9789_s28 + $0x78] sm:$0xf] %vm6004_vm1, %v6802_v15  ;;  %v6803_v21 = vpack.c.bf16 %v5545_v33, %v5545_v33  ;;  %v5343_v25 = vmax.f32 %v4427_v60, %v5048_v20  ;;  %v4428_v32 = vmax.f32 %v10861_v7, %v4135_v10  ;;  %v7605_v37 = vpop.f32.mrb[7].mxu0  ;;  %v7817_v38 = vpop.f32.mrb[7].mxu1  ;;  %v8171_v20 = vld [vmem:[%s8678_s8 + $0x600] sm:$0xff]   ;;  %v10872_v60 = vld [vmem:[#allocation30_spill] sm:$0xff] }
 0x380   : > { %v10873_v8 = vmax.f32 %v10871_v59, %v10872_v60  ;;  %v10874_v37 = vld [vmem:[#allocation31_spill] sm:$0xff]  ;;  %v10875_v38 = vld [vmem:[#allocation32_spill] sm:$0xff] }
 0x381   : > { %6036 = vst.msk [vmem:[%s9789_s28 + $0x7c] sm:$0xf] %vm6004_vm1, %v6803_v21  ;;  %v5448_v51 = vadd.f32 %v9775_v44, %v5343_v25  ;;  %v5344_v34 = vmax.f32 %v4428_v32, %v5051_v5  ;;  %7711 = vmatmul.mubr.bf16.gmra.mrb[112].mxu0 %v8166_v42  ;;  %7923 = vmatmul.mubr.bf16.gmra.mrb[112].mxu1 %v8167_v43 }
 0x382   : > { %7714 = vmatprep.mubr.msk.bf16.mxu0 %vm8205_vm0, %v10667_v63  ;;  %7926 = vmatprep.mubr.msk.bf16.mxu1 %vm8205_vm0, %v10667_v63 }
 0x383   : > { %v5546_v27 = vmax.f32 %v5448_v51, 0.0  ;;  %v5449_v46 = vadd.f32 %v9775_v44, %v5344_v34  ;;  %v10876_v51 = vmax.f32 %v10874_v37, %v10875_v38  ;;  %v10889_v38 = vld [vmem:[#allocation41_spill] sm:$0xff] }
 0x384   : > { %v4140_v22 = vpop.f32.mrb[8].mxu0  ;;  %v5056_v3 = vpop.f32.mrb[8].mxu1 }
 0x385   : > { %v6804_v40 = vpack.c.bf16 %v5546_v27, %v5546_v27  ;;  %v5547_v41 = vmax.f32 %v5449_v46, 0.0  ;;  %v4429_v58 = vmax.f32 %v10864_v4, %v4140_v22  ;;  %v7608_v56 = vpop.f32.mrb[9].mxu0  ;;  %v7820_v2 = vpop.f32.mrb[9].mxu1  ;;  %v8172_v22 = vld [vmem:[%s8678_s8 + $0x480] sm:$0xff]   ;;  %v10877_v4 = vld [vmem:[#allocation33_spill] sm:$0xff] }
 0x386   : > { %v4143_v39 = vpop.f32.mrb[10].mxu0  ;;  %v5059_v11 = vpop.f32.mrb[10].mxu1 }
 0x387   : > { %6037 = vst.msk [vmem:[%s9789_s28 + $0x80] sm:$0xf] %vm6004_vm1, %v6804_v40  ;;  %v6805_v28 = vpack.c.bf16 %v5547_v41, %v5547_v41  ;;  %v5345_v29 = vmax.f32 %v4429_v58, %v5056_v3  ;;  %v4430_v49 = vmax.f32 %v10867_v45, %v4143_v39  ;;  %v7609_v61 = vpop.f32.mrb[11].mxu0  ;;  %v7821_v62 = vpop.f32.mrb[11].mxu1  ;;  %v8173_v3 = vld [vmem:[%s8678_s8 + $0x608] sm:$0xff]   ;;  %v10878_v58 = vld [vmem:[#allocation34_spill] sm:$0xff] }
 0x388   : > { %v10879_v56 = vmax.f32 %v10877_v4, %v10878_v58  ;;  %v10880_v61 = vld [vmem:[#allocation35_spill] sm:$0xff]  ;;  %v10881_v62 = vld [vmem:[#allocation36_spill] sm:$0xff] }
 0x389   : > { %6038 = vst.msk [vmem:[%s9789_s28 + $0x84] sm:$0xf] %vm6004_vm1, %v6805_v28  ;;  %v5450_v13 = vadd.f32 %v9775_v44, %v5345_v29  ;;  %v5346_v14 = vmax.f32 %v4430_v49, %v5059_v11  ;;  %7715 = vmatmul.mubr.bf16.gmra.mrb[116].mxu0 %v8168_v31  ;;  %7927 = vmatmul.mubr.bf16.gmra.mrb[116].mxu1 %v8169_v54 }
 0x38a   : > { %7718 = vmatprep.mubr.msk.bf16.mxu0 %vm8205_vm0, %v10667_v63  ;;  %7930 = vmatprep.mubr.msk.bf16.mxu1 %vm8205_vm0, %v10667_v63 }
 0x38b   : > { %v5548_v35 = vmax.f32 %v5450_v13, 0.0  ;;  %v5451_v36 = vadd.f32 %v9775_v44, %v5346_v14  ;;  %v10882_v13 = vmax.f32 %v10880_v61, %v10881_v62  ;;  %v10896_v61 = vld [vmem:[#allocation46_spill] sm:$0xff] }
 0x38c   : > { %v4148_v16 = vpop.f32.mrb[12].mxu0  ;;  %v5064_v17 = vpop.f32.mrb[12].mxu1 }
 0x38d   : > { %v6806_v23 = vpack.c.bf16 %v5548_v35, %v5548_v35  ;;  %v5549_v24 = vmax.f32 %v5451_v36, 0.0  ;;  %v4431_v50 = vmax.f32 %v10870_v26, %v4148_v16  ;;  %v7612_v12 = vpop.f32.mrb[13].mxu0  ;;  %v7824_v9 = vpop.f32.mrb[13].mxu1  ;;  %v8174_v16 = vld [vmem:[%s8678_s8 + $0x488] sm:$0xff]   ;;  %v10884_v26 = vld [vmem:[#allocation38_spill] sm:$0xff] }
 0x38e   : > { %v4151_v15 = vpop.f32.mrb[14].mxu0  ;;  %v5067_v33 = vpop.f32.mrb[14].mxu1 }
 0x38f   : > { %6039 = vst.msk [vmem:[%s9789_s28 + $0x88] sm:$0xf] %vm6004_vm1, %v6806_v23  ;;  %v6807_v52 = vpack.c.bf16 %v5549_v24, %v5549_v24  ;;  %v5347_v53 = vmax.f32 %v4431_v50, %v5064_v17  ;;  %v4432_v18 = vmax.f32 %v10873_v8, %v4151_v15  ;;  %v7613_v42 = vpop.f32.mrb[15].mxu0  ;;  %v7825_v43 = vpop.f32.mrb[15].mxu1  ;;  %v8175_v17 = vld [vmem:[%s8678_s8 + $0x610] sm:$0xff]  }
 0x390   : > { %v10886_v42 = vld [vmem:[#allocation39_spill] sm:$0xff]  ;;  %v10887_v43 = vld [vmem:[#allocation40_spill] sm:$0xff] }
 0x391   : > { %6040 = vst.msk [vmem:[%s9789_s28 + $0x8c] sm:$0xf] %vm6004_vm1, %v6807_v52  ;;  %v5452_v10 = vadd.f32 %v9775_v44, %v5347_v53  ;;  %v5348_v5 = vmax.f32 %v4432_v18, %v5067_v33  ;;  %7719 = vmatmul.mubr.bf16.gmra.mrb[120].mxu0 %v8170_v55  ;;  %7931 = vmatmul.mubr.bf16.gmra.mrb[120].mxu1 %v8171_v20  ;;  %v10148_v20 = vld [vmem:[%s10507_s2] ss:$0 sm:$0xff] }
 0x392   : > { %7722 = vmatprep.mubr.msk.bf16.mxu0 %vm8205_vm0, %v10667_v63  ;;  %7934 = vmatprep.mubr.msk.bf16.mxu1 %vm8205_vm0, %v10667_v63 }
 0x393   : > { %v5550_v21 = vmax.f32 %v5452_v10, 0.0  ;;  %v5453_v25 = vadd.f32 %v9775_v44, %v5348_v5  ;;  %v10888_v10 = vmax.f32 %v10886_v42, %v10887_v43 }
 0x394   : > { %v4156_v57 = vpop.f32.mrb[16].mxu0  ;;  %v5072_v30 = vpop.f32.mrb[16].mxu1 }
 0x395   : > { %v6808_v7 = vpack.c.bf16 %v5550_v21, %v5550_v21  ;;  %v5551_v32 = vmax.f32 %v5453_v25, 0.0  ;;  %v4433_v34 = vmax.f32 %v10876_v51, %v4156_v57  ;;  %v7616_v27 = vpop.f32.mrb[17].mxu0  ;;  %v7828_v46 = vpop.f32.mrb[17].mxu1  ;;  %v8176_v57 = vld [vmem:[%s8678_s8 + $0x490] sm:$0xff]   ;;  %v10890_v51 = vld [vmem:[#allocation42_spill] sm:$0xff] }
 0x396   : > { %v4159_v40 = vpop.f32.mrb[18].mxu0  ;;  %v5075_v41 = vpop.f32.mrb[18].mxu1 }
 0x397   : > { %6041 = vst.msk [vmem:[%s9789_s28 + $0x90] sm:$0xf] %vm6004_vm1, %v6808_v7  ;;  %v6809_v47 = vpack.c.bf16 %v5551_v32, %v5551_v32  ;;  %v5349_v48 = vmax.f32 %v4433_v34, %v5072_v30  ;;  %v4434_v2 = vmax.f32 %v10879_v56, %v4159_v40  ;;  %v7617_v31 = vpop.f32.mrb[19].mxu0  ;;  %v7829_v54 = vpop.f32.mrb[19].mxu1  ;;  %v8177_v30 = vld [vmem:[%s8678_s8 + $0x618] sm:$0xff]   ;;  %v10891_v34 = vmax.f32 %v10889_v38, %v10890_v51  ;;  %v10905_v38 = vld [vmem:[#allocation52_spill] sm:$0xff] }
 0x398   : > { %v10893_v31 = vld [vmem:[#allocation44_spill] sm:$0xff] }
 0x399   : > { %6042 = vst.msk [vmem:[%s9789_s28 + $0x94] sm:$0xf] %vm6004_vm1, %v6809_v47  ;;  %v5454_v39 = vadd.f32 %v9775_v44, %v5349_v48  ;;  %v5350_v11 = vmax.f32 %v4434_v2, %v5075_v41  ;;  %7723 = vmatmul.mubr.bf16.gmra.mrb[124].mxu0 %v8172_v22  ;;  %7935 = vmatmul.mubr.bf16.gmra.mrb[124].mxu1 %v8173_v3  ;;  %v10892_v2 = vld [vmem:[#allocation43_spill] sm:$0xff] }
 0x39a   : > { %7726 = vmatprep.mubr.msk.bf16.mxu0 %vm8205_vm0, %v10667_v63  ;;  %7938 = vmatprep.mubr.msk.bf16.mxu1 %vm8205_vm0, %v10667_v63  ;;  %v10894_v54 = vmax.f32 %v10892_v2, %v10893_v31 }
 0x39b   : > { %v5552_v28 = vmax.f32 %v5454_v39, 0.0  ;;  %v5455_v29 = vadd.f32 %v9775_v44, %v5350_v11  ;;  %v10883_v44 = vld [vmem:[#allocation37_spill] sm:$0xff] }
 0x39c   : > { %v4164_v0 = vpop.f32.mrb[20].mxu0  ;;  %v5080_v1 = vpop.f32.mrb[20].mxu1  ;;  %v10885_v50 = vmax.f32 %v10883_v44, %v10884_v26  ;;  %v10898_v26 = vld [vmem:[#allocation47_spill] sm:$0xff] }
 0x39d   : > { %v6810_v45 = vpack.c.bf16 %v5552_v28, %v5552_v28  ;;  %v5553_v49 = vmax.f32 %v5455_v29, 0.0  ;;  %v4435_v14 = vmax.f32 %v10882_v13, %v4164_v0  ;;  %v7620_v35 = vpop.f32.mrb[21].mxu0  ;;  %v7832_v36 = vpop.f32.mrb[21].mxu1 }
 0x39e   : > { %v4167_v23 = vpop.f32.mrb[22].mxu0  ;;  %v5083_v24 = vpop.f32.mrb[22].mxu1 }
 0x39f   : > { %6043 = vst.msk [vmem:[%s9789_s28 + $0x98] sm:$0xf] %vm6004_vm1, %v6810_v45  ;;  %v6811_v6 = vpack.c.bf16 %v5553_v49, %v5553_v49  ;;  %v5351_v19 = vmax.f32 %v4435_v14, %v5080_v1  ;;  %v4436_v12 = vmax.f32 %v10885_v50, %v4167_v23  ;;  %v7621_v9 = vpop.f32.mrb[23].mxu0  ;;  %v7833_v55 = vpop.f32.mrb[23].mxu1  ;;  %v10895_v49 = vld [vmem:[#allocation45_spill] sm:$0xff]  ;;  %v10899_v50 = vld [vmem:[#allocation48_spill] sm:$0xff] }
 0x3a0   : > { %v10897_v62 = vmax.f32 %v10895_v49, %v10896_v61  ;;  %v10911_v49 = vld [vmem:[#allocation56_spill] sm:$0xff] }
 0x3a1   : > { %6044 = vst.msk [vmem:[%s9789_s28 + $0x9c] sm:$0xf] %vm6004_vm1, %v6811_v6  ;;  %v5456_v15 = vadd.f32 %v10148_v20, %v5351_v19  ;;  %v5352_v33 = vmax.f32 %v4436_v12, %v5083_v24  ;;  %7727 = vmatmul.mubr.bf16.gmra.mrb[128].mxu0 %v8174_v16  ;;  %7939 = vmatmul.mubr.bf16.gmra.mrb[128].mxu1 %v8175_v17 }
 0x3a2   : > { %7730 = vmatprep.mubr.msk.bf16.mxu0 %vm8205_vm0, %v10667_v63  ;;  %7942 = vmatprep.mubr.msk.bf16.mxu1 %vm8205_vm0, %v10667_v63  ;;  %v10900_v12 = vmax.f32 %v10898_v26, %v10899_v50 }
 0x3a3   : > { %v5554_v52 = vmax.f32 %v5456_v15, 0.0  ;;  %v5457_v53 = vadd.f32 %v10148_v20, %v5352_v33 }
 0x3a4   : > { %v4172_v59 = vpop.f32.mrb[24].mxu0  ;;  %v5088_v60 = vpop.f32.mrb[24].mxu1 }
 0x3a5   : > { %v6812_v8 = vpack.c.bf16 %v5554_v52, %v5554_v52  ;;  %v5555_v18 = vmax.f32 %v5457_v53, 0.0  ;;  %v4437_v5 = vmax.f32 %v10888_v10, %v4172_v59  ;;  %v7624_v21 = vpop.f32.mrb[25].mxu0  ;;  %v7836_v25 = vpop.f32.mrb[25].mxu1 }
 0x3a6   : > { %v4175_v7 = vpop.f32.mrb[26].mxu0  ;;  %v5091_v32 = vpop.f32.mrb[26].mxu1 }
 0x3a7   : > { %6045 = vst.msk [vmem:[%s9789_s28 + $0xa0] sm:$0xf] %vm6004_vm1, %v6812_v8  ;;  %v6813_v63 = vpack.c.bf16 %v5555_v18, %v5555_v18  ;;  %v5353_v37 = vmax.f32 %v4437_v5, %v5088_v60  ;;  %v4438_v27 = vmax.f32 %v10891_v34, %v4175_v7  ;;  %v7625_v46 = vpop.f32.mrb[27].mxu0  ;;  %v7837_v22 = vpop.f32.mrb[27].mxu1  ;;  %v10901_v60 = vld [vmem:[#allocation49_spill] sm:$0xff]  ;;  %v10902_v8 = vld [vmem:[#allocation50_spill] sm:$0xff] }
 0x3a8   : > { %v10903_v18 = vmax.f32 %v10901_v60, %v10902_v8  ;;  %v10917_v60 = vld [vmem:[#allocation60_spill] sm:$0xff] }
 0x3a9   : > { %6046 = vst.msk [vmem:[%s9789_s28 + $0xa4] sm:$0xf] %vm6004_vm1, %v6813_v63  ;;  %v5458_v3 = vadd.f32 %v10148_v20, %v5353_v37  ;;  %v5354_v40 = vmax.f32 %v4438_v27, %v5091_v32  ;;  %7731 = vmatmul.mubr.bf16.gmra.mrb[132].mxu0 %v8176_v57  ;;  %7943 = vmatmul.mubr.bf16.gmra.mrb[132].mxu1 %v8177_v30  ;;  %v10904_v37 = vld [vmem:[#allocation51_spill] sm:$0xff] }
 0x3aa   : > { %v10906_v51 = vmax.f32 %v10904_v37, %v10905_v38 }
 0x3ab   : > { %v5556_v41 = vmax.f32 %v5458_v3, 0.0  ;;  %v5459_v47 = vadd.f32 %v10148_v20, %v5354_v40 }
 0x3ac   : > { %v4180_v48 = vpop.f32.mrb[28].mxu0  ;;  %v5096_v4 = vpop.f32.mrb[28].mxu1 }
 0x3ad   : > { %v6814_v58 = vpack.c.bf16 %v5556_v41, %v5556_v41  ;;  %v5557_v56 = vmax.f32 %v5459_v47, 0.0  ;;  %v4439_v39 = vmax.f32 %v10894_v54, %v4180_v48  ;;  %v7628_v11 = vpop.f32.mrb[29].mxu0  ;;  %v7840_v28 = vpop.f32.mrb[29].mxu1  ;;  %v10907_v47 = vld [vmem:[#allocation53_spill] sm:$0xff]  ;;  %v10908_v48 = vld [vmem:[#allocation54_spill] sm:$0xff] }
 0x3ae   : > { %v4183_v29 = vpop.f32.mrb[30].mxu0  ;;  %v5099_v0 = vpop.f32.mrb[30].mxu1 }
 0x3af   : > { %6047 = vst.msk [vmem:[%s9789_s28 + $0xa8] sm:$0xf] %vm6004_vm1, %v6814_v58  ;;  %v6815_v1 = vpack.c.bf16 %v5557_v56, %v5557_v56  ;;  %v5355_v45 = vmax.f32 %v4439_v39, %v5096_v4  ;;  %v4440_v13 = vmax.f32 %v10897_v62, %v4183_v29  ;;  %v7629_v14 = vpop.f32.mrb[31].mxu0  ;;  %v7841_v35 = vpop.f32.mrb[31].mxu1  ;;  %v10909_v4 = vmax.f32 %v10907_v47, %v10908_v48  ;;  %v10923_v47 = vld [vmem:[#allocation64_spill] sm:$0xff] }
 0x3b1   : > { %6048 = vst.msk [vmem:[%s9789_s28 + $0xac] sm:$0xf] %vm6004_vm1, %v6815_v1  ;;  %v5460_v36 = vadd.f32 %v10148_v20, %v5355_v45  ;;  %v5356_v16 = vmax.f32 %v4440_v13, %v5099_v0  ;;  %v10910_v45 = vld [vmem:[#allocation55_spill] sm:$0xff] }
 0x3b2   : > { %v10912_v61 = vmax.f32 %v10910_v45, %v10911_v49 }
 0x3b3   : > { %v5558_v17 = vmax.f32 %v5460_v36, 0.0  ;;  %v5461_v23 = vadd.f32 %v10148_v20, %v5356_v16 }
 0x3b4   : > { %v4188_v24 = vpop.f32.mrb[32].mxu0  ;;  %v5104_v6 = vpop.f32.mrb[32].mxu1 }
 0x3b5   : > { %v6816_v19 = vpack.c.bf16 %v5558_v17, %v5558_v17  ;;  %v5559_v44 = vmax.f32 %v5461_v23, 0.0  ;;  %v4441_v9 = vmax.f32 %v10900_v12, %v4188_v24  ;;  %v7632_v55 = vpop.f32.mrb[33].mxu0  ;;  %v7844_v15 = vpop.f32.mrb[33].mxu1  ;;  %v10913_v23 = vld [vmem:[#allocation57_spill] sm:$0xff]  ;;  %v10914_v24 = vld [vmem:[#allocation58_spill] sm:$0xff] }
 0x3b6   : > { %v4191_v33 = vpop.f32.mrb[34].mxu0  ;;  %v5107_v52 = vpop.f32.mrb[34].mxu1 }
 0x3b7   : > { %6049 = vst.msk [vmem:[%s9789_s28 + $0xb0] sm:$0xf] %vm6004_vm1, %v6816_v19  ;;  %v6817_v53 = vpack.c.bf16 %v5559_v44, %v5559_v44  ;;  %v5357_v59 = vmax.f32 %v4441_v9, %v5104_v6  ;;  %v4442_v42 = vmax.f32 %v10903_v18, %v4191_v33  ;;  %v7633_v43 = vpop.f32.mrb[35].mxu0  ;;  %v7845_v10 = vpop.f32.mrb[35].mxu1  ;;  %v10915_v6 = vmax.f32 %v10913_v23, %v10914_v24  ;;  %v10929_v23 = vld [vmem:[#allocation68_spill] sm:$0xff] }
 0x3b9   : > { %6050 = vst.msk [vmem:[%s9789_s28 + $0xb4] sm:$0xf] %vm6004_vm1, %v6817_v53  ;;  %v5462_v5 = vadd.f32 %v10148_v20, %v5357_v59  ;;  %v5358_v21 = vmax.f32 %v4442_v42, %v5107_v52  ;;  %v10916_v59 = vld [vmem:[#allocation59_spill] sm:$0xff] }
 0x3ba   : > { %v10918_v8 = vmax.f32 %v10916_v59, %v10917_v60 }
 0x3bb   : > { %v5560_v25 = vmax.f32 %v5462_v5, 0.0  ;;  %v5463_v57 = vadd.f32 %v10148_v20, %v5358_v21 }
 0x3bc   : > { %v4196_v30 = vpop.f32.mrb[36].mxu0  ;;  %v5112_v7 = vpop.f32.mrb[36].mxu1 }
 0x3bd   : > { %v6818_v32 = vpack.c.bf16 %v5560_v25, %v5560_v25  ;;  %v5561_v63 = vmax.f32 %v5463_v57, 0.0  ;;  %v4443_v34 = vmax.f32 %v10906_v51, %v4196_v30  ;;  %v7636_v27 = vpop.f32.mrb[37].mxu0  ;;  %v7848_v46 = vpop.f32.mrb[37].mxu1  ;;  %v10919_v57 = vld [vmem:[#allocation61_spill] sm:$0xff]  ;;  %v10920_v30 = vld [vmem:[#allocation62_spill] sm:$0xff] }
 0x3be   : > { %v4199_v22 = vpop.f32.mrb[38].mxu0  ;;  %v5115_v3 = vpop.f32.mrb[38].mxu1 }
 0x3bf   : > { %6051 = vst.msk [vmem:[%s9789_s28 + $0xb8] sm:$0xf] %vm6004_vm1, %v6818_v32  ;;  %v6819_v40 = vpack.c.bf16 %v5561_v63, %v5561_v63  ;;  %v5359_v41 = vmax.f32 %v4443_v34, %v5112_v7  ;;  %v4444_v58 = vmax.f32 %v10909_v4, %v4199_v22  ;;  %v7637_v56 = vpop.f32.mrb[39].mxu0  ;;  %v7849_v2 = vpop.f32.mrb[39].mxu1  ;;  %v10921_v7 = vmax.f32 %v10919_v57, %v10920_v30  ;;  %v10935_v57 = vld [vmem:[#allocation72_spill] sm:$0xff] }
 0x3c1   : > { %6052 = vst.msk [vmem:[%s9789_s28 + $0xbc] sm:$0xf] %vm6004_vm1, %v6819_v40  ;;  %v5464_v31 = vadd.f32 %v10148_v20, %v5359_v41  ;;  %v5360_v54 = vmax.f32 %v4444_v58, %v5115_v3  ;;  %v10922_v41 = vld [vmem:[#allocation63_spill] sm:$0xff] }
 0x3c2   : > { %v10924_v48 = vmax.f32 %v10922_v41, %v10923_v47 }
 0x3c3   : > { %v5562_v39 = vmax.f32 %v5464_v31, 0.0  ;;  %v5465_v11 = vadd.f32 %v10148_v20, %v5360_v54 }
 0x3c4   : > { %v4204_v28 = vpop.f32.mrb[40].mxu0  ;;  %v5120_v29 = vpop.f32.mrb[40].mxu1 }
 0x3c5   : > { %v6820_v0 = vpack.c.bf16 %v5562_v39, %v5562_v39  ;;  %v5563_v1 = vmax.f32 %v5465_v11, 0.0  ;;  %v4445_v62 = vmax.f32 %v10912_v61, %v4204_v28  ;;  %v7640_v13 = vpop.f32.mrb[41].mxu0  ;;  %v7852_v14 = vpop.f32.mrb[41].mxu1  ;;  %v10925_v11 = vld [vmem:[#allocation65_spill] sm:$0xff]  ;;  %v10926_v28 = vld [vmem:[#allocation66_spill] sm:$0xff] }
 0x3c6   : > { %v4207_v35 = vpop.f32.mrb[42].mxu0  ;;  %v5123_v36 = vpop.f32.mrb[42].mxu1 }
 0x3c7   : > { %6053 = vst.msk [vmem:[%s9789_s28 + $0xc0] sm:$0xf] %vm6004_vm1, %v6820_v0  ;;  %v6821_v16 = vpack.c.bf16 %v5563_v1, %v5563_v1  ;;  %v5361_v17 = vmax.f32 %v4445_v62, %v5120_v29  ;;  %v4446_v19 = vmax.f32 %v10915_v6, %v4207_v35  ;;  %v7641_v44 = vpop.f32.mrb[43].mxu0  ;;  %v7853_v26 = vpop.f32.mrb[43].mxu1  ;;  %v10927_v29 = vmax.f32 %v10925_v11, %v10926_v28  ;;  %v10941_v11 = vld [vmem:[#allocation76_spill] sm:$0xff] }
 0x3c9   : > { %6054 = vst.msk [vmem:[%s9789_s28 + $0xc4] sm:$0xf] %vm6004_vm1, %v6821_v16  ;;  %v5466_v50 = vadd.f32 %v10148_v20, %v5361_v17  ;;  %v5362_v12 = vmax.f32 %v4446_v19, %v5123_v36  ;;  %v10928_v17 = vld [vmem:[#allocation67_spill] sm:$0xff] }
 0x3ca   : > { %v10930_v24 = vmax.f32 %v10928_v17, %v10929_v23 }
 0x3cb   : > { %v5564_v9 = vmax.f32 %v5466_v50, 0.0  ;;  %v5467_v55 = vadd.f32 %v10148_v20, %v5362_v12 }
 0x3cc   : > { %v4212_v15 = vpop.f32.mrb[44].mxu0  ;;  %v5128_v33 = vpop.f32.mrb[44].mxu1 }
 0x3cd   : > { %v6822_v52 = vpack.c.bf16 %v5564_v9, %v5564_v9  ;;  %v5565_v53 = vmax.f32 %v5467_v55, 0.0  ;;  %v4447_v18 = vmax.f32 %v10918_v8, %v4212_v15  ;;  %v7644_v42 = vpop.f32.mrb[45].mxu0  ;;  %v7856_v43 = vpop.f32.mrb[45].mxu1  ;;  %v10931_v55 = vld [vmem:[#allocation69_spill] sm:$0xff]  ;;  %v10932_v15 = vld [vmem:[#allocation70_spill] sm:$0xff] }
 0x3ce   : > { %v4215_v10 = vpop.f32.mrb[46].mxu0  ;;  %v5131_v5 = vpop.f32.mrb[46].mxu1 }
 0x3cf   : > { %6055 = vst.msk [vmem:[%s9789_s28 + $0xc8] sm:$0xf] %vm6004_vm1, %v6822_v52  ;;  %v6823_v21 = vpack.c.bf16 %v5565_v53, %v5565_v53  ;;  %v5363_v25 = vmax.f32 %v4447_v18, %v5128_v33  ;;  %v4448_v32 = vmax.f32 %v10921_v7, %v4215_v10  ;;  %v7645_v63 = vpop.f32.mrb[47].mxu0  ;;  %v7857_v37 = vpop.f32.mrb[47].mxu1  ;;  %v10933_v33 = vmax.f32 %v10931_v55, %v10932_v15  ;;  %v10947_v55 = vld [vmem:[#allocation80_spill] sm:$0xff] }
 0x3d1   : > { %6056 = vst.msk [vmem:[%s9789_s28 + $0xcc] sm:$0xf] %vm6004_vm1, %v6823_v21  ;;  %v5468_v38 = vadd.f32 %v10148_v20, %v5363_v25  ;;  %v5364_v51 = vmax.f32 %v4448_v32, %v5131_v5  ;;  %v10934_v25 = vld [vmem:[#allocation71_spill] sm:$0xff] }
 0x3d2   : > { %v10936_v30 = vmax.f32 %v10934_v25, %v10935_v57 }
 0x3d3   : > { %v5566_v34 = vmax.f32 %v5468_v38, 0.0  ;;  %v5469_v27 = vadd.f32 %v10148_v20, %v5364_v51 }
 0x3d4   : > { %v4220_v46 = vpop.f32.mrb[48].mxu0  ;;  %v5136_v22 = vpop.f32.mrb[48].mxu1 }
 0x3d5   : > { %v6824_v3 = vpack.c.bf16 %v5566_v34, %v5566_v34  ;;  %v5567_v40 = vmax.f32 %v5469_v27, 0.0  ;;  %v4449_v4 = vmax.f32 %v10924_v48, %v4220_v46  ;;  %v7648_v58 = vpop.f32.mrb[49].mxu0  ;;  %v7860_v56 = vpop.f32.mrb[49].mxu1  ;;  %v10937_v27 = vld [vmem:[#allocation73_spill] sm:$0xff]  ;;  %v10938_v46 = vld [vmem:[#allocation74_spill] sm:$0xff] }
 0x3d6   : > { %v4223_v2 = vpop.f32.mrb[50].mxu0  ;;  %v5139_v31 = vpop.f32.mrb[50].mxu1 }
 0x3d7   : > { %6057 = vst.msk [vmem:[%s9789_s28 + $0xd0] sm:$0xf] %vm6004_vm1, %v6824_v3  ;;  %v6825_v54 = vpack.c.bf16 %v5567_v40, %v5567_v40  ;;  %v5365_v39 = vmax.f32 %v4449_v4, %v5136_v22  ;;  %v4450_v0 = vmax.f32 %v10927_v29, %v4223_v2  ;;  %v7649_v1 = vpop.f32.mrb[51].mxu0  ;;  %v7861_v45 = vpop.f32.mrb[51].mxu1  ;;  %v10939_v22 = vmax.f32 %v10937_v27, %v10938_v46  ;;  %v10953_v27 = vld [vmem:[#allocation84_spill] sm:$0xff] }
 0x3d9   : > { %6058 = vst.msk [vmem:[%s9789_s28 + $0xd4] sm:$0xf] %vm6004_vm1, %v6825_v54  ;;  %v5470_v49 = vadd.f32 %v10148_v20, %v5365_v39  ;;  %v5366_v61 = vmax.f32 %v4450_v0, %v5139_v31  ;;  %v10940_v39 = vld [vmem:[#allocation75_spill] sm:$0xff] }
 0x3da   : > { %v10942_v28 = vmax.f32 %v10940_v39, %v10941_v11 }
 0x3db   : > { %v5568_v62 = vmax.f32 %v5470_v49, 0.0  ;;  %v5471_v13 = vadd.f32 %v10148_v20, %v5366_v61 }
 0x3dc   : > { %v4228_v14 = vpop.f32.mrb[52].mxu0  ;;  %v5144_v35 = vpop.f32.mrb[52].mxu1 }
 0x3dd   : > { %v6826_v36 = vpack.c.bf16 %v5568_v62, %v5568_v62  ;;  %v5569_v16 = vmax.f32 %v5471_v13, 0.0  ;;  %v4451_v6 = vmax.f32 %v10930_v24, %v4228_v14  ;;  %v7652_v19 = vpop.f32.mrb[53].mxu0  ;;  %v7864_v44 = vpop.f32.mrb[53].mxu1  ;;  %v10943_v13 = vld [vmem:[#allocation77_spill] sm:$0xff]  ;;  %v10944_v14 = vld [vmem:[#allocation78_spill] sm:$0xff] }
 0x3de   : > { %v4231_v26 = vpop.f32.mrb[54].mxu0  ;;  %v5147_v50 = vpop.f32.mrb[54].mxu1 }
 0x3df   : > { %6059 = vst.msk [vmem:[%s9789_s28 + $0xd8] sm:$0xf] %vm6004_vm1, %v6826_v36  ;;  %v6827_v12 = vpack.c.bf16 %v5569_v16, %v5569_v16  ;;  %v5367_v9 = vmax.f32 %v4451_v6, %v5144_v35  ;;  %v4452_v52 = vmax.f32 %v10933_v33, %v4231_v26  ;;  %v7653_v53 = vpop.f32.mrb[55].mxu0  ;;  %v7865_v59 = vpop.f32.mrb[55].mxu1  ;;  %v10945_v35 = vmax.f32 %v10943_v13, %v10944_v14  ;;  %v10959_v13 = vld [vmem:[#allocation88_spill] sm:$0xff] }
 0x3e1   : > { %6060 = vst.msk [vmem:[%s9789_s28 + $0xdc] sm:$0xf] %vm6004_vm1, %v6827_v12  ;;  %v5472_v60 = vadd.f32 %v10148_v20, %v5367_v9  ;;  %v5368_v8 = vmax.f32 %v4452_v52, %v5147_v50  ;;  %v10946_v9 = vld [vmem:[#allocation79_spill] sm:$0xff] }
 0x3e2   : > { %v10948_v15 = vmax.f32 %v10946_v9, %v10947_v55 }
 0x3e3   : > { %v5570_v18 = vmax.f32 %v5472_v60, 0.0  ;;  %v5473_v42 = vadd.f32 %v10148_v20, %v5368_v8 }
 0x3e4   : > { %v4236_v43 = vpop.f32.mrb[56].mxu0  ;;  %v5152_v10 = vpop.f32.mrb[56].mxu1 }
 0x3e5   : > { %v6828_v5 = vpack.c.bf16 %v5570_v18, %v5570_v18  ;;  %v5571_v21 = vmax.f32 %v5473_v42, 0.0  ;;  %v4453_v7 = vmax.f32 %v10936_v30, %v4236_v43  ;;  %v7656_v32 = vpop.f32.mrb[57].mxu0  ;;  %v7868_v63 = vpop.f32.mrb[57].mxu1  ;;  %v10949_v42 = vld [vmem:[#allocation81_spill] sm:$0xff]  ;;  %v10950_v43 = vld [vmem:[#allocation82_spill] sm:$0xff] }
 0x3e6   : > { %v4239_v37 = vpop.f32.mrb[58].mxu0  ;;  %v5155_v38 = vpop.f32.mrb[58].mxu1 }
 0x3e7   : > { %6061 = vst.msk [vmem:[%s9789_s28 + $0xe0] sm:$0xf] %vm6004_vm1, %v6828_v5  ;;  %v6829_v51 = vpack.c.bf16 %v5571_v21, %v5571_v21  ;;  %v5369_v34 = vmax.f32 %v4453_v7, %v5152_v10  ;;  %v4454_v3 = vmax.f32 %v10939_v22, %v4239_v37  ;;  %v7657_v40 = vpop.f32.mrb[59].mxu0  ;;  %v7869_v41 = vpop.f32.mrb[59].mxu1  ;;  %v10951_v10 = vmax.f32 %v10949_v42, %v10950_v43  ;;  %v10965_v42 = vld [vmem:[#allocation92_spill] sm:$0xff] }
 0x3e9   : > { %6062 = vst.msk [vmem:[%s9789_s28 + $0xe4] sm:$0xf] %vm6004_vm1, %v6829_v51  ;;  %v5474_v47 = vadd.f32 %v10148_v20, %v5369_v34  ;;  %v5370_v48 = vmax.f32 %v4454_v3, %v5155_v38  ;;  %v10952_v34 = vld [vmem:[#allocation83_spill] sm:$0xff] }
 0x3ea   : > { %v10954_v46 = vmax.f32 %v10952_v34, %v10953_v27 }
 0x3eb   : > { %v5572_v4 = vmax.f32 %v5474_v47, 0.0  ;;  %v5475_v58 = vadd.f32 %v10148_v20, %v5370_v48 }
 0x3ec   : > { %v4244_v56 = vpop.f32.mrb[60].mxu0  ;;  %v5160_v2 = vpop.f32.mrb[60].mxu1 }
 0x3ed   : > { %v6830_v31 = vpack.c.bf16 %v5572_v4, %v5572_v4  ;;  %v5573_v54 = vmax.f32 %v5475_v58, 0.0  ;;  %v4455_v29 = vmax.f32 %v10942_v28, %v4244_v56  ;;  %v7660_v0 = vpop.f32.mrb[61].mxu0  ;;  %v7872_v1 = vpop.f32.mrb[61].mxu1  ;;  %v10955_v58 = vld [vmem:[#allocation85_spill] sm:$0xff]  ;;  %v10956_v56 = vld [vmem:[#allocation86_spill] sm:$0xff] }
 0x3ee   : > { %v4247_v45 = vpop.f32.mrb[62].mxu0  ;;  %v5163_v49 = vpop.f32.mrb[62].mxu1 }
 0x3ef   : > { %6063 = vst.msk [vmem:[%s9789_s28 + $0xe8] sm:$0xf] %vm6004_vm1, %v6830_v31  ;;  %v6831_v61 = vpack.c.bf16 %v5573_v54, %v5573_v54  ;;  %v5371_v62 = vmax.f32 %v4455_v29, %v5160_v2  ;;  %v4456_v36 = vmax.f32 %v10945_v35, %v4247_v45  ;;  %v7661_v16 = vpop.f32.mrb[63].mxu0  ;;  %v7873_v17 = vpop.f32.mrb[63].mxu1  ;;  %v10957_v2 = vmax.f32 %v10955_v58, %v10956_v56  ;;  %v10971_v58 = vld [vmem:[#allocation96_spill] sm:$0xff] }
 0x3f1   : > { %6064 = vst.msk [vmem:[%s9789_s28 + $0xec] sm:$0xf] %vm6004_vm1, %v6831_v61  ;;  %v5476_v23 = vadd.f32 %v10148_v20, %v5371_v62  ;;  %v5372_v24 = vmax.f32 %v4456_v36, %v5163_v49  ;;  %v10958_v62 = vld [vmem:[#allocation87_spill] sm:$0xff] }
 0x3f2   : > { %v10960_v14 = vmax.f32 %v10958_v62, %v10959_v13 }
 0x3f3   : > { %v5574_v6 = vmax.f32 %v5476_v23, 0.0  ;;  %v5477_v19 = vadd.f32 %v10148_v20, %v5372_v24 }
 0x3f4   : > { %v4252_v44 = vpop.f32.mrb[64].mxu0  ;;  %v5168_v26 = vpop.f32.mrb[64].mxu1 }
 0x3f5   : > { %v6832_v50 = vpack.c.bf16 %v5574_v6, %v5574_v6  ;;  %v5575_v12 = vmax.f32 %v5477_v19, 0.0  ;;  %v4457_v33 = vmax.f32 %v10948_v15, %v4252_v44  ;;  %v7664_v52 = vpop.f32.mrb[65].mxu0  ;;  %v7876_v53 = vpop.f32.mrb[65].mxu1  ;;  %v10961_v19 = vld [vmem:[#allocation89_spill] sm:$0xff]  ;;  %v10962_v44 = vld [vmem:[#allocation90_spill] sm:$0xff] }
 0x3f6   : > { %v4255_v59 = vpop.f32.mrb[66].mxu0  ;;  %v5171_v60 = vpop.f32.mrb[66].mxu1 }
 0x3f7   : > { %6065 = vst.msk [vmem:[%s9789_s28 + $0xf0] sm:$0xf] %vm6004_vm1, %v6832_v50  ;;  %v6833_v8 = vpack.c.bf16 %v5575_v12, %v5575_v12  ;;  %v5373_v18 = vmax.f32 %v4457_v33, %v5168_v26  ;;  %v4458_v5 = vmax.f32 %v10951_v10, %v4255_v59  ;;  %v7665_v21 = vpop.f32.mrb[67].mxu0  ;;  %v7877_v25 = vpop.f32.mrb[67].mxu1  ;;  %v10963_v26 = vmax.f32 %v10961_v19, %v10962_v44  ;;  %v10977_v19 = vld [vmem:[#allocation100_spill] sm:$0xff] }
 0x3f9   : > { %6066 = vst.msk [vmem:[%s9789_s28 + $0xf4] sm:$0xf] %vm6004_vm1, %v6833_v8  ;;  %v5478_v57 = vadd.f32 %v10148_v20, %v5373_v18  ;;  %v5374_v30 = vmax.f32 %v4458_v5, %v5171_v60  ;;  %v10964_v18 = vld [vmem:[#allocation91_spill] sm:$0xff] }
 0x3fa   : > { %v10966_v43 = vmax.f32 %v10964_v18, %v10965_v42 }
 0x3fb   : > { %v5576_v7 = vmax.f32 %v5478_v57, 0.0  ;;  %v5479_v32 = vadd.f32 %v10148_v20, %v5374_v30 }
 0x3fc   : > { %v4260_v63 = vpop.f32.mrb[68].mxu0  ;;  %v5176_v37 = vpop.f32.mrb[68].mxu1 }
 0x3fd   : > { %v6834_v38 = vpack.c.bf16 %v5576_v7, %v5576_v7  ;;  %v5577_v51 = vmax.f32 %v5479_v32, 0.0  ;;  %v4459_v22 = vmax.f32 %v10954_v46, %v4260_v63  ;;  %v7668_v3 = vpop.f32.mrb[69].mxu0  ;;  %v7880_v40 = vpop.f32.mrb[69].mxu1  ;;  %v10967_v32 = vld [vmem:[#allocation93_spill] sm:$0xff]  ;;  %v10968_v63 = vld [vmem:[#allocation94_spill] sm:$0xff] }
 0x3fe   : > { %v4263_v41 = vpop.f32.mrb[70].mxu0  ;;  %v5179_v47 = vpop.f32.mrb[70].mxu1 }
 0x3ff   : > { %6067 = vst.msk [vmem:[%s9789_s28 + $0xf8] sm:$0xf] %vm6004_vm1, %v6834_v38  ;;  %v6835_v48 = vpack.c.bf16 %v5577_v51, %v5577_v51  ;;  %v5375_v4 = vmax.f32 %v4459_v22, %v5176_v37  ;;  %v4460_v31 = vmax.f32 %v10957_v2, %v4263_v41  ;;  %v7669_v54 = vpop.f32.mrb[71].mxu0  ;;  %v7881_v39 = vpop.f32.mrb[71].mxu1  ;;  %v10969_v37 = vmax.f32 %v10967_v32, %v10968_v63  ;;  %v10983_v32 = vld [vmem:[#allocation104_spill] sm:$0xff] }
 0x401   : > { %6068 = vst.msk [vmem:[%s9789_s28 + $0xfc] sm:$0xf] %vm6004_vm1, %v6835_v48  ;;  %v5480_v11 = vadd.f32 %v10148_v20, %v5375_v4  ;;  %v5376_v28 = vmax.f32 %v4460_v31, %v5179_v47  ;;  %v10970_v4 = vld [vmem:[#allocation95_spill] sm:$0xff] }
 0x402   : > { %v10972_v56 = vmax.f32 %v10970_v4, %v10971_v58 }
 0x403   : > { %v5578_v29 = vmax.f32 %v5480_v11, 0.0  ;;  %v5481_v0 = vadd.f32 %v10148_v20, %v5376_v28 }
 0x404   : > { %v4268_v1 = vpop.f32.mrb[72].mxu0  ;;  %v5184_v45 = vpop.f32.mrb[72].mxu1 }
 0x405   : > { %v6836_v49 = vpack.c.bf16 %v5578_v29, %v5578_v29  ;;  %v5579_v61 = vmax.f32 %v5481_v0, 0.0  ;;  %v4461_v35 = vmax.f32 %v10960_v14, %v4268_v1  ;;  %v7672_v36 = vpop.f32.mrb[73].mxu0  ;;  %v7884_v16 = vpop.f32.mrb[73].mxu1  ;;  %v10973_v0 = vld [vmem:[#allocation97_spill] sm:$0xff]  ;;  %v10974_v1 = vld [vmem:[#allocation98_spill] sm:$0xff] }
 0x406   : > { %v4271_v17 = vpop.f32.mrb[74].mxu0  ;;  %v5187_v23 = vpop.f32.mrb[74].mxu1 }
 0x407   : > { %6069 = vst.msk [vmem:[%s9789_s28 + $0x100] sm:$0xf] %vm6004_vm1, %v6836_v49  ;;  %v6837_v24 = vpack.c.bf16 %v5579_v61, %v5579_v61  ;;  %v5377_v6 = vmax.f32 %v4461_v35, %v5184_v45  ;;  %v4462_v50 = vmax.f32 %v10963_v26, %v4271_v17  ;;  %v7673_v12 = vpop.f32.mrb[75].mxu0  ;;  %v7885_v9 = vpop.f32.mrb[75].mxu1  ;;  %v10975_v45 = vmax.f32 %v10973_v0, %v10974_v1  ;;  %v10989_v0 = vld [vmem:[#allocation108_spill] sm:$0xff] }
 0x409   : > { %6070 = vst.msk [vmem:[%s9789_s28 + $0x104] sm:$0xf] %vm6004_vm1, %v6837_v24  ;;  %v5482_v55 = vadd.f32 %v10148_v20, %v5377_v6  ;;  %v5378_v15 = vmax.f32 %v4462_v50, %v5187_v23  ;;  %v10976_v6 = vld [vmem:[#allocation99_spill] sm:$0xff] }
 0x40a   : > { %v10978_v44 = vmax.f32 %v10976_v6, %v10977_v19 }
 0x40b   : > { %v5580_v33 = vmax.f32 %v5482_v55, 0.0  ;;  %v5483_v52 = vadd.f32 %v10148_v20, %v5378_v15 }
 0x40c   : > { %v4276_v53 = vpop.f32.mrb[76].mxu0  ;;  %v5192_v59 = vpop.f32.mrb[76].mxu1 }
 0x40d   : > { %v6838_v60 = vpack.c.bf16 %v5580_v33, %v5580_v33  ;;  %v5581_v8 = vmax.f32 %v5483_v52, 0.0  ;;  %v4463_v10 = vmax.f32 %v10966_v43, %v4276_v53  ;;  %v7676_v5 = vpop.f32.mrb[77].mxu0  ;;  %v7888_v21 = vpop.f32.mrb[77].mxu1  ;;  %v10979_v52 = vld [vmem:[#allocation101_spill] sm:$0xff]  ;;  %v10980_v53 = vld [vmem:[#allocation102_spill] sm:$0xff] }
 0x40e   : > { %v4279_v25 = vpop.f32.mrb[78].mxu0  ;;  %v5195_v57 = vpop.f32.mrb[78].mxu1 }
 0x40f   : > { %6071 = vst.msk [vmem:[%s9789_s28 + $0x108] sm:$0xf] %vm6004_vm1, %v6838_v60  ;;  %v6839_v30 = vpack.c.bf16 %v5581_v8, %v5581_v8  ;;  %v5379_v7 = vmax.f32 %v4463_v10, %v5192_v59  ;;  %v4464_v38 = vmax.f32 %v10969_v37, %v4279_v25  ;;  %v7677_v51 = vpop.f32.mrb[79].mxu0  ;;  %v7889_v34 = vpop.f32.mrb[79].mxu1  ;;  %v10981_v59 = vmax.f32 %v10979_v52, %v10980_v53  ;;  %v10995_v52 = vld [vmem:[#allocation112_spill] sm:$0xff] }
 0x411   : > { %6072 = vst.msk [vmem:[%s9789_s28 + $0x10c] sm:$0xf] %vm6004_vm1, %v6839_v30  ;;  %v5484_v27 = vadd.f32 %v10148_v20, %v5379_v7  ;;  %v5380_v46 = vmax.f32 %v4464_v38, %v5195_v57  ;;  %v10982_v7 = vld [vmem:[#allocation103_spill] sm:$0xff] }
 0x412   : > { %v10984_v63 = vmax.f32 %v10982_v7, %v10983_v32 }
 0x413   : > { %v5582_v22 = vmax.f32 %v5484_v27, 0.0  ;;  %v5485_v3 = vadd.f32 %v10148_v20, %v5380_v46 }
 0x414   : > { %v4284_v40 = vpop.f32.mrb[80].mxu0  ;;  %v5200_v41 = vpop.f32.mrb[80].mxu1 }
 0x415   : > { %v6840_v47 = vpack.c.bf16 %v5582_v22, %v5582_v22  ;;  %v5583_v48 = vmax.f32 %v5485_v3, 0.0  ;;  %v4465_v2 = vmax.f32 %v10972_v56, %v4284_v40  ;;  %v7680_v31 = vpop.f32.mrb[81].mxu0  ;;  %v7892_v54 = vpop.f32.mrb[81].mxu1  ;;  %v10985_v3 = vld [vmem:[#allocation105_spill] sm:$0xff]  ;;  %v10986_v40 = vld [vmem:[#allocation106_spill] sm:$0xff] }
 0x416   : > { %v4287_v39 = vpop.f32.mrb[82].mxu0  ;;  %v5203_v11 = vpop.f32.mrb[82].mxu1 }
 0x417   : > { %6073 = vst.msk [vmem:[%s9789_s28 + $0x110] sm:$0xf] %vm6004_vm1, %v6840_v47  ;;  %v6841_v28 = vpack.c.bf16 %v5583_v48, %v5583_v48  ;;  %v5381_v29 = vmax.f32 %v4465_v2, %v5200_v41  ;;  %v4466_v49 = vmax.f32 %v10975_v45, %v4287_v39  ;;  %v7681_v61 = vpop.f32.mrb[83].mxu0  ;;  %v7893_v62 = vpop.f32.mrb[83].mxu1  ;;  %v10987_v41 = vmax.f32 %v10985_v3, %v10986_v40  ;;  %v11001_v3 = vld [vmem:[#allocation116_spill] sm:$0xff] }
 0x419   : > { %6074 = vst.msk [vmem:[%s9789_s28 + $0x114] sm:$0xf] %vm6004_vm1, %v6841_v28  ;;  %v5486_v13 = vadd.f32 %v10148_v20, %v5381_v29  ;;  %v5382_v14 = vmax.f32 %v4466_v49, %v5203_v11  ;;  %v10988_v29 = vld [vmem:[#allocation107_spill] sm:$0xff] }
 0x41a   : > { %v10990_v1 = vmax.f32 %v10988_v29, %v10989_v0 }
 0x41b   : > { %v5584_v35 = vmax.f32 %v5486_v13, 0.0  ;;  %v5487_v36 = vadd.f32 %v10148_v20, %v5382_v14 }
 0x41c   : > { %v4292_v16 = vpop.f32.mrb[84].mxu0  ;;  %v5208_v17 = vpop.f32.mrb[84].mxu1 }
 0x41d   : > { %v6842_v23 = vpack.c.bf16 %v5584_v35, %v5584_v35  ;;  %v5585_v24 = vmax.f32 %v5487_v36, 0.0  ;;  %v4467_v26 = vmax.f32 %v10978_v44, %v4292_v16  ;;  %v7684_v50 = vpop.f32.mrb[85].mxu0  ;;  %v7896_v12 = vpop.f32.mrb[85].mxu1  ;;  %v10991_v36 = vld [vmem:[#allocation109_spill] sm:$0xff]  ;;  %v10992_v16 = vld [vmem:[#allocation110_spill] sm:$0xff] }
 0x41e   : > { %v4295_v9 = vpop.f32.mrb[86].mxu0  ;;  %v5211_v55 = vpop.f32.mrb[86].mxu1 }
 0x41f   : > { %6075 = vst.msk [vmem:[%s9789_s28 + $0x118] sm:$0xf] %vm6004_vm1, %v6842_v23  ;;  %v6843_v15 = vpack.c.bf16 %v5585_v24, %v5585_v24  ;;  %v5383_v33 = vmax.f32 %v4467_v26, %v5208_v17  ;;  %v4468_v60 = vmax.f32 %v10981_v59, %v4295_v9  ;;  %v7685_v8 = vpop.f32.mrb[87].mxu0  ;;  %v7897_v18 = vpop.f32.mrb[87].mxu1  ;;  %v10993_v17 = vmax.f32 %v10991_v36, %v10992_v16  ;;  %v11007_v36 = vld [vmem:[#allocation120_spill] sm:$0xff] }
 0x421   : > { %6076 = vst.msk [vmem:[%s9789_s28 + $0x11c] sm:$0xf] %vm6004_vm1, %v6843_v15  ;;  %v5488_v42 = vadd.f32 %v10148_v20, %v5383_v33  ;;  %v5384_v43 = vmax.f32 %v4468_v60, %v5211_v55  ;;  %v10994_v33 = vld [vmem:[#allocation111_spill] sm:$0xff] }
 0x422   : > { %v10996_v53 = vmax.f32 %v10994_v33, %v10995_v52 }
 0x423   : > { %v5586_v10 = vmax.f32 %v5488_v42, 0.0  ;;  %v5489_v5 = vadd.f32 %v10148_v20, %v5384_v43 }
 0x424   : > { %v4300_v21 = vpop.f32.mrb[88].mxu0  ;;  %v5216_v25 = vpop.f32.mrb[88].mxu1 }
 0x425   : > { %v6844_v57 = vpack.c.bf16 %v5586_v10, %v5586_v10  ;;  %v5587_v30 = vmax.f32 %v5489_v5, 0.0  ;;  %v4469_v37 = vmax.f32 %v10984_v63, %v4300_v21  ;;  %v7688_v38 = vpop.f32.mrb[89].mxu0  ;;  %v7900_v51 = vpop.f32.mrb[89].mxu1  ;;  %v10997_v5 = vld [vmem:[#allocation113_spill] sm:$0xff]  ;;  %v10998_v21 = vld [vmem:[#allocation114_spill] sm:$0xff] }
 0x426   : > { %v4303_v34 = vpop.f32.mrb[90].mxu0  ;;  %v5219_v27 = vpop.f32.mrb[90].mxu1 }
 0x427   : > { %6077 = vst.msk [vmem:[%s9789_s28 + $0x120] sm:$0xf] %vm6004_vm1, %v6844_v57  ;;  %v6845_v46 = vpack.c.bf16 %v5587_v30, %v5587_v30  ;;  %v5385_v22 = vmax.f32 %v4469_v37, %v5216_v25  ;;  %v4470_v47 = vmax.f32 %v10987_v41, %v4303_v34  ;;  %v7689_v48 = vpop.f32.mrb[91].mxu0  ;;  %v7901_v4 = vpop.f32.mrb[91].mxu1  ;;  %v10999_v25 = vmax.f32 %v10997_v5, %v10998_v21  ;;  %v11013_v5 = vld [vmem:[#allocation124_spill] sm:$0xff] }
 0x429   : > { %6078 = vst.msk [vmem:[%s9789_s28 + $0x124] sm:$0xf] %vm6004_vm1, %v6845_v46  ;;  %v5490_v58 = vadd.f32 %v10148_v20, %v5385_v22  ;;  %v5386_v56 = vmax.f32 %v4470_v47, %v5219_v27  ;;  %v11000_v22 = vld [vmem:[#allocation115_spill] sm:$0xff] }
 0x42a   : > { %v11002_v40 = vmax.f32 %v11000_v22, %v11001_v3 }
 0x42b   : > { %v5588_v2 = vmax.f32 %v5490_v58, 0.0  ;;  %v5491_v31 = vadd.f32 %v10148_v20, %v5386_v56 }
 0x42c   : > { %v4308_v54 = vpop.f32.mrb[92].mxu0  ;;  %v5224_v39 = vpop.f32.mrb[92].mxu1 }
 0x42d   : > { %v6846_v11 = vpack.c.bf16 %v5588_v2, %v5588_v2  ;;  %v5589_v28 = vmax.f32 %v5491_v31, 0.0  ;;  %v4471_v45 = vmax.f32 %v10990_v1, %v4308_v54  ;;  %v7692_v49 = vpop.f32.mrb[93].mxu0  ;;  %v7904_v61 = vpop.f32.mrb[93].mxu1  ;;  %v11003_v31 = vld [vmem:[#allocation117_spill] sm:$0xff]  ;;  %v11004_v54 = vld [vmem:[#allocation118_spill] sm:$0xff] }
 0x42e   : > { %v4311_v62 = vpop.f32.mrb[94].mxu0  ;;  %v5227_v13 = vpop.f32.mrb[94].mxu1 }
 0x42f   : > { %6079 = vst.msk [vmem:[%s9789_s28 + $0x128] sm:$0xf] %vm6004_vm1, %v6846_v11  ;;  %v6847_v14 = vpack.c.bf16 %v5589_v28, %v5589_v28  ;;  %v5387_v35 = vmax.f32 %v4471_v45, %v5224_v39  ;;  %v4472_v23 = vmax.f32 %v10993_v17, %v4311_v62  ;;  %v7693_v24 = vpop.f32.mrb[95].mxu0  ;;  %v7905_v6 = vpop.f32.mrb[95].mxu1  ;;  %v11005_v39 = vmax.f32 %v11003_v31, %v11004_v54  ;;  %v11019_v31 = vld [vmem:[#allocation128_spill] sm:$0xff] }
 0x431   : > { %6080 = vst.msk [vmem:[%s9789_s28 + $0x12c] sm:$0xf] %vm6004_vm1, %v6847_v14  ;;  %v5492_v19 = vadd.f32 %v10148_v20, %v5387_v35  ;;  %v5388_v44 = vmax.f32 %v4472_v23, %v5227_v13  ;;  %v11006_v35 = vld [vmem:[#allocation119_spill] sm:$0xff] }
 0x432   : > { %v11008_v16 = vmax.f32 %v11006_v35, %v11007_v36 }
 0x433   : > { %v5590_v26 = vmax.f32 %v5492_v19, 0.0  ;;  %v5493_v50 = vadd.f32 %v10148_v20, %v5388_v44 }
 0x434   : > { %v4316_v12 = vpop.f32.mrb[96].mxu0  ;;  %v5232_v9 = vpop.f32.mrb[96].mxu1 }
 0x435   : > { %v6848_v55 = vpack.c.bf16 %v5590_v26, %v5590_v26  ;;  %v5591_v15 = vmax.f32 %v5493_v50, 0.0  ;;  %v4473_v59 = vmax.f32 %v10996_v53, %v4316_v12  ;;  %v7696_v60 = vpop.f32.mrb[97].mxu0  ;;  %v7908_v8 = vpop.f32.mrb[97].mxu1  ;;  %v11009_v50 = vld [vmem:[#allocation121_spill] sm:$0xff]  ;;  %v11010_v12 = vld [vmem:[#allocation122_spill] sm:$0xff] }
 0x436   : > { %v4319_v18 = vpop.f32.mrb[98].mxu0  ;;  %v5235_v42 = vpop.f32.mrb[98].mxu1 }
 0x437   : > { %6081 = vst.msk [vmem:[%s9789_s28 + $0x130] sm:$0xf] %vm6004_vm1, %v6848_v55  ;;  %v6849_v43 = vpack.c.bf16 %v5591_v15, %v5591_v15  ;;  %v5389_v10 = vmax.f32 %v4473_v59, %v5232_v9  ;;  %v4474_v57 = vmax.f32 %v10999_v25, %v4319_v18  ;;  %v7697_v30 = vpop.f32.mrb[99].mxu0  ;;  %v7909_v7 = vpop.f32.mrb[99].mxu1  ;;  %v11011_v9 = vmax.f32 %v11009_v50, %v11010_v12  ;;  %v11025_v50 = vld [vmem:[#allocation132_spill] sm:$0xff] }
 0x439   : > { %6082 = vst.msk [vmem:[%s9789_s28 + $0x134] sm:$0xf] %vm6004_vm1, %v6849_v43  ;;  %v5494_v32 = vadd.f32 %v10148_v20, %v5389_v10  ;;  %v5390_v63 = vmax.f32 %v4474_v57, %v5235_v42  ;;  %v11012_v10 = vld [vmem:[#allocation123_spill] sm:$0xff] }
 0x43a   : > { %v11014_v21 = vmax.f32 %v11012_v10, %v11013_v5 }
 0x43b   : > { %v5592_v37 = vmax.f32 %v5494_v32, 0.0  ;;  %v5495_v38 = vadd.f32 %v10148_v20, %v5390_v63 }
 0x43c   : > { %v4324_v51 = vpop.f32.mrb[100].mxu0  ;;  %v5240_v34 = vpop.f32.mrb[100].mxu1 }
 0x43d   : > { %v6850_v27 = vpack.c.bf16 %v5592_v37, %v5592_v37  ;;  %v5593_v46 = vmax.f32 %v5495_v38, 0.0  ;;  %v4475_v41 = vmax.f32 %v11002_v40, %v4324_v51  ;;  %v7700_v47 = vpop.f32.mrb[101].mxu0  ;;  %v7912_v48 = vpop.f32.mrb[101].mxu1  ;;  %v11015_v38 = vld [vmem:[#allocation125_spill] sm:$0xff]  ;;  %v11016_v51 = vld [vmem:[#allocation126_spill] sm:$0xff] }
 0x43e   : > { %v4327_v4 = vpop.f32.mrb[102].mxu0  ;;  %v5243_v58 = vpop.f32.mrb[102].mxu1 }
 0x43f   : > { %6083 = vst.msk [vmem:[%s9789_s28 + $0x138] sm:$0xf] %vm6004_vm1, %v6850_v27  ;;  %v6851_v56 = vpack.c.bf16 %v5593_v46, %v5593_v46  ;;  %v5391_v2 = vmax.f32 %v4475_v41, %v5240_v34  ;;  %v4476_v11 = vmax.f32 %v11005_v39, %v4327_v4  ;;  %v7701_v28 = vpop.f32.mrb[103].mxu0  ;;  %v7913_v29 = vpop.f32.mrb[103].mxu1  ;;  %v11017_v34 = vmax.f32 %v11015_v38, %v11016_v51  ;;  %v11031_v38 = vld [vmem:[#allocation136_spill] sm:$0xff] }
 0x441   : > { %6084 = vst.msk [vmem:[%s9789_s28 + $0x13c] sm:$0xf] %vm6004_vm1, %v6851_v56  ;;  %v5496_v0 = vadd.f32 %v10148_v20, %v5391_v2  ;;  %v5392_v1 = vmax.f32 %v4476_v11, %v5243_v58  ;;  %v11018_v2 = vld [vmem:[#allocation127_spill] sm:$0xff] }
 0x442   : > { %v11020_v54 = vmax.f32 %v11018_v2, %v11019_v31 }
 0x443   : > { %v5594_v45 = vmax.f32 %v5496_v0, 0.0  ;;  %v5497_v49 = vadd.f32 %v10148_v20, %v5392_v1 }
 0x444   : > { %v4332_v61 = vpop.f32.mrb[104].mxu0  ;;  %v5248_v62 = vpop.f32.mrb[104].mxu1 }
 0x445   : > { %v6852_v13 = vpack.c.bf16 %v5594_v45, %v5594_v45  ;;  %v5595_v14 = vmax.f32 %v5497_v49, 0.0  ;;  %v4477_v17 = vmax.f32 %v11008_v16, %v4332_v61  ;;  %v7704_v23 = vpop.f32.mrb[105].mxu0  ;;  %v7916_v24 = vpop.f32.mrb[105].mxu1  ;;  %v11021_v49 = vld [vmem:[#allocation129_spill] sm:$0xff]  ;;  %v11022_v61 = vld [vmem:[#allocation130_spill] sm:$0xff] }
 0x446   : > { %v4335_v6 = vpop.f32.mrb[106].mxu0  ;;  %v5251_v19 = vpop.f32.mrb[106].mxu1 }
 0x447   : > { %6085 = vst.msk [vmem:[%s9789_s28 + $0x140] sm:$0xf] %vm6004_vm1, %v6852_v13  ;;  %v6853_v44 = vpack.c.bf16 %v5595_v14, %v5595_v14  ;;  %v5393_v26 = vmax.f32 %v4477_v17, %v5248_v62  ;;  %v4478_v55 = vmax.f32 %v11011_v9, %v4335_v6  ;;  %v7705_v15 = vpop.f32.mrb[107].mxu0  ;;  %v7917_v33 = vpop.f32.mrb[107].mxu1  ;;  %v11023_v62 = vmax.f32 %v11021_v49, %v11022_v61  ;;  %v11037_v49 = vld [vmem:[#allocation140_spill] sm:$0xff] }
 0x449   : > { %6086 = vst.msk [vmem:[%s9789_s28 + $0x144] sm:$0xf] %vm6004_vm1, %v6853_v44  ;;  %v5498_v52 = vadd.f32 %v10148_v20, %v5393_v26  ;;  %v5394_v53 = vmax.f32 %v4478_v55, %v5251_v19  ;;  %v11024_v26 = vld [vmem:[#allocation131_spill] sm:$0xff] }
 0x44a   : > { %v11026_v12 = vmax.f32 %v11024_v26, %v11025_v50  ;;  %v8179_v26 = vld [vmem:[%s10507_s2] ss:$0 sm:$0xff] }
 0x44b   : > { %v5596_v59 = vmax.f32 %v5498_v52, 0.0  ;;  %v5499_v60 = vadd.f32 %v10148_v20, %v5394_v53 }
 0x44c   : > { %v4340_v8 = vpop.f32.mrb[108].mxu0  ;;  %v5256_v18 = vpop.f32.mrb[108].mxu1 }
 0x44d   : > { %v6854_v42 = vpack.c.bf16 %v5596_v59, %v5596_v59  ;;  %v5597_v43 = vmax.f32 %v5499_v60, 0.0  ;;  %v4479_v25 = vmax.f32 %v11014_v21, %v4340_v8  ;;  %v7708_v57 = vpop.f32.mrb[109].mxu0  ;;  %v7920_v30 = vpop.f32.mrb[109].mxu1  ;;  %v11027_v60 = vld [vmem:[#allocation133_spill] sm:$0xff]  ;;  %v11028_v8 = vld [vmem:[#allocation134_spill] sm:$0xff] }
 0x44e   : > { %v4343_v7 = vpop.f32.mrb[110].mxu0  ;;  %v5259_v32 = vpop.f32.mrb[110].mxu1 }
 0x44f   : > { %6087 = vst.msk [vmem:[%s9789_s28 + $0x148] sm:$0xf] %vm6004_vm1, %v6854_v42  ;;  %v6855_v63 = vpack.c.bf16 %v5597_v43, %v5597_v43  ;;  %v5395_v37 = vmax.f32 %v4479_v25, %v5256_v18  ;;  %v4480_v27 = vmax.f32 %v11017_v34, %v4343_v7  ;;  %v7709_v46 = vpop.f32.mrb[111].mxu0  ;;  %v7921_v22 = vpop.f32.mrb[111].mxu1  ;;  %v11029_v18 = vmax.f32 %v11027_v60, %v11028_v8  ;;  %v11043_v60 = vld [vmem:[#allocation144_spill] sm:$0xff] }
 0x451   : > { %6088 = vst.msk [vmem:[%s9789_s28 + $0x14c] sm:$0xf] %vm6004_vm1, %v6855_v63  ;;  %v5500_v3 = vadd.f32 %v10148_v20, %v5395_v37  ;;  %v5396_v40 = vmax.f32 %v4480_v27, %v5259_v32  ;;  %v11030_v37 = vld [vmem:[#allocation135_spill] sm:$0xff] }
 0x452   : > { %v11032_v51 = vmax.f32 %v11030_v37, %v11031_v38 }
 0x453   : > { %v5598_v41 = vmax.f32 %v5500_v3, 0.0  ;;  %v5501_v47 = vadd.f32 %v10148_v20, %v5396_v40 }
 0x454   : > { %v4348_v48 = vpop.f32.mrb[112].mxu0  ;;  %v5264_v4 = vpop.f32.mrb[112].mxu1 }
 0x455   : > { %v6856_v58 = vpack.c.bf16 %v5598_v41, %v5598_v41  ;;  %v5599_v56 = vmax.f32 %v5501_v47, 0.0  ;;  %v4481_v39 = vmax.f32 %v11020_v54, %v4348_v48  ;;  %v7712_v11 = vpop.f32.mrb[113].mxu0  ;;  %v7924_v28 = vpop.f32.mrb[113].mxu1  ;;  %v11033_v47 = vld [vmem:[#allocation137_spill] sm:$0xff]  ;;  %v11034_v48 = vld [vmem:[#allocation138_spill] sm:$0xff] }
 0x456   : > { %v4351_v29 = vpop.f32.mrb[114].mxu0  ;;  %v5267_v0 = vpop.f32.mrb[114].mxu1 }
 0x457   : > { %6089 = vst.msk [vmem:[%s9789_s28 + $0x150] sm:$0xf] %vm6004_vm1, %v6856_v58  ;;  %v6857_v1 = vpack.c.bf16 %v5599_v56, %v5599_v56  ;;  %v5397_v45 = vmax.f32 %v4481_v39, %v5264_v4  ;;  %v4482_v13 = vmax.f32 %v11023_v62, %v4351_v29  ;;  %v7713_v14 = vpop.f32.mrb[115].mxu0  ;;  %v7925_v35 = vpop.f32.mrb[115].mxu1  ;;  %v11035_v4 = vmax.f32 %v11033_v47, %v11034_v48  ;;  %v11049_v47 = vld [vmem:[#allocation148_spill] sm:$0xff] }
 0x459   : > { %6090 = vst.msk [vmem:[%s9789_s28 + $0x154] sm:$0xf] %vm6004_vm1, %v6857_v1  ;;  %v5502_v36 = vadd.f32 %v10148_v20, %v5397_v45  ;;  %v5398_v16 = vmax.f32 %v4482_v13, %v5267_v0  ;;  %v11036_v45 = vld [vmem:[#allocation139_spill] sm:$0xff] }
 0x45a   : > { %v11038_v61 = vmax.f32 %v11036_v45, %v11037_v49 }
 0x45b   : > { %v5600_v17 = vmax.f32 %v5502_v36, 0.0  ;;  %v5503_v23 = vadd.f32 %v10148_v20, %v5398_v16 }
 0x45c   : > { %v4356_v24 = vpop.f32.mrb[116].mxu0  ;;  %v5272_v6 = vpop.f32.mrb[116].mxu1 }
 0x45d   : > { %v6858_v19 = vpack.c.bf16 %v5600_v17, %v5600_v17  ;;  %v5601_v44 = vmax.f32 %v5503_v23, 0.0  ;;  %v4483_v9 = vmax.f32 %v11026_v12, %v4356_v24  ;;  %v7716_v55 = vpop.f32.mrb[117].mxu0  ;;  %v7928_v15 = vpop.f32.mrb[117].mxu1  ;;  %v11039_v23 = vld [vmem:[#allocation141_spill] sm:$0xff]  ;;  %v11040_v24 = vld [vmem:[#allocation142_spill] sm:$0xff] }
 0x45e   : > { %v4359_v33 = vpop.f32.mrb[118].mxu0  ;;  %v5275_v52 = vpop.f32.mrb[118].mxu1 }
 0x45f   : > { %6091 = vst.msk [vmem:[%s9789_s28 + $0x158] sm:$0xf] %vm6004_vm1, %v6858_v19  ;;  %v6859_v53 = vpack.c.bf16 %v5601_v44, %v5601_v44  ;;  %v5399_v59 = vmax.f32 %v4483_v9, %v5272_v6  ;;  %v4484_v42 = vmax.f32 %v11029_v18, %v4359_v33  ;;  %v7717_v43 = vpop.f32.mrb[119].mxu0  ;;  %v7929_v10 = vpop.f32.mrb[119].mxu1 }
 0x461   : > { %6092 = vst.msk [vmem:[%s9789_s28 + $0x15c] sm:$0xf] %vm6004_vm1, %v6859_v53  ;;  %v5504_v5 = vadd.f32 %v10148_v20, %v5399_v59  ;;  %v5400_v21 = vmax.f32 %v4484_v42, %v5275_v52  ;;  %v11042_v59 = vld [vmem:[#allocation143_spill] sm:$0xff] }
 0x462   : > { %v11044_v8 = vmax.f32 %v11042_v59, %v11043_v60 }
 0x463   : > { %v5602_v25 = vmax.f32 %v5504_v5, 0.0  ;;  %v5505_v57 = vadd.f32 %v10148_v20, %v5400_v21 }
 0x464   : > { %v4364_v30 = vpop.f32.mrb[120].mxu0  ;;  %v5280_v7 = vpop.f32.mrb[120].mxu1 }
 0x465   : > { %v6860_v32 = vpack.c.bf16 %v5602_v25, %v5602_v25  ;;  %v5603_v63 = vmax.f32 %v5505_v57, 0.0  ;;  %v4485_v34 = vmax.f32 %v11032_v51, %v4364_v30  ;;  %v7720_v27 = vpop.f32.mrb[121].mxu0  ;;  %v7932_v46 = vpop.f32.mrb[121].mxu1  ;;  %v11045_v57 = vld [vmem:[#allocation145_spill] sm:$0xff]  ;;  %v11046_v30 = vld [vmem:[#allocation146_spill] sm:$0xff] }
 0x466   : > { %v4367_v22 = vpop.f32.mrb[122].mxu0  ;;  %v5283_v3 = vpop.f32.mrb[122].mxu1 }
 0x467   : > { %6093 = vst.msk [vmem:[%s9789_s28 + $0x160] sm:$0xf] %vm6004_vm1, %v6860_v32  ;;  %v6861_v40 = vpack.c.bf16 %v5603_v63, %v5603_v63  ;;  %v5401_v41 = vmax.f32 %v4485_v34, %v5280_v7  ;;  %v4486_v58 = vmax.f32 %v11035_v4, %v4367_v22  ;;  %v7721_v56 = vpop.f32.mrb[123].mxu0  ;;  %v7933_v2 = vpop.f32.mrb[123].mxu1  ;;  %v11047_v7 = vmax.f32 %v11045_v57, %v11046_v30 }
 0x469   : > { %6094 = vst.msk [vmem:[%s9789_s28 + $0x164] sm:$0xf] %vm6004_vm1, %v6861_v40  ;;  %v5506_v31 = vadd.f32 %v10148_v20, %v5401_v41  ;;  %v5402_v54 = vmax.f32 %v4486_v58, %v5283_v3  ;;  %v11048_v41 = vld [vmem:[#allocation147_spill] sm:$0xff] }
 0x46a   : > { %v11050_v48 = vmax.f32 %v11048_v41, %v11049_v47 }
 0x46b   : > { %v5604_v39 = vmax.f32 %v5506_v31, 0.0  ;;  %v5507_v11 = vadd.f32 %v10148_v20, %v5402_v54  ;;  %v11041_v20 = vmax.f32 %v11039_v23, %v11040_v24 }
 0x46c   : > { %v4372_v28 = vpop.f32.mrb[124].mxu0  ;;  %v5288_v29 = vpop.f32.mrb[124].mxu1 }
 0x46d   : > { %v6862_v0 = vpack.c.bf16 %v5604_v39, %v5604_v39  ;;  %v5605_v1 = vmax.f32 %v5507_v11, 0.0  ;;  %v4487_v62 = vmax.f32 %v11038_v61, %v4372_v28  ;;  %v7724_v13 = vpop.f32.mrb[125].mxu0  ;;  %v7936_v14 = vpop.f32.mrb[125].mxu1  ;;  %v11051_v11 = vld [vmem:[#allocation149_spill] sm:$0xff]  ;;  %v11052_v28 = vld [vmem:[#allocation150_spill] sm:$0xff] }
 0x46e   : > { %v4375_v35 = vpop.f32.mrb[126].mxu0  ;;  %v5291_v36 = vpop.f32.mrb[126].mxu1 }
 0x46f   : > { %6095 = vst.msk [vmem:[%s9789_s28 + $0x168] sm:$0xf] %vm6004_vm1, %v6862_v0  ;;  %v6863_v16 = vpack.c.bf16 %v5605_v1, %v5605_v1  ;;  %v5403_v17 = vmax.f32 %v4487_v62, %v5288_v29  ;;  %v4488_v6 = vmax.f32 %v11041_v20, %v4375_v35  ;;  %v7725_v19 = vpop.f32.mrb[127].mxu0  ;;  %v7937_v44 = vpop.f32.mrb[127].mxu1  ;;  %v11053_v29 = vmax.f32 %v11051_v11, %v11052_v28 }
 0x471   : > { %6096 = vst.msk [vmem:[%s9789_s28 + $0x16c] sm:$0xf] %vm6004_vm1, %v6863_v16  ;;  %v5508_v50 = vadd.f32 %v8179_v26, %v5403_v17  ;;  %v5404_v12 = vmax.f32 %v4488_v6, %v5291_v36 }
 0x473   : > { %v5606_v9 = vmax.f32 %v5508_v50, 0.0  ;;  %v5509_v55 = vadd.f32 %v8179_v26, %v5404_v12 }
 0x474   : > { %v4380_v15 = vpop.f32.mrb[128].mxu0  ;;  %v5296_v33 = vpop.f32.mrb[128].mxu1 }
 0x475   : > { %v6864_v52 = vpack.c.bf16 %v5606_v9, %v5606_v9  ;;  %v5607_v53 = vmax.f32 %v5509_v55, 0.0  ;;  %v4489_v18 = vmax.f32 %v11044_v8, %v4380_v15  ;;  %v7728_v42 = vpop.f32.mrb[129].mxu0  ;;  %v7940_v43 = vpop.f32.mrb[129].mxu1 }
 0x476   : > { %v4383_v10 = vpop.f32.mrb[130].mxu0  ;;  %v5299_v5 = vpop.f32.mrb[130].mxu1 }
 0x477   : > { %6097 = vst.msk [vmem:[%s9789_s28 + $0x170] sm:$0xf] %vm6004_vm1, %v6864_v52  ;;  %v6865_v21 = vpack.c.bf16 %v5607_v53, %v5607_v53  ;;  %v5405_v25 = vmax.f32 %v4489_v18, %v5296_v33  ;;  %v4490_v32 = vmax.f32 %v11047_v7, %v4383_v10  ;;  %v7729_v63 = vpop.f32.mrb[131].mxu0  ;;  %v7941_v37 = vpop.f32.mrb[131].mxu1 }
 0x479   : > { %6098 = vst.msk [vmem:[%s9789_s28 + $0x174] sm:$0xf] %vm6004_vm1, %v6865_v21  ;;  %v5510_v38 = vadd.f32 %v8179_v26, %v5405_v25  ;;  %v5406_v51 = vmax.f32 %v4490_v32, %v5299_v5 }
 0x47b   : > { %v5608_v34 = vmax.f32 %v5510_v38, 0.0  ;;  %v5511_v27 = vadd.f32 %v8179_v26, %v5406_v51 }
 0x47c   : > { %v4388_v46 = vpop.f32.mrb[132].mxu0  ;;  %v5304_v22 = vpop.f32.mrb[132].mxu1 }
 0x47d   : > { %v6866_v3 = vpack.c.bf16 %v5608_v34, %v5608_v34  ;;  %v5609_v40 = vmax.f32 %v5511_v27, 0.0  ;;  %v4491_v4 = vmax.f32 %v11050_v48, %v4388_v46  ;;  %v7732_v58 = vpop.f32.mrb[133].mxu0  ;;  %v7944_v56 = vpop.f32.mrb[133].mxu1 }
 0x47e   : > { %v4391_v2 = vpop.f32.mrb[134].mxu0  ;;  %v5307_v31 = vpop.f32.mrb[134].mxu1 }
 0x47f   : > { %6099 = vst.msk [vmem:[%s9789_s28 + $0x178] sm:$0xf] %vm6004_vm1, %v6866_v3  ;;  %v6867_v54 = vpack.c.bf16 %v5609_v40, %v5609_v40  ;;  %v5407_v39 = vmax.f32 %v4491_v4, %v5304_v22  ;;  %v4492_v0 = vmax.f32 %v11053_v29, %v4391_v2  ;;  %v7733_v1 = vpop.f32.mrb[135].mxu0  ;;  %v7945_v45 = vpop.f32.mrb[135].mxu1 }
 0x481   : > { %6100 = vst.msk [vmem:[%s9789_s28 + $0x17c] sm:$0xf] %vm6004_vm1, %v6867_v54  ;;  %v5512_v49 = vadd.f32 %v8179_v26, %v5407_v39  ;;  %v5408_v61 = vmax.f32 %v4492_v0, %v5307_v31 }
 0x483   : > { %v5610_v62 = vmax.f32 %v5512_v49, 0.0  ;;  %v5513_v13 = vadd.f32 %v8179_v26, %v5408_v61 }
 0x485   : > { %v6868_v14 = vpack.c.bf16 %v5610_v62, %v5610_v62  ;;  %v5611_v35 = vmax.f32 %v5513_v13, 0.0 }
 0x487   : > { %6101 = vst.msk [vmem:[%s9789_s28 + $0x180] sm:$0xf] %vm6004_vm1, %v6868_v14  ;;  %v6869_v36 = vpack.c.bf16 %v5611_v35, %v5611_v35 }
 0x489   : > { %6102 = vst.msk [vmem:[%s9789_s28 + $0x184] sm:$0xf] %vm6004_vm1, %v6869_v36 }
 0x48a PF: > { %p10_p9 = scmp.ge.s32.totalorder %s8243_s16, 4   ;;  %s11054_s12 = smov %s8198_s13 }
 0x48b   : > { %s11055_s13 = smov %s8252_s19  ;;  %s11056_s14 = smov %s8243_s16 }
 0x48c   :  { %12 = sbr.rel (!%p10_p9) target bundleno = 2 (0x2), region = 111 }

// kernel: simple_cnn_forward.3
= control target key start
LH: loop header
LB: loop body
LE: loop exit
PB: predicated region body
PF: predicated region fallthrough
CT: control target
= control target key end

     0   :  { %s8233_s0 = inlined_call_operand.vmem [shape: bf16[4,200,512], index: 0, kind: input, shape index: {}]   ;;  %s8234_s1 = inlined_call_operand.vmem [shape: bf16[512,32], index: 1, kind: input, shape index: {}]   ;;  %s8235_s2 = inlined_call_operand.vmem [shape: f32[1,32], index: 2, kind: input, shape index: {}]   ;;  %s8236_s3 = inlined_call_operand.vmem [shape: bf16[800,128], index: 3, kind: input, shape index: {}]   ;;  %s8237_s4 = inlined_call_operand.vmem [shape: f32[1,128], index: 4, kind: input, shape index: {}]   ;;  %s8238_s5 = inlined_call_operand.vmem [shape: bf16[128,128], index: 5, kind: input, shape index: {}]   ;;  %s8239_s6 = inlined_call_operand.vmem [shape: f32[1,128], index: 6, kind: input, shape index: {}]   ;;  %s8240_s7 = inlined_call_operand.vmem [shape: bf16[128,10], index: 7, kind: input, shape index: {}]   ;;  %s8241_s8 = inlined_call_operand.vmem [shape: f32[1,10], index: 8, kind: input, shape index: {}]   ;;  %s8242_s9 = inlined_call_operand.hbm [shape: f32[8,10], index: 9, kind: output, shape index: {}]  }
   0x1   :  { %v6590_v0 = vld [vmem:[%s8234_s1 + $0x40] sm:$0xff]   ;;  %v6613_v4 = vld [vmem:[%s8234_s1 + $0x48] sm:$0xff]   ;;  %v6637_v8 = vld [vmem:[%s8234_s1 + $0x50] sm:$0xff]  }
   0x2   :  { %v6595_v1 = vld [vmem:[%s8234_s1 + $0xc0] sm:$0xff]   ;;  %4988 = vmatprep.subr.bf16.mxu0 %v6590_v0  ;;  %v6619_v5 = vld [vmem:[%s8234_s1 + $0xc8] sm:$0xff]   ;;  %v6643_v9 = vld [vmem:[%s8234_s1 + $0xd0] sm:$0xff]  }
   0x3   :  { %v6601_v2 = vld [vmem:[%s8234_s1] sm:$0xff]   ;;  %5082 = vmatprep.subr.bf16.mxu1 %v6595_v1  ;;  %v6625_v6 = vld [vmem:[%s8234_s1 + $0x8] sm:$0xff]   ;;  %v6649_v10 = vld [vmem:[%s8234_s1 + $0x10] sm:$0xff]  }
   0x4   :  { %v6607_v3 = vld [vmem:[%s8234_s1 + $0x80] sm:$0xff]   ;;  %4989 = vmatpush3.bf16.msra.mxu0 %v6601_v2  ;;  %v6631_v7 = vld [vmem:[%s8234_s1 + $0x88] sm:$0xff]   ;;  %v6655_v11 = vld [vmem:[%s8234_s1 + $0x90] sm:$0xff]  }
   0x5   :  { %5083 = vmatpush3.bf16.msra.mxu1 %v6607_v3  ;;  %4990 = vmatprep.subr.bf16.mxu0 %v6613_v4  ;;  %v6661_v12 = vld [vmem:[%s8234_s1 + $0x58] sm:$0xff]   ;;  %v6685_v16 = vld [vmem:[%s8234_s1 + $0x60] sm:$0xff]   ;;  %v6709_v20 = vld [vmem:[%s8234_s1 + $0x68] sm:$0xff]  }
   0x6   :  { %5084 = vmatprep.subr.bf16.mxu1 %v6619_v5  ;;  %v6667_v13 = vld [vmem:[%s8234_s1 + $0xd8] sm:$0xff]   ;;  %v6691_v17 = vld [vmem:[%s8234_s1 + $0xe0] sm:$0xff]   ;;  %v6715_v21 = vld [vmem:[%s8234_s1 + $0xe8] sm:$0xff]  }
   0x7   :  { %v6673_v14 = vld [vmem:[%s8234_s1 + $0x18] sm:$0xff]   ;;  %v6697_v18 = vld [vmem:[%s8234_s1 + $0x20] sm:$0xff]   ;;  %v6721_v22 = vld [vmem:[%s8234_s1 + $0x28] sm:$0xff]  }
   0x8   :  { %4991 = vmatpush3.bf16.msra.mxu0 %v6625_v6  ;;  %v6679_v15 = vld [vmem:[%s8234_s1 + $0x98] sm:$0xff]   ;;  %v6703_v19 = vld [vmem:[%s8234_s1 + $0xa0] sm:$0xff]   ;;  %v6727_v23 = vld [vmem:[%s8234_s1 + $0xa8] sm:$0xff]  }
   0x9   :  { %5085 = vmatpush3.bf16.msra.mxu1 %v6631_v7  ;;  %4992 = vmatprep.subr.bf16.mxu0 %v6637_v8  ;;  %v6733_v24 = vld [vmem:[%s8234_s1 + $0x70] sm:$0xff]   ;;  %v6757_v28 = vld [vmem:[%s8234_s1 + $0x78] sm:$0xff]  }
   0xa   :  { %5086 = vmatprep.subr.bf16.mxu1 %v6643_v9  ;;  %v6739_v25 = vld [vmem:[%s8234_s1 + $0xf0] sm:$0xff]   ;;  %v6763_v29 = vld [vmem:[%s8234_s1 + $0xf8] sm:$0xff]  }
   0xb   :  { %v6745_v26 = vld [vmem:[%s8234_s1 + $0x30] sm:$0xff]   ;;  %v6769_v30 = vld [vmem:[%s8234_s1 + $0x38] sm:$0xff]  }
   0xc   :  { %4993 = vmatpush3.bf16.msra.mxu0 %v6649_v10  ;;  %v6751_v27 = vld [vmem:[%s8234_s1 + $0xb0] sm:$0xff]   ;;  %v6775_v31 = vld [vmem:[%s8234_s1 + $0xb8] sm:$0xff]  }
   0xd   :  { %5087 = vmatpush3.bf16.msra.mxu1 %v6655_v11  ;;  %4994 = vmatprep.subr.bf16.mxu0 %v6661_v12  ;;  %v6108_v32 = vld [vmem:[%s8233_s0] ss:$16 sps:$4 sm:$0xff]   ;;  %v6110_v33 = vld [vmem:[%s8233_s0 + $0x4] ss:$16 sps:$4 sm:$0xff]   ;;  %v6111_v34 = vld [vmem:[%s8233_s0 + $0x8] ss:$16 sps:$4 sm:$0xff]  }
   0xe   :  { %5088 = vmatprep.subr.bf16.mxu1 %v6667_v13  ;;  %v6113_v35 = vld [vmem:[%s8233_s0 + $0xc] ss:$16 sps:$4 sm:$0xff]   ;;  %626 = vmatprep.mubr.bf16.mxu0 %v6110_v33  ;;  %v6114_v36 = vld [vmem:[%s8233_s0 + $0x24] ss:$16 sps:$4 sm:$0xff]   ;;  %v6118_v38 = vld [vmem:[%s8233_s0 + $0x20] ss:$16 sps:$4 sm:$0xff]  }
   0xf   :  { %762 = vmatprep.mubr.bf16.mxu1 %v6113_v35  ;;  %v6116_v37 = vld [vmem:[%s8233_s0 + $0x2c] ss:$16 sps:$4 sm:$0xff]   ;;  %v6119_v39 = vld [vmem:[%s8233_s0 + $0x28] ss:$16 sps:$4 sm:$0xff]   ;;  %v6120_v40 = vld [vmem:[%s8233_s0 + $0x44] ss:$16 sps:$4 sm:$0xff]  }
  0x10   :  { %4995 = vmatpush3.bf16.msra.mxu0 %v6673_v14  ;;  %v6122_v41 = vld [vmem:[%s8233_s0 + $0x4c] ss:$16 sps:$4 sm:$0xff]   ;;  %v6124_v42 = vld [vmem:[%s8233_s0 + $0x40] ss:$16 sps:$4 sm:$0xff]   ;;  %v6125_v43 = vld [vmem:[%s8233_s0 + $0x48] ss:$16 sps:$4 sm:$0xff]  }
  0x11   :  { %5089 = vmatpush3.bf16.msra.mxu1 %v6679_v15  ;;  %4996 = vmatprep.subr.bf16.mxu0 %v6685_v16  ;;  %v6126_v44 = vld [vmem:[%s8233_s0 + $0x64] ss:$16 sps:$4 sm:$0xff]   ;;  %v6128_v45 = vld [vmem:[%s8233_s0 + $0x6c] ss:$16 sps:$4 sm:$0xff]   ;;  %v6130_v46 = vld [vmem:[%s8233_s0 + $0x60] ss:$16 sps:$4 sm:$0xff]  }
  0x12   :  { %5090 = vmatprep.subr.bf16.mxu1 %v6691_v17  ;;  %v6131_v47 = vld [vmem:[%s8233_s0 + $0x68] ss:$16 sps:$4 sm:$0xff]   ;;  %v6132_v48 = vld [vmem:[%s8233_s0 + $0x84] ss:$16 sps:$4 sm:$0xff]   ;;  %v6134_v49 = vld [vmem:[%s8233_s0 + $0x8c] ss:$16 sps:$4 sm:$0xff]  }
  0x13   :  { %v6136_v50 = vld [vmem:[%s8233_s0 + $0x80] ss:$16 sps:$4 sm:$0xff]   ;;  %v6137_v51 = vld [vmem:[%s8233_s0 + $0x88] ss:$16 sps:$4 sm:$0xff]   ;;  %v6138_v52 = vld [vmem:[%s8233_s0 + $0xa4] ss:$16 sps:$4 sm:$0xff]  }
  0x14   :  { %4997 = vmatpush3.bf16.msra.mxu0 %v6697_v18  ;;  %v6140_v53 = vld [vmem:[%s8233_s0 + $0xac] ss:$16 sps:$4 sm:$0xff]   ;;  %v6142_v54 = vld [vmem:[%s8233_s0 + $0xa0] ss:$16 sps:$4 sm:$0xff]   ;;  %v6143_v55 = vld [vmem:[%s8233_s0 + $0xa8] ss:$16 sps:$4 sm:$0xff]  }
  0x15   :  { %5091 = vmatpush3.bf16.msra.mxu1 %v6703_v19  ;;  %4998 = vmatprep.subr.bf16.mxu0 %v6709_v20  ;;  %v6144_v56 = vld [vmem:[%s8233_s0 + $0xc4] ss:$16 sps:$4 sm:$0xff]   ;;  %v6146_v57 = vld [vmem:[%s8233_s0 + $0xcc] ss:$16 sps:$4 sm:$0xff]   ;;  %v6148_v58 = vld [vmem:[%s8233_s0 + $0xc0] ss:$16 sps:$4 sm:$0xff]  }
  0x16   :  { %5092 = vmatprep.subr.bf16.mxu1 %v6715_v21  ;;  %v6149_v59 = vld [vmem:[%s8233_s0 + $0xc8] ss:$16 sps:$4 sm:$0xff]   ;;  %v6150_v60 = vld [vmem:[%s8233_s0 + $0xe4] ss:$16 sps:$4 sm:$0xff]   ;;  %v6152_v61 = vld [vmem:[%s8233_s0 + $0xec] ss:$16 sps:$4 sm:$0xff]  }
  0x17   :  { %v6154_v62 = vld [vmem:[%s8233_s0 + $0xe0] ss:$16 sps:$4 sm:$0xff]   ;;  %v6155_v63 = vld [vmem:[%s8233_s0 + $0xe8] ss:$16 sps:$4 sm:$0xff]   ;;  %v6164_v35 = vld [vmem:[%s8233_s0 + $0x12c] ss:$16 sps:$4 sm:$0xff]  }
  0x18   :  { %4999 = vmatpush3.bf16.msra.mxu0 %v6721_v22  ;;  %v6161_v33 = vld [vmem:[%s8233_s0 + $0x108] ss:$16 sps:$4 sm:$0xff]  }
  0x19   :  { %5093 = vmatpush3.bf16.msra.mxu1 %v6727_v23  ;;  %5000 = vmatprep.subr.bf16.mxu0 %v6733_v24 }
  0x1a   :  { %5094 = vmatprep.subr.bf16.mxu1 %v6739_v25 }
  0x1c   :  { %5001 = vmatpush3.bf16.msra.mxu0 %v6745_v26 }
  0x1d   :  { %5095 = vmatpush3.bf16.msra.mxu1 %v6751_v27  ;;  %5002 = vmatprep.subr.bf16.mxu0 %v6757_v28 }
  0x1e   :  { %5096 = vmatprep.subr.bf16.mxu1 %v6763_v29 }
  0x20   :  { %5003 = vmatpush3.bf16.msra.mxu0 %v6769_v30 }
  0x21   :  { %5097 = vmatpush3.bf16.msra.mxu1 %v6775_v31  ;;  %5176 = vmatprep.subr.bf16.mxu0 %v6590_v0 }
  0x22   :  { %5270 = vmatprep.subr.bf16.mxu1 %v6595_v1 }
  0x23   :  { %627 = vmatmul.mubr.bf16.vlgmr.msra.gmra.mrb[0].mxu0 %v6108_v32  ;;  %v6160_v32 = vld [vmem:[%s8233_s0 + $0x100] ss:$16 sps:$4 sm:$0xff]  }
  0x24   :  { %763 = vmatmul.mubr.bf16.vlgmr.msra.gmra.mrb[0].mxu1 %v6111_v34  ;;  %5177 = vmatpush3.bf16.msra.mxu0 %v6601_v2  ;;  %v6162_v34 = vld [vmem:[%s8233_s0 + $0x124] ss:$16 sps:$4 sm:$0xff]  }
  0x25   :  { %5271 = vmatpush3.bf16.msra.mxu1 %v6607_v3  ;;  %634 = vmatprep.mubr.bf16.mxu0 %v6114_v36  ;;  %v6166_v36 = vld [vmem:[%s8233_s0 + $0x120] ss:$16 sps:$4 sm:$0xff]  }
  0x26   :  { %770 = vmatprep.mubr.bf16.mxu1 %v6116_v37  ;;  %5178 = vmatprep.subr.bf16.mxu0 %v6613_v4  ;;  %v6167_v37 = vld [vmem:[%s8233_s0 + $0x128] ss:$16 sps:$4 sm:$0xff]  }
  0x27   :  { %5272 = vmatprep.subr.bf16.mxu1 %v6619_v5 }
  0x28   :  { %5179 = vmatpush3.bf16.msra.mxu0 %v6625_v6 }
  0x29   :  { %5273 = vmatpush3.bf16.msra.mxu1 %v6631_v7  ;;  %5180 = vmatprep.subr.bf16.mxu0 %v6637_v8 }
  0x2a   :  { %5274 = vmatprep.subr.bf16.mxu1 %v6643_v9 }
  0x2b   :  { %635 = vmatmul.mubr.bf16.gmra.mrb[4].mxu0 %v6118_v38  ;;  %v6168_v38 = vld [vmem:[%s8233_s0 + $0x144] ss:$16 sps:$4 sm:$0xff]  }
  0x2c   :  { %771 = vmatmul.mubr.bf16.gmra.mrb[4].mxu1 %v6119_v39  ;;  %642 = vmatprep.mubr.bf16.mxu0 %v6120_v40  ;;  %v6170_v39 = vld [vmem:[%s8233_s0 + $0x14c] ss:$16 sps:$4 sm:$0xff]   ;;  %v6172_v40 = vld [vmem:[%s8233_s0 + $0x140] ss:$16 sps:$4 sm:$0xff]  }
  0x2d   :  { %778 = vmatprep.mubr.bf16.mxu1 %v6122_v41  ;;  %5181 = vmatpush3.bf16.msra.mxu0 %v6649_v10  ;;  %v6173_v41 = vld [vmem:[%s8233_s0 + $0x148] ss:$16 sps:$4 sm:$0xff]  }
  0x2e   :  { %5275 = vmatpush3.bf16.msra.mxu1 %v6655_v11  ;;  %5182 = vmatprep.subr.bf16.mxu0 %v6661_v12 }
  0x2f   :  { %5276 = vmatprep.subr.bf16.mxu1 %v6667_v13 }
  0x31   :  { %5183 = vmatpush3.bf16.msra.mxu0 %v6673_v14 }
  0x32   :  { %5277 = vmatpush3.bf16.msra.mxu1 %v6679_v15  ;;  %5184 = vmatprep.subr.bf16.mxu0 %v6685_v16 }
  0x33   :  { %643 = vmatmul.mubr.bf16.gmra.mrb[8].mxu0 %v6124_v42  ;;  %5278 = vmatprep.subr.bf16.mxu1 %v6691_v17  ;;  %v6174_v42 = vld [vmem:[%s8233_s0 + $0x164] ss:$16 sps:$4 sm:$0xff]  }
  0x34   :  { %779 = vmatmul.mubr.bf16.gmra.mrb[8].mxu1 %v6125_v43  ;;  %650 = vmatprep.mubr.bf16.mxu0 %v6126_v44  ;;  %v6176_v43 = vld [vmem:[%s8233_s0 + $0x16c] ss:$16 sps:$4 sm:$0xff]   ;;  %v146_v44 = vld [vmem:[%s8233_s0 + $0x180] sm:$0xff] }
  0x35   :  { %786 = vmatprep.mubr.bf16.mxu1 %v6128_v45  ;;  %5185 = vmatpush3.bf16.msra.mxu0 %v6697_v18  ;;  %v147_v45 = vld [vmem:[%s8233_s0 + $0x188] sm:$0xff] }
  0x36   :  { %5279 = vmatpush3.bf16.msra.mxu1 %v6703_v19  ;;  %5186 = vmatprep.subr.bf16.mxu0 %v6709_v20 }
  0x37   :  { %5280 = vmatprep.subr.bf16.mxu1 %v6715_v21 }
  0x39   :  { %5187 = vmatpush3.bf16.msra.mxu0 %v6721_v22 }
  0x3a   :  { %5281 = vmatpush3.bf16.msra.mxu1 %v6727_v23  ;;  %5188 = vmatprep.subr.bf16.mxu0 %v6733_v24 }
  0x3b   :  { %651 = vmatmul.mubr.bf16.gmra.mrb[12].mxu0 %v6130_v46  ;;  %5282 = vmatprep.subr.bf16.mxu1 %v6739_v25  ;;  %v6178_v46 = vld [vmem:[%s8233_s0 + $0x160] ss:$16 sps:$4 sm:$0xff]  }
  0x3c   :  { %787 = vmatmul.mubr.bf16.gmra.mrb[12].mxu1 %v6131_v47  ;;  %658 = vmatprep.mubr.bf16.mxu0 %v6132_v48  ;;  %v6179_v47 = vld [vmem:[%s8233_s0 + $0x168] ss:$16 sps:$4 sm:$0xff]   ;;  %v4552_v48 = vcombine.high %v146_v44, %v146_v44 }
  0x3d   :  { %794 = vmatprep.mubr.bf16.mxu1 %v6134_v49  ;;  %5189 = vmatpush3.bf16.msra.mxu0 %v6745_v26  ;;  %v4554_v49 = vcombine.high %v147_v45, %v147_v45 }
  0x3e   :  { %5283 = vmatpush3.bf16.msra.mxu1 %v6751_v27  ;;  %5190 = vmatprep.subr.bf16.mxu0 %v6757_v28 }
  0x3f   :  { %5284 = vmatprep.subr.bf16.mxu1 %v6763_v29 }
  0x41   :  { %5191 = vmatpush3.bf16.msra.mxu0 %v6769_v30 }
  0x42   :  { %5285 = vmatpush3.bf16.msra.mxu1 %v6775_v31  ;;  %5364 = vmatprep.subr.bf16.mxu0 %v6590_v0  ;;  %v6156_v0 = vld [vmem:[%s8233_s0 + $0x104] ss:$16 sps:$4 sm:$0xff]  }
  0x43   :  { %659 = vmatmul.mubr.bf16.gmra.mrb[16].mxu0 %v6136_v50  ;;  %5458 = vmatprep.subr.bf16.mxu1 %v6595_v1  ;;  %v6158_v1 = vld [vmem:[%s8233_s0 + $0x10c] ss:$16 sps:$4 sm:$0xff]   ;;  %v6186_v50 = vld [vmem:[%s8233_s0 + $0x194] ss:$16 sps:$4 sm:$0xff]  }
  0x44   :  { %795 = vmatmul.mubr.bf16.gmra.mrb[16].mxu1 %v6137_v51  ;;  %666 = vmatprep.mubr.bf16.mxu0 %v6138_v52  ;;  %v4551_v51 = vcombine.low %v146_v44, %v146_v44  ;;  %v4553_v52 = vcombine.low %v147_v45, %v147_v45 }
  0x45   :  { %802 = vmatprep.mubr.bf16.mxu1 %v6140_v53  ;;  %v6189_v53 = vld [vmem:[%s8233_s0 + $0x19c] ss:$16 sps:$4 sm:$0xff]  }
  0x4b   :  { %667 = vmatmul.mubr.bf16.gmra.mrb[20].mxu0 %v6142_v54  ;;  %v6184_v54 = vld [vmem:[%s8233_s0 + $0x190] ss:$16 sps:$4 sm:$0xff]  }
  0x4c   :  { %803 = vmatmul.mubr.bf16.gmra.mrb[20].mxu1 %v6143_v55  ;;  %674 = vmatprep.mubr.bf16.mxu0 %v6144_v56  ;;  %v6187_v55 = vld [vmem:[%s8233_s0 + $0x198] ss:$16 sps:$4 sm:$0xff]   ;;  %v6190_v56 = vld [vmem:[%s8233_s0 + $0x1b4] ss:$16 sps:$4 sm:$0xff]  }
  0x4d   :  { %810 = vmatprep.mubr.bf16.mxu1 %v6146_v57  ;;  %v6192_v57 = vld [vmem:[%s8233_s0 + $0x1bc] ss:$16 sps:$4 sm:$0xff]  }
  0x53   :  { %675 = vmatmul.mubr.bf16.gmra.mrb[24].mxu0 %v6148_v58  ;;  %v6194_v58 = vld [vmem:[%s8233_s0 + $0x1b0] ss:$16 sps:$4 sm:$0xff]  }
  0x54   :  { %811 = vmatmul.mubr.bf16.gmra.mrb[24].mxu1 %v6149_v59  ;;  %682 = vmatprep.mubr.bf16.mxu0 %v6150_v60  ;;  %v6195_v59 = vld [vmem:[%s8233_s0 + $0x1b8] ss:$16 sps:$4 sm:$0xff]   ;;  %v6196_v60 = vld [vmem:[%s8233_s0 + $0x1d4] ss:$16 sps:$4 sm:$0xff]  }
  0x55   :  { %818 = vmatprep.mubr.bf16.mxu1 %v6152_v61 }
  0x5b   :  { %683 = vmatmul.mubr.bf16.gmra.mrb[28].mxu0 %v6154_v62 }
  0x5c   :  { %819 = vmatmul.mubr.bf16.gmra.mrb[28].mxu1 %v6155_v63  ;;  %690 = vmatprep.mubr.bf16.mxu0 %v6156_v0 }
  0x5d   :  { %826 = vmatprep.mubr.bf16.mxu1 %v6158_v1 }
  0x63   :  { %691 = vmatmul.mubr.bf16.gmra.mrb[32].mxu0 %v6160_v32 }
  0x64   :  { %827 = vmatmul.mubr.bf16.gmra.mrb[32].mxu1 %v6161_v33  ;;  %698 = vmatprep.mubr.bf16.mxu0 %v6162_v34 }
  0x65   :  { %834 = vmatprep.mubr.bf16.mxu1 %v6164_v35 }
  0x6b   :  { %699 = vmatmul.mubr.bf16.gmra.mrb[36].mxu0 %v6166_v36 }
  0x6c   :  { %835 = vmatmul.mubr.bf16.gmra.mrb[36].mxu1 %v6167_v37  ;;  %706 = vmatprep.mubr.bf16.mxu0 %v6168_v38 }
  0x6d   :  { %842 = vmatprep.mubr.bf16.mxu1 %v6170_v39 }
  0x73   :  { %707 = vmatmul.mubr.bf16.gmra.mrb[40].mxu0 %v6172_v40 }
  0x74   :  { %843 = vmatmul.mubr.bf16.gmra.mrb[40].mxu1 %v6173_v41  ;;  %714 = vmatprep.mubr.bf16.mxu0 %v6174_v42 }
  0x75   :  { %850 = vmatprep.mubr.bf16.mxu1 %v6176_v43 }
  0x7b   :  { %715 = vmatmul.mubr.bf16.gmra.mrb[44].mxu0 %v6178_v46 }
  0x7c   :  { %851 = vmatmul.mubr.bf16.gmra.mrb[44].mxu1 %v6179_v47  ;;  %722 = vmatprep.mubr.bf16.mxu0 %v4552_v48 }
  0x7d   :  { %858 = vmatprep.mubr.bf16.mxu1 %v4554_v49 }
  0x83   :  { %723 = vmatmul.mubr.bf16.gmra.mrb[48].mxu0 %v4551_v51 }
  0x84   :  { %859 = vmatmul.mubr.bf16.gmra.mrb[48].mxu1 %v4553_v52  ;;  %1203 = vmatprep.mubr.bf16.mxu0 %v6186_v50 }
  0x85   :  { %1339 = vmatprep.mubr.bf16.mxu1 %v6189_v53 }
  0x8b   :  { %1204 = vmatmul.mubr.bf16.vlgmr.msra.gmra.mrb[52].mxu0 %v6184_v54 }
  0x8c   :  { %1340 = vmatmul.mubr.bf16.vlgmr.msra.gmra.mrb[52].mxu1 %v6187_v55  ;;  %5365 = vmatpush3.bf16.msra.mxu0 %v6601_v2  ;;  %v6198_v2 = vld [vmem:[%s8233_s0 + $0x1dc] ss:$16 sps:$4 sm:$0xff]  }
  0x8d   :  { %5459 = vmatpush3.bf16.msra.mxu1 %v6607_v3  ;;  %1211 = vmatprep.mubr.bf16.mxu0 %v6190_v56  ;;  %v6200_v3 = vld [vmem:[%s8233_s0 + $0x1d0] ss:$16 sps:$4 sm:$0xff]  }
  0x8e   :  { %1347 = vmatprep.mubr.bf16.mxu1 %v6192_v57  ;;  %5366 = vmatprep.subr.bf16.mxu0 %v6613_v4  ;;  %v6201_v4 = vld [vmem:[%s8233_s0 + $0x1d8] ss:$16 sps:$4 sm:$0xff]  }
  0x8f   :  { %5460 = vmatprep.subr.bf16.mxu1 %v6619_v5  ;;  %v6202_v5 = vld [vmem:[%s8233_s0 + $0x1f4] ss:$16 sps:$4 sm:$0xff]  }
  0x90   :  { %5367 = vmatpush3.bf16.msra.mxu0 %v6625_v6  ;;  %v6204_v6 = vld [vmem:[%s8233_s0 + $0x1fc] ss:$16 sps:$4 sm:$0xff]  }
  0x91   :  { %5461 = vmatpush3.bf16.msra.mxu1 %v6631_v7  ;;  %5368 = vmatprep.subr.bf16.mxu0 %v6637_v8  ;;  %v6206_v7 = vld [vmem:[%s8233_s0 + $0x1f0] ss:$16 sps:$4 sm:$0xff]   ;;  %v6207_v8 = vld [vmem:[%s8233_s0 + $0x1f8] ss:$16 sps:$4 sm:$0xff]  }
  0x92   :  { %5462 = vmatprep.subr.bf16.mxu1 %v6643_v9  ;;  %v6208_v9 = vld [vmem:[%s8233_s0 + $0x214] ss:$16 sps:$4 sm:$0xff]  }
  0x93   :  { %1212 = vmatmul.mubr.bf16.gmra.mrb[56].mxu0 %v6194_v58 }
  0x94   :  { %1348 = vmatmul.mubr.bf16.gmra.mrb[56].mxu1 %v6195_v59  ;;  %1219 = vmatprep.mubr.bf16.mxu0 %v6196_v60 }
  0x95   :  { %1355 = vmatprep.mubr.bf16.mxu1 %v6198_v2  ;;  %5369 = vmatpush3.bf16.msra.mxu0 %v6649_v10  ;;  %v6210_v10 = vld [vmem:[%s8233_s0 + $0x21c] ss:$16 sps:$4 sm:$0xff]  }
  0x96   :  { %5463 = vmatpush3.bf16.msra.mxu1 %v6655_v11  ;;  %5370 = vmatprep.subr.bf16.mxu0 %v6661_v12  ;;  %v6212_v11 = vld [vmem:[%s8233_s0 + $0x210] ss:$16 sps:$4 sm:$0xff]   ;;  %v6213_v12 = vld [vmem:[%s8233_s0 + $0x218] ss:$16 sps:$4 sm:$0xff]  }
  0x97   :  { %5464 = vmatprep.subr.bf16.mxu1 %v6667_v13  ;;  %v6214_v13 = vld [vmem:[%s8233_s0 + $0x234] ss:$16 sps:$4 sm:$0xff]  }
  0x99   :  { %5371 = vmatpush3.bf16.msra.mxu0 %v6673_v14  ;;  %v6216_v14 = vld [vmem:[%s8233_s0 + $0x23c] ss:$16 sps:$4 sm:$0xff]  }
  0x9a   :  { %5465 = vmatpush3.bf16.msra.mxu1 %v6679_v15  ;;  %5372 = vmatprep.subr.bf16.mxu0 %v6685_v16  ;;  %v6478_v15 = vld [vmem:[%s8234_s1 + $0x40] sm:$0xff]  }
  0x9b   :  { %1220 = vmatmul.mubr.bf16.gmra.mrb[60].mxu0 %v6200_v3  ;;  %5466 = vmatprep.subr.bf16.mxu1 %v6691_v17  ;;  %v6479_v16 = vld [vmem:[%s8234_s1 + $0xc0] sm:$0xff]  }
  0x9c   :  { %1356 = vmatmul.mubr.bf16.gmra.mrb[60].mxu1 %v6201_v4  ;;  %1227 = vmatprep.mubr.bf16.mxu0 %v6202_v5  ;;  %v6218_v17 = vld [vmem:[%s8233_s0 + $0x230] ss:$16 sps:$4 sm:$0xff]  }
  0x9d   :  { %1363 = vmatprep.mubr.bf16.mxu1 %v6204_v6  ;;  %5373 = vmatpush3.bf16.msra.mxu0 %v6697_v18  ;;  %v6219_v18 = vld [vmem:[%s8233_s0 + $0x238] ss:$16 sps:$4 sm:$0xff]  }
  0x9e   :  { %5467 = vmatpush3.bf16.msra.mxu1 %v6703_v19  ;;  %5374 = vmatprep.subr.bf16.mxu0 %v6709_v20  ;;  %v6220_v19 = vld [vmem:[%s8233_s0 + $0x254] ss:$16 sps:$4 sm:$0xff]   ;;  %v6222_v20 = vld [vmem:[%s8233_s0 + $0x25c] ss:$16 sps:$4 sm:$0xff]  }
  0x9f   :  { %5468 = vmatprep.subr.bf16.mxu1 %v6715_v21  ;;  %v6224_v21 = vld [vmem:[%s8233_s0 + $0x250] ss:$16 sps:$4 sm:$0xff]  }
  0xa1   :  { %5375 = vmatpush3.bf16.msra.mxu0 %v6721_v22  ;;  %v6225_v22 = vld [vmem:[%s8233_s0 + $0x258] ss:$16 sps:$4 sm:$0xff]  }
  0xa2   :  { %5469 = vmatpush3.bf16.msra.mxu1 %v6727_v23  ;;  %5376 = vmatprep.subr.bf16.mxu0 %v6733_v24  ;;  %v6226_v23 = vld [vmem:[%s8233_s0 + $0x274] ss:$16 sps:$4 sm:$0xff]  }
  0xa3   :  { %1228 = vmatmul.mubr.bf16.gmra.mrb[64].mxu0 %v6206_v7  ;;  %5470 = vmatprep.subr.bf16.mxu1 %v6739_v25 }
  0xa4   :  { %1364 = vmatmul.mubr.bf16.gmra.mrb[64].mxu1 %v6207_v8  ;;  %1235 = vmatprep.mubr.bf16.mxu0 %v6208_v9 }
  0xa5   :  { %1371 = vmatprep.mubr.bf16.mxu1 %v6210_v10  ;;  %5377 = vmatpush3.bf16.msra.mxu0 %v6745_v26 }
  0xa6   :  { %5471 = vmatpush3.bf16.msra.mxu1 %v6751_v27  ;;  %5378 = vmatprep.subr.bf16.mxu0 %v6757_v28 }
  0xa7   :  { %5472 = vmatprep.subr.bf16.mxu1 %v6763_v29 }
  0xa9   :  { %5379 = vmatpush3.bf16.msra.mxu0 %v6769_v30 }
  0xaa   :  { %5473 = vmatpush3.bf16.msra.mxu1 %v6775_v31  ;;  %5552 = vmatprep.subr.bf16.mxu0 %v6478_v15 }
  0xab   :  { %1236 = vmatmul.mubr.bf16.gmra.mrb[68].mxu0 %v6212_v11  ;;  %5646 = vmatprep.subr.bf16.mxu1 %v6479_v16 }
  0xac   :  { %1372 = vmatmul.mubr.bf16.gmra.mrb[68].mxu1 %v6213_v12  ;;  %1243 = vmatprep.mubr.bf16.mxu0 %v6214_v13 }
  0xad   :  { %1379 = vmatprep.mubr.bf16.mxu1 %v6216_v14 }
  0xb3   :  { %1244 = vmatmul.mubr.bf16.gmra.mrb[72].mxu0 %v6218_v17 }
  0xb4   :  { %1380 = vmatmul.mubr.bf16.gmra.mrb[72].mxu1 %v6219_v18  ;;  %1251 = vmatprep.mubr.bf16.mxu0 %v6220_v19 }
  0xb5   :  { %1387 = vmatprep.mubr.bf16.mxu1 %v6222_v20 }
  0xb6   :  { %14 = vsyncpa [#allocation3], 0  ;;  %v6228_v24 = vld [vmem:[%s8233_s0 + $0x27c] ss:$16 sps:$4 sm:$0xff]   ;;  %v6230_v25 = vld [vmem:[%s8233_s0 + $0x270] ss:$16 sps:$4 sm:$0xff]  }
  0xb7   :  { %v6231_v26 = vld [vmem:[%s8233_s0 + $0x278] ss:$16 sps:$4 sm:$0xff]   ;;  %v6232_v27 = vld [vmem:[%s8233_s0 + $0x294] ss:$16 sps:$4 sm:$0xff]   ;;  %v6234_v28 = vld [vmem:[%s8233_s0 + $0x29c] ss:$16 sps:$4 sm:$0xff]  }
  0xb8   :  { %v6236_v29 = vld [vmem:[%s8233_s0 + $0x290] ss:$16 sps:$4 sm:$0xff]   ;;  %v6237_v30 = vld [vmem:[%s8233_s0 + $0x298] ss:$16 sps:$4 sm:$0xff]   ;;  %v6238_v31 = vld [vmem:[%s8233_s0 + $0x2b4] ss:$16 sps:$4 sm:$0xff]  }
  0xb9   :  { %v6240_v61 = vld [vmem:[%s8233_s0 + $0x2bc] ss:$16 sps:$4 sm:$0xff]   ;;  %v6242_v62 = vld [vmem:[%s8233_s0 + $0x2b0] ss:$16 sps:$4 sm:$0xff]   ;;  %v6243_v63 = vld [vmem:[%s8233_s0 + $0x2b8] ss:$16 sps:$4 sm:$0xff]  }
  0xba   :  { %v6244_v0 = vld [vmem:[%s8233_s0 + $0x2d4] ss:$16 sps:$4 sm:$0xff]   ;;  %v6246_v1 = vld [vmem:[%s8233_s0 + $0x2dc] ss:$16 sps:$4 sm:$0xff]   ;;  %v6248_v32 = vld [vmem:[%s8233_s0 + $0x2d0] ss:$16 sps:$4 sm:$0xff]  }
  0xbb   :  { %1252 = vmatmul.mubr.bf16.gmra.mrb[76].mxu0 %v6224_v21  ;;  %v6249_v33 = vld [vmem:[%s8233_s0 + $0x2d8] ss:$16 sps:$4 sm:$0xff]   ;;  %v6250_v34 = vld [vmem:[%s8233_s0 + $0x2f4] ss:$16 sps:$4 sm:$0xff]   ;;  %v6252_v35 = vld [vmem:[%s8233_s0 + $0x2fc] ss:$16 sps:$4 sm:$0xff]  }
  0xbc   :  { %1388 = vmatmul.mubr.bf16.gmra.mrb[76].mxu1 %v6225_v22  ;;  %1259 = vmatprep.mubr.bf16.mxu0 %v6226_v23  ;;  %v4635_v36 = vld [vmem:[%s8233_s0 + $0x310] sm:$0xff]  ;;  %v4636_v37 = vld [vmem:[%s8233_s0 + $0x318] sm:$0xff]  ;;  %v6480_v50 = vld [vmem:[%s8234_s1] sm:$0xff]   ;;  %vm6535_vm0 = vmmov 0   ;;  %vm2751_vm1 = vcmask 261120   ;;  %s6536_s18 = smov [#allocation2]  }
  0xbd   :  { %1395 = vmatprep.mubr.bf16.mxu1 %v6228_v24  ;;  %v6254_v38 = vld [vmem:[%s8233_s0 + $0x2f0] ss:$16 sps:$4 sm:$0xff]   ;;  %v6255_v39 = vld [vmem:[%s8233_s0 + $0x2f8] ss:$16 sps:$4 sm:$0xff]   ;;  %v4686_v40 = vcombine.high %v4635_v36, %v4635_v36  ;;  %v4688_v41 = vcombine.high %v4636_v37, %v4636_v37  ;;  %v4685_v42 = vcombine.low %v4635_v36, %v4635_v36  ;;  %v4687_v43 = vcombine.low %v4636_v37, %v4636_v37  ;;  %v6262_v44 = vld [vmem:[%s8233_s0 + $0x324] ss:$16 sps:$4 sm:$0xff]  }
  0xbe   :  { %v6265_v45 = vld [vmem:[%s8233_s0 + $0x32c] ss:$16 sps:$4 sm:$0xff]   ;;  %v6260_v46 = vld [vmem:[%s8233_s0 + $0x320] ss:$16 sps:$4 sm:$0xff]   ;;  %v6263_v47 = vld [vmem:[%s8233_s0 + $0x328] ss:$16 sps:$4 sm:$0xff]  }
  0xbf   :  { %v6266_v48 = vld [vmem:[%s8233_s0 + $0x344] ss:$16 sps:$4 sm:$0xff]   ;;  %v6268_v49 = vld [vmem:[%s8233_s0 + $0x34c] ss:$16 sps:$4 sm:$0xff]   ;;  %v6270_v56 = vld [vmem:[%s8233_s0 + $0x340] ss:$16 sps:$4 sm:$0xff]  }
  0xc0   :  { %v6481_v51 = vld [vmem:[%s8234_s1 + $0x80] sm:$0xff]   ;;  %v6482_v53 = vld [vmem:[%s8234_s1 + $0x48] sm:$0xff]   ;;  %v6486_v10 = vld [vmem:[%s8234_s1 + $0x50] sm:$0xff]   ;;  %s4495_s19 = sshll.u32 %s6536_s18, 4  ;;  %vm4487_vm2 = vcmask 80896   ;;  %s4496_s19 = int_to_ptr.vmem [resolvable:$true] %s4495_s19 }
  0xc1   :  { %v6483_v57 = vld [vmem:[%s8234_s1 + $0xc8] sm:$0xff]   ;;  %v6272_v4 = vld [vmem:[%s8233_s0 + $0x364] ss:$16 sps:$4 sm:$0xff]   ;;  %v6490_v20 = vld [vmem:[%s8234_s1 + $0x58] sm:$0xff]   ;;  %p6515_p1 = scmp.lt.s32.totalorder %s4496_s19, %s4496_s19 }
  0xc2   :  { %v6271_v2 = vld [vmem:[%s8233_s0 + $0x348] ss:$16 sps:$4 sm:$0xff]   ;;  %v6274_v9 = vld [vmem:[%s8233_s0 + $0x36c] ss:$16 sps:$4 sm:$0xff]   ;;  %v6487_v13 = vld [vmem:[%s8234_s1 + $0xd0] sm:$0xff]  }
  0xc3   :  { %1260 = vmatmul.mubr.bf16.gmra.mrb[80].mxu0 %v6230_v25  ;;  %v6484_v3 = vld [vmem:[%s8234_s1 + $0x8] sm:$0xff]   ;;  %v6488_v17 = vld [vmem:[%s8234_s1 + $0x10] sm:$0xff]   ;;  %v6491_v24 = vld [vmem:[%s8234_s1 + $0xd8] sm:$0xff]  }
  0xc4   :  { %1396 = vmatmul.mubr.bf16.gmra.mrb[80].mxu1 %v6231_v26  ;;  %1267 = vmatprep.mubr.bf16.mxu0 %v6232_v27  ;;  %v6485_v8 = vld [vmem:[%s8234_s1 + $0x88] sm:$0xff]   ;;  %v6489_v19 = vld [vmem:[%s8234_s1 + $0x90] sm:$0xff]   ;;  %v6495_v36 = vld [vmem:[%s8234_s1 + $0xe0] sm:$0xff]  }
  0xc5   :  { %1403 = vmatprep.mubr.bf16.mxu1 %v6234_v28  ;;  %v6276_v23 = vld [vmem:[%s8233_s0 + $0x360] ss:$16 sps:$4 sm:$0xff]   ;;  %v6277_v28 = vld [vmem:[%s8233_s0 + $0x368] ss:$16 sps:$4 sm:$0xff]  }
  0xcb   :  { %1268 = vmatmul.mubr.bf16.gmra.mrb[84].mxu0 %v6236_v29  ;;  %v6278_v29 = vld [vmem:[%s8233_s0 + $0x384] ss:$16 sps:$4 sm:$0xff]  }
  0xcc   :  { %1404 = vmatmul.mubr.bf16.gmra.mrb[84].mxu1 %v6237_v30  ;;  %1275 = vmatprep.mubr.bf16.mxu0 %v6238_v31 }
  0xcd   :  { %1411 = vmatprep.mubr.bf16.mxu1 %v6240_v61 }
  0xd3   :  { %1276 = vmatmul.mubr.bf16.gmra.mrb[88].mxu0 %v6242_v62  ;;  %v6280_v62 = vld [vmem:[%s8233_s0 + $0x38c] ss:$16 sps:$4 sm:$0xff]  }
  0xd4   :  { %1412 = vmatmul.mubr.bf16.gmra.mrb[88].mxu1 %v6243_v63  ;;  %1283 = vmatprep.mubr.bf16.mxu0 %v6244_v0  ;;  %v6492_v63 = vld [vmem:[%s8234_s1 + $0x18] sm:$0xff]  }
  0xd5   :  { %1419 = vmatprep.mubr.bf16.mxu1 %v6246_v1 }
  0xdb   :  { %1284 = vmatmul.mubr.bf16.gmra.mrb[92].mxu0 %v6248_v32  ;;  %v6493_v32 = vld [vmem:[%s8234_s1 + $0x98] sm:$0xff]  }
  0xdc   :  { %1420 = vmatmul.mubr.bf16.gmra.mrb[92].mxu1 %v6249_v33  ;;  %1291 = vmatprep.mubr.bf16.mxu0 %v6250_v34  ;;  %v6494_v33 = vld [vmem:[%s8234_s1 + $0x60] sm:$0xff]  }
  0xdd   :  { %1427 = vmatprep.mubr.bf16.mxu1 %v6252_v35 }
  0xe3   :  { %1292 = vmatmul.mubr.bf16.gmra.mrb[96].mxu0 %v6254_v38  ;;  %v6496_v38 = vld [vmem:[%s8234_s1 + $0x20] sm:$0xff]  }
  0xe4   :  { %1428 = vmatmul.mubr.bf16.gmra.mrb[96].mxu1 %v6255_v39  ;;  %1299 = vmatprep.mubr.bf16.mxu0 %v4686_v40  ;;  %v6497_v40 = vld [vmem:[%s8234_s1 + $0xa0] sm:$0xff]  }
  0xe5   :  { %1435 = vmatprep.mubr.bf16.mxu1 %v4688_v41  ;;  %v6498_v41 = vld [vmem:[%s8234_s1 + $0x68] sm:$0xff]  }
  0xeb   :  { %1300 = vmatmul.mubr.bf16.gmra.mrb[100].mxu0 %v4685_v42 }
  0xec   :  { %1436 = vmatmul.mubr.bf16.gmra.mrb[100].mxu1 %v4687_v43  ;;  %1805 = vmatprep.mubr.bf16.mxu0 %v6262_v44  ;;  %v6282_v44 = vld [vmem:[%s8233_s0 + $0x380] ss:$16 sps:$4 sm:$0xff]  }
  0xed   :  { %1941 = vmatprep.mubr.bf16.mxu1 %v6265_v45  ;;  %v6499_v45 = vld [vmem:[%s8234_s1 + $0xe8] sm:$0xff]  }
  0xf3   :  { %1806 = vmatmul.mubr.bf16.vlgmr.msra.gmra.mrb[104].mxu0 %v6260_v46 }
  0xf4   :  { %1942 = vmatmul.mubr.bf16.vlgmr.msra.gmra.mrb[104].mxu1 %v6263_v47  ;;  %5553 = vmatpush3.bf16.msra.mxu0 %v6480_v50  ;;  %v6284_v50 = vld [vmem:[%s8233_s0 + $0x3a4] ss:$16 sps:$4 sm:$0xff]  }
  0xf5   :  { %5647 = vmatpush3.bf16.msra.mxu1 %v6481_v51  ;;  %1813 = vmatprep.mubr.bf16.mxu0 %v6266_v48 }
  0xf6   :  { %v5004_v52 = vpop.f32.mrb[0].mxu0  ;;  %1949 = vmatprep.mubr.bf16.mxu1 %v6268_v49  ;;  %5554 = vmatprep.subr.bf16.mxu0 %v6482_v53  ;;  %v6283_v49 = vld [vmem:[%s8233_s0 + $0x388] ss:$16 sps:$4 sm:$0xff]  }
  0xf7   :  { %v5098_v54 = vpop.f32.mrb[0].mxu1  ;;  %v5005_v55 = vpop.f32.mrb[1].mxu0  ;;  %5648 = vmatprep.subr.bf16.mxu1 %v6483_v57 }
  0xf8   :  { %v5006_v58 = vadd.f32 %v5005_v55, %v5004_v52  ;;  %v5099_v59 = vpop.f32.mrb[1].mxu1  ;;  %v5007_v60 = vpop.f32.mrb[2].mxu0  ;;  %5555 = vmatpush3.bf16.msra.mxu0 %v6484_v3  ;;  %v6500_v55 = vld [vmem:[%s8234_s1 + $0x28] sm:$0xff]   ;;  %v6503_v3 = vld [vmem:[%s8234_s1 + $0xf0] sm:$0xff]  }
  0xf9   :  { %v5100_v5 = vadd.f32 %v5099_v59, %v5098_v54  ;;  %v5101_v6 = vpop.f32.mrb[2].mxu1  ;;  %v5008_v7 = vpop.f32.mrb[3].mxu0  ;;  %5649 = vmatpush3.bf16.msra.mxu1 %v6485_v8  ;;  %5556 = vmatprep.subr.bf16.mxu0 %v6486_v10  ;;  %v6286_v54 = vld [vmem:[%s8233_s0 + $0x3ac] ss:$16 sps:$4 sm:$0xff]   ;;  %v6502_v59 = vld [vmem:[%s8234_s1 + $0x70] sm:$0xff]  }
  0xfa   :  { %v5009_v11 = vadd.f32 %v5008_v7, %v5007_v60  ;;  %v5102_v12 = vpop.f32.mrb[3].mxu1  ;;  %5650 = vmatprep.subr.bf16.mxu1 %v6487_v13  ;;  %v6505_v7 = vld [vmem:[%s8234_s1 + $0xb0] sm:$0xff]   ;;  %v6506_v8 = vld [vmem:[%s8234_s1 + $0x78] sm:$0xff]  }
  0xfb   :  { %v7203_v14 = vadd.f32 %v5100_v5, %v5006_v58  ;;  %v5103_v15 = vadd.f32 %v5102_v12, %v5101_v6  ;;  %1814 = vmatmul.mubr.bf16.gmra.mrb[108].mxu0 %v6270_v56  ;;  %v6501_v58 = vld [vmem:[%s8234_s1 + $0xa8] sm:$0xff]   ;;  %v6504_v5 = vld [vmem:[%s8234_s1 + $0x30] sm:$0xff]   ;;  %v6507_v12 = vld [vmem:[%s8234_s1 + $0xf8] sm:$0xff]  }
  0xfc   :  { %1950 = vmatmul.mubr.bf16.gmra.mrb[108].mxu1 %v6271_v2  ;;  %1821 = vmatprep.mubr.bf16.mxu0 %v6272_v4 }
  0xfd   :  { %v7205_v16 = vadd.f32 %v5103_v15, %v5009_v11  ;;  %1957 = vmatprep.mubr.bf16.mxu1 %v6274_v9  ;;  %5557 = vmatpush3.bf16.msra.mxu0 %v6488_v17  ;;  %v6288_v11 = vld [vmem:[%s8233_s0 + $0x3a0] ss:$16 sps:$4 sm:$0xff]  }
  0xfe   :  { %v5010_v18 = vpop.f32.mrb[4].mxu0  ;;  %5651 = vmatpush3.bf16.msra.mxu1 %v6489_v19  ;;  %5558 = vmatprep.subr.bf16.mxu0 %v6490_v20  ;;  %v6290_v19 = vld [vmem:[%s8233_s0 + $0x3c4] ss:$16 sps:$4 sm:$0xff]  }
  0xff   :  { %v5104_v21 = vpop.f32.mrb[4].mxu1  ;;  %v5011_v22 = vpop.f32.mrb[5].mxu0  ;;  %5652 = vmatprep.subr.bf16.mxu1 %v6491_v24  ;;  %v6508_v24 = vld [vmem:[%s8234_s1 + $0x38] sm:$0xff]  }
 0x100   :  { %v5012_v25 = vadd.f32 %v5011_v22, %v5010_v18  ;;  %v5105_v26 = vpop.f32.mrb[5].mxu1  ;;  %v5013_v27 = vpop.f32.mrb[6].mxu0  ;;  %v6289_v18 = vld [vmem:[%s8233_s0 + $0x3a8] ss:$16 sps:$4 sm:$0xff]  }
 0x101   :  { %v5106_v30 = vadd.f32 %v5105_v26, %v5104_v21  ;;  %v5107_v31 = vpop.f32.mrb[6].mxu1  ;;  %v5014_v61 = vpop.f32.mrb[7].mxu0  ;;  %5559 = vmatpush3.bf16.msra.mxu0 %v6492_v63  ;;  %v6294_v63 = vld [vmem:[%s8233_s0 + $0x3c0] ss:$16 sps:$4 sm:$0xff]  }
 0x102   :  { %v5015_v0 = vadd.f32 %v5014_v61, %v5013_v27  ;;  %v5108_v1 = vpop.f32.mrb[7].mxu1  ;;  %5653 = vmatpush3.bf16.msra.mxu1 %v6493_v32  ;;  %5560 = vmatprep.subr.bf16.mxu0 %v6494_v33  ;;  %v6509_v27 = vld [vmem:[%s8234_s1 + $0xb8] sm:$0xff]  }
 0x103   :  { %v7240_v34 = vadd.f32 %v5106_v30, %v5012_v25  ;;  %v5109_v35 = vadd.f32 %v5108_v1, %v5107_v31  ;;  %1822 = vmatmul.mubr.bf16.gmra.mrb[112].mxu0 %v6276_v23  ;;  %5654 = vmatprep.subr.bf16.mxu1 %v6495_v36  ;;  %v6292_v23 = vld [vmem:[%s8233_s0 + $0x3cc] ss:$16 sps:$4 sm:$0xff]   ;;  %v6295_v33 = vld [vmem:[%s8233_s0 + $0x3c8] ss:$16 sps:$4 sm:$0xff]  }
 0x104   :  { %1958 = vmatmul.mubr.bf16.gmra.mrb[112].mxu1 %v6277_v28  ;;  %1829 = vmatprep.mubr.bf16.mxu0 %v6278_v29 }
 0x105   :  { %v7245_v37 = vadd.f32 %v5109_v35, %v5015_v0  ;;  %1965 = vmatprep.mubr.bf16.mxu1 %v6280_v62  ;;  %5561 = vmatpush3.bf16.msra.mxu0 %v6496_v38  ;;  %v6296_v35 = vld [vmem:[%s8233_s0 + $0x3e4] ss:$16 sps:$4 sm:$0xff]  }
 0x106   :  { %v5016_v39 = vpop.f32.mrb[8].mxu0  ;;  %5655 = vmatpush3.bf16.msra.mxu1 %v6497_v40  ;;  %5562 = vmatprep.subr.bf16.mxu0 %v6498_v41  ;;  %v6298_v40 = vld [vmem:[%s8233_s0 + $0x3ec] ss:$16 sps:$4 sm:$0xff]  }
 0x107   :  { %v5110_v42 = vpop.f32.mrb[8].mxu1  ;;  %v5017_v43 = vpop.f32.mrb[9].mxu0  ;;  %5656 = vmatprep.subr.bf16.mxu1 %v6499_v45 }
 0x108   :  { %v5018_v46 = vadd.f32 %v5017_v43, %v5016_v39  ;;  %v5111_v47 = vpop.f32.mrb[9].mxu1  ;;  %v5019_v48 = vpop.f32.mrb[10].mxu0 }
 0x109   :  { %v5112_v51 = vadd.f32 %v5111_v47, %v5110_v42  ;;  %v5113_v52 = vpop.f32.mrb[10].mxu1  ;;  %v5020_v53 = vpop.f32.mrb[11].mxu0  ;;  %5563 = vmatpush3.bf16.msra.mxu0 %v6500_v55 }
 0x10a   :  { %v5021_v56 = vadd.f32 %v5020_v53, %v5019_v48  ;;  %v5114_v57 = vpop.f32.mrb[11].mxu1  ;;  %5657 = vmatpush3.bf16.msra.mxu1 %v6501_v58  ;;  %5564 = vmatprep.subr.bf16.mxu0 %v6502_v59  ;;  %v6301_v53 = vld [vmem:[%s8233_s0 + $0x3e8] ss:$16 sps:$4 sm:$0xff]   ;;  %v6304_v58 = vld [vmem:[%s8233_s0 + $0x40c] ss:$16 sps:$4 sm:$0xff]  }
 0x10b   :  { %v7280_v60 = vadd.f32 %v5112_v51, %v5018_v46  ;;  %v5115_v2 = vadd.f32 %v5114_v57, %v5113_v52  ;;  %1830 = vmatmul.mubr.bf16.gmra.mrb[116].mxu0 %v6282_v44  ;;  %5658 = vmatprep.subr.bf16.mxu1 %v6503_v3 }
 0x10c   :  { %1966 = vmatmul.mubr.bf16.gmra.mrb[116].mxu1 %v6283_v49  ;;  %1837 = vmatprep.mubr.bf16.mxu0 %v6284_v50  ;;  %v6300_v49 = vld [vmem:[%s8233_s0 + $0x3e0] ss:$16 sps:$4 sm:$0xff]  }
 0x10d   :  { %v7285_v4 = vadd.f32 %v5115_v2, %v5021_v56  ;;  %1973 = vmatprep.mubr.bf16.mxu1 %v6286_v54  ;;  %5565 = vmatpush3.bf16.msra.mxu0 %v6504_v5  ;;  %v6302_v54 = vld [vmem:[%s8233_s0 + $0x404] ss:$16 sps:$4 sm:$0xff]  }
 0x10e   :  { %v5022_v6 = vpop.f32.mrb[12].mxu0  ;;  %5659 = vmatpush3.bf16.msra.mxu1 %v6505_v7  ;;  %5566 = vmatprep.subr.bf16.mxu0 %v6506_v8 }
 0x10f   :  { %v5116_v9 = vpop.f32.mrb[12].mxu1  ;;  %v5023_v10 = vpop.f32.mrb[13].mxu0  ;;  %5660 = vmatprep.subr.bf16.mxu1 %v6507_v12 }
 0x110   :  { %v5024_v13 = vadd.f32 %v5023_v10, %v5022_v6  ;;  %v5117_v15 = vpop.f32.mrb[13].mxu1  ;;  %v5025_v17 = vpop.f32.mrb[14].mxu0  ;;  %v6306_v10 = vld [vmem:[%s8233_s0 + $0x400] ss:$16 sps:$4 sm:$0xff]  }
 0x111   :  { %v5118_v20 = vadd.f32 %v5117_v15, %v5116_v9  ;;  %v5119_v21 = vpop.f32.mrb[14].mxu1  ;;  %v5026_v22 = vpop.f32.mrb[15].mxu0  ;;  %5567 = vmatpush3.bf16.msra.mxu0 %v6508_v24  ;;  %v6307_v15 = vld [vmem:[%s8233_s0 + $0x408] ss:$16 sps:$4 sm:$0xff]  }
 0x112   :  { %v5027_v25 = vadd.f32 %v5026_v22, %v5025_v17  ;;  %v5120_v26 = vpop.f32.mrb[15].mxu1  ;;  %5661 = vmatpush3.bf16.msra.mxu1 %v6509_v27  ;;  %v6308_v17 = vld [vmem:[%s8233_s0 + $0x424] ss:$16 sps:$4 sm:$0xff]  }
 0x113   :  { %v7317_v28 = vadd.f32 %v5118_v20, %v5024_v13  ;;  %v5121_v29 = vadd.f32 %v5120_v26, %v5119_v21  ;;  %1838 = vmatmul.mubr.bf16.gmra.mrb[120].mxu0 %v6288_v11  ;;  %v6310_v21 = vld [vmem:[%s8233_s0 + $0x42c] ss:$16 sps:$4 sm:$0xff]  }
 0x114   :  { %1974 = vmatmul.mubr.bf16.gmra.mrb[120].mxu1 %v6289_v18  ;;  %1845 = vmatprep.mubr.bf16.mxu0 %v6290_v19 }
 0x115   :  { %v7319_v30 = vadd.f32 %v5121_v29, %v5027_v25  ;;  %1981 = vmatprep.mubr.bf16.mxu1 %v6292_v23 }
 0x116   :  { %v5028_v31 = vpop.f32.mrb[16].mxu0 }
 0x117   :  { %v5122_v61 = vpop.f32.mrb[16].mxu1  ;;  %v5029_v62 = vpop.f32.mrb[17].mxu0 }
 0x118   :  { %v5030_v0 = vadd.f32 %v5029_v62, %v5028_v31  ;;  %v5123_v1 = vpop.f32.mrb[17].mxu1  ;;  %v5031_v32 = vpop.f32.mrb[18].mxu0 }
 0x119   :  { %v5124_v36 = vadd.f32 %v5123_v1, %v5122_v61  ;;  %v5125_v38 = vpop.f32.mrb[18].mxu1  ;;  %v5032_v39 = vpop.f32.mrb[19].mxu0  ;;  %v6312_v61 = vld [vmem:[%s8233_s0 + $0x420] ss:$16 sps:$4 sm:$0xff]   ;;  %v6313_v1 = vld [vmem:[%s8233_s0 + $0x428] ss:$16 sps:$4 sm:$0xff]  }
 0x11a   :  { %v5033_v41 = vadd.f32 %v5032_v39, %v5031_v32  ;;  %v5126_v42 = vpop.f32.mrb[19].mxu1  ;;  %v6314_v32 = vld [vmem:[%s8233_s0 + $0x444] ss:$16 sps:$4 sm:$0xff]  }
 0x11b   :  { %v7333_v43 = vadd.f32 %v5124_v36, %v5030_v0  ;;  %v5127_v44 = vadd.f32 %v5126_v42, %v5125_v38  ;;  %1846 = vmatmul.mubr.bf16.gmra.mrb[124].mxu0 %v6294_v63  ;;  %v6316_v38 = vld [vmem:[%s8233_s0 + $0x44c] ss:$16 sps:$4 sm:$0xff]  }
 0x11c   :  { %1982 = vmatmul.mubr.bf16.gmra.mrb[124].mxu1 %v6295_v33  ;;  %1853 = vmatprep.mubr.bf16.mxu0 %v6296_v35 }
 0x11d   :  { %v7335_v45 = vadd.f32 %v5127_v44, %v5033_v41  ;;  %1989 = vmatprep.mubr.bf16.mxu1 %v6298_v40 }
 0x11e   :  { %v5034_v46 = vpop.f32.mrb[20].mxu0 }
 0x11f   :  { %v5128_v47 = vpop.f32.mrb[20].mxu1  ;;  %v5035_v48 = vpop.f32.mrb[21].mxu0 }
 0x120   :  { %v5036_v50 = vadd.f32 %v5035_v48, %v5034_v46  ;;  %v5129_v51 = vpop.f32.mrb[21].mxu1  ;;  %v5037_v52 = vpop.f32.mrb[22].mxu0 }
 0x121   :  { %v5130_v55 = vadd.f32 %v5129_v51, %v5128_v47  ;;  %v5131_v56 = vpop.f32.mrb[22].mxu1  ;;  %v5038_v57 = vpop.f32.mrb[23].mxu0 }
 0x122   :  { %v5039_v59 = vadd.f32 %v5038_v57, %v5037_v52  ;;  %v5132_v2 = vpop.f32.mrb[23].mxu1 }
 0x123   :  { %v7349_v3 = vadd.f32 %v5130_v55, %v5036_v50  ;;  %v5133_v5 = vadd.f32 %v5132_v2, %v5131_v56  ;;  %1854 = vmatmul.mubr.bf16.gmra.mrb[128].mxu0 %v6300_v49  ;;  %v6318_v49 = vld [vmem:[%s8233_s0 + $0x440] ss:$16 sps:$4 sm:$0xff]  }
 0x124   :  { %1990 = vmatmul.mubr.bf16.gmra.mrb[128].mxu1 %v6301_v53  ;;  %1861 = vmatprep.mubr.bf16.mxu0 %v6302_v54  ;;  %v6319_v53 = vld [vmem:[%s8233_s0 + $0x448] ss:$16 sps:$4 sm:$0xff]   ;;  %v6320_v54 = vld [vmem:[%s8233_s0 + $0x464] ss:$16 sps:$4 sm:$0xff]  }
 0x125   :  { %v7351_v6 = vadd.f32 %v5133_v5, %v5039_v59  ;;  %1997 = vmatprep.mubr.bf16.mxu1 %v6304_v58  ;;  %v6322_v58 = vld [vmem:[%s8233_s0 + $0x46c] ss:$16 sps:$4 sm:$0xff]  }
 0x126   :  { %v5040_v7 = vpop.f32.mrb[24].mxu0 }
 0x127   :  { %v5134_v8 = vpop.f32.mrb[24].mxu1  ;;  %v5041_v9 = vpop.f32.mrb[25].mxu0 }
 0x128   :  { %v5042_v11 = vadd.f32 %v5041_v9, %v5040_v7  ;;  %v5135_v12 = vpop.f32.mrb[25].mxu1  ;;  %v5043_v13 = vpop.f32.mrb[26].mxu0 }
 0x129   :  { %v5136_v18 = vadd.f32 %v5135_v12, %v5134_v8  ;;  %v5137_v19 = vpop.f32.mrb[26].mxu1  ;;  %v5044_v20 = vpop.f32.mrb[27].mxu0  ;;  %v6324_v12 = vld [vmem:[%s8233_s0 + $0x460] ss:$16 sps:$4 sm:$0xff]  }
 0x12a   :  { %v5045_v22 = vadd.f32 %v5044_v20, %v5043_v13  ;;  %v5138_v23 = vpop.f32.mrb[27].mxu1 }
 0x12b   :  { %v7365_v24 = vadd.f32 %v5136_v18, %v5042_v11  ;;  %v5139_v25 = vadd.f32 %v5138_v23, %v5137_v19  ;;  %1862 = vmatmul.mubr.bf16.gmra.mrb[132].mxu0 %v6306_v10  ;;  %v6325_v18 = vld [vmem:[%s8233_s0 + $0x468] ss:$16 sps:$4 sm:$0xff]   ;;  %v6326_v19 = vld [vmem:[%s8233_s0 + $0x484] ss:$16 sps:$4 sm:$0xff]   ;;  %v6328_v23 = vld [vmem:[%s8233_s0 + $0x48c] ss:$16 sps:$4 sm:$0xff]  }
 0x12c   :  { %1998 = vmatmul.mubr.bf16.gmra.mrb[132].mxu1 %v6307_v15  ;;  %1869 = vmatprep.mubr.bf16.mxu0 %v6308_v17 }
 0x12d   :  { %v7367_v26 = vadd.f32 %v5139_v25, %v5045_v22  ;;  %2005 = vmatprep.mubr.bf16.mxu1 %v6310_v21 }
 0x12e   :  { %v5046_v27 = vpop.f32.mrb[28].mxu0 }
 0x12f   :  { %v5140_v29 = vpop.f32.mrb[28].mxu1  ;;  %v5047_v31 = vpop.f32.mrb[29].mxu0 }
 0x130   :  { %v5048_v62 = vadd.f32 %v5047_v31, %v5046_v27  ;;  %v5141_v63 = vpop.f32.mrb[29].mxu1  ;;  %v5049_v0 = vpop.f32.mrb[30].mxu0 }
 0x131   :  { %v5142_v33 = vadd.f32 %v5141_v63, %v5140_v29  ;;  %v5143_v35 = vpop.f32.mrb[30].mxu1  ;;  %v5050_v36 = vpop.f32.mrb[31].mxu0 }
 0x132   :  { %v5051_v39 = vadd.f32 %v5050_v36, %v5049_v0  ;;  %v5144_v40 = vpop.f32.mrb[31].mxu1  ;;  %v4738_v0 = vld [vmem:[%s8233_s0 + $0x4a8] sm:$0xff] }
 0x133   :  { %v7381_v41 = vadd.f32 %v5142_v33, %v5048_v62  ;;  %v5145_v42 = vadd.f32 %v5144_v40, %v5143_v35  ;;  %1870 = vmatmul.mubr.bf16.gmra.mrb[136].mxu0 %v6312_v61  ;;  %v4737_v62 = vld [vmem:[%s8233_s0 + $0x4a0] sm:$0xff] }
 0x134   :  { %2006 = vmatmul.mubr.bf16.gmra.mrb[136].mxu1 %v6313_v1  ;;  %1877 = vmatprep.mubr.bf16.mxu0 %v6314_v32  ;;  %v6330_v33 = vld [vmem:[%s8233_s0 + $0x480] ss:$16 sps:$4 sm:$0xff]   ;;  %v4788_v40 = vcombine.high %v4737_v62, %v4737_v62 }
 0x135   :  { %v7383_v44 = vadd.f32 %v5145_v42, %v5051_v39  ;;  %2013 = vmatprep.mubr.bf16.mxu1 %v6316_v38  ;;  %v6331_v39 = vld [vmem:[%s8233_s0 + $0x488] ss:$16 sps:$4 sm:$0xff]  }
 0x136   :  { %v5052_v46 = vpop.f32.mrb[32].mxu0 }
 0x137   :  { %v5146_v47 = vpop.f32.mrb[32].mxu1  ;;  %v5053_v48 = vpop.f32.mrb[33].mxu0 }
 0x138   :  { %v5054_v50 = vadd.f32 %v5053_v48, %v5052_v46  ;;  %v5147_v51 = vpop.f32.mrb[33].mxu1  ;;  %v5055_v52 = vpop.f32.mrb[34].mxu0  ;;  %v4790_v48 = vcombine.high %v4738_v0, %v4738_v0 }
 0x139   :  { %v5148_v55 = vadd.f32 %v5147_v51, %v5146_v47  ;;  %v5149_v56 = vpop.f32.mrb[34].mxu1  ;;  %v5056_v57 = vpop.f32.mrb[35].mxu0 }
 0x13a   :  { %v5057_v59 = vadd.f32 %v5056_v57, %v5055_v52  ;;  %v5150_v2 = vpop.f32.mrb[35].mxu1  ;;  %v4787_v57 = vcombine.low %v4737_v62, %v4737_v62 }
 0x13b   :  { %v7397_v5 = vadd.f32 %v5148_v55, %v5054_v50  ;;  %v5151_v7 = vadd.f32 %v5150_v2, %v5149_v56  ;;  %1878 = vmatmul.mubr.bf16.gmra.mrb[140].mxu0 %v6318_v49 }
 0x13c   :  { %2014 = vmatmul.mubr.bf16.gmra.mrb[140].mxu1 %v6319_v53  ;;  %1885 = vmatprep.mubr.bf16.mxu0 %v6320_v54 }
 0x13d   :  { %v7399_v8 = vadd.f32 %v5151_v7, %v5057_v59  ;;  %2021 = vmatprep.mubr.bf16.mxu1 %v6322_v58  ;;  %v4789_v7 = vcombine.low %v4738_v0, %v4738_v0  ;;  %v6342_v0 = vld [vmem:[%s8233_s0 + $0x4d4] ss:$16 sps:$4 sm:$0xff]  }
 0x13e   :  { %v5058_v9 = vpop.f32.mrb[36].mxu0 }
 0x13f   :  { %v5152_v10 = vpop.f32.mrb[36].mxu1  ;;  %v5059_v11 = vpop.f32.mrb[37].mxu0 }
 0x140   :  { %v5060_v13 = vadd.f32 %v5059_v11, %v5058_v9  ;;  %v5153_v15 = vpop.f32.mrb[37].mxu1  ;;  %v5061_v17 = vpop.f32.mrb[38].mxu0  ;;  %v6338_v9 = vld [vmem:[%s8233_s0 + $0x4b4] ss:$16 sps:$4 sm:$0xff]  }
 0x141   :  { %v5154_v20 = vadd.f32 %v5153_v15, %v5152_v10  ;;  %v5155_v21 = vpop.f32.mrb[38].mxu1  ;;  %v5062_v22 = vpop.f32.mrb[39].mxu0 }
 0x142   :  { %v5063_v25 = vadd.f32 %v5062_v22, %v5061_v17  ;;  %v5156_v27 = vpop.f32.mrb[39].mxu1 }
 0x143   :  { %v7413_v29 = vadd.f32 %v5154_v20, %v5060_v13  ;;  %v5157_v31 = vadd.f32 %v5156_v27, %v5155_v21  ;;  %1886 = vmatmul.mubr.bf16.gmra.mrb[144].mxu0 %v6324_v12  ;;  %v6341_v13 = vld [vmem:[%s8233_s0 + $0x4bc] ss:$16 sps:$4 sm:$0xff]  }
 0x144   :  { %2022 = vmatmul.mubr.bf16.gmra.mrb[144].mxu1 %v6325_v18  ;;  %1893 = vmatprep.mubr.bf16.mxu0 %v6326_v19 }
 0x145   :  { %v7415_v61 = vadd.f32 %v5157_v31, %v5063_v25  ;;  %2029 = vmatprep.mubr.bf16.mxu1 %v6328_v23  ;;  %v6336_v25 = vld [vmem:[%s8233_s0 + $0x4b0] ss:$16 sps:$4 sm:$0xff]  }
 0x146   :  { %v5064_v63 = vpop.f32.mrb[40].mxu0 }
 0x147   :  { %8251 = vst [vmem:[#allocation5_spill] sm:$0xff] %v7415_v61  ;;  %v5158_v1 = vpop.f32.mrb[40].mxu1  ;;  %v5065_v32 = vpop.f32.mrb[41].mxu0 }
 0x148   :  { %v5066_v35 = vadd.f32 %v5065_v32, %v5064_v63  ;;  %v5159_v36 = vpop.f32.mrb[41].mxu1  ;;  %v5067_v38 = vpop.f32.mrb[42].mxu0  ;;  %v6339_v63 = vld [vmem:[%s8233_s0 + $0x4b8] ss:$16 sps:$4 sm:$0xff]  }
 0x149   :  { %v5160_v42 = vadd.f32 %v5159_v36, %v5158_v1  ;;  %v5161_v46 = vpop.f32.mrb[42].mxu1  ;;  %v5068_v47 = vpop.f32.mrb[43].mxu0  ;;  %v8243_v1 = vmov 0.0   ;;  %v6344_v36 = vld [vmem:[%s8233_s0 + $0x4dc] ss:$16 sps:$4 sm:$0xff]  }
 0x14a   :  { %v5069_v49 = vadd.f32 %v5068_v47, %v5067_v38  ;;  %v5162_v50 = vpop.f32.mrb[43].mxu1  ;;  %5833 = vmatprep.subr.bf16.mxu0 %v8243_v1  ;;  %5841 = vmatprep.subr.bf16.mxu1 %v8243_v1 }
 0x14b   :  { %v7429_v51 = vadd.f32 %v5160_v42, %v5066_v35  ;;  %v5163_v52 = vadd.f32 %v5162_v50, %v5161_v46  ;;  %1894 = vmatmul.mubr.bf16.gmra.mrb[148].mxu0 %v6330_v33 }
 0x14c   :  { %2030 = vmatmul.mubr.bf16.gmra.mrb[148].mxu1 %v6331_v39  ;;  %1901 = vmatprep.mubr.bf16.mxu0 %v4788_v40  ;;  %v6412_v40 = vld [vmem:[%s8236_s3 + $0x10] sm:$0xff]  }
 0x14d   :  { %v7431_v53 = vadd.f32 %v5163_v52, %v5069_v49  ;;  %2037 = vmatprep.mubr.bf16.mxu1 %v4790_v48  ;;  %v6346_v48 = vld [vmem:[%s8233_s0 + $0x4d0] ss:$16 sps:$4 sm:$0xff]  }
 0x14e   :  { %v5070_v54 = vpop.f32.mrb[44].mxu0  ;;  %v6413_v49 = vld [vmem:[%s8236_s3] sm:$0xff]  }
 0x14f   :  { %v5164_v55 = vpop.f32.mrb[44].mxu1  ;;  %v5071_v56 = vpop.f32.mrb[45].mxu0 }
 0x150   :  { %v5072_v58 = vadd.f32 %v5071_v56, %v5070_v54  ;;  %v5165_v59 = vpop.f32.mrb[45].mxu1  ;;  %v5073_v2 = vpop.f32.mrb[46].mxu0  ;;  %v6348_v56 = vld [vmem:[%s8233_s0 + $0x4f4] ss:$16 sps:$4 sm:$0xff]  }
 0x151   :  { %v5166_v10 = vadd.f32 %v5165_v59, %v5164_v55  ;;  %v5167_v11 = vpop.f32.mrb[46].mxu1  ;;  %v5074_v12 = vpop.f32.mrb[47].mxu0  ;;  %v6347_v55 = vld [vmem:[%s8233_s0 + $0x4d8] ss:$16 sps:$4 sm:$0xff]  }
 0x152   :  { %v5075_v15 = vadd.f32 %v5074_v12, %v5073_v2  ;;  %v5168_v17 = vpop.f32.mrb[47].mxu1  ;;  %v6350_v2 = vld [vmem:[%s8233_s0 + $0x4fc] ss:$16 sps:$4 sm:$0xff]  }
 0x153   :  { %v7439_v18 = vadd.f32 %v5166_v10, %v5072_v58  ;;  %v5169_v19 = vadd.f32 %v5168_v17, %v5167_v11  ;;  %1902 = vmatmul.mubr.bf16.gmra.mrb[152].mxu0 %v4787_v57 }
 0x154   :  { %2038 = vmatmul.mubr.bf16.gmra.mrb[152].mxu1 %v4789_v7  ;;  %2407 = vmatprep.mubr.bf16.mxu0 %v6338_v9 }
 0x155   :  { %v7441_v20 = vadd.f32 %v5169_v19, %v5075_v15  ;;  %2543 = vmatprep.mubr.bf16.mxu1 %v6341_v13 }
 0x156   :  { %v5076_v21 = vpop.f32.mrb[48].mxu0 }
 0x157   :  { %8252 = vst [vmem:[#allocation6_spill] sm:$0xff] %v7441_v20  ;;  %v5170_v22 = vpop.f32.mrb[48].mxu1  ;;  %v5077_v23 = vpop.f32.mrb[49].mxu0 }
 0x158   :  { %v5078_v27 = vadd.f32 %v5077_v23, %v5076_v21  ;;  %v5171_v31 = vpop.f32.mrb[49].mxu1  ;;  %v5079_v62 = vpop.f32.mrb[50].mxu0 }
 0x159   :  { %v5172_v32 = vadd.f32 %v5171_v31, %v5170_v22  ;;  %v5173_v33 = vpop.f32.mrb[50].mxu1  ;;  %v5080_v35 = vpop.f32.mrb[51].mxu0  ;;  %v6352_v22 = vld [vmem:[%s8233_s0 + $0x4f0] ss:$16 sps:$4 sm:$0xff]   ;;  %v6353_v31 = vld [vmem:[%s8233_s0 + $0x4f8] ss:$16 sps:$4 sm:$0xff]  }
 0x15a   :  { %v5174_v38 = vpop.f32.mrb[51].mxu1  ;;  %v6354_v62 = vld [vmem:[%s8233_s0 + $0x514] ss:$16 sps:$4 sm:$0xff]   ;;  %v6356_v33 = vld [vmem:[%s8233_s0 + $0x51c] ss:$16 sps:$4 sm:$0xff]  }
 0x15b   :  { %v7457_v39 = vadd.f32 %v5172_v32, %v5078_v27  ;;  %2408 = vmatmul.mubr.bf16.vlgmr.msra.gmra.mrb[156].mxu0 %v6336_v25 }
 0x15c   :  { %2544 = vmatmul.mubr.bf16.vlgmr.msra.gmra.mrb[156].mxu1 %v6339_v63  ;;  %2415 = vmatprep.mubr.bf16.mxu0 %v6342_v0 }
 0x15d   :  { %2551 = vmatprep.mubr.bf16.mxu1 %v6344_v36  ;;  %5834 = vmatpush3.bf16.msra.mxu0 %v6412_v40 }
 0x15e   :  { %v5192_v42 = vpop.f32.mrb[52].mxu0  ;;  %5835 = vmatprep.subr.bf16.mxu0 %v8243_v1  ;;  %5842 = vmatpush3.bf16.msra.mxu1 %v6413_v49 }
 0x15f   :  { %v5286_v46 = vpop.f32.mrb[52].mxu1  ;;  %v5193_v47 = vpop.f32.mrb[53].mxu0  ;;  %5843 = vmatprep.subr.bf16.mxu1 %v8243_v1 }
 0x160   :  { %v5194_v50 = vadd.f32 %v5193_v47, %v5192_v42  ;;  %v5287_v52 = vpop.f32.mrb[53].mxu1  ;;  %v5195_v54 = vpop.f32.mrb[54].mxu0 }
 0x161   :  { %v5288_v57 = vadd.f32 %v5287_v52, %v5286_v46  ;;  %v5289_v58 = vpop.f32.mrb[54].mxu1  ;;  %v5196_v59 = vpop.f32.mrb[55].mxu0  ;;  %v6358_v52 = vld [vmem:[%s8233_s0 + $0x510] ss:$16 sps:$4 sm:$0xff]  }
 0x162   :  { %v5197_v7 = vadd.f32 %v5196_v59, %v5195_v54  ;;  %v5290_v9 = vpop.f32.mrb[55].mxu1 }
 0x163   :  { %v7479_v10 = vadd.f32 %v5288_v57, %v5194_v50  ;;  %v5291_v11 = vadd.f32 %v5290_v9, %v5289_v58  ;;  %2416 = vmatmul.mubr.bf16.gmra.mrb[160].mxu0 %v6346_v48  ;;  %v6359_v57 = vld [vmem:[%s8233_s0 + $0x518] ss:$16 sps:$4 sm:$0xff]   ;;  %v6360_v58 = vld [vmem:[%s8233_s0 + $0x534] ss:$16 sps:$4 sm:$0xff]   ;;  %v6362_v9 = vld [vmem:[%s8233_s0 + $0x53c] ss:$16 sps:$4 sm:$0xff]  }
 0x164   :  { %2552 = vmatmul.mubr.bf16.gmra.mrb[160].mxu1 %v6347_v55  ;;  %2423 = vmatprep.mubr.bf16.mxu0 %v6348_v56 }
 0x165   :  { %v7483_v13 = vadd.f32 %v5291_v11, %v5197_v7  ;;  %2559 = vmatprep.mubr.bf16.mxu1 %v6350_v2 }
 0x166   :  { %v5198_v15 = vpop.f32.mrb[56].mxu0 }
 0x167   :  { %v5292_v19 = vpop.f32.mrb[56].mxu1  ;;  %v5199_v21 = vpop.f32.mrb[57].mxu0 }
 0x168   :  { %v5200_v23 = vadd.f32 %v5199_v21, %v5198_v15  ;;  %v5293_v25 = vpop.f32.mrb[57].mxu1  ;;  %v5201_v27 = vpop.f32.mrb[58].mxu0 }
 0x169   :  { %v5294_v63 = vadd.f32 %v5293_v25, %v5292_v19  ;;  %v5295_v0 = vpop.f32.mrb[58].mxu1  ;;  %v5202_v32 = vpop.f32.mrb[59].mxu0 }
 0x16a   :  { %v5203_v35 = vadd.f32 %v5202_v32, %v5201_v27  ;;  %v5296_v36 = vpop.f32.mrb[59].mxu1 }
 0x16b   :  { %v7499_v38 = vadd.f32 %v5294_v63, %v5200_v23  ;;  %v5297_v40 = vadd.f32 %v5296_v36, %v5295_v0  ;;  %2424 = vmatmul.mubr.bf16.gmra.mrb[164].mxu0 %v6352_v22  ;;  %v6364_v63 = vld [vmem:[%s8233_s0 + $0x530] ss:$16 sps:$4 sm:$0xff]   ;;  %v6366_v36 = vld [vmem:[%s8233_s0 + $0x554] ss:$16 sps:$4 sm:$0xff]  }
 0x16c   :  { %2560 = vmatmul.mubr.bf16.gmra.mrb[164].mxu1 %v6353_v31  ;;  %2431 = vmatprep.mubr.bf16.mxu0 %v6354_v62 }
 0x16d   :  { %v7503_v46 = vadd.f32 %v5297_v40, %v5203_v35  ;;  %2567 = vmatprep.mubr.bf16.mxu1 %v6356_v33  ;;  %v6365_v35 = vld [vmem:[%s8233_s0 + $0x538] ss:$16 sps:$4 sm:$0xff]  }
 0x16e   :  { %v5204_v47 = vpop.f32.mrb[60].mxu0 }
 0x16f   :  { %v5298_v49 = vpop.f32.mrb[60].mxu1  ;;  %v5205_v50 = vpop.f32.mrb[61].mxu0 }
 0x170   :  { %v5206_v54 = vadd.f32 %v5205_v50, %v5204_v47  ;;  %v5299_v55 = vpop.f32.mrb[61].mxu1  ;;  %v5207_v56 = vpop.f32.mrb[62].mxu0  ;;  %v6368_v50 = vld [vmem:[%s8233_s0 + $0x55c] ss:$16 sps:$4 sm:$0xff]  }
 0x171   :  { %v5300_v59 = vadd.f32 %v5299_v55, %v5298_v49  ;;  %v5301_v2 = vpop.f32.mrb[62].mxu1  ;;  %v5208_v7 = vpop.f32.mrb[63].mxu0 }
 0x172   :  { %v5209_v11 = vadd.f32 %v5208_v7, %v5207_v56  ;;  %v5302_v15 = vpop.f32.mrb[63].mxu1 }
 0x173   :  { %v7519_v19 = vadd.f32 %v5300_v59, %v5206_v54  ;;  %v5303_v21 = vadd.f32 %v5302_v15, %v5301_v2  ;;  %2432 = vmatmul.mubr.bf16.gmra.mrb[168].mxu0 %v6358_v52 }
 0x174   :  { %2568 = vmatmul.mubr.bf16.gmra.mrb[168].mxu1 %v6359_v57  ;;  %2439 = vmatprep.mubr.bf16.mxu0 %v6360_v58 }
 0x175   :  { %v7523_v23 = vadd.f32 %v5303_v21, %v5209_v11  ;;  %2575 = vmatprep.mubr.bf16.mxu1 %v6362_v9  ;;  %v6370_v11 = vld [vmem:[%s8233_s0 + $0x550] ss:$16 sps:$4 sm:$0xff]  }
 0x176   :  { %v5210_v25 = vpop.f32.mrb[64].mxu0 }
 0x177   :  { %v5304_v31 = vpop.f32.mrb[64].mxu1  ;;  %v5211_v62 = vpop.f32.mrb[65].mxu0 }
 0x178   :  { %v5212_v0 = vadd.f32 %v5211_v62, %v5210_v25  ;;  %v5305_v32 = vpop.f32.mrb[65].mxu1  ;;  %v5213_v33 = vpop.f32.mrb[66].mxu0  ;;  %v6372_v62 = vld [vmem:[%s8233_s0 + $0x574] ss:$16 sps:$4 sm:$0xff]  }
 0x179   :  { %v5306_v40 = vadd.f32 %v5305_v32, %v5304_v31  ;;  %v5307_v47 = vpop.f32.mrb[66].mxu1  ;;  %v5214_v49 = vpop.f32.mrb[67].mxu0  ;;  %v6371_v31 = vld [vmem:[%s8233_s0 + $0x558] ss:$16 sps:$4 sm:$0xff]  }
 0x17a   :  { %v5215_v52 = vadd.f32 %v5214_v49, %v5213_v33  ;;  %v5308_v54 = vpop.f32.mrb[67].mxu1  ;;  %v6374_v33 = vld [vmem:[%s8233_s0 + $0x57c] ss:$16 sps:$4 sm:$0xff]  }
 0x17b   :  { %v7539_v55 = vadd.f32 %v5306_v40, %v5212_v0  ;;  %v5309_v56 = vadd.f32 %v5308_v54, %v5307_v47  ;;  %2440 = vmatmul.mubr.bf16.gmra.mrb[172].mxu0 %v6364_v63 }
 0x17c   :  { %2576 = vmatmul.mubr.bf16.gmra.mrb[172].mxu1 %v6365_v35  ;;  %2447 = vmatprep.mubr.bf16.mxu0 %v6366_v36 }
 0x17d   :  { %v7543_v58 = vadd.f32 %v5309_v56, %v5215_v52  ;;  %2583 = vmatprep.mubr.bf16.mxu1 %v6368_v50 }
 0x17e   :  { %v5216_v59 = vpop.f32.mrb[68].mxu0 }
 0x17f   :  { %v5310_v7 = vpop.f32.mrb[68].mxu1  ;;  %v5217_v9 = vpop.f32.mrb[69].mxu0 }
 0x180   :  { %v5218_v15 = vadd.f32 %v5217_v9, %v5216_v59  ;;  %v5311_v21 = vpop.f32.mrb[69].mxu1  ;;  %v5219_v25 = vpop.f32.mrb[70].mxu0 }
 0x181   :  { %v5312_v63 = vadd.f32 %v5311_v21, %v5310_v7  ;;  %v5313_v0 = vpop.f32.mrb[70].mxu1  ;;  %v5220_v32 = vpop.f32.mrb[71].mxu0  ;;  %v6376_v7 = vld [vmem:[%s8233_s0 + $0x570] ss:$16 sps:$4 sm:$0xff]   ;;  %v6377_v21 = vld [vmem:[%s8233_s0 + $0x578] ss:$16 sps:$4 sm:$0xff]  }
 0x182   :  { %v5221_v35 = vadd.f32 %v5220_v32, %v5219_v25  ;;  %v5314_v36 = vpop.f32.mrb[71].mxu1  ;;  %v6378_v25 = vld [vmem:[%s8233_s0 + $0x594] ss:$16 sps:$4 sm:$0xff]  }
 0x183   :  { %v7559_v40 = vadd.f32 %v5312_v63, %v5218_v15  ;;  %v5315_v47 = vadd.f32 %v5314_v36, %v5313_v0  ;;  %2448 = vmatmul.mubr.bf16.gmra.mrb[176].mxu0 %v6370_v11  ;;  %v6380_v0 = vld [vmem:[%s8233_s0 + $0x59c] ss:$16 sps:$4 sm:$0xff]  }
 0x184   :  { %2584 = vmatmul.mubr.bf16.gmra.mrb[176].mxu1 %v6371_v31  ;;  %2455 = vmatprep.mubr.bf16.mxu0 %v6372_v62 }
 0x185   :  { %v7563_v50 = vadd.f32 %v5315_v47, %v5221_v35  ;;  %2591 = vmatprep.mubr.bf16.mxu1 %v6374_v33 }
 0x186   :  { %v5222_v52 = vpop.f32.mrb[72].mxu0 }
 0x187   :  { %v5316_v56 = vpop.f32.mrb[72].mxu1  ;;  %v5223_v59 = vpop.f32.mrb[73].mxu0 }
 0x188   :  { %v5224_v9 = vadd.f32 %v5223_v59, %v5222_v52  ;;  %v5317_v11 = vpop.f32.mrb[73].mxu1  ;;  %v5225_v15 = vpop.f32.mrb[74].mxu0 }
 0x189   :  { %v5318_v31 = vadd.f32 %v5317_v11, %v5316_v56  ;;  %v5319_v62 = vpop.f32.mrb[74].mxu1  ;;  %v5226_v63 = vpop.f32.mrb[75].mxu0 }
 0x18a   :  { %v5227_v32 = vadd.f32 %v5226_v63, %v5225_v15  ;;  %v5320_v33 = vpop.f32.mrb[75].mxu1 }
 0x18b   :  { %v7579_v35 = vadd.f32 %v5318_v31, %v5224_v9  ;;  %v5321_v36 = vadd.f32 %v5320_v33, %v5319_v62  ;;  %2456 = vmatmul.mubr.bf16.gmra.mrb[180].mxu0 %v6376_v7  ;;  %v6382_v9 = vld [vmem:[%s8233_s0 + $0x590] ss:$16 sps:$4 sm:$0xff]   ;;  %v6414_v7 = vld [vmem:[%s8236_s3 + $0x18] sm:$0xff]   ;;  %v6384_v62 = vld [vmem:[%s8233_s0 + $0x5b4] ss:$16 sps:$4 sm:$0xff]  }
 0x18c   :  { %2592 = vmatmul.mubr.bf16.gmra.mrb[180].mxu1 %v6377_v21  ;;  %2463 = vmatprep.mubr.bf16.mxu0 %v6378_v25  ;;  %v6383_v31 = vld [vmem:[%s8233_s0 + $0x598] ss:$16 sps:$4 sm:$0xff]   ;;  %v6386_v33 = vld [vmem:[%s8233_s0 + $0x5bc] ss:$16 sps:$4 sm:$0xff]  }
 0x18d   :  { %v7583_v52 = vadd.f32 %v5321_v36, %v5227_v32  ;;  %2599 = vmatprep.mubr.bf16.mxu1 %v6380_v0  ;;  %5836 = vmatpush3.bf16.msra.mxu0 %v6414_v7  ;;  %v6392_v7 = vld [vmem:[%s8233_s0 + $0x5dc] ss:$16 sps:$4 sm:$0xff]  }
 0x18e   :  { %v5228_v56 = vpop.f32.mrb[76].mxu0  ;;  %5849 = vmatprep.subr.bf16.mxu0 %v8243_v1 }
 0x18f   :  { %v5322_v11 = vpop.f32.mrb[76].mxu1  ;;  %v5229_v54 = vpop.f32.mrb[77].mxu0 }
 0x190   :  { %v5230_v15 = vadd.f32 %v5229_v54, %v5228_v56  ;;  %v5323_v21 = vpop.f32.mrb[77].mxu1  ;;  %v5231_v25 = vpop.f32.mrb[78].mxu0 }
 0x191   :  { %v5324_v63 = vadd.f32 %v5323_v21, %v5322_v11  ;;  %v5325_v0 = vpop.f32.mrb[78].mxu1  ;;  %v5232_v32 = vpop.f32.mrb[79].mxu0 }
 0x192   :  { %v5233_v36 = vadd.f32 %v5232_v32, %v5231_v25  ;;  %v5326_v54 = vpop.f32.mrb[79].mxu1 }
 0x193   :  { %v7603_v56 = vadd.f32 %v5324_v63, %v5230_v15  ;;  %v5327_v59 = vadd.f32 %v5326_v54, %v5325_v0  ;;  %2464 = vmatmul.mubr.bf16.gmra.mrb[184].mxu0 %v6382_v9  ;;  %v6388_v15 = vld [vmem:[%s8233_s0 + $0x5b0] ss:$16 sps:$4 sm:$0xff]   ;;  %v6415_v9 = vld [vmem:[%s8236_s3 + $0x8] sm:$0xff]   ;;  %v6390_v0 = vld [vmem:[%s8233_s0 + $0x5d4] ss:$16 sps:$4 sm:$0xff]  }
 0x194   :  { %2600 = vmatmul.mubr.bf16.gmra.mrb[184].mxu1 %v6383_v31  ;;  %2471 = vmatprep.mubr.bf16.mxu0 %v6384_v62 }
 0x195   :  { %v7607_v21 = vadd.f32 %v5327_v59, %v5233_v36  ;;  %2607 = vmatprep.mubr.bf16.mxu1 %v6386_v33  ;;  %v6389_v59 = vld [vmem:[%s8233_s0 + $0x5b8] ss:$16 sps:$4 sm:$0xff]   ;;  %5844 = vmatpush3.bf16.msra.mxu1 %v6415_v9 }
 0x196   :  { %v5234_v47 = vpop.f32.mrb[80].mxu0  ;;  %5857 = vmatprep.subr.bf16.mxu1 %v8243_v1 }
 0x197   :  { %v5328_v25 = vpop.f32.mrb[80].mxu1  ;;  %v5235_v32 = vpop.f32.mrb[81].mxu0 }
 0x198   :  { %v5236_v31 = vadd.f32 %v5235_v32, %v5234_v47  ;;  %v5329_v62 = vpop.f32.mrb[81].mxu1  ;;  %v5237_v63 = vpop.f32.mrb[82].mxu0 }
 0x199   :  { %v5330_v33 = vadd.f32 %v5329_v62, %v5328_v25  ;;  %v5331_v36 = vpop.f32.mrb[82].mxu1  ;;  %v5238_v54 = vpop.f32.mrb[83].mxu0 }
 0x19a   :  { %v5239_v11 = vadd.f32 %v5238_v54, %v5237_v63  ;;  %v5332_v47 = vpop.f32.mrb[83].mxu1 }
 0x19b   :  { %v7627_v32 = vadd.f32 %v5330_v33, %v5236_v31  ;;  %v5333_v49 = vadd.f32 %v5332_v47, %v5331_v36  ;;  %2472 = vmatmul.mubr.bf16.gmra.mrb[188].mxu0 %v6388_v15  ;;  %v6394_v31 = vld [vmem:[%s8233_s0 + $0x5d0] ss:$16 sps:$4 sm:$0xff]   ;;  %v6398_v47 = vld [vmem:[%s8233_s0 + $0x5fc] ss:$16 sps:$4 sm:$0xff]  }
 0x19c   :  { %2608 = vmatmul.mubr.bf16.gmra.mrb[188].mxu1 %v6389_v59  ;;  %2479 = vmatprep.mubr.bf16.mxu0 %v6390_v0  ;;  %v6395_v0 = vld [vmem:[%s8233_s0 + $0x5d8] ss:$16 sps:$4 sm:$0xff]  }
 0x19d   :  { %v7631_v62 = vadd.f32 %v5333_v49, %v5239_v11  ;;  %2615 = vmatprep.mubr.bf16.mxu1 %v6392_v7  ;;  %v6396_v49 = vld [vmem:[%s8233_s0 + $0x5f4] ss:$16 sps:$4 sm:$0xff]  }
 0x19e   :  { %v5240_v2 = vpop.f32.mrb[84].mxu0 }
 0x19f   :  { %v5334_v63 = vpop.f32.mrb[84].mxu1  ;;  %v5241_v54 = vpop.f32.mrb[85].mxu0 }
 0x1a0   :  { %v5242_v33 = vadd.f32 %v5241_v54, %v5240_v2  ;;  %v5335_v15 = vpop.f32.mrb[85].mxu1  ;;  %v5243_v59 = vpop.f32.mrb[86].mxu0 }
 0x1a1   :  { %v5336_v11 = vadd.f32 %v5335_v15, %v5334_v63  ;;  %v5337_v7 = vpop.f32.mrb[86].mxu1  ;;  %v5244_v36 = vpop.f32.mrb[87].mxu0 }
 0x1a2   :  { %v5245_v9 = vadd.f32 %v5244_v36, %v5243_v59  ;;  %v5338_v25 = vpop.f32.mrb[87].mxu1  ;;  %v6404_v36 = vld [vmem:[%s8233_s0 + $0x61c] ss:$16 sps:$4 sm:$0xff]  }
 0x1a3   :  { %v7647_v2 = vadd.f32 %v5336_v11, %v5242_v33  ;;  %v5339_v54 = vadd.f32 %v5338_v25, %v5337_v7  ;;  %2480 = vmatmul.mubr.bf16.gmra.mrb[192].mxu0 %v6394_v31  ;;  %v6400_v33 = vld [vmem:[%s8233_s0 + $0x5f0] ss:$16 sps:$4 sm:$0xff]  }
 0x1a4   :  { %2616 = vmatmul.mubr.bf16.gmra.mrb[192].mxu1 %v6395_v0  ;;  %2487 = vmatprep.mubr.bf16.mxu0 %v6396_v49  ;;  %v6401_v0 = vld [vmem:[%s8233_s0 + $0x5f8] ss:$16 sps:$4 sm:$0xff]  }
 0x1a5   :  { %v7651_v27 = vadd.f32 %v5339_v54, %v5245_v9  ;;  %2623 = vmatprep.mubr.bf16.mxu1 %v6398_v47  ;;  %v6402_v9 = vld [vmem:[%s8233_s0 + $0x614] ss:$16 sps:$4 sm:$0xff]  }
 0x1a6   :  { %v5246_v63 = vpop.f32.mrb[88].mxu0 }
 0x1a7   :  { %v5340_v22 = vpop.f32.mrb[88].mxu1  ;;  %v5247_v48 = vpop.f32.mrb[89].mxu0 }
 0x1a8   :  { %v5248_v25 = vadd.f32 %v5247_v48, %v5246_v63  ;;  %v5341_v31 = vpop.f32.mrb[89].mxu1  ;;  %v5249_v59 = vpop.f32.mrb[90].mxu0 }
 0x1a9   :  { %v5342_v49 = vadd.f32 %v5341_v31, %v5340_v22  ;;  %v5343_v11 = vpop.f32.mrb[90].mxu1  ;;  %v5250_v7 = vpop.f32.mrb[91].mxu0  ;;  %v4839_v22 = vld [vmem:[%s8233_s0 + $0x630] sm:$0xff] }
 0x1aa   :  { %v5251_v47 = vadd.f32 %v5250_v7, %v5249_v59  ;;  %v5344_v54 = vpop.f32.mrb[91].mxu1 }
 0x1ab   :  { %v7667_v48 = vadd.f32 %v5342_v49, %v5248_v25  ;;  %v5345_v63 = vadd.f32 %v5344_v54, %v5343_v11  ;;  %2488 = vmatmul.mubr.bf16.gmra.mrb[196].mxu0 %v6400_v33  ;;  %v4840_v25 = vld [vmem:[%s8233_s0 + $0x638] sm:$0xff] }
 0x1ac   :  { %2624 = vmatmul.mubr.bf16.gmra.mrb[196].mxu1 %v6401_v0  ;;  %2495 = vmatprep.mubr.bf16.mxu0 %v6402_v9  ;;  %v6406_v9 = vld [vmem:[%s8233_s0 + $0x610] ss:$16 sps:$4 sm:$0xff]   ;;  %v4892_v42 = vcombine.high %v4840_v25, %v4840_v25 }
 0x1ad   :  { %8253 = vst [vmem:[#allocation7_spill] sm:$0xff] %v7667_v48  ;;  %v7671_v57 = vadd.f32 %v5345_v63, %v5251_v47  ;;  %2631 = vmatprep.mubr.bf16.mxu1 %v6404_v36  ;;  %v6407_v36 = vld [vmem:[%s8233_s0 + $0x618] ss:$16 sps:$4 sm:$0xff]   ;;  %v4890_v47 = vcombine.high %v4839_v22, %v4839_v22 }
 0x1ae   :  { %v5252_v31 = vpop.f32.mrb[92].mxu0 }
 0x1af   :  { %8254 = vst [vmem:[#allocation8_spill] sm:$0xff] %v7671_v57  ;;  %v5346_v59 = vpop.f32.mrb[92].mxu1  ;;  %v5253_v0 = vpop.f32.mrb[93].mxu0 }
 0x1b0   :  { %v5254_v49 = vadd.f32 %v5253_v0, %v5252_v31  ;;  %v5347_v11 = vpop.f32.mrb[93].mxu1  ;;  %v5255_v7 = vpop.f32.mrb[94].mxu0 }
 0x1b1   :  { %v5348_v54 = vadd.f32 %v5347_v11, %v5346_v59  ;;  %v5349_v63 = vpop.f32.mrb[94].mxu1  ;;  %v5256_v15 = vpop.f32.mrb[95].mxu0 }
 0x1b2   :  { %v5257_v17 = vadd.f32 %v5256_v15, %v5255_v7  ;;  %v5350_v33 = vpop.f32.mrb[95].mxu1  ;;  %v4889_v15 = vcombine.low %v4839_v22, %v4839_v22 }
 0x1b3   :  { %v7687_v12 = vadd.f32 %v5348_v54, %v5254_v49  ;;  %v5351_v1 = vadd.f32 %v5350_v33, %v5349_v63  ;;  %2496 = vmatmul.mubr.bf16.gmra.mrb[200].mxu0 %v6406_v9  ;;  %v4891_v33 = vcombine.low %v4840_v25, %v4840_v25 }
 0x1b4   :  { %2632 = vmatmul.mubr.bf16.gmra.mrb[200].mxu1 %v6407_v36  ;;  %2503 = vmatprep.mubr.bf16.mxu0 %v4890_v47 }
 0x1b5   :  { %v7691_v0 = vadd.f32 %v5351_v1, %v5257_v17  ;;  %2639 = vmatprep.mubr.bf16.mxu1 %v4892_v42  ;;  %v8255_v17 = vmov 0.0  }
 0x1b6   :  { %v5258_v57 = vpop.f32.mrb[96].mxu0 }
 0x1b7   :  { %v5352_v11 = vpop.f32.mrb[96].mxu1  ;;  %v5259_v61 = vpop.f32.mrb[97].mxu0 }
 0x1b8   :  { %v5260_v7 = vadd.f32 %v5259_v61, %v5258_v57  ;;  %v5353_v49 = vpop.f32.mrb[97].mxu1  ;;  %v5261_v54 = vpop.f32.mrb[98].mxu0 }
 0x1b9   :  { %v5354_v9 = vadd.f32 %v5353_v49, %v5352_v11  ;;  %v5355_v36 = vpop.f32.mrb[98].mxu1  ;;  %v5262_v47 = vpop.f32.mrb[99].mxu0 }
 0x1ba   :  { %v5263_v63 = vadd.f32 %v5262_v47, %v5261_v54  ;;  %v5356_v48 = vpop.f32.mrb[99].mxu1 }
 0x1bb   :  { %v7695_v31 = vadd.f32 %v5354_v9, %v5260_v7  ;;  %v5357_v1 = vadd.f32 %v5356_v48, %v5355_v36  ;;  %2504 = vmatmul.mubr.bf16.gmra.mrb[204].mxu0 %v4889_v15 }
 0x1bc   :  { %2640 = vmatmul.mubr.bf16.gmra.mrb[204].mxu1 %v4891_v33  ;;  %5837 = vmatprep.mubr.msk.bf16.mxu0 %vm6535_vm0, %v8255_v17 }
 0x1bd   :  { %v7701_v42 = vadd.f32 %v5357_v1, %v5263_v63  ;;  %5845 = vmatprep.mubr.msk.bf16.mxu1 %vm6535_vm0, %v8255_v17 }
 0x1be   :  { %v5264_v57 = vpop.f32.mrb[100].mxu0 }
 0x1bf   :  { %8256 = vst [vmem:[#allocation9_spill] sm:$0xff] %v7701_v42  ;;  %v5358_v25 = vpop.f32.mrb[100].mxu1  ;;  %v5265_v48 = vpop.f32.mrb[101].mxu0 }
 0x1c0   :  { %v5266_v11 = vadd.f32 %v5265_v48, %v5264_v57  ;;  %v5359_v15 = vpop.f32.mrb[101].mxu1  ;;  %v5267_v7 = vpop.f32.mrb[102].mxu0 }
 0x1c1   :  { %v5360_v49 = vadd.f32 %v5359_v15, %v5358_v25  ;;  %v5361_v54 = vpop.f32.mrb[102].mxu1  ;;  %v5268_v33 = vpop.f32.mrb[103].mxu0 }
 0x1c2   :  { %v5362_v9 = vpop.f32.mrb[103].mxu1 }
 0x1c3   :  { %v7707_v36 = vadd.f32 %v5360_v49, %v5266_v11  ;;  %v8257_v11 = vmax.f32 %v7203_v14, %v7479_v10  ;;  %v8258_v9 = vmax.f32 %v7205_v16, %v7483_v13 }
 0x1c6   :  { %v5380_v63 = vpop.f32.mrb[104].mxu0 }
 0x1c7   :  { %v5474_v1 = vpop.f32.mrb[104].mxu1  ;;  %v5381_v61 = vpop.f32.mrb[105].mxu0 }
 0x1c8   :  { %v5382_v59 = vadd.f32 %v5381_v61, %v5380_v63  ;;  %v5475_v17 = vpop.f32.mrb[105].mxu1  ;;  %v5383_v22 = vpop.f32.mrb[106].mxu0 }
 0x1c9   :  { %v5476_v42 = vadd.f32 %v5475_v17, %v5474_v1  ;;  %v5477_v20 = vpop.f32.mrb[106].mxu1  ;;  %v5384_v57 = vpop.f32.mrb[107].mxu0 }
 0x1ca   :  { %v5385_v48 = vadd.f32 %v5384_v57, %v5383_v22  ;;  %v5478_v7 = vpop.f32.mrb[107].mxu1 }
 0x1cb   :  { %v1944_v25 = vadd.f32 %v5476_v42, %v5382_v59  ;;  %v5479_v15 = vadd.f32 %v5478_v7, %v5477_v20 }
 0x1cd   :  { %v7714_v49 = vmax.f32 %v8257_v11, %v1944_v25  ;;  %v1947_v54 = vadd.f32 %v5479_v15, %v5385_v48  ;;  %v8259_v48 = vmax.f32 %v7240_v34, %v7499_v38  ;;  %v8260_v15 = vmax.f32 %v7245_v37, %v7503_v46 }
 0x1ce   :  { %v5386_v33 = vpop.f32.mrb[108].mxu0 }
 0x1cf   :  { %v7719_v61 = vmax.f32 %v8258_v9, %v1947_v54  ;;  %v5480_v63 = vpop.f32.mrb[108].mxu1  ;;  %v5387_v17 = vpop.f32.mrb[109].mxu0 }
 0x1d0   :  { %v5388_v1 = vadd.f32 %v5387_v17, %v5386_v33  ;;  %v5481_v47 = vpop.f32.mrb[109].mxu1  ;;  %v5389_v22 = vpop.f32.mrb[110].mxu0 }
 0x1d1   :  { %v5482_v57 = vadd.f32 %v5481_v47, %v5480_v63  ;;  %v5483_v59 = vpop.f32.mrb[110].mxu1  ;;  %v5390_v20 = vpop.f32.mrb[111].mxu0 }
 0x1d2   :  { %v5391_v42 = vadd.f32 %v5390_v20, %v5389_v22  ;;  %v5484_v7 = vpop.f32.mrb[111].mxu1  ;;  %v8261_v20 = vmax.f32 %v7280_v60, %v7519_v19 }
 0x1d3   :  { %v1952_v14 = vadd.f32 %v5482_v57, %v5388_v1  ;;  %v5485_v10 = vadd.f32 %v5484_v7, %v5483_v59  ;;  %v8262_v7 = vmax.f32 %v7285_v4, %v7523_v23 }
 0x1d5   :  { %v7724_v25 = vmax.f32 %v8259_v48, %v1952_v14  ;;  %v1955_v16 = vadd.f32 %v5485_v10, %v5391_v42 }
 0x1d6   :  { %v5392_v13 = vpop.f32.mrb[112].mxu0 }
 0x1d7   :  { %v7729_v11 = vmax.f32 %v8260_v15, %v1955_v16  ;;  %v5486_v54 = vpop.f32.mrb[112].mxu1  ;;  %v5393_v47 = vpop.f32.mrb[113].mxu0 }
 0x1d8   :  { %v5394_v33 = vadd.f32 %v5393_v47, %v5392_v13  ;;  %v5487_v9 = vpop.f32.mrb[113].mxu1  ;;  %v5395_v63 = vpop.f32.mrb[114].mxu0 }
 0x1d9   :  { %v5488_v17 = vadd.f32 %v5487_v9, %v5486_v54  ;;  %v5489_v1 = vpop.f32.mrb[114].mxu1  ;;  %v5396_v22 = vpop.f32.mrb[115].mxu0 }
 0x1da   :  { %v5397_v57 = vadd.f32 %v5396_v22, %v5395_v63  ;;  %v5490_v59 = vpop.f32.mrb[115].mxu1  ;;  %v8264_v22 = vmax.f32 %v7319_v30, %v7543_v58 }
 0x1db   :  { %v1960_v34 = vadd.f32 %v5488_v17, %v5394_v33  ;;  %v5491_v38 = vadd.f32 %v5490_v59, %v5489_v1  ;;  %v8263_v17 = vmax.f32 %v7317_v28, %v7539_v55 }
 0x1dd   :  { %v7734_v42 = vmax.f32 %v8261_v20, %v1960_v34  ;;  %v1963_v37 = vadd.f32 %v5491_v38, %v5397_v57 }
 0x1de   :  { %v5398_v46 = vpop.f32.mrb[116].mxu0 }
 0x1df   :  { %v7739_v14 = vmax.f32 %v8262_v7, %v1963_v37  ;;  %v5492_v10 = vpop.f32.mrb[116].mxu1  ;;  %v5399_v48 = vpop.f32.mrb[117].mxu0 }
 0x1e0   :  { %v5400_v16 = vadd.f32 %v5399_v48, %v5398_v46  ;;  %v5493_v13 = vpop.f32.mrb[117].mxu1  ;;  %v5401_v15 = vpop.f32.mrb[118].mxu0 }
 0x1e1   :  { %v5494_v54 = vadd.f32 %v5493_v13, %v5492_v10  ;;  %v5495_v47 = vpop.f32.mrb[118].mxu1  ;;  %v5402_v33 = vpop.f32.mrb[119].mxu0  ;;  %v8265_v13 = vmax.f32 %v7333_v43, %v7559_v40 }
 0x1e2   :  { %v5403_v9 = vadd.f32 %v5402_v33, %v5401_v15  ;;  %v5496_v63 = vpop.f32.mrb[119].mxu1 }
 0x1e3   :  { %v1968_v60 = vadd.f32 %v5494_v54, %v5400_v16  ;;  %v5497_v19 = vadd.f32 %v5496_v63, %v5495_v47  ;;  %v8266_v54 = vmax.f32 %v7335_v45, %v7563_v50 }
 0x1e5   :  { %v7744_v1 = vmax.f32 %v8263_v17, %v1968_v60  ;;  %v1971_v4 = vadd.f32 %v5497_v19, %v5403_v9 }
 0x1e6   :  { %v5404_v23 = vpop.f32.mrb[120].mxu0 }
 0x1e7   :  { %v7749_v57 = vmax.f32 %v8264_v22, %v1971_v4  ;;  %v5498_v59 = vpop.f32.mrb[120].mxu1  ;;  %v5405_v34 = vpop.f32.mrb[121].mxu0 }
 0x1e8   :  { %v5406_v38 = vadd.f32 %v5405_v34, %v5404_v23  ;;  %v5499_v20 = vpop.f32.mrb[121].mxu1  ;;  %v5407_v37 = vpop.f32.mrb[122].mxu0  ;;  %v8267_v34 = vmax.f32 %v7349_v3, %v7579_v35 }
 0x1e9   :  { %v5500_v46 = vadd.f32 %v5499_v20, %v5498_v59  ;;  %v5501_v7 = vpop.f32.mrb[122].mxu1  ;;  %v5408_v10 = vpop.f32.mrb[123].mxu0  ;;  %v8268_v20 = vmax.f32 %v7351_v6, %v7583_v52 }
 0x1ea   :  { %v5409_v48 = vadd.f32 %v5408_v10, %v5407_v37  ;;  %v5502_v16 = vpop.f32.mrb[123].mxu1 }
 0x1eb   :  { %v1976_v28 = vadd.f32 %v5500_v46, %v5406_v38  ;;  %v5503_v55 = vadd.f32 %v5502_v16, %v5501_v7 }
 0x1ed   :  { %v7754_v15 = vmax.f32 %v8265_v13, %v1976_v28  ;;  %v1979_v30 = vadd.f32 %v5503_v55, %v5409_v48 }
 0x1ee   :  { %v5410_v58 = vpop.f32.mrb[124].mxu0 }
 0x1ef   :  { %v7759_v47 = vmax.f32 %v8266_v54, %v1979_v30  ;;  %v5504_v33 = vpop.f32.mrb[124].mxu1  ;;  %v5411_v9 = vpop.f32.mrb[125].mxu0  ;;  %v8269_v54 = vmax.f32 %v7365_v24, %v7603_v56 }
 0x1f0   :  { %v5412_v63 = vadd.f32 %v5411_v9, %v5410_v58  ;;  %v5505_v60 = vpop.f32.mrb[125].mxu1  ;;  %v5413_v19 = vpop.f32.mrb[126].mxu0  ;;  %v8270_v9 = vmax.f32 %v7367_v26, %v7607_v21 }
 0x1f1   :  { %v5506_v17 = vadd.f32 %v5505_v60, %v5504_v33  ;;  %v5507_v4 = vpop.f32.mrb[126].mxu1  ;;  %v5414_v23 = vpop.f32.mrb[127].mxu0 }
 0x1f2   :  { %v5415_v22 = vadd.f32 %v5414_v23, %v5413_v19  ;;  %v5508_v59 = vpop.f32.mrb[127].mxu1 }
 0x1f3   :  { %v1984_v43 = vadd.f32 %v5506_v17, %v5412_v63  ;;  %v5509_v40 = vadd.f32 %v5508_v59, %v5507_v4 }
 0x1f5   :  { %v7764_v38 = vmax.f32 %v8267_v34, %v1984_v43  ;;  %v1987_v45 = vadd.f32 %v5509_v40, %v5415_v22 }
 0x1f6   :  { %v5416_v50 = vpop.f32.mrb[128].mxu0 }
 0x1f7   :  { %v7769_v37 = vmax.f32 %v8268_v20, %v1987_v45  ;;  %v5510_v46 = vpop.f32.mrb[128].mxu1  ;;  %v5417_v7 = vpop.f32.mrb[129].mxu0  ;;  %v8271_v45 = vmax.f32 %v7381_v41, %v7627_v32  ;;  %v8272_v20 = vmax.f32 %v7383_v44, %v7631_v62 }
 0x1f8   :  { %v5418_v10 = vadd.f32 %v5417_v7, %v5416_v50  ;;  %v5511_v48 = vpop.f32.mrb[129].mxu1  ;;  %v5419_v16 = vpop.f32.mrb[130].mxu0 }
 0x1f9   :  { %v5512_v28 = vadd.f32 %v5511_v48, %v5510_v46  ;;  %v5513_v55 = vpop.f32.mrb[130].mxu1  ;;  %v5420_v13 = vpop.f32.mrb[131].mxu0 }
 0x1fa   :  { %v5421_v30 = vadd.f32 %v5420_v13, %v5419_v16  ;;  %v5514_v58 = vpop.f32.mrb[131].mxu1 }
 0x1fb   :  { %v1992_v3 = vadd.f32 %v5512_v28, %v5418_v10  ;;  %v5515_v35 = vadd.f32 %v5514_v58, %v5513_v55 }
 0x1fd   :  { %v7774_v33 = vmax.f32 %v8269_v54, %v1992_v3  ;;  %v1995_v6 = vadd.f32 %v5515_v35, %v5421_v30  ;;  %v8273_v35 = vmax.f32 %v7397_v5, %v7647_v2 }
 0x1fe   :  { %v5422_v52 = vpop.f32.mrb[132].mxu0 }
 0x1ff   :  { %v7779_v63 = vmax.f32 %v8270_v9, %v1995_v6  ;;  %v5516_v60 = vpop.f32.mrb[132].mxu1  ;;  %v5423_v19 = vpop.f32.mrb[133].mxu0  ;;  %v8274_v6 = vmax.f32 %v7399_v8, %v7651_v27 }
 0x200   :  { %v5424_v17 = vadd.f32 %v5423_v19, %v5422_v52  ;;  %v5517_v4 = vpop.f32.mrb[133].mxu1  ;;  %v5425_v23 = vpop.f32.mrb[134].mxu0 }
 0x201   :  { %v5518_v22 = vadd.f32 %v5517_v4, %v5516_v60  ;;  %v5519_v59 = vpop.f32.mrb[134].mxu1  ;;  %v5426_v43 = vpop.f32.mrb[135].mxu0 }
 0x202   :  { %v5427_v40 = vadd.f32 %v5426_v43, %v5425_v23  ;;  %v5520_v34 = vpop.f32.mrb[135].mxu1 }
 0x203   :  { %v2000_v24 = vadd.f32 %v5518_v22, %v5424_v17  ;;  %v5521_v56 = vadd.f32 %v5520_v34, %v5519_v59  ;;  %v8275_v34 = vld [vmem:[#allocation7_spill] sm:$0xff] }
 0x205   :  { %v7784_v50 = vmax.f32 %v8271_v45, %v2000_v24  ;;  %v2003_v26 = vadd.f32 %v5521_v56, %v5427_v40  ;;  %v8276_v24 = vmax.f32 %v7413_v29, %v8275_v34  ;;  %v8277_v45 = vld [vmem:[#allocation5_spill] sm:$0xff] }
 0x206   :  { %v5428_v21 = vpop.f32.mrb[136].mxu0 }
 0x207   :  { %v7789_v46 = vmax.f32 %v8272_v20, %v2003_v26  ;;  %v5522_v7 = vpop.f32.mrb[136].mxu1  ;;  %v5429_v10 = vpop.f32.mrb[137].mxu0  ;;  %v8278_v26 = vld [vmem:[#allocation8_spill] sm:$0xff] }
 0x208   :  { %v5430_v48 = vadd.f32 %v5429_v10, %v5428_v21  ;;  %v5523_v16 = vpop.f32.mrb[137].mxu1  ;;  %v5431_v28 = vpop.f32.mrb[138].mxu0  ;;  %v8279_v21 = vmax.f32 %v8277_v45, %v8278_v26 }
 0x209   :  { %v5524_v55 = vadd.f32 %v5523_v16, %v5522_v7  ;;  %v5525_v13 = vpop.f32.mrb[138].mxu1  ;;  %v5432_v30 = vpop.f32.mrb[139].mxu0 }
 0x20a   :  { %v5433_v58 = vadd.f32 %v5432_v30, %v5431_v28  ;;  %v5526_v3 = vpop.f32.mrb[139].mxu1 }
 0x20b   :  { %v2008_v41 = vadd.f32 %v5524_v55, %v5430_v48  ;;  %v5527_v32 = vadd.f32 %v5526_v3, %v5525_v13 }
 0x20d   :  { %v7794_v54 = vmax.f32 %v8273_v35, %v2008_v41  ;;  %v2011_v44 = vadd.f32 %v5527_v32, %v5433_v58  ;;  %v8280_v32 = vmax.f32 %v7429_v51, %v7687_v12 }
 0x20e   :  { %v5434_v62 = vpop.f32.mrb[140].mxu0 }
 0x20f   :  { %v7799_v52 = vmax.f32 %v8274_v6, %v2011_v44  ;;  %v5528_v9 = vpop.f32.mrb[140].mxu1  ;;  %v5435_v60 = vpop.f32.mrb[141].mxu0  ;;  %v8281_v6 = vmax.f32 %v7431_v53, %v7691_v0 }
 0x210   :  { %v5436_v19 = vadd.f32 %v5435_v60, %v5434_v62  ;;  %v5529_v17 = vpop.f32.mrb[141].mxu1  ;;  %v5437_v4 = vpop.f32.mrb[142].mxu0 }
 0x211   :  { %v5530_v23 = vadd.f32 %v5529_v17, %v5528_v9  ;;  %v5531_v22 = vpop.f32.mrb[142].mxu1  ;;  %v5438_v59 = vpop.f32.mrb[143].mxu0 }
 0x212   :  { %v5439_v43 = vadd.f32 %v5438_v59, %v5437_v4  ;;  %v5532_v40 = vpop.f32.mrb[143].mxu1 }
 0x213   :  { %v2016_v5 = vadd.f32 %v5530_v23, %v5436_v19  ;;  %v5533_v2 = vadd.f32 %v5532_v40, %v5531_v22 }
 0x215   :  { %v7804_v56 = vmax.f32 %v8276_v24, %v2016_v5  ;;  %v2019_v8 = vadd.f32 %v5533_v2, %v5439_v43  ;;  %v8282_v2 = vmax.f32 %v7439_v18, %v7695_v31  ;;  %v8283_v24 = vld [vmem:[#allocation6_spill] sm:$0xff]  ;;  %v8286_v18 = vmax.f32 %v7457_v39, %v7707_v36 }
 0x216   :  { %v5440_v27 = vpop.f32.mrb[144].mxu0 }
 0x217   :  { %v7809_v20 = vmax.f32 %v8279_v21, %v2019_v8  ;;  %v5534_v7 = vpop.f32.mrb[144].mxu1  ;;  %v5441_v10 = vpop.f32.mrb[145].mxu0  ;;  %v8284_v8 = vld [vmem:[#allocation9_spill] sm:$0xff] }
 0x218   :  { %v5442_v48 = vadd.f32 %v5441_v10, %v5440_v27  ;;  %v5535_v16 = vpop.f32.mrb[145].mxu1  ;;  %v5443_v28 = vpop.f32.mrb[146].mxu0  ;;  %v8285_v27 = vmax.f32 %v8283_v24, %v8284_v8 }
 0x219   :  { %v5536_v55 = vadd.f32 %v5535_v16, %v5534_v7  ;;  %v5537_v13 = vpop.f32.mrb[146].mxu1  ;;  %v5444_v30 = vpop.f32.mrb[147].mxu0 }
 0x21a   :  { %v5445_v58 = vadd.f32 %v5444_v30, %v5443_v28  ;;  %v5538_v3 = vpop.f32.mrb[147].mxu1 }
 0x21b   :  { %v2024_v29 = vadd.f32 %v5536_v55, %v5442_v48  ;;  %v5539_v41 = vadd.f32 %v5538_v3, %v5537_v13 }
 0x21d   :  { %v7814_v35 = vmax.f32 %v8280_v32, %v2024_v29  ;;  %v2027_v44 = vadd.f32 %v5539_v41, %v5445_v58 }
 0x21e   :  { %v5446_v62 = vpop.f32.mrb[148].mxu0 }
 0x21f   :  { %v7819_v9 = vmax.f32 %v8281_v6, %v2027_v44  ;;  %v5540_v60 = vpop.f32.mrb[148].mxu1  ;;  %v5447_v19 = vpop.f32.mrb[149].mxu0 }
 0x220   :  { %v5448_v17 = vadd.f32 %v5447_v19, %v5446_v62  ;;  %v5541_v4 = vpop.f32.mrb[149].mxu1  ;;  %v5449_v23 = vpop.f32.mrb[150].mxu0 }
 0x221   :  { %v5542_v22 = vadd.f32 %v5541_v4, %v5540_v60  ;;  %v5543_v59 = vpop.f32.mrb[150].mxu1  ;;  %v5450_v43 = vpop.f32.mrb[151].mxu0 }
 0x222   :  { %v5451_v40 = vadd.f32 %v5450_v43, %v5449_v23  ;;  %v5544_v5 = vpop.f32.mrb[151].mxu1 }
 0x223   :  { %v2032_v51 = vadd.f32 %v5542_v22, %v5448_v17  ;;  %v5545_v12 = vadd.f32 %v5544_v5, %v5543_v59  ;;  %v7839_v22 = vld [vmem:[%s8235_s2] ss:$0 sm:$0xff] }
 0x225   :  { %v7824_v34 = vmax.f32 %v8282_v2, %v2032_v51  ;;  %v2035_v53 = vadd.f32 %v5545_v12, %v5451_v40 }
 0x226   :  { %v5452_v0 = vpop.f32.mrb[152].mxu0 }
 0x227   :  { %v7829_v45 = vmax.f32 %v8285_v27, %v2035_v53  ;;  %v5546_v26 = vpop.f32.mrb[152].mxu1  ;;  %v5453_v21 = vpop.f32.mrb[153].mxu0 }
 0x228   :  { %v5454_v7 = vadd.f32 %v5453_v21, %v5452_v0  ;;  %v5547_v10 = vpop.f32.mrb[153].mxu1  ;;  %v5455_v48 = vpop.f32.mrb[154].mxu0 }
 0x229   :  { %v5548_v16 = vadd.f32 %v5547_v10, %v5546_v26  ;;  %v5549_v28 = vpop.f32.mrb[154].mxu1  ;;  %v5456_v55 = vpop.f32.mrb[155].mxu0 }
 0x22a   :  { %v5550_v13 = vpop.f32.mrb[155].mxu1  ;;  %v6416_v28 = vld [vmem:[%s8236_s3 + $0x20] sm:$0xff]  }
 0x22b   :  { %v2040_v30 = vadd.f32 %v5548_v16, %v5454_v7 }
 0x22d   :  { %v7834_v31 = vmax.f32 %v8286_v18, %v2040_v30 }
 0x22e   :  { %v5568_v58 = vpop.f32.mrb[156].mxu0 }
 0x22f   :  { %v5662_v3 = vpop.f32.mrb[156].mxu1  ;;  %v5569_v29 = vpop.f32.mrb[157].mxu0 }
 0x230   :  { %v5570_v41 = vadd.f32 %v5569_v29, %v5568_v58  ;;  %v5663_v32 = vpop.f32.mrb[157].mxu1  ;;  %v5571_v44 = vpop.f32.mrb[158].mxu0  ;;  %v6419_v58 = vld [vmem:[%s8236_s3 + $0x38] sm:$0xff]  }
 0x231   :  { %v5664_v62 = vadd.f32 %v5663_v32, %v5662_v3  ;;  %v5665_v6 = vpop.f32.mrb[158].mxu1  ;;  %v5572_v60 = vpop.f32.mrb[159].mxu0  ;;  %v8287_v3 = vmov 0.0  }
 0x232   :  { %v5573_v19 = vadd.f32 %v5572_v60, %v5571_v44  ;;  %v5666_v17 = vpop.f32.mrb[159].mxu1  ;;  %v6418_v60 = vld [vmem:[%s8236_s3 + $0x28] sm:$0xff]  }
 0x233   :  { %v2546_v4 = vadd.f32 %v5664_v62, %v5570_v41  ;;  %v5667_v23 = vadd.f32 %v5666_v17, %v5665_v6 }
 0x235   :  { %v2647_v39 = vmax.f32 %v7714_v49, %v2546_v4  ;;  %v2549_v36 = vadd.f32 %v5667_v23, %v5573_v19  ;;  %v6417_v49 = vld [vmem:[%s8236_s3 + $0x30] sm:$0xff]  }
 0x236   :  { %v5574_v59 = vpop.f32.mrb[160].mxu0 }
 0x237   :  { %v2679_v43 = vadd.f32 %v7839_v22, %v2647_v39  ;;  %v2648_v40 = vmax.f32 %v7719_v61, %v2549_v36  ;;  %v5668_v5 = vpop.f32.mrb[160].mxu1  ;;  %v5575_v51 = vpop.f32.mrb[161].mxu0 }
 0x238   :  { %v5576_v12 = vadd.f32 %v5575_v51, %v5574_v59  ;;  %v5669_v2 = vpop.f32.mrb[161].mxu1  ;;  %v5577_v53 = vpop.f32.mrb[162].mxu0  ;;  %v6421_v51 = vld [vmem:[%s8236_s3 + $0x50] sm:$0xff]  }
 0x239   :  { %v2704_v0 = vmax.f32 %v2679_v43, 0.0  ;;  %v2680_v24 = vadd.f32 %v7839_v22, %v2648_v40  ;;  %v5670_v8 = vadd.f32 %v5669_v2, %v5668_v5  ;;  %v5671_v27 = vpop.f32.mrb[162].mxu1  ;;  %v5578_v26 = vpop.f32.mrb[163].mxu0  ;;  %v6420_v5 = vld [vmem:[%s8236_s3 + $0x40] sm:$0xff]  }
 0x23a   :  { %v5579_v21 = vadd.f32 %v5578_v26, %v5577_v53  ;;  %v5672_v7 = vpop.f32.mrb[163].mxu1 }
 0x23b   :  { %v2729_v10 = vpack.c.bf16 %v2704_v0, %v2704_v0  ;;  %v2705_v61 = vmax.f32 %v2680_v24, 0.0  ;;  %v2554_v48 = vadd.f32 %v5670_v8, %v5576_v12  ;;  %v5673_v16 = vadd.f32 %v5672_v7, %v5671_v27 }
 0x23d   :  { %v2734_v55 = vpack.c.bf16 %v2705_v61, %v2705_v61  ;;  %v2649_v13 = vmax.f32 %v7724_v25, %v2554_v48  ;;  %v2557_v30 = vadd.f32 %v5673_v16, %v5579_v21  ;;  %5846 = vmatmul.mubr.msk.bf16.vlgmr.msra.gmra.mrb[208].mxu1 %vm2751_vm1, %v2729_v10  ;;  %v6423_v61 = vld [vmem:[%s8236_s3 + $0x58] sm:$0xff]  }
 0x23e   :  { %v5580_v18 = vpop.f32.mrb[164].mxu0  ;;  %5858 = vmatpush3.bf16.msra.mxu1 %v6417_v49  ;;  %5861 = vmatprep.mubr.msk.bf16.mxu1 %vm6535_vm0, %v8287_v3 }
 0x23f   :  { %v2681_v29 = vadd.f32 %v7839_v22, %v2649_v13  ;;  %v2650_v41 = vmax.f32 %v7729_v11, %v2557_v30  ;;  %v5674_v32 = vpop.f32.mrb[164].mxu1  ;;  %5838 = vmatmul.mubr.msk.bf16.vlgmr.msra.gmra.mrb[208].mxu0 %vm2751_vm1, %v2734_v55  ;;  %v5581_v25 = vpop.f32.mrb[165].mxu0  ;;  %5859 = vmatprep.subr.bf16.mxu1 %v8287_v3 }
 0x240   :  { %v5582_v44 = vadd.f32 %v5581_v25, %v5580_v18  ;;  %v5675_v62 = vpop.f32.mrb[165].mxu1  ;;  %5850 = vmatpush3.bf16.msra.mxu0 %v6416_v28  ;;  %v5583_v6 = vpop.f32.mrb[166].mxu0  ;;  %5853 = vmatprep.mubr.msk.bf16.mxu0 %vm6535_vm0, %v8287_v3  ;;  %v6425_v25 = vld [vmem:[%s8236_s3 + $0x70] sm:$0xff]  }
 0x241   :  { %v2706_v19 = vmax.f32 %v2681_v29, 0.0  ;;  %v2682_v11 = vadd.f32 %v7839_v22, %v2650_v41  ;;  %v5676_v17 = vadd.f32 %v5675_v62, %v5674_v32  ;;  %v5677_v4 = vpop.f32.mrb[166].mxu1  ;;  %v5584_v23 = vpop.f32.mrb[167].mxu0  ;;  %5851 = vmatprep.subr.bf16.mxu0 %v8287_v3  ;;  %v6424_v32 = vld [vmem:[%s8236_s3 + $0x60] sm:$0xff]  }
 0x242   :  { %v5585_v39 = vadd.f32 %v5584_v23, %v5583_v6  ;;  %v5678_v36 = vpop.f32.mrb[167].mxu1  ;;  %5860 = vmatpush3.bf16.msra.mxu1 %v6419_v58 }
 0x243   :  { %v2707_v59 = vmax.f32 %v2682_v11, 0.0  ;;  %v2562_v43 = vadd.f32 %v5676_v17, %v5582_v44  ;;  %v5679_v40 = vadd.f32 %v5678_v36, %v5677_v4  ;;  %5873 = vmatprep.subr.bf16.mxu1 %v8287_v3  ;;  %v2850_v12 = vpack.c.bf16 %v2706_v19, %v2706_v19  ;;  %v6426_v36 = vld [vmem:[%s8236_s3 + $0x68] sm:$0xff]  }
 0x244   :  { %5852 = vmatpush3.bf16.msra.mxu0 %v6418_v60 }
 0x245   :  { %v2911_v2 = vpack.c.bf16 %v2707_v59, %v2707_v59  ;;  %v2651_v53 = vmax.f32 %v7734_v42, %v2562_v43  ;;  %v2565_v0 = vadd.f32 %v5679_v40, %v5585_v39  ;;  %5865 = vmatprep.subr.bf16.mxu0 %v8287_v3  ;;  %v6422_v42 = vld [vmem:[%s8236_s3 + $0x48] sm:$0xff]   ;;  %v6427_v59 = vld [vmem:[%s8236_s3 + $0x78] sm:$0xff]  }
 0x246   :  { %v5586_v24 = vpop.f32.mrb[168].mxu0 }
 0x247   :  { %v2683_v8 = vadd.f32 %v7839_v22, %v2651_v53  ;;  %v2652_v27 = vmax.f32 %v7739_v14, %v2565_v0  ;;  %v5680_v26 = vpop.f32.mrb[168].mxu1  ;;  %5854 = vmatmul.mubr.msk.bf16.vlgmr.msra.gmra.mrb[212].mxu0 %vm2751_vm1, %v2850_v12  ;;  %5862 = vmatmul.mubr.msk.bf16.vlgmr.msra.gmra.mrb[212].mxu1 %vm2751_vm1, %v2911_v2  ;;  %v5587_v21 = vpop.f32.mrb[169].mxu0 }
 0x248   :  { %v5588_v7 = vadd.f32 %v5587_v21, %v5586_v24  ;;  %v5681_v49 = vpop.f32.mrb[169].mxu1  ;;  %5866 = vmatpush3.bf16.msra.mxu0 %v6420_v5  ;;  %5874 = vmatpush3.bf16.msra.mxu1 %v6421_v51  ;;  %v5589_v10 = vpop.f32.mrb[170].mxu0 }
 0x249   :  { %v2708_v14 = vmax.f32 %v2683_v8, 0.0  ;;  %v2684_v48 = vadd.f32 %v7839_v22, %v2652_v27  ;;  %v5682_v16 = vadd.f32 %v5681_v49, %v5680_v26  ;;  %v5683_v28 = vpop.f32.mrb[170].mxu1  ;;  %v5590_v55 = vpop.f32.mrb[171].mxu0  ;;  %5867 = vmatprep.subr.bf16.mxu0 %v8287_v3  ;;  %5875 = vmatprep.subr.bf16.mxu1 %v8287_v3  ;;  %v6428_v27 = vld [vmem:[%s8236_s3 + $0x80] sm:$0xff]   ;;  %v6429_v26 = vld [vmem:[%s8236_s3 + $0x90] sm:$0xff]  }
 0x24a   :  { %v5591_v13 = vadd.f32 %v5590_v55, %v5589_v10  ;;  %v5684_v30 = vpop.f32.mrb[171].mxu1  ;;  %5869 = vmatprep.mubr.msk.bf16.mxu0 %vm6535_vm0, %v8287_v3  ;;  %5877 = vmatprep.mubr.msk.bf16.mxu1 %vm6535_vm0, %v8287_v3  ;;  %v6430_v55 = vld [vmem:[%s8236_s3 + $0x88] sm:$0xff]  }
 0x24b   :  { %v2709_v18 = vmax.f32 %v2684_v48, 0.0  ;;  %v2570_v58 = vadd.f32 %v5682_v16, %v5588_v7  ;;  %v5685_v29 = vadd.f32 %v5684_v30, %v5683_v28  ;;  %v2972_v41 = vpack.c.bf16 %v2708_v14, %v2708_v14 }
 0x24c   :  { %5868 = vmatpush3.bf16.msra.mxu0 %v6422_v42  ;;  %5876 = vmatpush3.bf16.msra.mxu1 %v6423_v61 }
 0x24d   :  { %v3033_v44 = vpack.c.bf16 %v2709_v18, %v2709_v18  ;;  %v2653_v62 = vmax.f32 %v7744_v1, %v2570_v58  ;;  %v2573_v6 = vadd.f32 %v5685_v29, %v5591_v13  ;;  %5881 = vmatprep.subr.bf16.mxu0 %v8287_v3  ;;  %5889 = vmatprep.subr.bf16.mxu1 %v8287_v3  ;;  %v6431_v13 = vld [vmem:[%s8236_s3 + $0x98] sm:$0xff]  }
 0x24e   :  { %v5592_v60 = vpop.f32.mrb[172].mxu0 }
 0x24f   :  { %v2685_v19 = vadd.f32 %v7839_v22, %v2653_v62  ;;  %v2654_v11 = vmax.f32 %v7749_v57, %v2573_v6  ;;  %v5686_v17 = vpop.f32.mrb[172].mxu1  ;;  %5870 = vmatmul.mubr.msk.bf16.vlgmr.msra.gmra.mrb[216].mxu0 %vm2751_vm1, %v2972_v41  ;;  %5878 = vmatmul.mubr.msk.bf16.vlgmr.msra.gmra.mrb[216].mxu1 %vm2751_vm1, %v3033_v44  ;;  %v5593_v4 = vpop.f32.mrb[173].mxu0 }
 0x250   :  { %v5594_v23 = vadd.f32 %v5593_v4, %v5592_v60  ;;  %v5687_v39 = vpop.f32.mrb[173].mxu1  ;;  %5882 = vmatpush3.bf16.msra.mxu0 %v6424_v32  ;;  %5890 = vmatpush3.bf16.msra.mxu1 %v6425_v25  ;;  %v5595_v1 = vpop.f32.mrb[174].mxu0  ;;  %v6432_v60 = vld [vmem:[%s8236_s3 + $0xa0] sm:$0xff]  }
 0x251   :  { %v2710_v57 = vmax.f32 %v2685_v19, 0.0  ;;  %v2686_v43 = vadd.f32 %v7839_v22, %v2654_v11  ;;  %v5688_v40 = vadd.f32 %v5687_v39, %v5686_v17  ;;  %v5689_v5 = vpop.f32.mrb[174].mxu1  ;;  %v5596_v51 = vpop.f32.mrb[175].mxu0  ;;  %5883 = vmatprep.subr.bf16.mxu0 %v8287_v3  ;;  %5891 = vmatprep.subr.bf16.mxu1 %v8287_v3  ;;  %v6433_v19 = vld [vmem:[%s8236_s3 + $0xb0] sm:$0xff]  }
 0x252   :  { %v5597_v12 = vadd.f32 %v5596_v51, %v5595_v1  ;;  %v5690_v2 = vpop.f32.mrb[175].mxu1  ;;  %5885 = vmatprep.mubr.msk.bf16.mxu0 %vm6535_vm0, %v8287_v3  ;;  %5893 = vmatprep.mubr.msk.bf16.mxu1 %vm6535_vm0, %v8287_v3 }
 0x253   :  { %v2711_v53 = vmax.f32 %v2686_v43, 0.0  ;;  %v2578_v0 = vadd.f32 %v5688_v40, %v5594_v23  ;;  %v5691_v24 = vadd.f32 %v5690_v2, %v5689_v5  ;;  %v3094_v8 = vpack.c.bf16 %v2710_v57, %v2710_v57  ;;  %v6434_v40 = vld [vmem:[%s8236_s3 + $0xa8] sm:$0xff]   ;;  %v6435_v5 = vld [vmem:[%s8236_s3 + $0xb8] sm:$0xff]  }
 0x254   :  { %5884 = vmatpush3.bf16.msra.mxu0 %v6426_v36  ;;  %5892 = vmatpush3.bf16.msra.mxu1 %v6427_v59 }
 0x255   :  { %v3155_v21 = vpack.c.bf16 %v2711_v53, %v2711_v53  ;;  %v2655_v7 = vmax.f32 %v7754_v15, %v2578_v0  ;;  %v2581_v49 = vadd.f32 %v5691_v24, %v5597_v12  ;;  %5897 = vmatprep.subr.bf16.mxu0 %v8287_v3  ;;  %5905 = vmatprep.subr.bf16.mxu1 %v8287_v3 }
 0x256   :  { %v5598_v10 = vpop.f32.mrb[176].mxu0 }
 0x257   :  { %v2687_v42 = vadd.f32 %v7839_v22, %v2655_v7  ;;  %v2656_v61 = vmax.f32 %v7759_v47, %v2581_v49  ;;  %v5692_v14 = vpop.f32.mrb[176].mxu1  ;;  %5886 = vmatmul.mubr.msk.bf16.vlgmr.msra.gmra.mrb[220].mxu0 %vm2751_vm1, %v3094_v8  ;;  %5894 = vmatmul.mubr.msk.bf16.vlgmr.msra.gmra.mrb[220].mxu1 %vm2751_vm1, %v3155_v21  ;;  %v5599_v48 = vpop.f32.mrb[177].mxu0  ;;  %v6436_v7 = vld [vmem:[%s8236_s3 + $0xc0] sm:$0xff]   ;;  %v6437_v49 = vld [vmem:[%s8236_s3 + $0xd0] sm:$0xff]  }
 0x258   :  { %v5600_v16 = vadd.f32 %v5599_v48, %v5598_v10  ;;  %v5693_v28 = vpop.f32.mrb[177].mxu1  ;;  %5898 = vmatpush3.bf16.msra.mxu0 %v6428_v27  ;;  %5906 = vmatpush3.bf16.msra.mxu1 %v6429_v26  ;;  %v5601_v15 = vpop.f32.mrb[178].mxu0 }
 0x259   :  { %v2712_v47 = vmax.f32 %v2687_v42, 0.0  ;;  %v2688_v30 = vadd.f32 %v7839_v22, %v2656_v61  ;;  %v5694_v18 = vadd.f32 %v5693_v28, %v5692_v14  ;;  %v5695_v58 = vpop.f32.mrb[178].mxu1  ;;  %v5602_v29 = vpop.f32.mrb[179].mxu0  ;;  %5899 = vmatprep.subr.bf16.mxu0 %v8287_v3  ;;  %5907 = vmatprep.subr.bf16.mxu1 %v8287_v3 }
 0x25a   :  { %v5603_v41 = vadd.f32 %v5602_v29, %v5601_v15  ;;  %v5696_v32 = vpop.f32.mrb[179].mxu1  ;;  %5901 = vmatprep.mubr.msk.bf16.mxu0 %vm6535_vm0, %v8287_v3  ;;  %5909 = vmatprep.mubr.msk.bf16.mxu1 %vm6535_vm0, %v8287_v3 }
 0x25b   :  { %v2713_v25 = vmax.f32 %v2688_v30, 0.0  ;;  %v2586_v44 = vadd.f32 %v5694_v18, %v5600_v16  ;;  %v5697_v62 = vadd.f32 %v5696_v32, %v5695_v58  ;;  %v3216_v6 = vpack.c.bf16 %v2712_v47, %v2712_v47  ;;  %v6438_v47 = vld [vmem:[%s8236_s3 + $0xc8] sm:$0xff]   ;;  %v6439_v30 = vld [vmem:[%s8236_s3 + $0xd8] sm:$0xff]  }
 0x25c   :  { %5900 = vmatpush3.bf16.msra.mxu0 %v6430_v55  ;;  %5908 = vmatpush3.bf16.msra.mxu1 %v6431_v13 }
 0x25d   :  { %v3277_v11 = vpack.c.bf16 %v2713_v25, %v2713_v25  ;;  %v2657_v17 = vmax.f32 %v7764_v38, %v2586_v44  ;;  %v2589_v4 = vadd.f32 %v5697_v62, %v5603_v41  ;;  %5913 = vmatprep.subr.bf16.mxu0 %v8287_v3  ;;  %5921 = vmatprep.subr.bf16.mxu1 %v8287_v3 }
 0x25e   :  { %v5604_v23 = vpop.f32.mrb[180].mxu0 }
 0x25f   :  { %v2689_v39 = vadd.f32 %v7839_v22, %v2657_v17  ;;  %v2658_v1 = vmax.f32 %v7769_v37, %v2589_v4  ;;  %v5698_v36 = vpop.f32.mrb[180].mxu1  ;;  %5902 = vmatmul.mubr.msk.bf16.vlgmr.msra.gmra.mrb[224].mxu0 %vm2751_vm1, %v3216_v6  ;;  %5910 = vmatmul.mubr.msk.bf16.vlgmr.msra.gmra.mrb[224].mxu1 %vm2751_vm1, %v3277_v11  ;;  %v5605_v59 = vpop.f32.mrb[181].mxu0  ;;  %v6441_v11 = vld [vmem:[%s8236_s3 + $0xf0] sm:$0xff]  }
 0x260   :  { %v5606_v57 = vadd.f32 %v5605_v59, %v5604_v23  ;;  %v5699_v43 = vpop.f32.mrb[181].mxu1  ;;  %5914 = vmatpush3.bf16.msra.mxu0 %v6432_v60  ;;  %5922 = vmatpush3.bf16.msra.mxu1 %v6433_v19  ;;  %v5607_v38 = vpop.f32.mrb[182].mxu0  ;;  %v6440_v19 = vld [vmem:[%s8236_s3 + $0xe0] sm:$0xff]  }
 0x261   :  { %v2714_v37 = vmax.f32 %v2689_v39, 0.0  ;;  %v2690_v51 = vadd.f32 %v7839_v22, %v2658_v1  ;;  %v5700_v12 = vadd.f32 %v5699_v43, %v5698_v36  ;;  %v5701_v2 = vpop.f32.mrb[182].mxu1  ;;  %v5608_v53 = vpop.f32.mrb[183].mxu0  ;;  %5915 = vmatprep.subr.bf16.mxu0 %v8287_v3  ;;  %5923 = vmatprep.subr.bf16.mxu1 %v8287_v3 }
 0x262   :  { %v5609_v0 = vadd.f32 %v5608_v53, %v5607_v38  ;;  %v5702_v24 = vpop.f32.mrb[183].mxu1  ;;  %5917 = vmatprep.mubr.msk.bf16.mxu0 %vm6535_vm0, %v8287_v3  ;;  %5925 = vmatprep.mubr.msk.bf16.mxu1 %vm6535_vm0, %v8287_v3 }
 0x263   :  { %v2715_v8 = vmax.f32 %v2690_v51, 0.0  ;;  %v2594_v27 = vadd.f32 %v5700_v12, %v5606_v57  ;;  %v5703_v26 = vadd.f32 %v5702_v24, %v5701_v2  ;;  %v3338_v21 = vpack.c.bf16 %v2714_v37, %v2714_v37 }
 0x264   :  { %5916 = vmatpush3.bf16.msra.mxu0 %v6434_v40  ;;  %5924 = vmatpush3.bf16.msra.mxu1 %v6435_v5  ;;  %v6442_v40 = vld [vmem:[%s8236_s3 + $0xe8] sm:$0xff]   ;;  %v6443_v5 = vld [vmem:[%s8236_s3 + $0xf8] sm:$0xff]  }
 0x265   :  { %v3399_v10 = vpack.c.bf16 %v2715_v8, %v2715_v8  ;;  %v2659_v42 = vmax.f32 %v7774_v33, %v2594_v27  ;;  %v2597_v61 = vadd.f32 %v5703_v26, %v5609_v0  ;;  %5929 = vmatprep.subr.bf16.mxu0 %v8287_v3  ;;  %5937 = vmatprep.subr.bf16.mxu1 %v8287_v3 }
 0x266   :  { %v5610_v14 = vpop.f32.mrb[184].mxu0 }
 0x267   :  { %v2691_v48 = vadd.f32 %v7839_v22, %v2659_v42  ;;  %v2660_v16 = vmax.f32 %v7779_v63, %v2597_v61  ;;  %v5704_v28 = vpop.f32.mrb[184].mxu1  ;;  %5918 = vmatmul.mubr.msk.bf16.vlgmr.msra.gmra.mrb[228].mxu0 %vm2751_vm1, %v3338_v21  ;;  %5926 = vmatmul.mubr.msk.bf16.vlgmr.msra.gmra.mrb[228].mxu1 %vm2751_vm1, %v3399_v10  ;;  %v5611_v15 = vpop.f32.mrb[185].mxu0  ;;  %v6444_v21 = vld [vmem:[%s8236_s3 + $0x100] sm:$0xff]  }
 0x268   :  { %v5612_v55 = vadd.f32 %v5611_v15, %v5610_v14  ;;  %v5705_v13 = vpop.f32.mrb[185].mxu1  ;;  %5930 = vmatpush3.bf16.msra.mxu0 %v6436_v7  ;;  %5938 = vmatpush3.bf16.msra.mxu1 %v6437_v49  ;;  %v5613_v33 = vpop.f32.mrb[186].mxu0  ;;  %v6445_v7 = vld [vmem:[%s8236_s3 + $0x110] sm:$0xff]  }
 0x269   :  { %v2716_v63 = vmax.f32 %v2691_v48, 0.0  ;;  %v2692_v18 = vadd.f32 %v7839_v22, %v2660_v16  ;;  %v5706_v58 = vadd.f32 %v5705_v13, %v5704_v28  ;;  %v5707_v29 = vpop.f32.mrb[186].mxu1  ;;  %v5614_v41 = vpop.f32.mrb[187].mxu0  ;;  %5931 = vmatprep.subr.bf16.mxu0 %v8287_v3  ;;  %5939 = vmatprep.subr.bf16.mxu1 %v8287_v3  ;;  %v6446_v13 = vld [vmem:[%s8236_s3 + $0x108] sm:$0xff]  }
 0x26a   :  { %v5615_v32 = vadd.f32 %v5614_v41, %v5613_v33  ;;  %v5708_v25 = vpop.f32.mrb[187].mxu1  ;;  %5933 = vmatprep.mubr.msk.bf16.mxu0 %vm6535_vm0, %v8287_v3  ;;  %5941 = vmatprep.mubr.msk.bf16.mxu1 %vm6535_vm0, %v8287_v3  ;;  %v6447_v33 = vld [vmem:[%s8236_s3 + $0x118] sm:$0xff]  }
 0x26b   :  { %v2717_v44 = vmax.f32 %v2692_v18, 0.0  ;;  %v2602_v62 = vadd.f32 %v5706_v58, %v5612_v55  ;;  %v5709_v6 = vadd.f32 %v5708_v25, %v5707_v29  ;;  %v3460_v60 = vpack.c.bf16 %v2716_v63, %v2716_v63 }
 0x26c   :  { %5932 = vmatpush3.bf16.msra.mxu0 %v6438_v47  ;;  %5940 = vmatpush3.bf16.msra.mxu1 %v6439_v30 }
 0x26d   :  { %v3521_v17 = vpack.c.bf16 %v2717_v44, %v2717_v44  ;;  %v2661_v4 = vmax.f32 %v7784_v50, %v2602_v62  ;;  %v2605_v23 = vadd.f32 %v5709_v6, %v5615_v32  ;;  %5945 = vmatprep.subr.bf16.mxu0 %v8287_v3  ;;  %5953 = vmatprep.subr.bf16.mxu1 %v8287_v3  ;;  %v6448_v62 = vld [vmem:[%s8236_s3 + $0x120] sm:$0xff]   ;;  %v6449_v6 = vld [vmem:[%s8236_s3 + $0x130] sm:$0xff]  }
 0x26e   :  { %v5616_v39 = vpop.f32.mrb[188].mxu0 }
 0x26f   :  { %v2693_v1 = vadd.f32 %v7839_v22, %v2661_v4  ;;  %v2662_v36 = vmax.f32 %v7789_v46, %v2605_v23  ;;  %v5710_v59 = vpop.f32.mrb[188].mxu1  ;;  %5934 = vmatmul.mubr.msk.bf16.vlgmr.msra.gmra.mrb[232].mxu0 %vm2751_vm1, %v3460_v60  ;;  %5942 = vmatmul.mubr.msk.bf16.vlgmr.msra.gmra.mrb[232].mxu1 %vm2751_vm1, %v3521_v17  ;;  %v5617_v57 = vpop.f32.mrb[189].mxu0 }
 0x270   :  { %v5618_v43 = vadd.f32 %v5617_v57, %v5616_v39  ;;  %v5711_v38 = vpop.f32.mrb[189].mxu1  ;;  %5946 = vmatpush3.bf16.msra.mxu0 %v6440_v19  ;;  %5954 = vmatpush3.bf16.msra.mxu1 %v6441_v11  ;;  %v5619_v50 = vpop.f32.mrb[190].mxu0  ;;  %v6450_v57 = vld [vmem:[%s8236_s3 + $0x128] sm:$0xff]  }
 0x271   :  { %v2718_v46 = vmax.f32 %v2693_v1, 0.0  ;;  %v2694_v37 = vadd.f32 %v7839_v22, %v2662_v36  ;;  %v5712_v51 = vadd.f32 %v5711_v38, %v5710_v59  ;;  %v5713_v12 = vpop.f32.mrb[190].mxu1  ;;  %v5620_v2 = vpop.f32.mrb[191].mxu0  ;;  %5947 = vmatprep.subr.bf16.mxu0 %v8287_v3  ;;  %5955 = vmatprep.subr.bf16.mxu1 %v8287_v3 }
 0x272   :  { %v5621_v53 = vadd.f32 %v5620_v2, %v5619_v50  ;;  %v5714_v0 = vpop.f32.mrb[191].mxu1  ;;  %5949 = vmatprep.mubr.msk.bf16.mxu0 %vm6535_vm0, %v8287_v3  ;;  %5957 = vmatprep.mubr.msk.bf16.mxu1 %vm6535_vm0, %v8287_v3 }
 0x273   :  { %v2719_v24 = vmax.f32 %v2694_v37, 0.0  ;;  %v2610_v8 = vadd.f32 %v5712_v51, %v5618_v43  ;;  %v5715_v27 = vadd.f32 %v5714_v0, %v5713_v12  ;;  %v3582_v26 = vpack.c.bf16 %v2718_v46, %v2718_v46  ;;  %v6451_v43 = vld [vmem:[%s8236_s3 + $0x138] sm:$0xff]   ;;  %v6452_v0 = vld [vmem:[%s8236_s3 + $0x140] sm:$0xff]  }
 0x274   :  { %5948 = vmatpush3.bf16.msra.mxu0 %v6442_v40  ;;  %5956 = vmatpush3.bf16.msra.mxu1 %v6443_v5 }
 0x275   :  { %v3643_v49 = vpack.c.bf16 %v2719_v24, %v2719_v24  ;;  %v2663_v10 = vmax.f32 %v7794_v54, %v2610_v8  ;;  %v2613_v42 = vadd.f32 %v5715_v27, %v5621_v53  ;;  %5961 = vmatprep.subr.bf16.mxu0 %v8287_v3  ;;  %5969 = vmatprep.subr.bf16.mxu1 %v8287_v3  ;;  %v6453_v24 = vld [vmem:[%s8236_s3 + $0x150] sm:$0xff]  }
 0x276   :  { %v5622_v61 = vpop.f32.mrb[192].mxu0 }
 0x277   :  { %v2695_v14 = vadd.f32 %v7839_v22, %v2663_v10  ;;  %v2664_v48 = vmax.f32 %v7799_v52, %v2613_v42  ;;  %v5716_v16 = vpop.f32.mrb[192].mxu1  ;;  %5950 = vmatmul.mubr.msk.bf16.vlgmr.msra.gmra.mrb[236].mxu0 %vm2751_vm1, %v3582_v26  ;;  %5958 = vmatmul.mubr.msk.bf16.vlgmr.msra.gmra.mrb[236].mxu1 %vm2751_vm1, %v3643_v49  ;;  %v5623_v28 = vpop.f32.mrb[193].mxu0 }
 0x278   :  { %v5624_v15 = vadd.f32 %v5623_v28, %v5622_v61  ;;  %v5717_v55 = vpop.f32.mrb[193].mxu1  ;;  %5962 = vmatpush3.bf16.msra.mxu0 %v6444_v21  ;;  %5970 = vmatpush3.bf16.msra.mxu1 %v6445_v7  ;;  %v5625_v54 = vpop.f32.mrb[194].mxu0 }
 0x279   :  { %v2720_v52 = vmax.f32 %v2695_v14, 0.0  ;;  %v2696_v47 = vadd.f32 %v7839_v22, %v2664_v48  ;;  %v5718_v30 = vadd.f32 %v5717_v55, %v5716_v16  ;;  %v5719_v63 = vpop.f32.mrb[194].mxu1  ;;  %v5626_v18 = vpop.f32.mrb[195].mxu0  ;;  %5963 = vmatprep.subr.bf16.mxu0 %v8287_v3  ;;  %5971 = vmatprep.subr.bf16.mxu1 %v8287_v3  ;;  %v6454_v48 = vld [vmem:[%s8236_s3 + $0x148] sm:$0xff]   ;;  %v6455_v16 = vld [vmem:[%s8236_s3 + $0x158] sm:$0xff]  }
 0x27a   :  { %v5627_v58 = vadd.f32 %v5626_v18, %v5625_v54  ;;  %v5720_v29 = vpop.f32.mrb[195].mxu1  ;;  %5965 = vmatprep.mubr.msk.bf16.mxu0 %vm6535_vm0, %v8287_v3  ;;  %5973 = vmatprep.mubr.msk.bf16.mxu1 %vm6535_vm0, %v8287_v3  ;;  %v6456_v18 = vld [vmem:[%s8236_s3 + $0x160] sm:$0xff]  }
 0x27b   :  { %v2721_v41 = vmax.f32 %v2696_v47, 0.0  ;;  %v2618_v32 = vadd.f32 %v5718_v30, %v5624_v15  ;;  %v5721_v25 = vadd.f32 %v5720_v29, %v5719_v63  ;;  %v3704_v44 = vpack.c.bf16 %v2720_v52, %v2720_v52 }
 0x27c   :  { %5964 = vmatpush3.bf16.msra.mxu0 %v6446_v13  ;;  %5972 = vmatpush3.bf16.msra.mxu1 %v6447_v33 }
 0x27d   :  { %v3765_v60 = vpack.c.bf16 %v2721_v41, %v2721_v41  ;;  %v2665_v19 = vmax.f32 %v7804_v56, %v2618_v32  ;;  %v2621_v11 = vadd.f32 %v5721_v25, %v5627_v58  ;;  %5977 = vmatprep.subr.bf16.mxu0 %v8287_v3  ;;  %5985 = vmatprep.subr.bf16.mxu1 %v8287_v3  ;;  %v6457_v58 = vld [vmem:[%s8236_s3 + $0x170] sm:$0xff]  }
 0x27e   :  { %v5628_v17 = vpop.f32.mrb[196].mxu0 }
 0x27f   :  { %v2697_v4 = vadd.f32 %v7839_v22, %v2665_v19  ;;  %v2666_v23 = vmax.f32 %v7809_v20, %v2621_v11  ;;  %v5722_v39 = vpop.f32.mrb[196].mxu1  ;;  %5966 = vmatmul.mubr.msk.bf16.vlgmr.msra.gmra.mrb[240].mxu0 %vm2751_vm1, %v3704_v44  ;;  %5974 = vmatmul.mubr.msk.bf16.vlgmr.msra.gmra.mrb[240].mxu1 %vm2751_vm1, %v3765_v60  ;;  %v5629_v1 = vpop.f32.mrb[197].mxu0 }
 0x280   :  { %v5630_v36 = vadd.f32 %v5629_v1, %v5628_v17  ;;  %v5723_v59 = vpop.f32.mrb[197].mxu1  ;;  %5978 = vmatpush3.bf16.msra.mxu0 %v6448_v62  ;;  %5986 = vmatpush3.bf16.msra.mxu1 %v6449_v6  ;;  %v5631_v56 = vpop.f32.mrb[198].mxu0  ;;  %v6458_v17 = vld [vmem:[%s8236_s3 + $0x168] sm:$0xff]  }
 0x281   :  { %v2722_v20 = vmax.f32 %v2697_v4, 0.0  ;;  %v2698_v38 = vadd.f32 %v7839_v22, %v2666_v23  ;;  %v5724_v50 = vadd.f32 %v5723_v59, %v5722_v39  ;;  %v5725_v40 = vpop.f32.mrb[198].mxu1  ;;  %v5632_v5 = vpop.f32.mrb[199].mxu0  ;;  %5979 = vmatprep.subr.bf16.mxu0 %v8287_v3  ;;  %5987 = vmatprep.subr.bf16.mxu1 %v8287_v3  ;;  %v6459_v4 = vld [vmem:[%s8236_s3 + $0x178] sm:$0xff]  }
 0x282   :  { %v5633_v46 = vadd.f32 %v5632_v5, %v5631_v56  ;;  %v5726_v37 = vpop.f32.mrb[199].mxu1  ;;  %5981 = vmatprep.mubr.msk.bf16.mxu0 %vm6535_vm0, %v8287_v3  ;;  %5989 = vmatprep.mubr.msk.bf16.mxu1 %vm6535_vm0, %v8287_v3  ;;  %v6461_v5 = vld [vmem:[%s8236_s3 + $0x188] sm:$0xff]  }
 0x283   :  { %v2723_v51 = vmax.f32 %v2698_v38, 0.0  ;;  %v2626_v12 = vadd.f32 %v5724_v50, %v5630_v36  ;;  %v5727_v2 = vadd.f32 %v5726_v37, %v5725_v40  ;;  %v3826_v53 = vpack.c.bf16 %v2722_v20, %v2722_v20  ;;  %v6463_v37 = vld [vmem:[%s8238_s5 + $0x8] sm:$0xff]  }
 0x284   :  { %5980 = vmatpush3.bf16.msra.mxu0 %v6450_v57  ;;  %5988 = vmatpush3.bf16.msra.mxu1 %v6451_v43  ;;  %v6460_v43 = vld [vmem:[%s8236_s3 + $0x180] sm:$0xff]  }
 0x285   :  { %v3887_v8 = vpack.c.bf16 %v2723_v51, %v2723_v51  ;;  %v2667_v27 = vmax.f32 %v7814_v35, %v2626_v12  ;;  %v2629_v26 = vadd.f32 %v5727_v2, %v5633_v46  ;;  %5993 = vmatprep.subr.bf16.mxu0 %v8287_v3  ;;  %6001 = vmatprep.subr.bf16.mxu1 %v8287_v3  ;;  %v6464_v51 = vld [vmem:[%s8238_s5 + $0x10] sm:$0xff]   ;;  %v6465_v12 = vld [vmem:[%s8238_s5 + $0x18] sm:$0xff]   ;;  %v6466_v2 = vld [vmem:[%s8238_s5 + $0x20] sm:$0xff]  }
 0x286   :  { %v5634_v21 = vpop.f32.mrb[200].mxu0 }
 0x287   :  { %v2699_v7 = vadd.f32 %v7839_v22, %v2667_v27  ;;  %v2668_v49 = vmax.f32 %v7819_v9, %v2629_v26  ;;  %v5728_v10 = vpop.f32.mrb[200].mxu1  ;;  %5982 = vmatmul.mubr.msk.bf16.vlgmr.msra.gmra.mrb[244].mxu0 %vm2751_vm1, %v3826_v53  ;;  %5990 = vmatmul.mubr.msk.bf16.vlgmr.msra.gmra.mrb[244].mxu1 %vm2751_vm1, %v3887_v8  ;;  %v5635_v42 = vpop.f32.mrb[201].mxu0  ;;  %v6467_v53 = vld [vmem:[%s8238_s5 + $0x28] sm:$0xff]   ;;  %v6470_v8 = vld [vmem:[%s8240_s7] sm:$0xff]   ;;  %v6472_v26 = vld [vmem:[%s8240_s7 + $0x10] sm:$0xff]  }
 0x288   :  { %v5636_v61 = vadd.f32 %v5635_v42, %v5634_v21  ;;  %v5729_v14 = vpop.f32.mrb[201].mxu1  ;;  %5994 = vmatpush3.bf16.msra.mxu0 %v6452_v0  ;;  %6002 = vmatpush3.bf16.msra.mxu1 %v6453_v24  ;;  %v5637_v35 = vpop.f32.mrb[202].mxu0  ;;  %v6468_v0 = vld [vmem:[%s8238_s5 + $0x30] sm:$0xff]   ;;  %v6469_v24 = vld [vmem:[%s8238_s5 + $0x38] sm:$0xff]   ;;  %v6471_v27 = vld [vmem:[%s8240_s7 + $0x8] sm:$0xff]  }
 0x289   :  { %v2724_v9 = vmax.f32 %v2699_v7, 0.0  ;;  %v2700_v28 = vadd.f32 %v7839_v22, %v2668_v49  ;;  %v5730_v15 = vadd.f32 %v5729_v14, %v5728_v10  ;;  %v5731_v55 = vpop.f32.mrb[202].mxu1  ;;  %v5638_v54 = vpop.f32.mrb[203].mxu0  ;;  %5995 = vmatprep.subr.bf16.mxu0 %v8287_v3  ;;  %6003 = vmatprep.subr.bf16.mxu1 %v8287_v3  ;;  %v6473_v21 = vld [vmem:[%s8240_s7 + $0x18] sm:$0xff]   ;;  %v6474_v7 = vld [vmem:[%s8240_s7 + $0x20] sm:$0xff]   ;;  %v6475_v49 = vld [vmem:[%s8240_s7 + $0x28] sm:$0xff]  }
 0x28a   :  { %v5639_v13 = vadd.f32 %v5638_v54, %v5637_v35  ;;  %v5732_v33 = vpop.f32.mrb[203].mxu1  ;;  %5997 = vmatprep.mubr.msk.bf16.mxu0 %vm6535_vm0, %v8287_v3  ;;  %6005 = vmatprep.mubr.msk.bf16.mxu1 %vm6535_vm0, %v8287_v3 }
 0x28b   :  { %v2725_v52 = vmax.f32 %v2700_v28, 0.0  ;;  %v2634_v47 = vadd.f32 %v5730_v15, %v5636_v61  ;;  %v5733_v30 = vadd.f32 %v5732_v33, %v5731_v55  ;;  %v3948_v63 = vpack.c.bf16 %v2724_v9, %v2724_v9 }
 0x28c   :  { %5996 = vmatpush3.bf16.msra.mxu0 %v6454_v48  ;;  %6004 = vmatpush3.bf16.msra.mxu1 %v6455_v16 }
 0x28d   :  { %v4009_v29 = vpack.c.bf16 %v2725_v52, %v2725_v52  ;;  %v2669_v41 = vmax.f32 %v7824_v34, %v2634_v47  ;;  %v2637_v32 = vadd.f32 %v5733_v30, %v5639_v13  ;;  %6009 = vmatprep.subr.bf16.mxu0 %v8287_v3  ;;  %6017 = vmatprep.subr.bf16.mxu1 %v8287_v3 }
 0x28e   :  { %v5640_v25 = vpop.f32.mrb[204].mxu0 }
 0x28f   :  { %v2701_v44 = vadd.f32 %v7839_v22, %v2669_v41  ;;  %v2670_v62 = vmax.f32 %v7829_v45, %v2637_v32  ;;  %v5734_v6 = vpop.f32.mrb[204].mxu1  ;;  %5998 = vmatmul.mubr.msk.bf16.vlgmr.msra.gmra.mrb[248].mxu0 %vm2751_vm1, %v3948_v63  ;;  %6006 = vmatmul.mubr.msk.bf16.vlgmr.msra.gmra.mrb[248].mxu1 %vm2751_vm1, %v4009_v29  ;;  %v5641_v60 = vpop.f32.mrb[205].mxu0 }
 0x290   :  { %v5642_v19 = vadd.f32 %v5641_v60, %v5640_v25  ;;  %v5735_v11 = vpop.f32.mrb[205].mxu1  ;;  %6010 = vmatpush3.bf16.msra.mxu0 %v6456_v18  ;;  %6018 = vmatpush3.bf16.msra.mxu1 %v6457_v58  ;;  %v5643_v34 = vpop.f32.mrb[206].mxu0 }
 0x291   :  { %v2726_v45 = vmax.f32 %v2701_v44, 0.0  ;;  %v2702_v23 = vadd.f32 %v7839_v22, %v2670_v62  ;;  %v5736_v39 = vadd.f32 %v5735_v11, %v5734_v6  ;;  %v5737_v1 = vpop.f32.mrb[206].mxu1  ;;  %v5644_v36 = vpop.f32.mrb[207].mxu0  ;;  %6011 = vmatprep.subr.bf16.mxu0 %v8287_v3  ;;  %6019 = vmatprep.subr.bf16.mxu1 %v8287_v3 }
 0x292   :  { %v5738_v59 = vpop.f32.mrb[207].mxu1  ;;  %6013 = vmatprep.mubr.msk.bf16.mxu0 %vm6535_vm0, %v8287_v3  ;;  %6021 = vmatprep.mubr.msk.bf16.mxu1 %vm6535_vm0, %v8287_v3 }
 0x293   :  { %v2727_v56 = vmax.f32 %v2702_v23, 0.0  ;;  %v2642_v57 = vadd.f32 %v5736_v39, %v5642_v19  ;;  %v4070_v20 = vpack.c.bf16 %v2726_v45, %v2726_v45 }
 0x294   :  { %6012 = vmatpush3.bf16.msra.mxu0 %v6458_v17  ;;  %6020 = vmatpush3.bf16.msra.mxu1 %v6459_v4 }
 0x295   :  { %v4131_v38 = vpack.c.bf16 %v2727_v56, %v2727_v56  ;;  %v2671_v50 = vmax.f32 %v7834_v31, %v2642_v57  ;;  %6025 = vmatprep.subr.bf16.mxu0 %v8287_v3  ;;  %6033 = vmatprep.subr.bf16.mxu1 %v8287_v3 }
 0x297   :  { %v2703_v40 = vadd.f32 %v7839_v22, %v2671_v50  ;;  %6014 = vmatmul.mubr.msk.bf16.vlgmr.msra.gmra.mrb[252].mxu0 %vm2751_vm1, %v4070_v20  ;;  %6022 = vmatmul.mubr.msk.bf16.vlgmr.msra.gmra.mrb[252].mxu1 %vm2751_vm1, %v4131_v38  ;;  %v6462_v22 = vld [vmem:[%s8238_s5] sm:$0xff]  }
 0x298   :  { %6026 = vmatpush3.bf16.msra.mxu0 %v6460_v43  ;;  %6029 = vmatprep.mubr.msk.bf16.mxu0 %vm6535_vm0, %v8287_v3 }
 0x299   :  { %v2728_v46 = vmax.f32 %v2703_v40, 0.0  ;;  %6027 = vmatprep.subr.bf16.mxu0 %v8287_v3  ;;  %6049 = vmatprep.mubr.msk.bf16.mxu1 %vm6535_vm0, %v8287_v3 }
 0x29a   :  { %6034 = vmatpush3.bf16.msra.mxu1 %v6462_v22 }
 0x29b   :  { %v4192_v31 = vpack.c.bf16 %v2728_v46, %v2728_v46  ;;  %6035 = vmatprep.subr.bf16.mxu1 %v8287_v3 }
 0x29c   :  { %6028 = vmatpush3.bf16.msra.mxu0 %v6461_v5 }
 0x29d   :  { %6053 = vmatprep.subr.bf16.mxu0 %v8287_v3 }
 0x29e   :  { %6036 = vmatpush3.bf16.msra.mxu1 %v6463_v37 }
 0x29f   :  { %6030 = vmatmul.mubr.msk.bf16.vlgmr.msra.gmra.mrb[0].mxu0 %vm2751_vm1, %v4192_v31  ;;  %6037 = vmatprep.subr.bf16.mxu1 %v8287_v3 }
 0x2a0   :  { %6069 = vmatprep.mubr.msk.bf16.mxu0 %vm6535_vm0, %v8287_v3  ;;  %6054 = vmatpush3.bf16.msra.mxu0 %v6470_v8 }
 0x2a1   :  { %6055 = vmatprep.subr.bf16.mxu0 %v8287_v3 }
 0x2a2   :  { %6038 = vmatpush3.bf16.msra.mxu1 %v6464_v51 }
 0x2a3   :  { %6039 = vmatprep.subr.bf16.mxu1 %v8287_v3 }
 0x2a4   :  { %6056 = vmatpush3.bf16.msra.mxu0 %v6471_v27 }
 0x2a5   :  { %6057 = vmatprep.subr.bf16.mxu0 %v8287_v3 }
 0x2a6   :  { %6040 = vmatpush3.bf16.msra.mxu1 %v6465_v12 }
 0x2a7   :  { %6041 = vmatprep.subr.bf16.mxu1 %v8287_v3 }
 0x2a8   :  { %6058 = vmatpush3.bf16.msra.mxu0 %v6472_v26 }
 0x2a9   :  { %6059 = vmatprep.subr.bf16.mxu0 %v8287_v3 }
 0x2aa   :  { %6042 = vmatpush3.bf16.msra.mxu1 %v6466_v2 }
 0x2ab   :  { %6043 = vmatprep.subr.bf16.mxu1 %v8287_v3 }
 0x2ac   :  { %6060 = vmatpush3.bf16.msra.mxu0 %v6473_v21 }
 0x2ad   :  { %6061 = vmatprep.subr.bf16.mxu0 %v8287_v3 }
 0x2ae   :  { %6044 = vmatpush3.bf16.msra.mxu1 %v6467_v53 }
 0x2af   :  { %6045 = vmatprep.subr.bf16.mxu1 %v8287_v3 }
 0x2b0   :  { %6062 = vmatpush3.bf16.msra.mxu0 %v6474_v7 }
 0x2b1   :  { %6063 = vmatprep.subr.bf16.mxu0 %v8287_v3 }
 0x2b2   :  { %6046 = vmatpush3.bf16.msra.mxu1 %v6468_v0 }
 0x2b3   :  { %6047 = vmatprep.subr.bf16.mxu1 %v8287_v3 }
 0x2b4   :  { %6064 = vmatpush3.bf16.msra.mxu0 %v6475_v49 }
 0x2b5   :  { %6065 = vmatprep.subr.bf16.mxu0 %v8287_v3 }
 0x2b6   :  { %6048 = vmatpush3.bf16.msra.mxu1 %v6469_v24 }
 0x310   :  { %v2844_v10 = vpop.f32.mrb[208].mxu1 }
 0x311   :  { %v5847_v42 = vpop.f32.mrb[209].mxu1 }
 0x312   :  { %v2789_v61 = vpop.f32.mrb[208].mxu0  ;;  %v2847_v14 = vpop.f32.mrb[210].mxu1 }
 0x313   :  { %v2845_v35 = vadd.f32 %v2844_v10, %v2789_v61  ;;  %v5839_v48 = vpop.f32.mrb[209].mxu0  ;;  %v5848_v16 = vpop.f32.mrb[211].mxu1 }
 0x314   :  { %v2792_v9 = vpop.f32.mrb[210].mxu0 }
 0x315   :  { %v5840_v28 = vpop.f32.mrb[211].mxu0 }
 0x31a   :  { %v2904_v15 = vpop.f32.mrb[212].mxu0  ;;  %v2965_v55 = vpop.f32.mrb[212].mxu1 }
 0x31b   :  { %v2910_v54 = vadd.f32 %v2904_v15, %v2845_v35  ;;  %v5855_v13 = vpop.f32.mrb[213].mxu0  ;;  %v5863_v33 = vpop.f32.mrb[213].mxu1 }
 0x31c   :  { %v2907_v52 = vpop.f32.mrb[214].mxu0  ;;  %v2968_v47 = vpop.f32.mrb[214].mxu1 }
 0x31d   :  { %v2971_v30 = vadd.f32 %v2965_v55, %v2910_v54  ;;  %v5856_v63 = vpop.f32.mrb[215].mxu0  ;;  %v5864_v18 = vpop.f32.mrb[215].mxu1 }
 0x322   :  { %v3026_v58 = vpop.f32.mrb[216].mxu0  ;;  %v3087_v29 = vpop.f32.mrb[216].mxu1 }
 0x323   :  { %v3032_v41 = vadd.f32 %v3026_v58, %v2971_v30  ;;  %v5871_v32 = vpop.f32.mrb[217].mxu0  ;;  %v5879_v25 = vpop.f32.mrb[217].mxu1 }
 0x324   :  { %v3029_v44 = vpop.f32.mrb[218].mxu0  ;;  %v3090_v62 = vpop.f32.mrb[218].mxu1 }
 0x325   :  { %v3093_v6 = vadd.f32 %v3087_v29, %v3032_v41  ;;  %v5872_v60 = vpop.f32.mrb[219].mxu0  ;;  %v5880_v19 = vpop.f32.mrb[219].mxu1 }
 0x32a   :  { %v3148_v11 = vpop.f32.mrb[220].mxu0  ;;  %v3209_v34 = vpop.f32.mrb[220].mxu1 }
 0x32b   :  { %v3154_v17 = vadd.f32 %v3148_v11, %v3093_v6  ;;  %v5887_v4 = vpop.f32.mrb[221].mxu0  ;;  %v5895_v45 = vpop.f32.mrb[221].mxu1 }
 0x32c   :  { %v3151_v23 = vpop.f32.mrb[222].mxu0  ;;  %v3212_v39 = vpop.f32.mrb[222].mxu1 }
 0x32d   :  { %v3215_v1 = vadd.f32 %v3209_v34, %v3154_v17  ;;  %v5888_v36 = vpop.f32.mrb[223].mxu0  ;;  %v5896_v59 = vpop.f32.mrb[223].mxu1 }
 0x332   :  { %v3270_v56 = vpop.f32.mrb[224].mxu0  ;;  %v3331_v57 = vpop.f32.mrb[224].mxu1 }
 0x333   :  { %v3276_v43 = vadd.f32 %v3270_v56, %v3215_v1  ;;  %v5903_v20 = vpop.f32.mrb[225].mxu0  ;;  %v5911_v38 = vpop.f32.mrb[225].mxu1 }
 0x334   :  { %v3273_v50 = vpop.f32.mrb[226].mxu0  ;;  %v3334_v40 = vpop.f32.mrb[226].mxu1 }
 0x335   :  { %v3337_v5 = vadd.f32 %v3331_v57, %v3276_v43  ;;  %v5904_v46 = vpop.f32.mrb[227].mxu0  ;;  %v5912_v31 = vpop.f32.mrb[227].mxu1 }
 0x33a   :  { %v3392_v22 = vpop.f32.mrb[228].mxu0  ;;  %v3453_v37 = vpop.f32.mrb[228].mxu1 }
 0x33b   :  { %v3398_v51 = vadd.f32 %v3392_v22, %v3337_v5  ;;  %v5919_v12 = vpop.f32.mrb[229].mxu0  ;;  %v5927_v2 = vpop.f32.mrb[229].mxu1 }
 0x33c   :  { %v3395_v53 = vpop.f32.mrb[230].mxu0  ;;  %v3456_v0 = vpop.f32.mrb[230].mxu1 }
 0x33d   :  { %v3459_v24 = vadd.f32 %v3453_v37, %v3398_v51  ;;  %v5920_v8 = vpop.f32.mrb[231].mxu0  ;;  %v5928_v27 = vpop.f32.mrb[231].mxu1 }
 0x33e   :  { %v4969_v8 = vld [vmem:[%s8237_s4] ss:$0 sm:$0xff] }
 0x342   :  { %v3514_v26 = vpop.f32.mrb[232].mxu0  ;;  %v3575_v21 = vpop.f32.mrb[232].mxu1 }
 0x343   :  { %v3520_v7 = vadd.f32 %v3514_v26, %v3459_v24  ;;  %v5935_v49 = vpop.f32.mrb[233].mxu0  ;;  %v5943_v10 = vpop.f32.mrb[233].mxu1 }
 0x344   :  { %v3517_v42 = vpop.f32.mrb[234].mxu0  ;;  %v3578_v61 = vpop.f32.mrb[234].mxu1 }
 0x345   :  { %v3581_v14 = vadd.f32 %v3575_v21, %v3520_v7  ;;  %v5936_v35 = vpop.f32.mrb[235].mxu0  ;;  %v5944_v48 = vpop.f32.mrb[235].mxu1  ;;  %v6476_v61 = vld [vmem:[%s8240_s7 + $0x30] sm:$0xff]  }
 0x346   :  { %6066 = vmatpush3.bf16.msra.mxu0 %v6476_v61  ;;  %v4970_v35 = vld [vmem:[%s8239_s6] ss:$0 sm:$0xff]  ;;  %s6510_s6 = scalar_lea.vmem %s4496_s19, 128 }
 0x347   :  { %6067 = vmatprep.subr.bf16.mxu0 %v8287_v3  ;;  %v4979_v3 = vld [vmem:[%s8241_s8] ss:$0 sm:$0xff]  ;;  %p6511_p0 = scmp.ne.s32.totalorder %s4496_s19, %s6510_s6  ;;  %p6516_p2 = scmp.lt.s32.totalorder %s6510_s6, %s6510_s6 }
 0x349   :  { %p6517_p3 = por %p6516_p2, %p6515_p1 }
 0x34a   :  { %v3636_v16 = vpop.f32.mrb[236].mxu0  ;;  %v3697_v9 = vpop.f32.mrb[236].mxu1 }
 0x34b   :  { %v3642_v28 = vadd.f32 %v3636_v16, %v3581_v14  ;;  %v5951_v15 = vpop.f32.mrb[237].mxu0  ;;  %v5959_v55 = vpop.f32.mrb[237].mxu1  ;;  %v6477_v14 = vld [vmem:[%s8240_s7 + $0x38] sm:$0xff]   ;;  %p6518_p4 = pnand %p6517_p3, %p6511_p0 }
 0x34c   :  { %v3639_v54 = vpop.f32.mrb[238].mxu0  ;;  %v3700_v13 = vpop.f32.mrb[238].mxu1  ;;  %6068 = vmatpush3.bf16.msra.mxu0 %v6477_v14 }
 0x34d   :  { %v3703_v33 = vadd.f32 %v3697_v9, %v3642_v28  ;;  %v5952_v52 = vpop.f32.mrb[239].mxu0  ;;  %v5960_v47 = vpop.f32.mrb[239].mxu1 }
 0x352   :  { %v3758_v30 = vpop.f32.mrb[240].mxu0  ;;  %v3819_v63 = vpop.f32.mrb[240].mxu1 }
 0x353   :  { %v3764_v18 = vadd.f32 %v3758_v30, %v3703_v33  ;;  %v5967_v58 = vpop.f32.mrb[241].mxu0  ;;  %v5975_v29 = vpop.f32.mrb[241].mxu1 }
 0x354   :  { %v3761_v41 = vpop.f32.mrb[242].mxu0  ;;  %v3822_v32 = vpop.f32.mrb[242].mxu1 }
 0x355   :  { %v3825_v25 = vadd.f32 %v3819_v63, %v3764_v18  ;;  %v5968_v44 = vpop.f32.mrb[243].mxu0  ;;  %v5976_v62 = vpop.f32.mrb[243].mxu1 }
 0x35a   :  { %v3880_v6 = vpop.f32.mrb[244].mxu0  ;;  %v3941_v60 = vpop.f32.mrb[244].mxu1 }
 0x35b   :  { %v3886_v19 = vadd.f32 %v3880_v6, %v3825_v25  ;;  %v5983_v11 = vpop.f32.mrb[245].mxu0  ;;  %v5991_v34 = vpop.f32.mrb[245].mxu1 }
 0x35c   :  { %v3883_v17 = vpop.f32.mrb[246].mxu0  ;;  %v3944_v4 = vpop.f32.mrb[246].mxu1 }
 0x35d   :  { %v3947_v45 = vadd.f32 %v3941_v60, %v3886_v19  ;;  %v5984_v23 = vpop.f32.mrb[247].mxu0  ;;  %v5992_v39 = vpop.f32.mrb[247].mxu1 }
 0x362   :  { %v4002_v1 = vpop.f32.mrb[248].mxu0  ;;  %v4063_v36 = vpop.f32.mrb[248].mxu1 }
 0x363   :  { %v4008_v59 = vadd.f32 %v4002_v1, %v3947_v45  ;;  %v5999_v56 = vpop.f32.mrb[249].mxu0  ;;  %v6007_v57 = vpop.f32.mrb[249].mxu1 }
 0x364   :  { %v4005_v43 = vpop.f32.mrb[250].mxu0  ;;  %v4066_v20 = vpop.f32.mrb[250].mxu1 }
 0x365   :  { %v4069_v38 = vadd.f32 %v4063_v36, %v4008_v59  ;;  %v6000_v50 = vpop.f32.mrb[251].mxu0  ;;  %v6008_v40 = vpop.f32.mrb[251].mxu1 }
 0x36a   :  { %v4124_v5 = vpop.f32.mrb[252].mxu0  ;;  %v4185_v46 = vpop.f32.mrb[252].mxu1 }
 0x36b   :  { %v4130_v31 = vadd.f32 %v4124_v5, %v4069_v38  ;;  %v6015_v22 = vpop.f32.mrb[253].mxu0  ;;  %v6023_v37 = vpop.f32.mrb[253].mxu1 }
 0x36c   :  { %v4127_v51 = vpop.f32.mrb[254].mxu0  ;;  %v4188_v12 = vpop.f32.mrb[254].mxu1 }
 0x36d   :  { %v4191_v2 = vadd.f32 %v4185_v46, %v4130_v31  ;;  %v6016_v53 = vpop.f32.mrb[255].mxu0  ;;  %v6024_v0 = vpop.f32.mrb[255].mxu1 }
 0x372   :  { %v4246_v24 = vpop.f32.mrb[0].mxu0 }
 0x373   :  { %v4252_v27 = vadd.f32 %v4246_v24, %v4191_v2  ;;  %v6031_v26 = vpop.f32.mrb[1].mxu0 }
 0x374   :  { %v4249_v21 = vpop.f32.mrb[2].mxu0 }
 0x375   :  { %v4260_v7 = vadd.f32 %v4969_v8, %v4252_v27  ;;  %v6032_v49 = vpop.f32.mrb[3].mxu0 }
 0x377   :  { %v4261_v10 = vmax.f32 %v4260_v7, 0.0 }
 0x379   :  { %v4262_v42 = vpack.c.bf16 %v4261_v10, %v4261_v10 }
 0x37b   :  { %6050 = vmatmul.mubr.bf16.vlgmr.msra.gmra.mrb[0].mxu1 %v4262_v42 }
 0x44e   :  { %v4368_v48 = vpop.f32.mrb[0].mxu1 }
 0x44f   :  { %v4369_v16 = vadd.f32 %v4970_v35, %v4368_v48  ;;  %v6051_v9 = vpop.f32.mrb[1].mxu1 }
 0x450   :  { %v4371_v28 = vpop.f32.mrb[2].mxu1 }
 0x451   :  { %v4374_v15 = vmax.f32 %v4369_v16, 0.0  ;;  %v6052_v55 = vpop.f32.mrb[3].mxu1 }
 0x453   :  { %v4375_v54 = vpack.c.bf16 %v4374_v15, %v4374_v15 }
 0x455   :  { %6070 = vmatmul.mubr.bf16.vlgmr.msra.gmra.mrb[4].mxu0 %v4375_v54 }
 0x528   :  { %v4481_v13 = vpop.f32.mrb[4].mxu0 }
 0x529   :  { %v4482_v33 = vadd.f32 %v4979_v3, %v4481_v13  ;;  %v6071_v52 = vpop.f32.mrb[5].mxu0 }
 0x52a   :  { %v4484_v47 = vpop.f32.mrb[6].mxu0 }
 0x52b   :  { %v6072_v30 = vpop.f32.mrb[7].mxu0  ;;  %4488 = vst.msk [vmem:[#allocation2] sm:$0xff] %vm4487_vm2, %v4482_v33 }
 0x52c   :  { %6521 = shalt.err (!%p6518_p4)
}
 0x52d   :  { %s6522_s8 = scalar_lea.hbm %s8242_s9, 128 }
 0x52e   :  { %p6523_p5 = scmp.ne.s32.totalorder %s8242_s9, %s6522_s8  ;;  %p6526_p6 = scmp.lt.u32.totalorder %s6522_s8, %s8242_s9 }
 0x530   :  { %p6528_p7 = pnand %p6526_p6, %p6523_p5 }
 0x532   :  { %6531 = shalt.err (!%p6528_p7)
}
 0x533   :  { %4498 = dma.vmem_to_hbm [thread:$0]  %s4496_s19, 128, %s8242_s9, [#allocation3]  }
 0x534   :  { %6532 = dma.done.wait [#allocation3], 128  }
 0x535   :  { %6533 = vsyncadd [#allocation3], 4294967168 }
 0x536   :  { %4502 = vsyncpa [#allocation3], 1 }

</bundles_post_ra>
